<compile_context>
chip_gen: v5e
topology: v5e:2x2
jax: 0.10.0
libtpu: 0.0.40
codegen_flags: <defaults>
</compile_context>

<pallas_src>
import math

import jax
import jax.numpy as jnp
import numpy as np
from jax.experimental import pallas as pl
from jax.experimental.pallas import tpu as pltpu

C = 30      # channels, fixed by the module (Conv2d(30, 30, ...))
KH = 10     # temporal conv kernel height
POOL = 3    # AvgPool2d kernel/stride along H


# ----------------------------------------------------------------------------
# host-side constant construction (numpy)
# ----------------------------------------------------------------------------
def make_interp_matrix(h_out, h_in, align_corners=False):
    """Row-interpolation matrix (h_out, h_in) for bilinear upsample along H."""
    if align_corners and h_out > 1:
        src = np.arange(h_out, dtype=np.float64) * ((h_in - 1) / (h_out - 1))
    else:
        src = (np.arange(h_out, dtype=np.float64) + 0.5) * (h_in / h_out) - 0.5
    src = np.clip(src, 0.0, h_in - 1)
    lo = np.floor(src).astype(np.int64)
    hi = np.minimum(lo + 1, h_in - 1)
    w_hi = (src - lo).astype(np.float32)
    w_lo = 1.0 - w_hi
    m = np.zeros((h_out, h_in), np.float32)
    rows = np.arange(h_out)
    m[rows, lo] += w_lo
    m[rows, hi] += w_hi
    return m


def make_pool_taps(h_in):
    """Per-tap (conv window + AvgPool) row matrices, shape (KH, Hp, h_in).

    pooled_k[p] = mean_{j<3} x[3p + j + k]   so   out[p] = sum_k pooled_k[p] @ W_k.
    """
    hc = h_in - KH + 1
    hp = hc // POOL
    pt = np.zeros((KH, hp, h_in), np.float32)
    for k in range(KH):
        for p in range(hp):
            for j in range(POOL):
                pt[k, p, POOL * p + j + k] += 1.0 / POOL
    return pt


def _batch_block_diag_taps(p_kph, bt):
    """(KH, Hp, Hi) -> (KH*bt*Hp, bt*Hi), block-diagonal over the batch tile.

    Row order (tap, image, pooled-row), column order (image, height): the rows
    for one tap across the whole tile are contiguous, so the channel-mix
    matmul runs with M = bt*Hp.  NOTE: scales as bt^2 (documented limit).
    """
    kh, hp, hi = p_kph.shape
    eye = np.eye(bt, dtype=np.float32)
    big = np.einsum('bc,kph->kbpch', eye, p_kph)
    return big.reshape(kh * bt * hp, bt * hi)


def _batch_block_diag(m_oh, bt):
    """(Ho, Hi) -> (bt*Ho, bt*Hi): rows (image, out-row), cols (image, in-row)."""
    ho, hi = m_oh.shape
    eye = np.eye(bt, dtype=np.float32)
    big = np.einsum('bc,oh->boch', eye, m_oh)
    return big.reshape(bt * ho, bt * hi)


# ----------------------------------------------------------------------------
# Pallas kernel
# ----------------------------------------------------------------------------
def _feature_blending_kernel(x_ref, p1_ref, p2_ref, w_ref, sc_ref, sh_ref,
                             m1_ref, m2_ref, o1_ref, o2_ref):
    """One batch tile of bt images.

    x_ref : (bt*H,  W*C)        rows (image, height), lanes (width, channel)
    p1/p2 : (KH*bt*Hp, bt*Hi)   conv-window + avgpool rows, block-diag over tile
    w_ref : (KH, W*C, W*C)      block-diagonal (over W) channel-mix weights
    sc/sh : (1, W*C)            folded BN scale / (BN shift + conv bias), f32
    m1/m2 : (bt*H, bt*Hp)       bilinear row-interp, block-diag over tile
    o1/o2 : (bt*H, W*C)         upsampled stage outputs (f32)
    """
    mm = x_ref.dtype
    wc = w_ref.shape[-1]
    scale = sc_ref[...]            # hoisted: read once per grid step
    shift = sh_ref[...]

    def temporal_conv(x2d, p_ref):
        # Conv2d(30,30,(10,1)) + AvgPool2d((3,1)) + BN + ELU for the whole tile.
        m_rows = p_ref.shape[0] // KH            # = bt * Hp
        # one pooled-window matmul for all taps and all images in the tile
        pooled = jnp.dot(p_ref[...], x2d,
                         preferred_element_type=jnp.float32).astype(mm)
        # channel mix: one matmul per tap, batched over (image, pooled-row)
        acc = jnp.zeros((m_rows, wc), jnp.float32)
        for k in range(KH):
            acc = acc + jnp.dot(pooled[k * m_rows:(k + 1) * m_rows, :], w_ref[k],
                                preferred_element_type=jnp.float32)
        y = acc * scale + shift                  # eval-mode BN (+ folded bias), f32
        y = jnp.where(y > 0, y, jnp.exp(jnp.minimum(y, 0.0)) - 1.0)   # ELU, f32
        return y.astype(mm)                      # (bt*Hp, W*C)

    out1 = temporal_conv(x_ref[...], p1_ref)     # (bt*Hp1, W*C)
    out2 = temporal_conv(out1, p2_ref)           # (bt*Hp2, W*C)

    # bilinear upsample along H: one matmul per stage per grid step.
    # (width interpolation is exact identity since the (10,1)/(3,1) stages
    # preserve W; the wrapper asserts that.)
    o1_ref[...] = jnp.dot(m1_ref[...], out1,
                          preferred_element_type=jnp.float32).astype(o1_ref.dtype)
    o2_ref[...] = jnp.dot(m2_ref[...], out2,
                          preferred_element_type=jnp.float32).astype(o2_ref.dtype)


# ----------------------------------------------------------------------------
# wrapper
# ----------------------------------------------------------------------------
def feature_blending_forward(x_nchw, conv_w, conv_b, bn_gamma, bn_beta,
                             bn_mean, bn_var, eps=1e-5, batch_tile=16,
                             matmul_dtype=jnp.bfloat16, align_corners=False):
    N, Cc, H, W = x_nchw.shape
    assert Cc == C
    # width-1 conv + width-1 pool => W is preserved, so the bilinear upsample
    # only needs to interpolate along H (width interpolation is the identity).
    assert conv_w.shape == (C, C, KH, 1), conv_w.shape

    Hc1 = H - KH + 1
    Hp1 = Hc1 // POOL
    Hc2 = Hp1 - KH + 1
    Hp2 = Hc2 // POOL
    assert Hc1 >= POOL and Hc2 >= POOL, "H too small for two temporal_conv stages"

    WC = W * C
    x_f32 = x_nchw.astype(jnp.float32)

    # ---- batch tile: amortize ~0.35us/grid-step and feed the batched-M matmuls;
    #      keep >=2 grid steps when N is large and keep the block sublane dim
    #      (bt*H) a multiple of 8. ----
    if N <= batch_tile:
        bt = N                                   # single grid step (full-extent block)
    else:
        g = 8 // math.gcd(H, 8)                  # smallest bt with (bt*H) % 8 == 0
        bt = max(g, (batch_tile // g) * g)
    n_pad = int(pl.cdiv(N, bt)) * bt
    grid = n_pad // bt

    # lane-dense input: rows (image, height), lanes (width, channel)
    x_rows = jnp.transpose(x_f32, (0, 2, 3, 1)).reshape(N, H, WC)
    if n_pad != N:
        x_rows = jnp.pad(x_rows, ((0, n_pad - N), (0, 0), (0, 0)))
    x_flat = x_rows.reshape(n_pad * H, WC).astype(matmul_dtype)

    # ---- parameter preprocessing (host / XLA glue) ----
    # per-tap channel-mix weights (KH, Cin, Cout)
    w_taps = jnp.transpose(conv_w[:, :, :, 0], (2, 1, 0)).astype(jnp.float32)
    # block-diagonal lane-dense weights (KH, W*C, W*C).
    # NOTE: W x redundant MXU FLOPs and W^2*KH*C^2 memory -- acceptable for the
    # module's W <= ~16; restructure with C on the lane axis for larger W.
    eye_w = jnp.eye(W, dtype=jnp.float32)
    w_bd = jnp.einsum('pq,kio->kpiqo', eye_w, w_taps).reshape(KH, WC, WC)
    w_bd = w_bd.astype(matmul_dtype)

    inv_std = (bn_gamma / jnp.sqrt(bn_var + eps)).astype(jnp.float32)
    shift_c = (bn_beta + inv_std * (conv_b - bn_mean)).astype(jnp.float32)
    scale_t = jnp.tile(inv_std.reshape(1, C), (1, W))            # (1, W*C)
    shift_t = jnp.tile(shift_c.reshape(1, C), (1, W))            # (1, W*C)

    # conv+pool and interp matrices, block-diagonal over the batch tile so the
    # kernel only ever issues plain 2-D matmuls (no in-kernel relayouts).
    p1 = jnp.asarray(_batch_block_diag_taps(make_pool_taps(H), bt),
                     dtype=matmul_dtype)                         # (KH*bt*Hp1, bt*H)
    p2 = jnp.asarray(_batch_block_diag_taps(make_pool_taps(Hp1), bt),
                     dtype=matmul_dtype)                         # (KH*bt*Hp2, bt*Hp1)
    m1 = jnp.asarray(_batch_block_diag(make_interp_matrix(H, Hp1, align_corners), bt),
                     dtype=matmul_dtype)                         # (bt*H, bt*Hp1)
    m2 = jnp.asarray(_batch_block_diag(make_interp_matrix(H, Hp2, align_corners), bt),
                     dtype=matmul_dtype)                         # (bt*H, bt*Hp2)

    rows_blk = bt * H
    out_sds = jax.ShapeDtypeStruct((n_pad * H, WC), jnp.float32)

    o1, o2 = pl.pallas_call(
        _feature_blending_kernel,
        out_shape=(out_sds, out_sds),
        grid=(grid,),
        in_specs=[
            pl.BlockSpec((rows_blk, WC), lambda i: (i, 0)),
            pl.BlockSpec(p1.shape, lambda i: (0, 0)),
            pl.BlockSpec(p2.shape, lambda i: (0, 0)),
            pl.BlockSpec((KH, WC, WC), lambda i: (0, 0, 0)),
            pl.BlockSpec((1, WC), lambda i: (0, 0)),
            pl.BlockSpec((1, WC), lambda i: (0, 0)),
            pl.BlockSpec(m1.shape, lambda i: (0, 0)),
            pl.BlockSpec(m2.shape, lambda i: (0, 0)),
        ],
        out_specs=(
            pl.BlockSpec((rows_blk, WC), lambda i: (i, 0)),
            pl.BlockSpec((rows_blk, WC), lambda i: (i, 0)),
        ),
        compiler_params=pltpu.CompilerParams(dimension_semantics=("parallel",)),
    )(x_flat, p1, p2, w_bd, scale_t, shift_t, m1, m2)

    # ---- final layout plumbing in the wrapper (XLA transposes at HBM roofline).
    # (Emitting branch layout directly from the kernel was considered; left to
    #  XLA since the kernel is matmul-bound at these sizes.) ----
    o1 = o1.reshape(n_pad, H, W, C)[:N]
    o2 = o2.reshape(n_pad, H, W, C)[:N]
    branch0 = jnp.transpose(x_f32, (0, 3, 2, 1))   # x.permute(0,3,2,1): (N, W, H, C)
    branch1 = jnp.transpose(o1, (0, 2, 1, 3))      # (N, W, H, C)
    branch2 = jnp.transpose(o2, (0, 2, 1, 3))      # (N, W, H, C)
    return jnp.concatenate([branch0, branch1, branch2], axis=1)   # (N, 3W, H, C)


# ----------------------------------------------------------------------------
# pure-JAX reference (mirrors the PyTorch forward, eval-mode BN)
# ----------------------------------------------------------------------------
def reference_forward(x_nchw, conv_w, conv_b, gamma, beta, mean, var, eps=1e-5,
                      align_corners=False):
    N, Cc, H, W = x_nchw.shape

    def tconv(inp):
        Hi = inp.shape[2]
        Hc = Hi - KH + 1
        conv = jnp.zeros((inp.shape[0], Cc, Hc, inp.shape[3]), jnp.float32)
        for k in range(KH):
            conv = conv + jnp.einsum('oi,nihw->nohw', conv_w[:, :, k, 0],
                                     inp[:, :, k:k + Hc, :])
        conv = conv + conv_b[None, :, None, None]
        Hp = Hc // POOL
        r = conv[:, :, :Hp * POOL, :].reshape(inp.shape[0], Cc, Hp, POOL,
                                              inp.shape[3])
        pooled = r.mean(axis=3)
        y = (gamma[None, :, None, None] * (pooled - mean[None, :, None, None])
             / jnp.sqrt(var[None, :, None, None] + eps) + beta[None, :, None, None])
        return jnp.where(y > 0, y, jnp.exp(y) - 1.0)

    out1 = tconv(x_nchw)
    out2 = tconv(out1)
    m1 = jnp.asarray(make_interp_matrix(H, out1.shape[2], align_corners))
    m2 = jnp.asarray(make_interp_matrix(H, out2.shape[2], align_corners))
    up1 = jnp.einsum('hk,nckw->nwhc', m1, out1)
    up2 = jnp.einsum('hk,nckw->nwhc', m2, out2)
    xp = jnp.transpose(x_nchw, (0, 3, 2, 1))
    return jnp.concatenate([xp, up1, up2], axis=1)


if __name__ == "__main__":
    key = jax.random.PRNGKey(0)
    ks = jax.random.split(key, 6)
    N, H, W = 2, 54, 8            # H=54 -> Hp1=15 -> Hp2=2 (both conv stages valid)
    x = jax.random.normal(ks[0], (N, C, H, W), jnp.float32)
    conv_w = 0.1 * jax.random.normal(ks[1], (C, C, KH, 1), jnp.float32)
    conv_b = 0.05 * jax.random.normal(ks[2], (C,), jnp.float32)
    bn_gamma = 1.0 + 0.1 * jax.random.normal(ks[3], (C,), jnp.float32)
    bn_beta = 0.1 * jax.random.normal(ks[4], (C,), jnp.float32)
    bn_mean = 0.1 * jax.random.normal(ks[5], (C,), jnp.float32)
    bn_var = jnp.ones((C,), jnp.float32)

    y_ref = reference_forward(x, conv_w, conv_b, bn_gamma, bn_beta, bn_mean, bn_var)

    # 1) f32 matmuls: tight numerical check against the pure-JAX reference.
    y32 = feature_blending_forward(x, conv_w, conv_b, bn_gamma, bn_beta, bn_mean,
                                   bn_var, matmul_dtype=jnp.float32)
    y32 = jax.block_until_ready(y32)
    assert y32.shape == (N, 3 * W, H, C), y32.shape
    err32 = float(jnp.max(jnp.abs(y32 - y_ref)))
    assert jnp.allclose(y32, y_ref, atol=2e-4, rtol=2e-4), err32

    # 2) bf16 matmuls (default performance config): loose check.
    ybf = feature_blending_forward(x, conv_w, conv_b, bn_gamma, bn_beta, bn_mean,
                                   bn_var)
    ybf = jax.block_until_ready(ybf)
    errbf = float(jnp.max(jnp.abs(ybf - y_ref)))
    assert jnp.allclose(ybf, y_ref, atol=1e-1, rtol=1e-1), errbf

    # 3) multi-grid-step + batch-padding path (f32, tight check).
    N2 = 10
    x2 = jax.random.normal(jax.random.PRNGKey(1), (N2, C, H, W), jnp.float32)
    y2_ref = reference_forward(x2, conv_w, conv_b, bn_gamma, bn_beta, bn_mean, bn_var)
    y2 = feature_blending_forward(x2, conv_w, conv_b, bn_gamma, bn_beta, bn_mean,
                                  bn_var, batch_tile=4, matmul_dtype=jnp.float32)
    y2 = jax.block_until_ready(y2)
    err2 = float(jnp.max(jnp.abs(y2 - y2_ref)))
    assert jnp.allclose(y2, y2_ref, atol=2e-4, rtol=2e-4), err2

    print("KERNEL_OK")
</pallas_src>

<mosaic_0001>
module attributes {stable_mosaic.version = 11 : i64} {
  func.func @_feature_blending_kernel(%arg0: i32, %arg1: memref<108x240xf32, #tpu.memory_space<vmem>>, %arg2: memref<300x108xf32, #tpu.memory_space<vmem>>, %arg3: memref<40x30xf32, #tpu.memory_space<vmem>>, %arg4: memref<10x240x240xf32, #tpu.memory_space<vmem>>, %arg5: memref<1x240xf32, #tpu.memory_space<vmem>>, %arg6: memref<1x240xf32, #tpu.memory_space<vmem>>, %arg7: memref<108x30xf32, #tpu.memory_space<vmem>>, %arg8: memref<108x4xf32, #tpu.memory_space<vmem>>, %arg9: memref<108x240xf32, #tpu.memory_space<vmem>>, %arg10: memref<108x240xf32, #tpu.memory_space<vmem>>) attributes {dimension_semantics = [#tpu.dimension_semantics<parallel>], iteration_bounds = array<i64: 1>, scalar_prefetch = 0 : i64, scratch_operands = 0 : i64, tpu.core_type = #tpu.core_type<tc>, window_params = [{transform_indices = @transform_0, window_bounds = array<i64: 108, 240>}, {pipeline_mode = #tpu.pipeline_mode<synchronous>, transform_indices = @transform_1, window_bounds = array<i64: 300, 108>}, {pipeline_mode = #tpu.pipeline_mode<synchronous>, transform_indices = @transform_2, window_bounds = array<i64: 40, 30>}, {pipeline_mode = #tpu.pipeline_mode<synchronous>, transform_indices = @transform_3, window_bounds = array<i64: 10, 240, 240>}, {pipeline_mode = #tpu.pipeline_mode<synchronous>, transform_indices = @transform_4, window_bounds = array<i64: 1, 240>}, {pipeline_mode = #tpu.pipeline_mode<synchronous>, transform_indices = @transform_5, window_bounds = array<i64: 1, 240>}, {pipeline_mode = #tpu.pipeline_mode<synchronous>, transform_indices = @transform_6, window_bounds = array<i64: 108, 30>}, {pipeline_mode = #tpu.pipeline_mode<synchronous>, transform_indices = @transform_7, window_bounds = array<i64: 108, 4>}, {transform_indices = @transform_8, window_bounds = array<i64: 108, 240>}, {transform_indices = @transform_9, window_bounds = array<i64: 108, 240>}]} {
    %c0 = arith.constant 0 : index
    %c0_0 = arith.constant 0 : index
    %0 = vector.load %arg5[%c0, %c0_0] : memref<1x240xf32, #tpu.memory_space<vmem>>, vector<1x240xf32>
    %c0_1 = arith.constant 0 : index
    %c0_2 = arith.constant 0 : index
    %1 = vector.load %arg6[%c0_1, %c0_2] : memref<1x240xf32, #tpu.memory_space<vmem>>, vector<1x240xf32>
    %c0_3 = arith.constant 0 : index
    %c0_4 = arith.constant 0 : index
    %2 = vector.load %arg1[%c0_3, %c0_4] : memref<108x240xf32, #tpu.memory_space<vmem>>, vector<108x240xf32>
    %c0_5 = arith.constant 0 : index
    %c0_6 = arith.constant 0 : index
    %3 = vector.load %arg2[%c0_5, %c0_6] : memref<300x108xf32, #tpu.memory_space<vmem>>, vector<300x108xf32>
    %cst = arith.constant dense<0.000000e+00> : vector<300x240xf32>
    %4 = tpu.matmul %3, %2, %cst {dimension_numbers = #tpu.dot_dimension_numbers<[1], [0], [0], [1], [0, 0, 1, 1], [], []>} : vector<300x108xf32>, vector<108x240xf32>, vector<300x240xf32> -> vector<300x240xf32>
    %cst_7 = arith.constant 0.000000e+00 : f32
    %5 = vector.broadcast %cst_7 : f32 to vector<30x240xf32>
    %6 = vector.extract_strided_slice %4 {offsets = [0, 0], sizes = [30, 240], strides = [1, 1]} : vector<300x240xf32> to vector<30x240xf32>
    %c0_8 = arith.constant 0 : index
    %c0_9 = arith.constant 0 : index
    %c0_10 = arith.constant 0 : index
    %7 = vector.load %arg4[%c0_8, %c0_9, %c0_10] : memref<10x240x240xf32, #tpu.memory_space<vmem>>, vector<1x240x240xf32>
    %8 = vector.shape_cast %7 : vector<1x240x240xf32> to vector<240x240xf32>
    %cst_11 = arith.constant dense<0.000000e+00> : vector<30x240xf32>
    %9 = tpu.matmul %6, %8, %cst_11 {dimension_numbers = #tpu.dot_dimension_numbers<[1], [0], [0], [1], [0, 0, 1, 1], [], []>} : vector<30x240xf32>, vector<240x240xf32>, vector<30x240xf32> -> vector<30x240xf32>
    %10 = arith.addf %5, %9 : vector<30x240xf32>
    %11 = vector.extract_strided_slice %4 {offsets = [30, 0], sizes = [30, 240], strides = [1, 1]} : vector<300x240xf32> to vector<30x240xf32>
    %c1 = arith.constant 1 : index
    %c0_12 = arith.constant 0 : index
    %c0_13 = arith.constant 0 : index
    %12 = vector.load %arg4[%c1, %c0_12, %c0_13] : memref<10x240x240xf32, #tpu.memory_space<vmem>>, vector<1x240x240xf32>
    %13 = vector.shape_cast %12 : vector<1x240x240xf32> to vector<240x240xf32>
    %cst_14 = arith.constant dense<0.000000e+00> : vector<30x240xf32>
    %14 = tpu.matmul %11, %13, %cst_14 {dimension_numbers = #tpu.dot_dimension_numbers<[1], [0], [0], [1], [0, 0, 1, 1], [], []>} : vector<30x240xf32>, vector<240x240xf32>, vector<30x240xf32> -> vector<30x240xf32>
    %15 = arith.addf %10, %14 : vector<30x240xf32>
    %16 = vector.extract_strided_slice %4 {offsets = [60, 0], sizes = [30, 240], strides = [1, 1]} : vector<300x240xf32> to vector<30x240xf32>
    %c2 = arith.constant 2 : index
    %c0_15 = arith.constant 0 : index
    %c0_16 = arith.constant 0 : index
    %17 = vector.load %arg4[%c2, %c0_15, %c0_16] : memref<10x240x240xf32, #tpu.memory_space<vmem>>, vector<1x240x240xf32>
    %18 = vector.shape_cast %17 : vector<1x240x240xf32> to vector<240x240xf32>
    %cst_17 = arith.constant dense<0.000000e+00> : vector<30x240xf32>
    %19 = tpu.matmul %16, %18, %cst_17 {dimension_numbers = #tpu.dot_dimension_numbers<[1], [0], [0], [1], [0, 0, 1, 1], [], []>} : vector<30x240xf32>, vector<240x240xf32>, vector<30x240xf32> -> vector<30x240xf32>
    %20 = arith.addf %15, %19 : vector<30x240xf32>
    %21 = vector.extract_strided_slice %4 {offsets = [90, 0], sizes = [30, 240], strides = [1, 1]} : vector<300x240xf32> to vector<30x240xf32>
    %c3 = arith.constant 3 : index
    %c0_18 = arith.constant 0 : index
    %c0_19 = arith.constant 0 : index
    %22 = vector.load %arg4[%c3, %c0_18, %c0_19] : memref<10x240x240xf32, #tpu.memory_space<vmem>>, vector<1x240x240xf32>
    %23 = vector.shape_cast %22 : vector<1x240x240xf32> to vector<240x240xf32>
    %cst_20 = arith.constant dense<0.000000e+00> : vector<30x240xf32>
    %24 = tpu.matmul %21, %23, %cst_20 {dimension_numbers = #tpu.dot_dimension_numbers<[1], [0], [0], [1], [0, 0, 1, 1], [], []>} : vector<30x240xf32>, vector<240x240xf32>, vector<30x240xf32> -> vector<30x240xf32>
    %25 = arith.addf %20, %24 : vector<30x240xf32>
    %26 = vector.extract_strided_slice %4 {offsets = [120, 0], sizes = [30, 240], strides = [1, 1]} : vector<300x240xf32> to vector<30x240xf32>
    %c4 = arith.constant 4 : index
    %c0_21 = arith.constant 0 : index
    %c0_22 = arith.constant 0 : index
    %27 = vector.load %arg4[%c4, %c0_21, %c0_22] : memref<10x240x240xf32, #tpu.memory_space<vmem>>, vector<1x240x240xf32>
    %28 = vector.shape_cast %27 : vector<1x240x240xf32> to vector<240x240xf32>
    %cst_23 = arith.constant dense<0.000000e+00> : vector<30x240xf32>
    %29 = tpu.matmul %26, %28, %cst_23 {dimension_numbers = #tpu.dot_dimension_numbers<[1], [0], [0], [1], [0, 0, 1, 1], [], []>} : vector<30x240xf32>, vector<240x240xf32>, vector<30x240xf32> -> vector<30x240xf32>
    %30 = arith.addf %25, %29 : vector<30x240xf32>
    %31 = vector.extract_strided_slice %4 {offsets = [150, 0], sizes = [30, 240], strides = [1, 1]} : vector<300x240xf32> to vector<30x240xf32>
    %c5 = arith.constant 5 : index
    %c0_24 = arith.constant 0 : index
    %c0_25 = arith.constant 0 : index
    %32 = vector.load %arg4[%c5, %c0_24, %c0_25] : memref<10x240x240xf32, #tpu.memory_space<vmem>>, vector<1x240x240xf32>
    %33 = vector.shape_cast %32 : vector<1x240x240xf32> to vector<240x240xf32>
    %cst_26 = arith.constant dense<0.000000e+00> : vector<30x240xf32>
    %34 = tpu.matmul %31, %33, %cst_26 {dimension_numbers = #tpu.dot_dimension_numbers<[1], [0], [0], [1], [0, 0, 1, 1], [], []>} : vector<30x240xf32>, vector<240x240xf32>, vector<30x240xf32> -> vector<30x240xf32>
    %35 = arith.addf %30, %34 : vector<30x240xf32>
    %36 = vector.extract_strided_slice %4 {offsets = [180, 0], sizes = [30, 240], strides = [1, 1]} : vector<300x240xf32> to vector<30x240xf32>
    %c6 = arith.constant 6 : index
    %c0_27 = arith.constant 0 : index
    %c0_28 = arith.constant 0 : index
    %37 = vector.load %arg4[%c6, %c0_27, %c0_28] : memref<10x240x240xf32, #tpu.memory_space<vmem>>, vector<1x240x240xf32>
    %38 = vector.shape_cast %37 : vector<1x240x240xf32> to vector<240x240xf32>
    %cst_29 = arith.constant dense<0.000000e+00> : vector<30x240xf32>
    %39 = tpu.matmul %36, %38, %cst_29 {dimension_numbers = #tpu.dot_dimension_numbers<[1], [0], [0], [1], [0, 0, 1, 1], [], []>} : vector<30x240xf32>, vector<240x240xf32>, vector<30x240xf32> -> vector<30x240xf32>
    %40 = arith.addf %35, %39 : vector<30x240xf32>
    %41 = vector.extract_strided_slice %4 {offsets = [210, 0], sizes = [30, 240], strides = [1, 1]} : vector<300x240xf32> to vector<30x240xf32>
    %c7 = arith.constant 7 : index
    %c0_30 = arith.constant 0 : index
    %c0_31 = arith.constant 0 : index
    %42 = vector.load %arg4[%c7, %c0_30, %c0_31] : memref<10x240x240xf32, #tpu.memory_space<vmem>>, vector<1x240x240xf32>
    %43 = vector.shape_cast %42 : vector<1x240x240xf32> to vector<240x240xf32>
    %cst_32 = arith.constant dense<0.000000e+00> : vector<30x240xf32>
    %44 = tpu.matmul %41, %43, %cst_32 {dimension_numbers = #tpu.dot_dimension_numbers<[1], [0], [0], [1], [0, 0, 1, 1], [], []>} : vector<30x240xf32>, vector<240x240xf32>, vector<30x240xf32> -> vector<30x240xf32>
    %45 = arith.addf %40, %44 : vector<30x240xf32>
    %46 = vector.extract_strided_slice %4 {offsets = [240, 0], sizes = [30, 240], strides = [1, 1]} : vector<300x240xf32> to vector<30x240xf32>
    %c8 = arith.constant 8 : index
    %c0_33 = arith.constant 0 : index
    %c0_34 = arith.constant 0 : index
    %47 = vector.load %arg4[%c8, %c0_33, %c0_34] : memref<10x240x240xf32, #tpu.memory_space<vmem>>, vector<1x240x240xf32>
    %48 = vector.shape_cast %47 : vector<1x240x240xf32> to vector<240x240xf32>
    %cst_35 = arith.constant dense<0.000000e+00> : vector<30x240xf32>
    %49 = tpu.matmul %46, %48, %cst_35 {dimension_numbers = #tpu.dot_dimension_numbers<[1], [0], [0], [1], [0, 0, 1, 1], [], []>} : vector<30x240xf32>, vector<240x240xf32>, vector<30x240xf32> -> vector<30x240xf32>
    %50 = arith.addf %45, %49 : vector<30x240xf32>
    %51 = vector.extract_strided_slice %4 {offsets = [270, 0], sizes = [30, 240], strides = [1, 1]} : vector<300x240xf32> to vector<30x240xf32>
    %c9 = arith.constant 9 : index
    %c0_36 = arith.constant 0 : index
    %c0_37 = arith.constant 0 : index
    %52 = vector.load %arg4[%c9, %c0_36, %c0_37] : memref<10x240x240xf32, #tpu.memory_space<vmem>>, vector<1x240x240xf32>
    %53 = vector.shape_cast %52 : vector<1x240x240xf32> to vector<240x240xf32>
    %cst_38 = arith.constant dense<0.000000e+00> : vector<30x240xf32>
    %54 = tpu.matmul %51, %53, %cst_38 {dimension_numbers = #tpu.dot_dimension_numbers<[1], [0], [0], [1], [0, 0, 1, 1], [], []>} : vector<30x240xf32>, vector<240x240xf32>, vector<30x240xf32> -> vector<30x240xf32>
    %55 = arith.addf %50, %54 : vector<30x240xf32>
    %56 = vector.broadcast %0 : vector<1x240xf32> to vector<30x240xf32>
    %57 = arith.mulf %55, %56 : vector<30x240xf32>
    %58 = vector.broadcast %1 : vector<1x240xf32> to vector<30x240xf32>
    %59 = arith.addf %57, %58 : vector<30x240xf32>
    %cst_39 = arith.constant 0.000000e+00 : f32
    %60 = vector.broadcast %cst_39 : f32 to vector<30x240xf32>
    %61 = arith.cmpf ogt, %59, %60 : vector<30x240xf32>
    %cst_40 = arith.constant 0.000000e+00 : f32
    %62 = vector.broadcast %cst_40 : f32 to vector<30x240xf32>
    %63 = arith.minimumf %59, %62 : vector<30x240xf32>
    %64 = math.exp %63 : vector<30x240xf32>
    %cst_41 = arith.constant 1.000000e+00 : f32
    %65 = vector.broadcast %cst_41 : f32 to vector<30x240xf32>
    %66 = arith.subf %64, %65 : vector<30x240xf32>
    %67 = arith.select %61, %59, %66 : vector<30x240xi1>, vector<30x240xf32>
    %c0_42 = arith.constant 0 : index
    %c0_43 = arith.constant 0 : index
    %68 = vector.load %arg3[%c0_42, %c0_43] : memref<40x30xf32, #tpu.memory_space<vmem>>, vector<40x30xf32>
    %cst_44 = arith.constant dense<0.000000e+00> : vector<40x240xf32>
    %69 = tpu.matmul %68, %67, %cst_44 {dimension_numbers = #tpu.dot_dimension_numbers<[1], [0], [0], [1], [0, 0, 1, 1], [], []>} : vector<40x30xf32>, vector<30x240xf32>, vector<40x240xf32> -> vector<40x240xf32>
    %cst_45 = arith.constant 0.000000e+00 : f32
    %70 = vector.broadcast %cst_45 : f32 to vector<4x240xf32>
    %71 = vector.extract_strided_slice %69 {offsets = [0, 0], sizes = [4, 240], strides = [1, 1]} : vector<40x240xf32> to vector<4x240xf32>
    %c0_46 = arith.constant 0 : index
    %c0_47 = arith.constant 0 : index
    %c0_48 = arith.constant 0 : index
    %72 = vector.load %arg4[%c0_46, %c0_47, %c0_48] : memref<10x240x240xf32, #tpu.memory_space<vmem>>, vector<1x240x240xf32>
    %73 = vector.shape_cast %72 : vector<1x240x240xf32> to vector<240x240xf32>
    %cst_49 = arith.constant dense<0.000000e+00> : vector<4x240xf32>
    %74 = tpu.matmul %71, %73, %cst_49 {dimension_numbers = #tpu.dot_dimension_numbers<[1], [0], [0], [1], [0, 0, 1, 1], [], []>} : vector<4x240xf32>, vector<240x240xf32>, vector<4x240xf32> -> vector<4x240xf32>
    %75 = arith.addf %70, %74 : vector<4x240xf32>
    %76 = vector.extract_strided_slice %69 {offsets = [4, 0], sizes = [4, 240], strides = [1, 1]} : vector<40x240xf32> to vector<4x240xf32>
    %c1_50 = arith.constant 1 : index
    %c0_51 = arith.constant 0 : index
    %c0_52 = arith.constant 0 : index
    %77 = vector.load %arg4[%c1_50, %c0_51, %c0_52] : memref<10x240x240xf32, #tpu.memory_space<vmem>>, vector<1x240x240xf32>
    %78 = vector.shape_cast %77 : vector<1x240x240xf32> to vector<240x240xf32>
    %cst_53 = arith.constant dense<0.000000e+00> : vector<4x240xf32>
    %79 = tpu.matmul %76, %78, %cst_53 {dimension_numbers = #tpu.dot_dimension_numbers<[1], [0], [0], [1], [0, 0, 1, 1], [], []>} : vector<4x240xf32>, vector<240x240xf32>, vector<4x240xf32> -> vector<4x240xf32>
    %80 = arith.addf %75, %79 : vector<4x240xf32>
    %81 = vector.extract_strided_slice %69 {offsets = [8, 0], sizes = [4, 240], strides = [1, 1]} : vector<40x240xf32> to vector<4x240xf32>
    %c2_54 = arith.constant 2 : index
    %c0_55 = arith.constant 0 : index
    %c0_56 = arith.constant 0 : index
    %82 = vector.load %arg4[%c2_54, %c0_55, %c0_56] : memref<10x240x240xf32, #tpu.memory_space<vmem>>, vector<1x240x240xf32>
    %83 = vector.shape_cast %82 : vector<1x240x240xf32> to vector<240x240xf32>
    %cst_57 = arith.constant dense<0.000000e+00> : vector<4x240xf32>
    %84 = tpu.matmul %81, %83, %cst_57 {dimension_numbers = #tpu.dot_dimension_numbers<[1], [0], [0], [1], [0, 0, 1, 1], [], []>} : vector<4x240xf32>, vector<240x240xf32>, vector<4x240xf32> -> vector<4x240xf32>
    %85 = arith.addf %80, %84 : vector<4x240xf32>
    %86 = vector.extract_strided_slice %69 {offsets = [12, 0], sizes = [4, 240], strides = [1, 1]} : vector<40x240xf32> to vector<4x240xf32>
    %c3_58 = arith.constant 3 : index
    %c0_59 = arith.constant 0 : index
    %c0_60 = arith.constant 0 : index
    %87 = vector.load %arg4[%c3_58, %c0_59, %c0_60] : memref<10x240x240xf32, #tpu.memory_space<vmem>>, vector<1x240x240xf32>
    %88 = vector.shape_cast %87 : vector<1x240x240xf32> to vector<240x240xf32>
    %cst_61 = arith.constant dense<0.000000e+00> : vector<4x240xf32>
    %89 = tpu.matmul %86, %88, %cst_61 {dimension_numbers = #tpu.dot_dimension_numbers<[1], [0], [0], [1], [0, 0, 1, 1], [], []>} : vector<4x240xf32>, vector<240x240xf32>, vector<4x240xf32> -> vector<4x240xf32>
    %90 = arith.addf %85, %89 : vector<4x240xf32>
    %91 = vector.extract_strided_slice %69 {offsets = [16, 0], sizes = [4, 240], strides = [1, 1]} : vector<40x240xf32> to vector<4x240xf32>
    %c4_62 = arith.constant 4 : index
    %c0_63 = arith.constant 0 : index
    %c0_64 = arith.constant 0 : index
    %92 = vector.load %arg4[%c4_62, %c0_63, %c0_64] : memref<10x240x240xf32, #tpu.memory_space<vmem>>, vector<1x240x240xf32>
    %93 = vector.shape_cast %92 : vector<1x240x240xf32> to vector<240x240xf32>
    %cst_65 = arith.constant dense<0.000000e+00> : vector<4x240xf32>
    %94 = tpu.matmul %91, %93, %cst_65 {dimension_numbers = #tpu.dot_dimension_numbers<[1], [0], [0], [1], [0, 0, 1, 1], [], []>} : vector<4x240xf32>, vector<240x240xf32>, vector<4x240xf32> -> vector<4x240xf32>
    %95 = arith.addf %90, %94 : vector<4x240xf32>
    %96 = vector.extract_strided_slice %69 {offsets = [20, 0], sizes = [4, 240], strides = [1, 1]} : vector<40x240xf32> to vector<4x240xf32>
    %c5_66 = arith.constant 5 : index
    %c0_67 = arith.constant 0 : index
    %c0_68 = arith.constant 0 : index
    %97 = vector.load %arg4[%c5_66, %c0_67, %c0_68] : memref<10x240x240xf32, #tpu.memory_space<vmem>>, vector<1x240x240xf32>
    %98 = vector.shape_cast %97 : vector<1x240x240xf32> to vector<240x240xf32>
    %cst_69 = arith.constant dense<0.000000e+00> : vector<4x240xf32>
    %99 = tpu.matmul %96, %98, %cst_69 {dimension_numbers = #tpu.dot_dimension_numbers<[1], [0], [0], [1], [0, 0, 1, 1], [], []>} : vector<4x240xf32>, vector<240x240xf32>, vector<4x240xf32> -> vector<4x240xf32>
    %100 = arith.addf %95, %99 : vector<4x240xf32>
    %101 = vector.extract_strided_slice %69 {offsets = [24, 0], sizes = [4, 240], strides = [1, 1]} : vector<40x240xf32> to vector<4x240xf32>
    %c6_70 = arith.constant 6 : index
    %c0_71 = arith.constant 0 : index
    %c0_72 = arith.constant 0 : index
    %102 = vector.load %arg4[%c6_70, %c0_71, %c0_72] : memref<10x240x240xf32, #tpu.memory_space<vmem>>, vector<1x240x240xf32>
    %103 = vector.shape_cast %102 : vector<1x240x240xf32> to vector<240x240xf32>
    %cst_73 = arith.constant dense<0.000000e+00> : vector<4x240xf32>
    %104 = tpu.matmul %101, %103, %cst_73 {dimension_numbers = #tpu.dot_dimension_numbers<[1], [0], [0], [1], [0, 0, 1, 1], [], []>} : vector<4x240xf32>, vector<240x240xf32>, vector<4x240xf32> -> vector<4x240xf32>
    %105 = arith.addf %100, %104 : vector<4x240xf32>
    %106 = vector.extract_strided_slice %69 {offsets = [28, 0], sizes = [4, 240], strides = [1, 1]} : vector<40x240xf32> to vector<4x240xf32>
    %c7_74 = arith.constant 7 : index
    %c0_75 = arith.constant 0 : index
    %c0_76 = arith.constant 0 : index
    %107 = vector.load %arg4[%c7_74, %c0_75, %c0_76] : memref<10x240x240xf32, #tpu.memory_space<vmem>>, vector<1x240x240xf32>
    %108 = vector.shape_cast %107 : vector<1x240x240xf32> to vector<240x240xf32>
    %cst_77 = arith.constant dense<0.000000e+00> : vector<4x240xf32>
    %109 = tpu.matmul %106, %108, %cst_77 {dimension_numbers = #tpu.dot_dimension_numbers<[1], [0], [0], [1], [0, 0, 1, 1], [], []>} : vector<4x240xf32>, vector<240x240xf32>, vector<4x240xf32> -> vector<4x240xf32>
    %110 = arith.addf %105, %109 : vector<4x240xf32>
    %111 = vector.extract_strided_slice %69 {offsets = [32, 0], sizes = [4, 240], strides = [1, 1]} : vector<40x240xf32> to vector<4x240xf32>
    %c8_78 = arith.constant 8 : index
    %c0_79 = arith.constant 0 : index
    %c0_80 = arith.constant 0 : index
    %112 = vector.load %arg4[%c8_78, %c0_79, %c0_80] : memref<10x240x240xf32, #tpu.memory_space<vmem>>, vector<1x240x240xf32>
    %113 = vector.shape_cast %112 : vector<1x240x240xf32> to vector<240x240xf32>
    %cst_81 = arith.constant dense<0.000000e+00> : vector<4x240xf32>
    %114 = tpu.matmul %111, %113, %cst_81 {dimension_numbers = #tpu.dot_dimension_numbers<[1], [0], [0], [1], [0, 0, 1, 1], [], []>} : vector<4x240xf32>, vector<240x240xf32>, vector<4x240xf32> -> vector<4x240xf32>
    %115 = arith.addf %110, %114 : vector<4x240xf32>
    %116 = vector.extract_strided_slice %69 {offsets = [36, 0], sizes = [4, 240], strides = [1, 1]} : vector<40x240xf32> to vector<4x240xf32>
    %c9_82 = arith.constant 9 : index
    %c0_83 = arith.constant 0 : index
    %c0_84 = arith.constant 0 : index
    %117 = vector.load %arg4[%c9_82, %c0_83, %c0_84] : memref<10x240x240xf32, #tpu.memory_space<vmem>>, vector<1x240x240xf32>
    %118 = vector.shape_cast %117 : vector<1x240x240xf32> to vector<240x240xf32>
    %cst_85 = arith.constant dense<0.000000e+00> : vector<4x240xf32>
    %119 = tpu.matmul %116, %118, %cst_85 {dimension_numbers = #tpu.dot_dimension_numbers<[1], [0], [0], [1], [0, 0, 1, 1], [], []>} : vector<4x240xf32>, vector<240x240xf32>, vector<4x240xf32> -> vector<4x240xf32>
    %120 = arith.addf %115, %119 : vector<4x240xf32>
    %121 = vector.broadcast %0 : vector<1x240xf32> to vector<4x240xf32>
    %122 = arith.mulf %120, %121 : vector<4x240xf32>
    %123 = vector.broadcast %1 : vector<1x240xf32> to vector<4x240xf32>
    %124 = arith.addf %122, %123 : vector<4x240xf32>
    %cst_86 = arith.constant 0.000000e+00 : f32
    %125 = vector.broadcast %cst_86 : f32 to vector<4x240xf32>
    %126 = arith.cmpf ogt, %124, %125 : vector<4x240xf32>
    %cst_87 = arith.constant 0.000000e+00 : f32
    %127 = vector.broadcast %cst_87 : f32 to vector<4x240xf32>
    %128 = arith.minimumf %124, %127 : vector<4x240xf32>
    %129 = math.exp %128 : vector<4x240xf32>
    %cst_88 = arith.constant 1.000000e+00 : f32
    %130 = vector.broadcast %cst_88 : f32 to vector<4x240xf32>
    %131 = arith.subf %129, %130 : vector<4x240xf32>
    %132 = arith.select %126, %124, %131 : vector<4x240xi1>, vector<4x240xf32>
    %c0_89 = arith.constant 0 : index
    %c0_90 = arith.constant 0 : index
    %133 = vector.load %arg7[%c0_89, %c0_90] : memref<108x30xf32, #tpu.memory_space<vmem>>, vector<108x30xf32>
    %cst_91 = arith.constant dense<0.000000e+00> : vector<108x240xf32>
    %134 = tpu.matmul %133, %67, %cst_91 {dimension_numbers = #tpu.dot_dimension_numbers<[1], [0], [0], [1], [0, 0, 1, 1], [], []>} : vector<108x30xf32>, vector<30x240xf32>, vector<108x240xf32> -> vector<108x240xf32>
    %c0_92 = arith.constant 0 : index
    %c0_93 = arith.constant 0 : index
    %135 = vector.load %arg9[%c0_92, %c0_93] : memref<108x240xf32, #tpu.memory_space<vmem>>, vector<108x240xf32>
    tpu.vector_store %arg9[%c0_92, %c0_93], %134 {strides = array<i32>} : memref<108x240xf32, #tpu.memory_space<vmem>>, vector<108x240xf32>,
    %c0_94 = arith.constant 0 : index
    %c0_95 = arith.constant 0 : index
    %136 = vector.load %arg8[%c0_94, %c0_95] : memref<108x4xf32, #tpu.memory_space<vmem>>, vector<108x4xf32>
    %cst_96 = arith.constant dense<0.000000e+00> : vector<108x240xf32>
    %137 = tpu.matmul %136, %132, %cst_96 {dimension_numbers = #tpu.dot_dimension_numbers<[1], [0], [0], [1], [0, 0, 1, 1], [], []>} : vector<108x4xf32>, vector<4x240xf32>, vector<108x240xf32> -> vector<108x240xf32>
    %c0_97 = arith.constant 0 : index
    %c0_98 = arith.constant 0 : index
    %138 = vector.load %arg10[%c0_97, %c0_98] : memref<108x240xf32, #tpu.memory_space<vmem>>, vector<108x240xf32>
    tpu.vector_store %arg10[%c0_97, %c0_98], %137 {strides = array<i32>} : memref<108x240xf32, #tpu.memory_space<vmem>>, vector<108x240xf32>,
    return
  }
  func.func @transform_0(%arg0: i32) -> (i32, i32) {
    %c0_i32 = arith.constant 0 : i32
    %c0_i32_0 = arith.constant 0 : i32
    return %arg0, %c0_i32 : i32, i32
  }
  func.func @transform_1(%arg0: i32) -> (i32, i32) {
    %c0_i32 = arith.constant 0 : i32
    %c0_i32_0 = arith.constant 0 : i32
    %c0_i32_1 = arith.constant 0 : i32
    return %c0_i32, %c0_i32_0 : i32, i32
  }
  func.func @transform_2(%arg0: i32) -> (i32, i32) {
    %c0_i32 = arith.constant 0 : i32
    %c0_i32_0 = arith.constant 0 : i32
    %c0_i32_1 = arith.constant 0 : i32
    return %c0_i32, %c0_i32_0 : i32, i32
  }
  func.func @transform_3(%arg0: i32) -> (i32, i32, i32) {
    %c0_i32 = arith.constant 0 : i32
    %c0_i32_0 = arith.constant 0 : i32
    %c0_i32_1 = arith.constant 0 : i32
    %c0_i32_2 = arith.constant 0 : i32
    return %c0_i32, %c0_i32_0, %c0_i32_1 : i32, i32, i32
  }
  func.func @transform_4(%arg0: i32) -> (i32, i32) {
    %c0_i32 = arith.constant 0 : i32
    %c0_i32_0 = arith.constant 0 : i32
    %c0_i32_1 = arith.constant 0 : i32
    return %c0_i32, %c0_i32_0 : i32, i32
  }
  func.func @transform_5(%arg0: i32) -> (i32, i32) {
    %c0_i32 = arith.constant 0 : i32
    %c0_i32_0 = arith.constant 0 : i32
    %c0_i32_1 = arith.constant 0 : i32
    return %c0_i32, %c0_i32_0 : i32, i32
  }
  func.func @transform_6(%arg0: i32) -> (i32, i32) {
    %c0_i32 = arith.constant 0 : i32
    %c0_i32_0 = arith.constant 0 : i32
    %c0_i32_1 = arith.constant 0 : i32
    return %c0_i32, %c0_i32_0 : i32, i32
  }
  func.func @transform_7(%arg0: i32) -> (i32, i32) {
    %c0_i32 = arith.constant 0 : i32
    %c0_i32_0 = arith.constant 0 : i32
    %c0_i32_1 = arith.constant 0 : i32
    return %c0_i32, %c0_i32_0 : i32, i32
  }
  func.func @transform_8(%arg0: i32) -> (i32, i32) {
    %c0_i32 = arith.constant 0 : i32
    %c0_i32_0 = arith.constant 0 : i32
    return %arg0, %c0_i32 : i32, i32
  }
  func.func @transform_9(%arg0: i32) -> (i32, i32) {
    %c0_i32 = arith.constant 0 : i32
    %c0_i32_0 = arith.constant 0 : i32
    return %arg0, %c0_i32 : i32, i32
  }
}

</mosaic_0001>

<bundles_post_ra>
// kernel: tpu_custom_call.1
= control target key start
LH: loop header
LB: loop body
LE: loop exit
PB: predicated region body
PF: predicated region fallthrough
CT: control target
= control target key end

     0   :  { %15 = vsyncpa [#allocation3], 0  ;;  %s6839_s0 = inlined_call_operand.hbm [shape: f32[108,240], index: 0, kind: input, shape index: {}]   ;;  %s6840_s1 = inlined_call_operand.hbm [shape: f32[300,108], index: 1, kind: input, shape index: {}]   ;;  %s6841_s2 = inlined_call_operand.vmem [shape: f32[40,30], index: 2, kind: input, shape index: {}]   ;;  %s6842_s3 = inlined_call_operand.hbm [shape: f32[10,240,240], index: 3, kind: input, shape index: {}]   ;;  %s6843_s4 = inlined_call_operand.hbm [shape: f32[1,240], index: 4, kind: input, shape index: {}]   ;;  %s6844_s5 = inlined_call_operand.hbm [shape: f32[1,240], index: 5, kind: input, shape index: {}]   ;;  %s6845_s6 = inlined_call_operand.vmem [shape: f32[108,30], index: 6, kind: input, shape index: {}]   ;;  %s6846_s7 = inlined_call_operand.vmem [shape: f32[108,4], index: 7, kind: input, shape index: {}]   ;;  %s6847_s8 = inlined_call_operand.hbm [shape: f32[108,240], index: 8, kind: output, shape index: {0}]   ;;  %s6848_s9 = inlined_call_operand.hbm [shape: f32[108,240], index: 9, kind: output, shape index: {1}]  }
   0x1   :  { %16 = vsyncpa [#allocation6], 0 }
   0x2   :  { %17 = vsyncpa [#allocation9], 0 }
   0x3   :  { %18 = vsyncpa [#allocation4], 0  ;;  %s37_s11 = sshll.u32 %s6840_s1, 4  ;;  %s38_s11 = int_to_ptr.hbm [resolvable:$true] %s37_s11 }
   0x4   :  { %19 = vsyncpa [#allocation13], 0  ;;  %s5252_s12 = smov [#allocation5]   ;;  %s66_s16 = sshll.u32 %s6843_s4, 4  ;;  %s67_s16 = int_to_ptr.hbm [resolvable:$true] %s66_s16 }
   0x5   :  { %s39_s13 = sshll.u32 %s5252_s12, 4  ;;  %s5253_s17 = smov 128   ;;  %s40_s13 = int_to_ptr.vmem [resolvable:$true] %s39_s13 }
   0x6   :  { %s5254_s18 = smov 8   ;;  %s5255_s19 = smov [#allocation8]  }
   0x7   :  { %45 = dma.hbm_to_vmem [thread:$0]  %s38_s11, 4864, %s40_s13, [#allocation6], %s5253_s17, %s5253_s17, %s5254_s18  }
   0x8   :  { %s68_s20 = sshll.u32 %s5255_s19, 4  ;;  %s24_s23 = sshll.u32 %s6839_s0, 4  ;;  %s69_s20 = int_to_ptr.vmem [resolvable:$true] %s68_s20  ;;  %s25_s23 = int_to_ptr.hbm [resolvable:$true] %s24_s23 }
   0x9   :  { %71 = dma.hbm_to_vmem [thread:$0]  %s67_s16, 32, %s69_s20, [#allocation9]  }
   0xa   :  { %s5256_s1 = smov [#allocation2]   ;;  %s52_s4 = sshll.u32 %s6842_s3, 4  ;;  %s53_s4 = int_to_ptr.hbm [resolvable:$true] %s52_s4 }
   0xb   :  { %s26_s24 = sshll.u32 %s5256_s1, 4  ;;  %s5257_s27 = smov 256   ;;  %s27_s24 = int_to_ptr.vmem [resolvable:$true] %s26_s24 }
   0xc   :  { %s5258_s28 = smov 16   ;;  %s5259_s29 = smov [#allocation7]  }
   0xd   :  { %32 = dma.hbm_to_vmem [thread:$0]  %s25_s23, 3584, %s27_s24, [#allocation3], %s5257_s27, %s5257_s27, %s5258_s28  }
   0xe   :  { %s54_s30 = sshll.u32 %s5259_s29, 4  ;;  %s77_s11 = sshll.u32 %s6844_s5, 4  ;;  %s55_s30 = int_to_ptr.vmem [resolvable:$true] %s54_s30  ;;  %s78_s11 = int_to_ptr.hbm [resolvable:$true] %s77_s11 }
   0xf   :  { %60 = dma.hbm_to_vmem [thread:$0]  %s53_s4, 76800, %s55_s30, [#allocation6], %s5257_s27, %s5257_s27, %s5258_s28  }
  0x10   :  { %s5260_s3 = smov [#allocation10]  }
  0x11   :  { %s79_s12 = sshll.u32 %s5260_s3, 4  ;;  %s80_s12 = int_to_ptr.vmem [resolvable:$true] %s79_s12 }
  0x12   :  { %82 = dma.hbm_to_vmem [thread:$0]  %s78_s11, 32, %s80_s12, [#allocation9]  }
  0x13   :  { %5242 = dma.done.wait [#allocation3], 3584  }
  0x14   :  { %5243 = vsyncadd [#allocation3], 4294963712 }
  0x15   :  { %5244 = dma.done.wait [#allocation6], 81664  }
  0x16   :  { %5245 = vsyncadd [#allocation6], 4294885632 }
  0x17   :  { %5246 = dma.done.wait [#allocation9], 64  }
  0x18   :  { %5247 = vsyncadd [#allocation9], 4294967232  ;;  %vm290_vm0 = vcmask 1043456   ;;  %v135_v0 = vld [vmem:[#allocation2 + $0xd0] sm:$0xf]  ;;  %v133_v2 = vld [vmem:[#allocation2 + $0xc0] sm:$0xff] }
  0x19   :  { %v136_v1 = vld [vmem:[#allocation2 + $0xd8] sm:$0xf]  ;;  %4181 = vmatpush.msk.msra.mxu0 %vm290_vm0, %v135_v0  ;;  %v134_v3 = vld [vmem:[#allocation2 + $0xc8] sm:$0xff]  ;;  %v131_v4 = vld [vmem:[#allocation2 + $0xb0] sm:$0xff]  ;;  %vm175_vm1 = vcmask 883712   ;;  %vm690_vm2 = vcmask 1041408  }
  0x1a   :  { %4220 = vmatpush.msk.msra.mxu1 %vm290_vm0, %v136_v1  ;;  %v132_v5 = vld [vmem:[#allocation2 + $0xb8] sm:$0xff]  ;;  %v129_v6 = vld [vmem:[#allocation2 + $0xa0] sm:$0xff]  ;;  %v130_v7 = vld [vmem:[#allocation2 + $0xa8] sm:$0xff]  ;;  %vm713_vm3 = vcmask 916480   ;;  %vm1255_vm4 = vcmask 1045504   ;;  %vm2767_vm9 = vcmask 244736  }
  0x1b   :  { %300 = vmatpush.msra.mxu0 %v133_v2  ;;  %v127_v8 = vld [vmem:[#allocation2 + $0x90] sm:$0xff]  ;;  %v128_v9 = vld [vmem:[#allocation2 + $0x98] sm:$0xff]  ;;  %v125_v10 = vld [vmem:[#allocation2 + $0x80] sm:$0xff]  ;;  %vm3947_vm15 = vcmask 31744   ;;  %s4148_s29 = sshll.u32 %s6847_s8, 4  ;;  %s5262_s8 = smov [#allocation12]   ;;  %s4149_s29 = int_to_ptr.hbm [resolvable:$true] %s4148_s29 }
  0x1c   :  { %431 = vmatpush.msra.mxu1 %v134_v3  ;;  %v126_v11 = vld [vmem:[#allocation2 + $0x88] sm:$0xff]  ;;  %v123_v12 = vld [vmem:[#allocation2 + $0x70] sm:$0xff]  ;;  %v124_v13 = vld [vmem:[#allocation2 + $0x78] sm:$0xff]  ;;  %s4159_s30 = sshll.u32 %s5262_s8, 4  ;;  %s4161_s11 = sshll.u32 %s6848_s9, 4  ;;  %s4160_s30 = int_to_ptr.vmem [resolvable:$true] %s4159_s30  ;;  %s4162_s11 = int_to_ptr.hbm [resolvable:$true] %s4161_s11 }
  0x1d   :  { %301 = vmatpush.msra.mxu0 %v131_v4  ;;  %v121_v14 = vld [vmem:[#allocation2 + $0x60] sm:$0xff]  ;;  %v122_v15 = vld [vmem:[#allocation2 + $0x68] sm:$0xff]  ;;  %v119_v16 = vld [vmem:[#allocation2 + $0x50] sm:$0xff] }
  0x1e   :  { %432 = vmatpush.msra.mxu1 %v132_v5  ;;  %v120_v17 = vld [vmem:[#allocation2 + $0x58] sm:$0xff]  ;;  %v117_v18 = vld [vmem:[#allocation2 + $0x40] sm:$0xff]  ;;  %v118_v19 = vld [vmem:[#allocation2 + $0x48] sm:$0xff] }
  0x1f   :  { %302 = vmatpush.msra.mxu0 %v129_v6  ;;  %v115_v20 = vld [vmem:[#allocation2 + $0x30] sm:$0xff]  ;;  %v116_v21 = vld [vmem:[#allocation2 + $0x38] sm:$0xff]  ;;  %v113_v22 = vld [vmem:[#allocation2 + $0x20] sm:$0xff] }
  0x20   :  { %433 = vmatpush.msra.mxu1 %v130_v7  ;;  %v114_v23 = vld [vmem:[#allocation2 + $0x28] sm:$0xff]  ;;  %v111_v24 = vld [vmem:[#allocation2 + $0x10] sm:$0xff]  ;;  %v112_v25 = vld [vmem:[#allocation2 + $0x18] sm:$0xff] }
  0x21   :  { %303 = vmatpush.msra.mxu0 %v127_v8  ;;  %v109_v26 = vld [vmem:[#allocation2] sm:$0xff]  ;;  %v110_v27 = vld [vmem:[#allocation2 + $0x8] sm:$0xff]  ;;  %v139_v30 = vld [vmem:[#allocation5 + $0x10] sm:$0xff] }
  0x22   :  { %434 = vmatpush.msra.mxu1 %v128_v9  ;;  %v137_v28 = vld [vmem:[#allocation5] sm:$0xff]  ;;  %v138_v29 = vld [vmem:[#allocation5 + $0x8] sm:$0xff]  ;;  %v140_v31 = vld [vmem:[#allocation5 + $0x18] sm:$0xff] }
  0x23   :  { %304 = vmatpush.msra.mxu0 %v125_v10  ;;  %v141_v32 = vld [vmem:[#allocation5 + $0x20] sm:$0xff]  ;;  %v142_v33 = vld [vmem:[#allocation5 + $0x28] sm:$0xff]  ;;  %v143_v34 = vld [vmem:[#allocation5 + $0x30] sm:$0xff] }
  0x24   :  { %435 = vmatpush.msra.mxu1 %v126_v11  ;;  %v144_v35 = vld [vmem:[#allocation5 + $0x38] sm:$0xff]  ;;  %v145_v36 = vld [vmem:[#allocation5 + $0x40] sm:$0xff]  ;;  %v146_v37 = vld [vmem:[#allocation5 + $0x48] sm:$0xff] }
  0x25   :  { %305 = vmatpush.msra.mxu0 %v123_v12  ;;  %v147_v38 = vld [vmem:[#allocation5 + $0x50] sm:$0xff]  ;;  %v148_v39 = vld [vmem:[#allocation5 + $0x58] sm:$0xff]  ;;  %v149_v40 = vld [vmem:[#allocation5 + $0x60] sm:$0xff] }
  0x26   :  { %436 = vmatpush.msra.mxu1 %v124_v13  ;;  %v650_v41 = vld [vmem:[#allocation7 + $0x2d0] sm:$0xff]  ;;  %v648_v42 = vld [vmem:[#allocation7 + $0x2c0] sm:$0xff]  ;;  %v150_v43 = vld [vmem:[#allocation5 + $0x68] sm:$0xff] }
  0x27   :  { %306 = vmatpush.msra.mxu0 %v121_v14  ;;  %722 = vmatpush.msra.mxu2 %v650_v41  ;;  %v646_v44 = vld [vmem:[#allocation7 + $0x2b0] sm:$0xff]  ;;  %v644_v46 = vld [vmem:[#allocation7 + $0x2a0] sm:$0xff]  ;;  %v152_v61 = vld [vmem:[#allocation5 + $0x78] sm:$0xff] }
  0x28   :  { %437 = vmatpush.msra.mxu1 %v122_v15  ;;  %v678_v45 = vld [vmem:[#allocation7 + $0x3b0] sm:$0xff]  ;;  %v676_v47 = vld [vmem:[#allocation7 + $0x3a0] sm:$0xff]  ;;  %v651_v13 = vld [vmem:[#allocation7 + $0x2d8] sm:$0xff] }
  0x29   :  { %307 = vmatpush.msra.mxu0 %v119_v16  ;;  %723 = vmatpush.msra.mxu2 %v648_v42  ;;  %v642_v48 = vld [vmem:[#allocation7 + $0x290] sm:$0xff]  ;;  %v640_v50 = vld [vmem:[#allocation7 + $0x280] sm:$0xff]  ;;  %v649_v14 = vld [vmem:[#allocation7 + $0x2c8] sm:$0xff] }
  0x2a   :  { %438 = vmatpush.msra.mxu1 %v120_v17  ;;  %753 = vmatpush.msra.mxu3 %v678_v45  ;;  %v674_v49 = vld [vmem:[#allocation7 + $0x390] sm:$0xff]  ;;  %v672_v51 = vld [vmem:[#allocation7 + $0x380] sm:$0xff]  ;;  %v154_v17 = vld [vmem:[#allocation5 + $0x88] sm:$0xff] }
  0x2b   :  { %308 = vmatpush.msra.mxu0 %v117_v18  ;;  %724 = vmatpush.msra.mxu2 %v646_v44  ;;  %v151_v52 = vld [vmem:[#allocation5 + $0x70] sm:$0xff]  ;;  %v638_v53 = vld [vmem:[#allocation7 + $0x270] sm:$0xff]  ;;  %v647_v18 = vld [vmem:[#allocation7 + $0x2b8] sm:$0xff] }
  0x2c   :  { %439 = vmatpush.msra.mxu1 %v118_v19  ;;  %754 = vmatpush.msra.mxu3 %v676_v47  ;;  %v670_v54 = vld [vmem:[#allocation7 + $0x370] sm:$0xff]  ;;  %v636_v55 = vld [vmem:[#allocation7 + $0x260] sm:$0xff]  ;;  %v679_v19 = vld [vmem:[#allocation7 + $0x3b8] sm:$0xff] }
  0x2d   :  { %309 = vmatpush.msra.mxu0 %v115_v20  ;;  %725 = vmatpush.msra.mxu2 %v644_v46  ;;  %v668_v56 = vld [vmem:[#allocation7 + $0x360] sm:$0xff]  ;;  %v634_v57 = vld [vmem:[#allocation7 + $0x250] sm:$0xff]  ;;  %v645_v20 = vld [vmem:[#allocation7 + $0x2a8] sm:$0xff] }
  0x2e   :  { %440 = vmatpush.msra.mxu1 %v116_v21  ;;  %755 = vmatpush.msra.mxu3 %v674_v49  ;;  %v666_v58 = vld [vmem:[#allocation7 + $0x350] sm:$0xff]  ;;  %v632_v59 = vld [vmem:[#allocation7 + $0x240] sm:$0xff]  ;;  %v677_v21 = vld [vmem:[#allocation7 + $0x3a8] sm:$0xff] }
  0x2f   :  { %310 = vmatpush.msra.mxu0 %v113_v22  ;;  %726 = vmatpush.msra.mxu2 %v642_v48  ;;  %v664_v60 = vld [vmem:[#allocation7 + $0x340] sm:$0xff]  ;;  %v630_v62 = vld [vmem:[#allocation7 + $0x230] sm:$0xff]  ;;  %v643_v22 = vld [vmem:[#allocation7 + $0x298] sm:$0xff] }
  0x30   :  { %441 = vmatpush.msra.mxu1 %v114_v23  ;;  %756 = vmatpush.msra.mxu3 %v672_v51  ;;  %v662_v63 = vld [vmem:[#allocation7 + $0x330] sm:$0xff]  ;;  %v628_v0 = vld [vmem:[#allocation7 + $0x220] sm:$0xff]  ;;  %v675_v23 = vld [vmem:[#allocation7 + $0x398] sm:$0xff] }
  0x31   :  { %311 = vmatpush.msra.mxu0 %v111_v24  ;;  %727 = vmatpush.msra.mxu2 %v640_v50  ;;  %v660_v1 = vld [vmem:[#allocation7 + $0x320] sm:$0xff]  ;;  %v626_v2 = vld [vmem:[#allocation7 + $0x210] sm:$0xff]  ;;  %v641_v24 = vld [vmem:[#allocation7 + $0x288] sm:$0xff] }
  0x32   :  { %442 = vmatpush.msra.mxu1 %v112_v25  ;;  %757 = vmatpush.msra.mxu3 %v670_v54  ;;  %v658_v3 = vld [vmem:[#allocation7 + $0x310] sm:$0xff]  ;;  %v624_v4 = vld [vmem:[#allocation7 + $0x200] sm:$0xff]  ;;  %v673_v25 = vld [vmem:[#allocation7 + $0x388] sm:$0xff] }
  0x33   :  { %312 = vmatpush.msra.mxu0 %v109_v26  ;;  %728 = vmatpush.msra.mxu2 %v638_v53  ;;  %v656_v5 = vld [vmem:[#allocation7 + $0x300] sm:$0xff]  ;;  %v153_v8 = vld [vmem:[#allocation5 + $0x80] sm:$0xff]  ;;  %v663_v41 = vld [vmem:[#allocation7 + $0x338] sm:$0xff] }
  0x34   :  { %443 = vmatpush.msra.mxu1 %v110_v27  ;;  %4182 = vmatmul.msk.f32.vlgmr.msra.gmra.mxu0 %vm175_vm1, %v137_v28  ;;  %v622_v9 = vld [vmem:[#allocation7 + $0x1f0] sm:$0xff]  ;;  %v620_v11 = vld [vmem:[#allocation7 + $0x1e0] sm:$0xff]  ;;  %v629_v42 = vld [vmem:[#allocation7 + $0x228] sm:$0xff] }
  0x35   :  { %4221 = vmatmul.msk.f32.vlgmr.msra.gmra.mxu1 %vm175_vm1, %v137_v28  ;;  %729 = vmatpush.msra.mxu2 %v636_v55  ;;  %v654_v10 = vld [vmem:[#allocation7 + $0x2f0] sm:$0xff]  ;;  %v652_v12 = vld [vmem:[#allocation7 + $0x2e0] sm:$0xff]  ;;  %v627_v44 = vld [vmem:[#allocation7 + $0x218] sm:$0xff] }
  0x36   :  { %758 = vmatpush.msra.mxu3 %v668_v56  ;;  %v155_v28 = vld [vmem:[#allocation5 + $0x90] sm:$0xff]  ;;  %v659_v45 = vld [vmem:[#allocation7 + $0x318] sm:$0xff]  ;;  %v625_v46 = vld [vmem:[#allocation7 + $0x208] sm:$0xff] }
  0x37   :  { %730 = vmatpush.msra.mxu2 %v634_v57  ;;  %v657_v47 = vld [vmem:[#allocation7 + $0x308] sm:$0xff]  ;;  %v157_v50 = vld [vmem:[#allocation5 + $0xa0] sm:$0xff]  ;;  %v623_v51 = vld [vmem:[#allocation7 + $0x1f8] sm:$0xff] }
  0x38   :  { %759 = vmatpush.msra.mxu3 %v666_v58  ;;  %v621_v57 = vld [vmem:[#allocation7 + $0x1e8] sm:$0xff] }
  0x39   :  { %731 = vmatpush.msra.mxu2 %v632_v59  ;;  %v653_v58 = vld [vmem:[#allocation7 + $0x2e8] sm:$0xff] }
  0x3a   :  { %760 = vmatpush.msra.mxu3 %v664_v60 }
  0x3b   :  { %732 = vmatpush.msra.mxu2 %v630_v62  ;;  %v587_v62 = vld [vmem:[#allocation7 + $0xe0] sm:$0xff] }
  0x3c   :  { %4183 = vmatmul.msk.f32.gmra.mxu0 %vm175_vm1, %v138_v29  ;;  %761 = vmatpush.msra.mxu3 %v662_v63 }
  0x3d   :  { %4222 = vmatmul.msk.f32.gmra.mxu1 %vm175_vm1, %v138_v29  ;;  %733 = vmatpush.msra.mxu2 %v628_v0  ;;  %v639_v29 = vld [vmem:[#allocation7 + $0x278] sm:$0xff] }
  0x3e   :  { %762 = vmatpush.msra.mxu3 %v660_v1  ;;  %v158_v1 = vld [vmem:[#allocation5 + $0xa8] sm:$0xff] }
  0x3f   :  { %734 = vmatpush.msra.mxu2 %v626_v2  ;;  %v585_v2 = vld [vmem:[#allocation7 + $0xd0] sm:$0xff] }
  0x40   :  { %763 = vmatpush.msra.mxu3 %v658_v3  ;;  %v617_v3 = vld [vmem:[#allocation7 + $0x1d0] sm:$0xff] }
  0x41   :  { %735 = vmatpush.msra.mxu2 %v624_v4 }
  0x42   :  { %764 = vmatpush.msra.mxu3 %v656_v5 }
  0x43   :  { %736 = vmatpush.msra.mxu2 %v622_v9  ;;  %v615_v9 = vld [vmem:[#allocation7 + $0x1c0] sm:$0xff] }
  0x44   :  { %4184 = vmatmul.msk.f32.gmra.mxu0 %vm175_vm1, %v139_v30  ;;  %765 = vmatpush.msra.mxu3 %v654_v10 }
  0x45   :  { %4223 = vmatmul.msk.f32.gmra.mxu1 %vm175_vm1, %v139_v30  ;;  %737 = vmatpush.msra.mxu2 %v620_v11  ;;  %v671_v30 = vld [vmem:[#allocation7 + $0x378] sm:$0xff] }
  0x46   :  { %766 = vmatpush.msra.mxu3 %v652_v12  ;;  %v581_v12 = vld [vmem:[#allocation7 + $0xb0] sm:$0xff] }
  0x47   :  { %811 = vmatpush.msrb.mxu2 %v679_v19 }
  0x48   :  { %780 = vmatpush.msrb.mxu3 %v651_v13  ;;  %v613_v13 = vld [vmem:[#allocation7 + $0x1b0] sm:$0xff] }
  0x49   :  { %812 = vmatpush.msrb.mxu2 %v677_v21 }
  0x4a   :  { %781 = vmatpush.msrb.mxu3 %v649_v14  ;;  %v579_v14 = vld [vmem:[#allocation7 + $0xa0] sm:$0xff] }
  0x4b   :  { %813 = vmatpush.msrb.mxu2 %v675_v23  ;;  %v577_v23 = vld [vmem:[#allocation7 + $0x90] sm:$0xff] }
  0x4c   :  { %4185 = vmatmul.msk.f32.gmra.mxu0 %vm175_vm1, %v140_v31  ;;  %782 = vmatpush.msrb.mxu3 %v647_v18 }
  0x4d   :  { %4224 = vmatmul.msk.f32.gmra.mxu1 %vm175_vm1, %v140_v31  ;;  %814 = vmatpush.msrb.mxu2 %v673_v25  ;;  %v637_v31 = vld [vmem:[#allocation7 + $0x268] sm:$0xff] }
  0x4e   :  { %783 = vmatpush.msrb.mxu3 %v645_v20  ;;  %v159_v20 = vld [vmem:[#allocation5 + $0xb0] sm:$0xff] }
  0x4f   :  { %815 = vmatpush.msrb.mxu2 %v671_v30  ;;  %v607_v30 = vld [vmem:[#allocation7 + $0x180] sm:$0xff] }
  0x50   :  { %784 = vmatpush.msrb.mxu3 %v643_v22 }
  0x52   :  { %785 = vmatpush.msrb.mxu3 %v641_v24  ;;  %v609_v24 = vld [vmem:[#allocation7 + $0x190] sm:$0xff] }
  0x54   :  { %4186 = vmatmul.msk.f32.gmra.mxu0 %vm175_vm1, %v141_v32  ;;  %786 = vmatpush.msrb.mxu3 %v639_v29  ;;  %v575_v29 = vld [vmem:[#allocation7 + $0x80] sm:$0xff] }
  0x55   :  { %4225 = vmatmul.msk.f32.gmra.mxu1 %vm175_vm1, %v141_v32  ;;  %v669_v32 = vld [vmem:[#allocation7 + $0x368] sm:$0xff] }
  0x56   :  { %787 = vmatpush.msrb.mxu3 %v637_v31  ;;  %816 = vmatpush.msrb.mxu2 %v669_v32  ;;  %v573_v31 = vld [vmem:[#allocation7 + $0x70] sm:$0xff] }
  0x57   :  { %v605_v32 = vld [vmem:[#allocation7 + $0x170] sm:$0xff] }
  0x5c   :  { %4187 = vmatmul.msk.f32.gmra.mxu0 %vm175_vm1, %v142_v33 }
  0x5d   :  { %4226 = vmatmul.msk.f32.gmra.mxu1 %vm175_vm1, %v142_v33  ;;  %v635_v33 = vld [vmem:[#allocation7 + $0x258] sm:$0xff] }
  0x5e   :  { %788 = vmatpush.msrb.mxu3 %v635_v33 }
  0x64   :  { %4188 = vmatmul.msk.f32.gmra.mxu0 %vm175_vm1, %v143_v34 }
  0x65   :  { %4227 = vmatmul.msk.f32.gmra.mxu1 %vm175_vm1, %v143_v34  ;;  %v667_v34 = vld [vmem:[#allocation7 + $0x358] sm:$0xff] }
  0x66   :  { %817 = vmatpush.msrb.mxu2 %v667_v34 }
  0x6c   :  { %4189 = vmatmul.msk.f32.gmra.mxu0 %vm175_vm1, %v144_v35 }
  0x6d   :  { %4228 = vmatmul.msk.f32.gmra.mxu1 %vm175_vm1, %v144_v35  ;;  %v633_v35 = vld [vmem:[#allocation7 + $0x248] sm:$0xff] }
  0x6e   :  { %789 = vmatpush.msrb.mxu3 %v633_v35  ;;  %v160_v35 = vld [vmem:[#allocation5 + $0xb8] sm:$0xff] }
  0x74   :  { %4190 = vmatmul.msk.f32.gmra.mxu0 %vm175_vm1, %v145_v36 }
  0x75   :  { %4229 = vmatmul.msk.f32.gmra.mxu1 %vm175_vm1, %v145_v36  ;;  %v665_v36 = vld [vmem:[#allocation7 + $0x348] sm:$0xff] }
  0x76   :  { %818 = vmatpush.msrb.mxu2 %v665_v36 }
  0x78   :  { %819 = vmatpush.msrb.mxu2 %v663_v41  ;;  %v603_v41 = vld [vmem:[#allocation7 + $0x160] sm:$0xff] }
  0x7c   :  { %4191 = vmatmul.msk.f32.gmra.mxu0 %vm175_vm1, %v146_v37 }
  0x7d   :  { %4230 = vmatmul.msk.f32.gmra.mxu1 %vm175_vm1, %v146_v37 }
  0x84   :  { %4192 = vmatmul.msk.f32.gmra.mxu0 %vm175_vm1, %v147_v38 }
  0x85   :  { %4231 = vmatmul.msk.f32.gmra.mxu1 %vm175_vm1, %v147_v38 }
  0x8c   :  { %4193 = vmatmul.msk.f32.gmra.mxu0 %vm175_vm1, %v148_v39 }
  0x8d   :  { %4232 = vmatmul.msk.f32.gmra.mxu1 %vm175_vm1, %v148_v39  ;;  %v156_v39 = vld [vmem:[#allocation5 + $0x98] sm:$0xff] }
  0x94   :  { %4194 = vmatmul.msk.f32.gmra.mxu0 %vm175_vm1, %v149_v40 }
  0x95   :  { %4233 = vmatmul.msk.f32.gmra.mxu1 %vm175_vm1, %v149_v40  ;;  %v631_v40 = vld [vmem:[#allocation7 + $0x238] sm:$0xff] }
  0x96   :  { %790 = vmatpush.msrb.mxu3 %v631_v40  ;;  %v571_v40 = vld [vmem:[#allocation7 + $0x60] sm:$0xff] }
  0x98   :  { %791 = vmatpush.msrb.mxu3 %v629_v42 }
  0x9a   :  { %792 = vmatpush.msrb.mxu3 %v627_v44  ;;  %v569_v44 = vld [vmem:[#allocation7 + $0x50] sm:$0xff] }
  0x9c   :  { %4195 = vmatmul.msk.f32.gmra.mxu0 %vm175_vm1, %v150_v43  ;;  %793 = vmatpush.msrb.mxu3 %v625_v46  ;;  %v567_v46 = vld [vmem:[#allocation7 + $0x40] sm:$0xff] }
  0x9d   :  { %4234 = vmatmul.msk.f32.gmra.mxu1 %vm175_vm1, %v150_v43  ;;  %v661_v43 = vld [vmem:[#allocation7 + $0x328] sm:$0xff] }
  0x9e   :  { %820 = vmatpush.msrb.mxu2 %v661_v43  ;;  %794 = vmatpush.msrb.mxu3 %v623_v51  ;;  %v565_v51 = vld [vmem:[#allocation7 + $0x30] sm:$0xff] }
  0xa0   :  { %821 = vmatpush.msrb.mxu2 %v659_v45  ;;  %795 = vmatpush.msrb.mxu3 %v621_v57  ;;  %v601_v45 = vld [vmem:[#allocation7 + $0x150] sm:$0xff] }
  0xa2   :  { %822 = vmatpush.msrb.mxu2 %v657_v47  ;;  %v599_v47 = vld [vmem:[#allocation7 + $0x140] sm:$0xff] }
  0xa4   :  { %4196 = vmatmul.msk.f32.gmra.mxu0 %vm175_vm1, %v151_v52 }
  0xa5   :  { %4235 = vmatmul.msk.f32.gmra.mxu1 %vm175_vm1, %v151_v52  ;;  %v655_v52 = vld [vmem:[#allocation7 + $0x2f8] sm:$0xff] }
  0xa6   :  { %823 = vmatpush.msrb.mxu2 %v655_v52  ;;  %v597_v52 = vld [vmem:[#allocation7 + $0x130] sm:$0xff] }
  0xa8   :  { %824 = vmatpush.msrb.mxu2 %v653_v58 }
  0xac   :  { %4197 = vmatmul.msk.f32.gmra.mxu0 %vm175_vm1, %v152_v61 }
  0xad   :  { %4236 = vmatmul.msk.f32.gmra.mxu1 %vm175_vm1, %v152_v61  ;;  %v589_v61 = vld [vmem:[#allocation7 + $0xf0] sm:$0xff] }
  0xb1   :  { %v5368_v6 = vpop.f32.mrf.mxu0 }
  0xb2   :  { %v5370_v7 = vpop.f32.mrf.mxu1 }
  0xb4   :  { %4198 = vmatmul.msk.f32.gmra.mxu0 %vm175_vm1, %v153_v8 }
  0xb5   :  { %4237 = vmatmul.msk.f32.gmra.mxu1 %vm175_vm1, %v153_v8  ;;  %v583_v8 = vld [vmem:[#allocation7 + $0xc0] sm:$0xff] }
  0xb9   :  { %v5374_v15 = vpop.f32.mrf.mxu0 }
  0xba   :  { %v5376_v16 = vpop.f32.mrf.mxu1 }
  0xbc   :  { %4199 = vmatmul.msk.f32.gmra.mxu0 %vm175_vm1, %v154_v17 }
  0xbd   :  { %4238 = vmatmul.msk.f32.gmra.mxu1 %vm175_vm1, %v154_v17  ;;  %v611_v17 = vld [vmem:[#allocation7 + $0x1a0] sm:$0xff] }
  0xc1   :  { %v5380_v26 = vpop.f32.mrf.mxu0 }
  0xc2   :  { %v5382_v27 = vpop.f32.mrf.mxu1 }
  0xc4   :  { %4200 = vmatmul.msk.f32.gmra.mxu0 %vm175_vm1, %v155_v28 }
  0xc5   :  { %4239 = vmatmul.msk.f32.gmra.mxu1 %vm175_vm1, %v155_v28 }
  0xc9   :  { %v5386_v37 = vpop.f32.mrf.mxu0 }
  0xca   :  { %v5388_v38 = vpop.f32.mrf.mxu1  ;;  %v691_v56 = vrot.slane %v5386_v37, 6 }
  0xcb   :  { %v694_v53 = vrot.slane %v5388_v38, 6 }
  0xcc   :  { %4201 = vmatmul.msk.f32.gmra.mxu0 %vm175_vm1, %v156_v39 }
  0xcd   :  { %4240 = vmatmul.msk.f32.gmra.mxu1 %vm175_vm1, %v156_v39 }
  0xd1   :  { %v326_v48 = vpop.f32.mrf.mxu0 }
  0xd2   :  { %v457_v49 = vpop.f32.mrf.mxu1  ;;  %v692_v54 = vrot.slane %v326_v48, 6 }
  0xd3   :  { %v695_v55 = vrot.slane %v457_v49, 6 }
  0xd4   :  { %4202 = vmatmul.msk.f32.gmra.mxu0 %vm175_vm1, %v157_v50  ;;  %v5397_v59 = vsel %vm690_vm2, %v691_v56, %v692_v54  ;;  %v593_v56 = vld [vmem:[#allocation7 + $0x110] sm:$0xff] }
  0xd5   :  { %4241 = vmatmul.msk.f32.gmra.mxu1 %vm175_vm1, %v157_v50  ;;  %v5400_v60 = vsel %vm690_vm2, %v694_v53, %v695_v55  ;;  %738 = vmatmul.f32.vlgmr.msra.gmra.mxu2 %v5397_v59  ;;  %v161_v50 = vld [vmem:[#allocation5 + $0xc0] sm:$0xff]  ;;  %v563_v53 = vld [vmem:[#allocation7 + $0x20] sm:$0xff] }
  0xd6   :  { %4259 = vmatmul.msk.f32.vlgmr.msra.gmra.mxu3 %vm713_vm3, %v5400_v60  ;;  %880 = vmatpush.msra.mxu2 %v617_v3  ;;  %v614_v3 = vld [vmem:[#allocation7 + $0x1b8] sm:$0xff] }
  0xd7   :  { %849 = vmatpush.msra.mxu3 %v589_v61  ;;  %v162_v61 = vld [vmem:[#allocation5 + $0xc8] sm:$0xff] }
  0xd8   :  { %881 = vmatpush.msra.mxu2 %v615_v9  ;;  %v584_v9 = vld [vmem:[#allocation7 + $0xc8] sm:$0xff] }
  0xd9   :  { %v329_v63 = vpop.f32.mrf.mxu0  ;;  %850 = vmatpush.msra.mxu3 %v587_v62  ;;  %v559_v62 = vld [vmem:[#allocation7] sm:$0xff] }
  0xda   :  { %v460_v0 = vpop.f32.mrf.mxu1  ;;  %v697_v4 = vrot.slane %v329_v63, 6  ;;  %882 = vmatpush.msra.mxu2 %v613_v13  ;;  %v618_v63 = vld [vmem:[#allocation7 + $0x1d8] sm:$0xff]  ;;  %v580_v13 = vld [vmem:[#allocation7 + $0xa8] sm:$0xff] }
  0xdb   :  { %v699_v5 = vrot.slane %v460_v0, 6  ;;  %851 = vmatpush.msra.mxu3 %v585_v2  ;;  %v588_v0 = vld [vmem:[#allocation7 + $0xe8] sm:$0xff]  ;;  %v586_v2 = vld [vmem:[#allocation7 + $0xd8] sm:$0xff] }
  0xdc   :  { %4203 = vmatmul.msk.f32.gmra.mxu0 %vm175_vm1, %v158_v1  ;;  %v5408_v10 = vsel %vm690_vm2, %v692_v54, %v697_v4  ;;  %883 = vmatpush.msra.mxu2 %v611_v17  ;;  %v595_v54 = vld [vmem:[#allocation7 + $0x120] sm:$0xff] }
  0xdd   :  { %4242 = vmatmul.msk.f32.gmra.mxu1 %vm175_vm1, %v158_v1  ;;  %v5411_v11 = vsel %vm690_vm2, %v695_v55, %v699_v5  ;;  %741 = vmatmul.f32.gmra.mxu2 %v5408_v10  ;;  %v561_v55 = vld [vmem:[#allocation7 + $0x10] sm:$0xff]  ;;  %v616_v1 = vld [vmem:[#allocation7 + $0x1c8] sm:$0xff] }
  0xde   :  { %4260 = vmatmul.msk.f32.gmra.mxu3 %vm713_vm3, %v5411_v11  ;;  %884 = vmatpush.msra.mxu2 %v609_v24  ;;  %v574_v24 = vld [vmem:[#allocation7 + $0x78] sm:$0xff] }
  0xdf   :  { %852 = vmatpush.msra.mxu3 %v583_v8  ;;  %v163_v8 = vld [vmem:[#allocation5 + $0xd0] sm:$0xff] }
  0xe0   :  { %885 = vmatpush.msra.mxu2 %v607_v30  ;;  %v165_v30 = vld [vmem:[#allocation5 + $0xe0] sm:$0xff] }
  0xe1   :  { %853 = vmatpush.msra.mxu3 %v581_v12  ;;  %v332_v18 = vpop.f32.mrf.mxu0  ;;  %v610_v12 = vld [vmem:[#allocation7 + $0x198] sm:$0xff] }
  0xe2   :  { %v463_v19 = vpop.f32.mrf.mxu1  ;;  %v701_v21 = vrot.slane %v332_v18, 6  ;;  %886 = vmatpush.msra.mxu2 %v605_v32  ;;  %v600_v32 = vld [vmem:[#allocation7 + $0x148] sm:$0xff] }
  0xe3   :  { %v703_v22 = vrot.slane %v463_v19, 6  ;;  %854 = vmatpush.msra.mxu3 %v579_v14  ;;  %v608_v14 = vld [vmem:[#allocation7 + $0x188] sm:$0xff] }
  0xe4   :  { %4204 = vmatmul.msk.f32.gmra.mxu0 %vm175_vm1, %v159_v20  ;;  %v5419_v25 = vsel %vm690_vm2, %v697_v4, %v701_v21  ;;  %887 = vmatpush.msra.mxu2 %v603_v41  ;;  %v164_v19 = vld [vmem:[#allocation5 + $0xd8] sm:$0xff] }
  0xe5   :  { %4243 = vmatmul.msk.f32.gmra.mxu1 %vm175_vm1, %v159_v20  ;;  %v5422_v28 = vsel %vm690_vm2, %v699_v5, %v703_v22  ;;  %744 = vmatmul.f32.gmra.mxu2 %v5419_v25  ;;  %v578_v20 = vld [vmem:[#allocation7 + $0x98] sm:$0xff] }
  0xe6   :  { %4261 = vmatmul.msk.f32.gmra.mxu3 %vm713_vm3, %v5422_v28  ;;  %888 = vmatpush.msra.mxu2 %v601_v45  ;;  %v594_v45 = vld [vmem:[#allocation7 + $0x118] sm:$0xff] }
  0xe7   :  { %855 = vmatpush.msra.mxu3 %v577_v23  ;;  %v604_v23 = vld [vmem:[#allocation7 + $0x168] sm:$0xff] }
  0xe8   :  { %889 = vmatpush.msra.mxu2 %v599_v47  ;;  %v592_v47 = vld [vmem:[#allocation7 + $0x108] sm:$0xff] }
  0xe9   :  { %856 = vmatpush.msra.mxu3 %v575_v29  ;;  %v5427_v33 = vpop.f32.mrf.mxu0 }
  0xea   :  { %v5429_v34 = vpop.f32.mrf.mxu1  ;;  %v705_v36 = vrot.slane %v5427_v33, 6  ;;  %890 = vmatpush.msra.mxu2 %v597_v52  ;;  %v1022_v52 = vld [vmem:[#allocation7 + $0x580] sm:$0xff] }
  0xeb   :  { %v707_v39 = vrot.slane %v5429_v34, 6  ;;  %857 = vmatpush.msra.mxu3 %v573_v31  ;;  %v572_v31 = vld [vmem:[#allocation7 + $0x68] sm:$0xff] }
  0xec   :  { %4205 = vmatmul.msk.f32.gmra.mxu0 %vm175_vm1, %v160_v35  ;;  %v5436_v42 = vsel %vm690_vm2, %v701_v21, %v705_v36  ;;  %891 = vmatpush.msra.mxu2 %v595_v54  ;;  %v606_v21 = vld [vmem:[#allocation7 + $0x178] sm:$0xff] }
  0xed   :  { %4244 = vmatmul.msk.f32.gmra.mxu1 %vm175_vm1, %v160_v35  ;;  %v5439_v43 = vsel %vm690_vm2, %v703_v22, %v707_v39  ;;  %747 = vmatmul.f32.gmra.mxu2 %v5436_v42  ;;  %v576_v22 = vld [vmem:[#allocation7 + $0x88] sm:$0xff]  ;;  %v570_v35 = vld [vmem:[#allocation7 + $0x58] sm:$0xff] }
  0xee   :  { %4262 = vmatmul.msk.f32.gmra.mxu3 %vm713_vm3, %v5439_v43  ;;  %892 = vmatpush.msra.mxu2 %v593_v56  ;;  %v598_v36 = vld [vmem:[#allocation7 + $0x138] sm:$0xff]  ;;  %v568_v39 = vld [vmem:[#allocation7 + $0x48] sm:$0xff] }
  0xef   :  { %858 = vmatpush.msra.mxu3 %v571_v40  ;;  %v596_v40 = vld [vmem:[#allocation7 + $0x128] sm:$0xff] }
  0xf0   :  { %v560_v56 = vld [vmem:[#allocation7 + $0x8] sm:$0xff] }
  0xf1   :  { %859 = vmatpush.msra.mxu3 %v569_v44  ;;  %v5444_v48 = vpop.f32.mrf.mxu0  ;;  %v566_v44 = vld [vmem:[#allocation7 + $0x38] sm:$0xff] }
  0xf2   :  { %v5446_v49 = vpop.f32.mrf.mxu1 }
  0xf3   :  { %860 = vmatpush.msra.mxu3 %v567_v46  ;;  %v564_v46 = vld [vmem:[#allocation7 + $0x28] sm:$0xff] }
  0xf4   :  { %4206 = vmatmul.msk.f32.gmra.mxu0 %vm175_vm1, %v161_v50 }
  0xf5   :  { %4245 = vmatmul.msk.f32.gmra.mxu1 %vm175_vm1, %v161_v50  ;;  %4263 = vmatmul.msk.f32.vlgmr.msrb.gmra.mxu2 %vm713_vm3, %v5400_v60  ;;  %v590_v60 = vld [vmem:[#allocation7 + $0xf8] sm:$0xff]  ;;  %v1024_v50 = vld [vmem:[#allocation7 + $0x590] sm:$0xff] }
  0xf6   :  { %796 = vmatmul.f32.vlgmr.msrb.gmra.mxu3 %v5397_v59  ;;  %v591_v59 = vld [vmem:[#allocation7 + $0x100] sm:$0xff] }
  0xf7   :  { %861 = vmatpush.msra.mxu3 %v565_v51  ;;  %893 = vmatpush.msra.mxu2 %v591_v59  ;;  %v562_v51 = vld [vmem:[#allocation7 + $0x18] sm:$0xff]  ;;  %v1018_v59 = vld [vmem:[#allocation7 + $0x560] sm:$0xff] }
  0xf9   :  { %862 = vmatpush.msra.mxu3 %v563_v53  ;;  %v5453_v57 = vpop.f32.mrf.mxu0  ;;  %938 = vmatpush.msrb.mxu2 %v618_v63  ;;  %v994_v63 = vld [vmem:[#allocation7 + $0x4a0] sm:$0xff] }
  0xfa   :  { %v5455_v58 = vpop.f32.mrf.mxu1 }
  0xfb   :  { %863 = vmatpush.msra.mxu3 %v561_v55  ;;  %939 = vmatpush.msrb.mxu2 %v616_v1  ;;  %v167_v55 = vld [vmem:[#allocation5 + $0xf0] sm:$0xff]  ;;  %v1016_v1 = vld [vmem:[#allocation7 + $0x550] sm:$0xff] }
  0xfc   :  { %4207 = vmatmul.msk.f32.gmra.mxu0 %vm175_vm1, %v162_v61 }
  0xfd   :  { %4246 = vmatmul.msk.f32.gmra.mxu1 %vm175_vm1, %v162_v61  ;;  %4264 = vmatmul.msk.f32.gmra.mxu2 %vm713_vm3, %v5411_v11  ;;  %v582_v11 = vld [vmem:[#allocation7 + $0xb8] sm:$0xff]  ;;  %v1020_v61 = vld [vmem:[#allocation7 + $0x570] sm:$0xff] }
  0xfe   :  { %799 = vmatmul.f32.gmra.mxu3 %v5408_v10  ;;  %940 = vmatpush.msrb.mxu2 %v614_v3  ;;  %v612_v10 = vld [vmem:[#allocation7 + $0x1a8] sm:$0xff] }
  0xff   :  { %864 = vmatpush.msra.mxu3 %v559_v62  ;;  %v996_v62 = vld [vmem:[#allocation7 + $0x4b0] sm:$0xff] }
 0x100   :  { %941 = vmatpush.msrb.mxu2 %v612_v10  ;;  %v1630_v10 = vld [vmem:[#allocation7 + $0xa30] sm:$0xff] }
 0x101   :  { %907 = vmatpush.msrb.mxu3 %v590_v60  ;;  %v5462_v4 = vpop.f32.mrf.mxu0  ;;  %v1634_v60 = vld [vmem:[#allocation7 + $0xa50] sm:$0xff] }
 0x102   :  { %v5464_v5 = vpop.f32.mrf.mxu1  ;;  %942 = vmatpush.msrb.mxu2 %v610_v12  ;;  %1703 = vmatpush.msrb.mxu0 %v1634_v60  ;;  %v1014_v12 = vld [vmem:[#allocation7 + $0x540] sm:$0xff] }
 0x103   :  { %908 = vmatpush.msrb.mxu3 %v588_v0  ;;  %v1632_v0 = vld [vmem:[#allocation7 + $0xa40] sm:$0xff] }
 0x104   :  { %4208 = vmatmul.msk.f32.gmra.mxu0 %vm175_vm1, %v163_v8  ;;  %943 = vmatpush.msrb.mxu2 %v608_v14  ;;  %v1628_v14 = vld [vmem:[#allocation7 + $0xa20] sm:$0xff] }
 0x105   :  { %909 = vmatpush.msrb.mxu3 %v586_v2  ;;  %4247 = vmatmul.msk.f32.gmra.mxu1 %vm175_vm1, %v163_v8  ;;  %v992_v2 = vld [vmem:[#allocation7 + $0x490] sm:$0xff]  ;;  %v1616_v60 = vld [vmem:[#allocation7 + $0x9c0] sm:$0xff] }
 0x106   :  { %802 = vmatmul.f32.gmra.mxu3 %v5419_v25  ;;  %4265 = vmatmul.msk.f32.gmra.mxu2 %vm713_vm3, %v5422_v28  ;;  %v602_v25 = vld [vmem:[#allocation7 + $0x158] sm:$0xff] }
 0x107   :  { %910 = vmatpush.msrb.mxu3 %v584_v9  ;;  %944 = vmatpush.msrb.mxu2 %v606_v21  ;;  %v168_v9 = vld [vmem:[#allocation5 + $0xf8] sm:$0xff]  ;;  %v1660_v21 = vld [vmem:[#allocation7 + $0xb20] sm:$0xff] }
 0x108   :  { %1704 = vmatpush.msrb.mxu0 %v1632_v0  ;;  %v1000_v0 = vld [vmem:[#allocation7 + $0x4d0] sm:$0xff] }
 0x109   :  { %911 = vmatpush.msrb.mxu3 %v582_v11  ;;  %v5471_v17 = vpop.f32.mrf.mxu0  ;;  %945 = vmatpush.msrb.mxu2 %v604_v23  ;;  %v990_v11 = vld [vmem:[#allocation7 + $0x480] sm:$0xff] }
 0x10a   :  { %v5473_v18 = vpop.f32.mrf.mxu1  ;;  %1705 = vmatpush.msrb.mxu0 %v1630_v10  ;;  %v986_v23 = vld [vmem:[#allocation7 + $0x460] sm:$0xff] }
 0x10b   :  { %912 = vmatpush.msrb.mxu3 %v580_v13  ;;  %946 = vmatpush.msrb.mxu2 %v602_v25  ;;  %v1662_v13 = vld [vmem:[#allocation7 + $0xb30] sm:$0xff]  ;;  %v998_v10 = vld [vmem:[#allocation7 + $0x4c0] sm:$0xff] }
 0x10c   :  { %4209 = vmatmul.msk.f32.gmra.mxu0 %vm175_vm1, %v164_v19  ;;  %1734 = vmatpush.msrb.mxu1 %v1662_v13  ;;  %v1658_v25 = vld [vmem:[#allocation7 + $0xb10] sm:$0xff] }
 0x10d   :  { %4248 = vmatmul.msk.f32.gmra.mxu1 %vm175_vm1, %v164_v19  ;;  %913 = vmatpush.msrb.mxu3 %v578_v20  ;;  %v988_v19 = vld [vmem:[#allocation7 + $0x470] sm:$0xff] }
 0x10e   :  { %805 = vmatmul.f32.gmra.mxu3 %v5436_v42  ;;  %4266 = vmatmul.msk.f32.gmra.mxu2 %vm713_vm3, %v5439_v43  ;;  %v166_v43 = vld [vmem:[#allocation5 + $0xe8] sm:$0xff]  ;;  %v1012_v20 = vld [vmem:[#allocation7 + $0x530] sm:$0xff] }
 0x10f   :  { %914 = vmatpush.msrb.mxu3 %v576_v22  ;;  %947 = vmatpush.msrb.mxu2 %v600_v32  ;;  %v1626_v22 = vld [vmem:[#allocation7 + $0xa10] sm:$0xff] }
 0x110   :  { %1706 = vmatpush.msrb.mxu0 %v1628_v14  ;;  %1735 = vmatpush.msrb.mxu1 %v1660_v21  ;;  %v171_v14 = vld [vmem:[#allocation5 + $0x110] sm:$0xff] }
 0x111   :  { %v5480_v28 = vpop.f32.mrf.mxu0  ;;  %915 = vmatpush.msrb.mxu3 %v574_v24  ;;  %948 = vmatpush.msrb.mxu2 %v598_v36  ;;  %v1010_v24 = vld [vmem:[#allocation7 + $0x520] sm:$0xff]  ;;  %v984_v36 = vld [vmem:[#allocation7 + $0x450] sm:$0xff] }
 0x112   :  { %v5482_v29 = vpop.f32.mrf.mxu1  ;;  %1707 = vmatpush.msrb.mxu0 %v1626_v22  ;;  %1736 = vmatpush.msrb.mxu1 %v1658_v25  ;;  %v1644_v21 = vld [vmem:[#allocation7 + $0xaa0] sm:$0xff]  ;;  %v1642_v25 = vld [vmem:[#allocation7 + $0xa90] sm:$0xff] }
 0x113   :  { %916 = vmatpush.msrb.mxu3 %v572_v31  ;;  %949 = vmatpush.msrb.mxu2 %v596_v40  ;;  %v1656_v40 = vld [vmem:[#allocation7 + $0xb00] sm:$0xff] }
 0x114   :  { %4210 = vmatmul.msk.f32.gmra.mxu0 %vm175_vm1, %v165_v30  ;;  %1737 = vmatpush.msrb.mxu1 %v1656_v40  ;;  %v970_v22 = vld [vmem:[#allocation7 + $0x3e0] sm:$0xff] }
 0x115   :  { %4249 = vmatmul.msk.f32.gmra.mxu1 %vm175_vm1, %v165_v30  ;;  %917 = vmatpush.msrb.mxu3 %v570_v35  ;;  %v1624_v30 = vld [vmem:[#allocation7 + $0xa00] sm:$0xff]  ;;  %v169_v35 = vld [vmem:[#allocation5 + $0x100] sm:$0xff] }
 0x116   :  { %865 = vmatmul.f32.vlgmr.msra.gmra.mxu3 %v5368_v6  ;;  %4267 = vmatmul.msk.f32.vlgmr.msra.gmra.mxu2 %vm713_vm3, %v5370_v7 }
 0x117   :  { %918 = vmatpush.msrb.mxu3 %v568_v39  ;;  %950 = vmatpush.msrb.mxu2 %v594_v45  ;;  %v1008_v39 = vld [vmem:[#allocation7 + $0x510] sm:$0xff]  ;;  %v1006_v45 = vld [vmem:[#allocation7 + $0x500] sm:$0xff] }
 0x118   :  { %1708 = vmatpush.msrb.mxu0 %v1624_v30  ;;  %v968_v30 = vld [vmem:[#allocation7 + $0x3d0] sm:$0xff] }
 0x119   :  { %v5489_v41 = vpop.f32.mrf.mxu0  ;;  %919 = vmatpush.msrb.mxu3 %v566_v44  ;;  %951 = vmatpush.msrb.mxu2 %v592_v47  ;;  %v982_v44 = vld [vmem:[#allocation7 + $0x440] sm:$0xff] }
 0x11a   :  { %v5491_v42 = vpop.f32.mrf.mxu1  ;;  %v1620_v47 = vld [vmem:[#allocation7 + $0x9e0] sm:$0xff] }
 0x11b   :  { %920 = vmatpush.msrb.mxu3 %v564_v46  ;;  %1095 = vmatpush.msra.mxu2 %v1024_v50  ;;  %v1654_v46 = vld [vmem:[#allocation7 + $0xaf0] sm:$0xff] }
 0x11c   :  { %4211 = vmatmul.msk.f32.gmra.mxu0 %vm175_vm1, %v166_v43  ;;  %v980_v50 = vld [vmem:[#allocation7 + $0x430] sm:$0xff]  ;;  %1738 = vmatpush.msrb.mxu1 %v1654_v46 }
 0x11d   :  { %4250 = vmatmul.msk.f32.gmra.mxu1 %vm175_vm1, %v166_v43  ;;  %921 = vmatpush.msrb.mxu3 %v562_v51  ;;  %v1622_v43 = vld [vmem:[#allocation7 + $0x9f0] sm:$0xff] }
 0x11e   :  { %868 = vmatmul.f32.gmra.mxu3 %v5374_v15  ;;  %4268 = vmatmul.msk.f32.gmra.mxu2 %vm713_vm3, %v5376_v16  ;;  %v1004_v51 = vld [vmem:[#allocation7 + $0x4f0] sm:$0xff] }
 0x11f   :  { %1096 = vmatpush.msra.mxu2 %v1022_v52  ;;  %922 = vmatpush.msrb.mxu3 %v560_v56  ;;  %v1652_v52 = vld [vmem:[#allocation7 + $0xae0] sm:$0xff]  ;;  %v1606_v46 = vld [vmem:[#allocation7 + $0x970] sm:$0xff] }
 0x120   :  { %1709 = vmatpush.msrb.mxu0 %v1622_v43  ;;  %1739 = vmatpush.msrb.mxu1 %v1652_v52  ;;  %v172_v43 = vld [vmem:[#allocation5 + $0x118] sm:$0xff]  ;;  %v1604_v52 = vld [vmem:[#allocation7 + $0x960] sm:$0xff] }
 0x121   :  { %v5498_v53 = vpop.f32.mrf.mxu0  ;;  %1097 = vmatpush.msra.mxu2 %v1020_v61  ;;  %1064 = vmatpush.msra.mxu3 %v996_v62  ;;  %v170_v61 = vld [vmem:[#allocation5 + $0x108] sm:$0xff]  ;;  %v1002_v62 = vld [vmem:[#allocation7 + $0x4e0] sm:$0xff] }
 0x122   :  { %v5500_v54 = vpop.f32.mrf.mxu1  ;;  %1710 = vmatpush.msrb.mxu0 %v1620_v47  ;;  %v1638_v47 = vld [vmem:[#allocation7 + $0xa70] sm:$0xff] }
 0x123   :  { %1098 = vmatpush.msra.mxu2 %v1018_v59  ;;  %1065 = vmatpush.msra.mxu3 %v994_v63  ;;  %v1650_v59 = vld [vmem:[#allocation7 + $0xad0] sm:$0xff] }
 0x124   :  { %4212 = vmatmul.msk.f32.gmra.mxu0 %vm175_vm1, %v167_v55  ;;  %v976_v63 = vld [vmem:[#allocation7 + $0x410] sm:$0xff]  ;;  %1740 = vmatpush.msrb.mxu1 %v1650_v59  ;;  %v993_v59 = vld [vmem:[#allocation7 + $0x498] sm:$0xff] }
 0x125   :  { %4251 = vmatmul.msk.f32.gmra.mxu1 %vm175_vm1, %v167_v55  ;;  %1099 = vmatpush.msra.mxu2 %v1016_v1  ;;  %v1618_v55 = vld [vmem:[#allocation7 + $0x9d0] sm:$0xff]  ;;  %v1648_v1 = vld [vmem:[#allocation7 + $0xac0] sm:$0xff] }
 0x126   :  { %871 = vmatmul.f32.gmra.mxu3 %v5380_v26  ;;  %4269 = vmatmul.msk.f32.gmra.mxu2 %vm713_vm3, %v5382_v27 }
 0x127   :  { %1066 = vmatpush.msra.mxu3 %v992_v2  ;;  %1100 = vmatpush.msra.mxu2 %v1014_v12  ;;  %v1614_v2 = vld [vmem:[#allocation7 + $0x9b0] sm:$0xff] }
 0x128   :  { %1711 = vmatpush.msrb.mxu0 %v1618_v55  ;;  %v1646_v12 = vld [vmem:[#allocation7 + $0xab0] sm:$0xff]  ;;  %1741 = vmatpush.msrb.mxu1 %v1648_v1  ;;  %v1636_v55 = vld [vmem:[#allocation7 + $0xa60] sm:$0xff]  ;;  %v1037_v1 = vrot.slane %v5429_v34, 4  ;;  %v989_v34 = vld [vmem:[#allocation7 + $0x478] sm:$0xff] }
 0x129   :  { %v5507_v3 = vpop.f32.mrf.mxu0  ;;  %1067 = vmatpush.msra.mxu3 %v990_v11  ;;  %1101 = vmatpush.msra.mxu2 %v1012_v20  ;;  %v1025_v11 = vld [vmem:[#allocation7 + $0x598] sm:$0xff]  ;;  %v1612_v20 = vld [vmem:[#allocation7 + $0x9a0] sm:$0xff] }
 0x12a   :  { %v5509_v8 = vpop.f32.mrf.mxu1  ;;  %1712 = vmatpush.msrb.mxu0 %v1616_v60  ;;  %1742 = vmatpush.msrb.mxu1 %v1646_v12  ;;  %v1854_v12 = vld [vmem:[#allocation7 + $0xc10] sm:$0xff] }
 0x12b   :  { %1068 = vmatpush.msra.mxu3 %v988_v19  ;;  %1102 = vmatpush.msra.mxu2 %v1010_v24  ;;  %v1023_v19 = vld [vmem:[#allocation7 + $0x588] sm:$0xff]  ;;  %v1610_v24 = vld [vmem:[#allocation7 + $0x990] sm:$0xff] }
 0x12c   :  { %4213 = vmatmul.msk.f32.gmra.mxu0 %vm175_vm1, %v168_v9  ;;  %1743 = vmatpush.msrb.mxu1 %v1644_v21  ;;  %v1042_v21 = vrot.slane %v5455_v58, 4  ;;  %v977_v58 = vld [vmem:[#allocation7 + $0x418] sm:$0xff] }
 0x12d   :  { %4252 = vmatmul.msk.f32.gmra.mxu1 %vm175_vm1, %v168_v9  ;;  %1069 = vmatpush.msra.mxu3 %v986_v23  ;;  %v974_v9 = vld [vmem:[#allocation7 + $0x400] sm:$0xff]  ;;  %v1021_v23 = vld [vmem:[#allocation7 + $0x578] sm:$0xff] }
 0x12e   :  { %874 = vmatmul.f32.gmra.mxu3 %v5386_v37  ;;  %4270 = vmatmul.msk.f32.gmra.mxu2 %vm713_vm3, %v5388_v38 }
 0x12f   :  { %1070 = vmatpush.msra.mxu3 %v984_v36  ;;  %1103 = vmatpush.msra.mxu2 %v1008_v39  ;;  %v1608_v36 = vld [vmem:[#allocation7 + $0x980] sm:$0xff] }
 0x130   :  { %1713 = vmatpush.msrb.mxu0 %v1614_v2  ;;  %v1640_v39 = vld [vmem:[#allocation7 + $0xa80] sm:$0xff]  ;;  %1744 = vmatpush.msrb.mxu1 %v1642_v25  ;;  %v1882_v25 = vld [vmem:[#allocation7 + $0xcf0] sm:$0xff] }
 0x131   :  { %v5516_v31 = vpop.f32.mrf.mxu0  ;;  %1071 = vmatpush.msra.mxu3 %v982_v44  ;;  %1104 = vmatpush.msra.mxu2 %v1006_v45  ;;  %v1017_v44 = vld [vmem:[#allocation7 + $0x558] sm:$0xff] }
 0x132   :  { %v5518_v32 = vpop.f32.mrf.mxu1  ;;  %1714 = vmatpush.msrb.mxu0 %v1612_v20  ;;  %1745 = vmatpush.msrb.mxu1 %v1640_v39  ;;  %v997_v45 = vld [vmem:[#allocation7 + $0x4b8] sm:$0xff]  ;;  %v1040_v20 = vrot.slane %v5453_v57, 4 }
 0x133   :  { %1072 = vmatpush.msra.mxu3 %v980_v50  ;;  %1105 = vmatpush.msra.mxu2 %v1004_v51  ;;  %v1015_v50 = vld [vmem:[#allocation7 + $0x548] sm:$0xff]  ;;  %v174_v39 = vld [vmem:[#allocation5 + $0x128] sm:$0xf] }
 0x134   :  { %4214 = vmatmul.msk.f32.gmra.mxu0 %vm175_vm1, %v169_v35  ;;  %v995_v51 = vld [vmem:[#allocation7 + $0x4a8] sm:$0xff]  ;;  %1746 = vmatpush.msrb.mxu1 %v1638_v47  ;;  %v1880_v47 = vld [vmem:[#allocation7 + $0xce0] sm:$0xff] }
 0x135   :  { %4253 = vmatmul.msk.f32.gmra.mxu1 %vm175_vm1, %v169_v35  ;;  %1106 = vmatpush.msra.mxu2 %v1002_v62  ;;  %v1019_v35 = vld [vmem:[#allocation7 + $0x568] sm:$0xff]  ;;  %v1038_v62 = vrot.slane %v5446_v49, 4 }
 0x136   :  { %923 = vmatmul.f32.vlgmr.msrb.gmra.mxu3 %v5368_v6  ;;  %4271 = vmatmul.msk.f32.vlgmr.msrb.gmra.mxu2 %vm713_vm3, %v5370_v7  ;;  %v978_v7 = vld [vmem:[#allocation7 + $0x420] sm:$0xff]  ;;  %v1011_v49 = vld [vmem:[#allocation7 + $0x528] sm:$0xff] }
 0x137   :  { %1073 = vmatpush.msra.mxu3 %v978_v7  ;;  %1107 = vmatpush.msra.mxu2 %v1000_v0  ;;  %v1035_v7 = vrot.slane %v5444_v48, 4  ;;  %v1034_v0 = vrot.slane %v5427_v33, 4  ;;  %v991_v48 = vld [vmem:[#allocation7 + $0x488] sm:$0xff]  ;;  %v1886_v33 = vld [vmem:[#allocation7 + $0xd10] sm:$0xff] }
 0x138   :  { %1715 = vmatpush.msrb.mxu0 %v1610_v24  ;;  %1747 = vmatpush.msrb.mxu1 %v1636_v55  ;;  %v1852_v24 = vld [vmem:[#allocation7 + $0xc00] sm:$0xff] }
 0x139   :  { %v5525_v56 = vpop.f32.mrf.mxu0  ;;  %1074 = vmatpush.msra.mxu3 %v976_v63  ;;  %1108 = vmatpush.msra.mxu2 %v998_v10  ;;  %v173_v63 = vld [vmem:[#allocation5 + $0x120] sm:$0xff]  ;;  %v5563_v2 = vsel %vm290_vm0, %v1034_v0, %v1035_v7  ;;  %v1856_v10 = vld [vmem:[#allocation7 + $0xc20] sm:$0xff]  ;;  %v1044_v0 = vrot.slane %v5462_v4, 4  ;;  %v971_v4 = vld [vmem:[#allocation7 + $0x3e8] sm:$0xff] }
 0x13a   :  { %v5527_v6 = vpop.f32.mrf.mxu1  ;;  %1716 = vmatpush.msrb.mxu0 %v1608_v36  ;;  %1957 = vmatpush.msra.mxu1 %v1886_v33  ;;  %v1876_v33 = vld [vmem:[#allocation7 + $0xcc0] sm:$0xff] }
 0x13b   :  { %1075 = vmatpush.msra.mxu3 %v974_v9  ;;  %1153 = vmatpush.msrb.mxu2 %v1025_v11  ;;  %v5566_v9 = vsel %vm290_vm0, %v1037_v1, %v1038_v62  ;;  %v1009_v11 = vld [vmem:[#allocation7 + $0x518] sm:$0xff]  ;;  %v1046_v1 = vrot.slane %v5464_v5, 4  ;;  %v1866_v5 = vld [vmem:[#allocation7 + $0xc70] sm:$0xff] }
 0x13c   :  { %4215 = vmatmul.msk.f32.gmra.mxu0 %vm175_vm1, %v170_v61 }
 0x13d   :  { %4254 = vmatmul.msk.f32.gmra.mxu1 %vm175_vm1, %v170_v61  ;;  %1154 = vmatpush.msrb.mxu2 %v1023_v19  ;;  %v1013_v61 = vld [vmem:[#allocation7 + $0x538] sm:$0xff]  ;;  %v1007_v19 = vld [vmem:[#allocation7 + $0x508] sm:$0xff] }
 0x13e   :  { %926 = vmatmul.f32.gmra.mxu3 %v5374_v15  ;;  %4272 = vmatmul.msk.f32.gmra.mxu2 %vm713_vm3, %v5376_v16  ;;  %v972_v16 = vld [vmem:[#allocation7 + $0x3f0] sm:$0xff] }
 0x13f   :  { %1076 = vmatpush.msra.mxu3 %v972_v16  ;;  %1155 = vmatpush.msrb.mxu2 %v1021_v23  ;;  %v987_v16 = vld [vmem:[#allocation7 + $0x468] sm:$0xff] }
 0x140   :  { %1717 = vmatpush.msrb.mxu0 %v1606_v46  ;;  %v1850_v46 = vld [vmem:[#allocation7 + $0xbf0] sm:$0xff] }
 0x141   :  { %v5534_v13 = vpop.f32.mrf.mxu0  ;;  %1077 = vmatpush.msra.mxu3 %v970_v22  ;;  %1156 = vmatpush.msrb.mxu2 %v1019_v35 }
 0x142   :  { %v5536_v15 = vpop.f32.mrf.mxu1  ;;  %1718 = vmatpush.msrb.mxu0 %v1604_v52 }
 0x143   :  { %1078 = vmatpush.msra.mxu3 %v968_v30  ;;  %1157 = vmatpush.msrb.mxu2 %v1017_v44  ;;  %v5584_v44 = vsel %vm290_vm0, %v1035_v7, %v1040_v20  ;;  %v1003_v7 = vld [vmem:[#allocation7 + $0x4e8] sm:$0xff] }
 0x144   :  { %4216 = vmatmul.msk.f32.gmra.mxu0 %vm175_vm1, %v171_v14 }
 0x145   :  { %4255 = vmatmul.msk.f32.gmra.mxu1 %vm175_vm1, %v171_v14  ;;  %1158 = vmatpush.msrb.mxu2 %v1015_v50  ;;  %v1884_v14 = vld [vmem:[#allocation7 + $0xd00] sm:$0xff]  ;;  %v1673_v50 = vrot.slane %v5534_v13, 6 }
 0x146   :  { %929 = vmatmul.f32.gmra.mxu3 %v5380_v26  ;;  %4273 = vmatmul.msk.f32.gmra.mxu2 %vm713_vm3, %v5382_v27  ;;  %v966_v27 = vld [vmem:[#allocation7 + $0x3c0] sm:$0xff] }
 0x147   :  { %1079 = vmatpush.msra.mxu3 %v966_v27  ;;  %1159 = vmatpush.msrb.mxu2 %v1013_v61  ;;  %v1005_v27 = vld [vmem:[#allocation7 + $0x4f8] sm:$0xff]  ;;  %v983_v61 = vld [vmem:[#allocation7 + $0x448] sm:$0xff] }
 0x148   :  { %1958 = vmatpush.msra.mxu1 %v1884_v14 }
 0x149   :  { %v5543_v40 = vpop.f32.mrf.mxu0  ;;  %1122 = vmatpush.msrb.mxu3 %v997_v45  ;;  %1160 = vmatpush.msrb.mxu2 %v1011_v49  ;;  %v5589_v45 = vsel %vm290_vm0, %v1038_v62, %v1042_v21  ;;  %v1848_v62 = vld [vmem:[#allocation7 + $0xbe0] sm:$0xff] }
 0x14a   :  { %v5545_v26 = vpop.f32.mrf.mxu1  ;;  %1959 = vmatpush.msra.mxu1 %v1882_v25  ;;  %v1674_v52 = vrot.slane %v5543_v40, 6  ;;  %v1844_v25 = vld [vmem:[#allocation7 + $0xbc0] sm:$0xff] }
 0x14b   :  { %1123 = vmatpush.msrb.mxu3 %v995_v51  ;;  %1161 = vmatpush.msrb.mxu2 %v1009_v11  ;;  %v1676_v51 = vrot.slane %v5536_v15, 6  ;;  %v1677_v55 = vrot.slane %v5545_v26, 6 }
 0x14c   :  { %4217 = vmatmul.msk.f32.gmra.mxu0 %vm175_vm1, %v172_v43  ;;  %1960 = vmatpush.msra.mxu1 %v1880_v47  ;;  %v5609_v14 = vsel %vm690_vm2, %v1673_v50, %v1674_v52  ;;  %v1245_v47 = vld [vmem:[#allocation7 + $0x760] sm:$0xff]  ;;  %v1048_v50 = vrot.slane %v5471_v17, 4 }
 0x14d   :  { %4256 = vmatmul.msk.f32.gmra.mxu1 %vm175_vm1, %v172_v43  ;;  %1124 = vmatpush.msrb.mxu3 %v993_v59  ;;  %v985_v43 = vld [vmem:[#allocation7 + $0x458] sm:$0xff]  ;;  %v1878_v59 = vld [vmem:[#allocation7 + $0xcd0] sm:$0xff] }
 0x14e   :  { %932 = vmatmul.f32.gmra.mxu3 %v5386_v37  ;;  %4274 = vmatmul.msk.f32.gmra.mxu2 %vm713_vm3, %v5388_v38  ;;  %v1858_v37 = vld [vmem:[#allocation7 + $0xc30] sm:$0xff]  ;;  %v5663_v40 = vsel %vm290_vm0, %v1044_v0, %v1048_v50 }
 0x14f   :  { %1926 = vmatpush.msra.mxu0 %v1858_v37  ;;  %1125 = vmatpush.msrb.mxu3 %v991_v48  ;;  %v981_v37 = vld [vmem:[#allocation7 + $0x438] sm:$0xff] }
 0x150   :  { %1162 = vmatpush.msrb.mxu2 %v1007_v19  ;;  %1961 = vmatpush.msra.mxu1 %v1878_v59  ;;  %v979_v19 = vld [vmem:[#allocation7 + $0x428] sm:$0xff]  ;;  %v1870_v59 = vld [vmem:[#allocation7 + $0xc90] sm:$0xff] }
 0x151   :  { %v5554_v60 = vpop.f32.mrf.mxu0  ;;  %1927 = vmatpush.msra.mxu0 %v1856_v10  ;;  %1126 = vmatpush.msrb.mxu3 %v989_v34  ;;  %v1846_v10 = vld [vmem:[#allocation7 + $0xbd0] sm:$0xff] }
 0x152   :  { %v5556_v38 = vpop.f32.mrf.mxu1  ;;  %1163 = vmatpush.msrb.mxu2 %v1005_v27  ;;  %1962 = vmatpush.msra.mxu1 %v1876_v33  ;;  %v1872_v27 = vld [vmem:[#allocation7 + $0xca0] sm:$0xff]  ;;  %v973_v33 = vld [vmem:[#allocation7 + $0x3f8] sm:$0xff] }
 0x153   :  { %1928 = vmatpush.msra.mxu0 %v1854_v12  ;;  %1127 = vmatpush.msrb.mxu3 %v987_v16  ;;  %v5614_v16 = vsel %vm690_vm2, %v1676_v51, %v1677_v55  ;;  %v1681_v57 = vrot.slane %v5556_v38, 6  ;;  %v1050_v51 = vrot.slane %v5473_v18, 4  ;;  %v1237_v38 = vld [vmem:[#allocation7 + $0x720] sm:$0xff] }
 0x154   :  { %4218 = vmatmul.msk.f32.gmra.mxu0 %vm175_vm1, %v173_v63  ;;  %1164 = vmatpush.msrb.mxu2 %v1003_v7 }
 0x155   :  { %4257 = vmatmul.msk.f32.gmra.mxu1 %vm175_vm1, %v173_v63  ;;  %1929 = vmatpush.msra.mxu0 %v1852_v24  ;;  %v1001_v63 = vld [vmem:[#allocation7 + $0x4d8] sm:$0xff]  ;;  %v5628_v24 = vsel %vm290_vm0, %v1042_v21, %v1046_v1  ;;  %v1842_v21 = vld [vmem:[#allocation7 + $0xbb0] sm:$0xff]  ;;  %v5668_v26 = vsel %vm290_vm0, %v1046_v1, %v1050_v51  ;;  %v1241_v1 = vld [vmem:[#allocation7 + $0x740] sm:$0xff] }
 0x156   :  { %1080 = vmatmul.f32.vlgmr.msra.gmra.mxu3 %v5563_v2  ;;  %4275 = vmatmul.msk.f32.vlgmr.msra.gmra.mxu2 %vm713_vm3, %v5566_v9  ;;  %v967_v51 = vld [vmem:[#allocation7 + $0x3c8] sm:$0xff] }
 0x157   :  { %1128 = vmatpush.msrb.mxu3 %v985_v43  ;;  %1930 = vmatpush.msra.mxu0 %v1850_v46  ;;  %v1679_v43 = vrot.slane %v5554_v60, 6  ;;  %v975_v46 = vld [vmem:[#allocation7 + $0x408] sm:$0xff]  ;;  %v1862_v60 = vld [vmem:[#allocation7 + $0xc50] sm:$0xff] }
 0x158   :  { %v739_v22 = vpop.f32.mrf.mxu2  ;;  %1165 = vmatpush.msrb.mxu2 %v1001_v63 }
 0x159   :  { %v768_v23 = vpop.f32.mrf.mxu3  ;;  %v5575_v35 = vpop.f32.mrf.mxu0  ;;  %1129 = vmatpush.msrb.mxu3 %v983_v61  ;;  %1931 = vmatpush.msra.mxu0 %v1848_v62  ;;  %v1840_v62 = vld [vmem:[#allocation7 + $0xba0] sm:$0xff] }
 0x15a   :  { %v5573_v30 = vadd.f32 %v768_v23, %v739_v22  ;;  %v5577_v36 = vpop.f32.mrf.mxu1  ;;  %v999_v22 = vld [vmem:[#allocation7 + $0x4c8] sm:$0xff]  ;;  %v5621_v23 = vsel %vm290_vm0, %v1040_v20, %v1044_v0  ;;  %v1247_v20 = vld [vmem:[#allocation7 + $0x770] sm:$0xff]  ;;  %v1836_v0 = vld [vmem:[#allocation7 + $0xb80] sm:$0xff] }
 0x15b   :  { %1130 = vmatpush.msrb.mxu3 %v981_v37  ;;  %1932 = vmatpush.msra.mxu0 %v1846_v10  ;;  %v5658_v10 = vsel %vm690_vm2, %v1677_v55, %v1681_v57  ;;  %v1243_v55 = vld [vmem:[#allocation7 + $0x750] sm:$0xff] }
 0x15c   :  { %4219 = vmatmul.msk.f32.gmra.mxu0 %vm175_vm1, %v174_v39  ;;  %1166 = vmatpush.msrb.mxu2 %v999_v22  ;;  %v1683_v22 = vrot.slane %v5575_v35, 6  ;;  %v1864_v35 = vld [vmem:[#allocation7 + $0xc60] sm:$0xff] }
 0x15d   :  { %4258 = vmatmul.msk.f32.gmra.mxu1 %vm175_vm1, %v174_v39  ;;  %v1874_v39 = vld [vmem:[#allocation7 + $0xcb0] sm:$0xff]  ;;  %1131 = vmatpush.msrb.mxu3 %v979_v19 }
 0x15e   :  { %1083 = vmatmul.f32.gmra.mxu3 %v5584_v44  ;;  %4276 = vmatmul.msk.f32.gmra.mxu2 %vm713_vm3, %v5589_v45  ;;  %v1838_v19 = vld [vmem:[#allocation7 + $0xb90] sm:$0xff] }
 0x15f   :  { %1933 = vmatpush.msra.mxu0 %v1844_v25  ;;  %1963 = vmatpush.msra.mxu1 %v1874_v39  ;;  %v1685_v25 = vrot.slane %v5577_v36, 6  ;;  %v969_v39 = vld [vmem:[#allocation7 + $0x3d8] sm:$0xff]  ;;  %v5687_v36 = vsel %vm690_vm2, %v1679_v43, %v1683_v22 }
 0x160   :  { %v742_v48 = vpop.f32.mrf.mxu2  ;;  %1132 = vmatpush.msrb.mxu3 %v977_v58  ;;  %1313 = vmatpush.msra.mxu2 %v1247_v20  ;;  %v1834_v58 = vld [vmem:[#allocation7 + $0xb70] sm:$0xff] }
 0x161   :  { %v771_v49 = vpop.f32.mrf.mxu3  ;;  %v5602_v11 = vpop.f32.mrf.mxu0  ;;  %1934 = vmatpush.msra.mxu0 %v1842_v21  ;;  %1964 = vmatpush.msra.mxu1 %v1872_v27  ;;  %v1239_v27 = vld [vmem:[#allocation7 + $0x730] sm:$0xff] }
 0x162   :  { %v5600_v34 = vadd.f32 %v771_v49, %v742_v48  ;;  %v5604_v12 = vpop.f32.mrf.mxu1  ;;  %v5651_v49 = vsel %vm690_vm2, %v1674_v52, %v1679_v43  ;;  %1133 = vmatpush.msrb.mxu3 %v975_v46  ;;  %1314 = vmatpush.msra.mxu2 %v1245_v47  ;;  %v1868_v52 = vld [vmem:[#allocation7 + $0xc80] sm:$0xff]  ;;  %v1687_v43 = vrot.slane %v5602_v11, 6 }
 0x163   :  { %1935 = vmatpush.msra.mxu0 %v1840_v62  ;;  %1965 = vmatpush.msra.mxu1 %v1870_v59  ;;  %v1832_v62 = vld [vmem:[#allocation7 + $0xb60] sm:$0xff] }
 0x164   :  { %1719 = vmatmul.f32.vlgmr.msrb.gmra.mxu0 %v5609_v14  ;;  %1134 = vmatpush.msrb.mxu3 %v973_v33  ;;  %v1217_v59 = vld [vmem:[#allocation7 + $0x680] sm:$0xff] }
 0x165   :  { %4299 = vmatmul.msk.f32.vlgmr.msrb.gmra.mxu1 %vm713_vm3, %v5614_v16  ;;  %1936 = vmatpush.msra.mxu0 %v1838_v19  ;;  %v1860_v33 = vld [vmem:[#allocation7 + $0xc40] sm:$0xff]  ;;  %v1689_v19 = vrot.slane %v5604_v12, 6 }
 0x166   :  { %1086 = vmatmul.f32.gmra.mxu3 %v5621_v23  ;;  %4277 = vmatmul.msk.f32.gmra.mxu2 %vm713_vm3, %v5628_v24 }
 0x167   :  { %1966 = vmatpush.msra.mxu1 %v1868_v52  ;;  %1315 = vmatpush.msra.mxu2 %v1243_v55  ;;  %v1215_v52 = vld [vmem:[#allocation7 + $0x670] sm:$0xff] }
 0x168   :  { %v745_v61 = vpop.f32.mrf.mxu2  ;;  %1135 = vmatpush.msrb.mxu3 %v971_v4  ;;  %1937 = vmatpush.msra.mxu0 %v1836_v0  ;;  %v1235_v55 = vld [vmem:[#allocation7 + $0x710] sm:$0xff] }
 0x169   :  { %v774_v7 = vpop.f32.mrf.mxu3  ;;  %v5642_v63 = vpop.f32.mrf.mxu0  ;;  %1967 = vmatpush.msra.mxu1 %v1866_v5  ;;  %1316 = vmatpush.msra.mxu2 %v1241_v1 }
 0x16a   :  { %v5640_v37 = vadd.f32 %v774_v7, %v745_v61  ;;  %v5644_v48 = vpop.f32.mrf.mxu1  ;;  %1136 = vmatpush.msrb.mxu3 %v969_v39  ;;  %1938 = vmatpush.msra.mxu0 %v1834_v58  ;;  %v5692_v61 = vsel %vm690_vm2, %v1681_v57, %v1685_v25  ;;  %v1219_v7 = vld [vmem:[#allocation7 + $0x690] sm:$0xff]  ;;  %v1213_v58 = vld [vmem:[#allocation7 + $0x660] sm:$0xff] }
 0x16b   :  { %1968 = vmatpush.msra.mxu1 %v1864_v35  ;;  %1317 = vmatpush.msra.mxu2 %v1239_v27  ;;  %v1830_v57 = vld [vmem:[#allocation7 + $0xb50] sm:$0xff] }
 0x16c   :  { %6884 = vst [vmem:[#allocation19_spill] sm:$0xff] %v5640_v37  ;;  %1722 = vmatmul.f32.gmra.mxu0 %v5651_v49  ;;  %1137 = vmatpush.msrb.mxu3 %v967_v51  ;;  %v1211_v35 = vld [vmem:[#allocation7 + $0x650] sm:$0xff]  ;;  %v1233_v51 = vld [vmem:[#allocation7 + $0x700] sm:$0xff] }
 0x16d   :  { %4300 = vmatmul.msk.f32.gmra.mxu1 %vm713_vm3, %v5658_v10  ;;  %1939 = vmatpush.msra.mxu0 %v1832_v62  ;;  %v2081_v27 = vld [vmem:[#allocation7 + $0xe10] sm:$0xff]  ;;  %v1209_v62 = vld [vmem:[#allocation7 + $0x640] sm:$0xff] }
 0x16e   :  { %1089 = vmatmul.f32.gmra.mxu3 %v5663_v40  ;;  %4278 = vmatmul.msk.f32.gmra.mxu2 %vm713_vm3, %v5668_v26  ;;  %v2294_v37 = vld [vmem:[#allocation7 + $0xfd0] sm:$0xff] }
 0x16f   :  { %1282 = vmatpush.msra.mxu3 %v1219_v7  ;;  %1969 = vmatpush.msra.mxu1 %v1862_v60  ;;  %v1896_v7 = vrot.slane %v5602_v11, 4  ;;  %v2079_v60 = vld [vmem:[#allocation7 + $0xe00] sm:$0xff]  ;;  %v1207_v11 = vld [vmem:[#allocation7 + $0x630] sm:$0xff] }
 0x170   :  { %v748_v20 = vpop.f32.mrf.mxu2  ;;  %1318 = vmatpush.msra.mxu2 %v1237_v38  ;;  %1940 = vmatpush.msra.mxu0 %v1830_v57  ;;  %v1900_v38 = vrot.slane %v5644_v48, 4 }
 0x171   :  { %v777_v21 = vpop.f32.mrf.mxu3  ;;  %v5680_v47 = vpop.f32.mrf.mxu0  ;;  %1283 = vmatpush.msra.mxu3 %v1217_v59  ;;  %1970 = vmatpush.msra.mxu1 %v1860_v33  ;;  %v1899_v59 = vrot.slane %v5604_v12, 4  ;;  %v1229_v33 = vld [vmem:[#allocation7 + $0x6e0] sm:$0xff] }
 0x172   :  { %v5678_v46 = vadd.f32 %v777_v21, %v748_v20  ;;  %v5682_v50 = vpop.f32.mrf.mxu1  ;;  %v5709_v20 = vsel %vm690_vm2, %v1683_v22, %v1687_v43  ;;  %1319 = vmatpush.msra.mxu2 %v1235_v55  ;;  %v5712_v21 = vsel %vm690_vm2, %v1685_v25, %v1689_v19  ;;  %v1897_v22 = vrot.slane %v5642_v63, 4  ;;  %v2107_v25 = vld [vmem:[#allocation7 + $0xee0] sm:$0xff]  ;;  %v1231_v43 = vld [vmem:[#allocation7 + $0x6f0] sm:$0xff] }
 0x173   :  { %1284 = vmatpush.msra.mxu3 %v1215_v52  ;;  %v2105_v63 = vld [vmem:[#allocation7 + $0xed0] sm:$0xff]  ;;  %v1205_v55 = vld [vmem:[#allocation7 + $0x620] sm:$0xff]  ;;  %v5736_v48 = vsel %vm290_vm0, %v1899_v59, %v1900_v38 }
 0x174   :  { %6885 = vst [vmem:[#allocation20_spill] sm:$0xff] %v5678_v46  ;;  %1725 = vmatmul.f32.gmra.mxu0 %v5687_v36  ;;  %1320 = vmatpush.msra.mxu2 %v1233_v51  ;;  %v5733_v12 = vsel %vm290_vm0, %v1896_v7, %v1897_v22  ;;  %v1225_v51 = vld [vmem:[#allocation7 + $0x6c0] sm:$0xff]  ;;  %v1904_v7 = vrot.slane %v5682_v50, 4  ;;  %v1200_v46 = vld [vmem:[#allocation7 + $0x5f8] sm:$0xff] }
 0x175   :  { %4301 = vmatmul.msk.f32.gmra.mxu1 %vm713_vm3, %v5692_v61  ;;  %1285 = vmatpush.msra.mxu3 %v1213_v58  ;;  %v1201_v58 = vld [vmem:[#allocation7 + $0x600] sm:$0xff] }
 0x176   :  { %1138 = vmatmul.f32.vlgmr.msrb.gmra.mxu3 %v5563_v2  ;;  %4279 = vmatmul.msk.f32.vlgmr.msrb.gmra.mxu2 %vm713_vm3, %v5566_v9  ;;  %v1828_v2 = vld [vmem:[#allocation7 + $0xb40] sm:$0xff]  ;;  %v2109_v9 = vld [vmem:[#allocation7 + $0xef0] sm:$0xff] }
 0x177   :  { %1941 = vmatpush.msra.mxu0 %v1828_v2  ;;  %2174 = vmatpush.msrb.mxu1 %v2109_v9  ;;  %v1227_v2 = vld [vmem:[#allocation7 + $0x6d0] sm:$0xff]  ;;  %v1902_v9 = vrot.slane %v5680_v47, 4 }
 0x178   :  { %v826_v0 = vpop.f32.mrf.mxu2  ;;  %1286 = vmatpush.msra.mxu3 %v1211_v35  ;;  %1321 = vmatpush.msra.mxu2 %v1231_v43  ;;  %v2103_v35 = vld [vmem:[#allocation7 + $0xec0] sm:$0xff]  ;;  %v1223_v43 = vld [vmem:[#allocation7 + $0x6b0] sm:$0xff] }
 0x179   :  { %v797_v4 = vpop.f32.mrf.mxu3  ;;  %v5704_v1 = vpop.f32.mrf.mxu0  ;;  %2143 = vmatpush.msrb.mxu0 %v2081_v27  ;;  %2175 = vmatpush.msrb.mxu1 %v2107_v25  ;;  %v2073_v27 = vld [vmem:[#allocation7 + $0xdd0] sm:$0xff]  ;;  %v5757_v50 = vsel %vm290_vm0, %v1897_v22, %v1902_v9  ;;  %v1193_v22 = vld [vmem:[#allocation7 + $0x5c0] sm:$0xff] }
 0x17a   :  { %v5702_v5 = vadd.f32 %v826_v0, %v797_v4  ;;  %v5706_v39 = vpop.f32.mrf.mxu1  ;;  %1287 = vmatpush.msra.mxu3 %v1209_v62  ;;  %v1203_v4 = vld [vmem:[#allocation7 + $0x610] sm:$0xff]  ;;  %1322 = vmatpush.msra.mxu2 %v1229_v33  ;;  %v2075_v0 = vld [vmem:[#allocation7 + $0xde0] sm:$0xff] }
 0x17b   :  { %2144 = vmatpush.msrb.mxu0 %v2079_v60  ;;  %2176 = vmatpush.msrb.mxu1 %v2105_v63  ;;  %v1199_v62 = vld [vmem:[#allocation7 + $0x5f0] sm:$0xff]  ;;  %v1197_v63 = vld [vmem:[#allocation7 + $0x5e0] sm:$0xff] }
 0x17c   :  { %6886 = vst [vmem:[#allocation21_spill] sm:$0xff] %v5702_v5  ;;  %1728 = vmatmul.f32.gmra.mxu0 %v5709_v20  ;;  %1288 = vmatpush.msra.mxu3 %v1207_v11  ;;  %v2101_v25 = vld [vmem:[#allocation7 + $0xeb0] sm:$0xff] }
 0x17d   :  { %4302 = vmatmul.msk.f32.gmra.mxu1 %vm713_vm3, %v5712_v21  ;;  %1323 = vmatpush.msra.mxu2 %v1227_v2  ;;  %v1195_v33 = vld [vmem:[#allocation7 + $0x5d0] sm:$0xff]  ;;  %v2099_v2 = vld [vmem:[#allocation7 + $0xea0] sm:$0xff] }
 0x17e   :  { %1141 = vmatmul.f32.gmra.mxu3 %v5584_v44  ;;  %4280 = vmatmul.msk.f32.gmra.mxu2 %vm713_vm3, %v5589_v45  ;;  %v2077_v45 = vld [vmem:[#allocation7 + $0xdf0] sm:$0xff] }
 0x17f   :  { %2145 = vmatpush.msrb.mxu0 %v2077_v45  ;;  %1289 = vmatpush.msra.mxu3 %v1205_v55  ;;  %v5760_v45 = vsel %vm290_vm0, %v1900_v38, %v1904_v7  ;;  %v2069_v55 = vld [vmem:[#allocation7 + $0xdb0] sm:$0xff]  ;;  %v2067_v38 = vld [vmem:[#allocation7 + $0xda0] sm:$0xff] }
 0x180   :  { %v5726_v57 = vpop.f32.mrf.mxu2  ;;  %2177 = vmatpush.msrb.mxu1 %v2103_v35  ;;  %1324 = vmatpush.msra.mxu2 %v1225_v51  ;;  %v6851_v35 = vrot.slane %v5706_v39, 4  ;;  %v2097_v51 = vld [vmem:[#allocation7 + $0xe90] sm:$0xff] }
 0x181   :  { %v5724_v44 = vpop.f32.mrf.mxu3  ;;  %6888 = vst [vmem:[#allocation23_spill] sm:$0xff] %v5726_v57  ;;  %v5728_v19 = vpop.f32.mrf.mxu0  ;;  %1290 = vmatpush.msra.mxu3 %v1203_v4  ;;  %2146 = vmatpush.msrb.mxu0 %v2075_v0  ;;  %v1221_v4 = vld [vmem:[#allocation7 + $0x6a0] sm:$0xff]  ;;  %v6852_v0 = vrot.slane %v5704_v1, 4 }
 0x182   :  { %6887 = vst [vmem:[#allocation22_spill] sm:$0xff] %v5724_v44  ;;  %v5730_v52 = vpop.f32.mrf.mxu1  ;;  %2178 = vmatpush.msrb.mxu1 %v2101_v25  ;;  %1325 = vmatpush.msra.mxu2 %v1223_v43  ;;  %v6849_v25 = vrot.slane %v5482_v29, 2 }
 0x183   :  { %1291 = vmatpush.msra.mxu3 %v1201_v58  ;;  %2147 = vmatpush.msrb.mxu0 %v2073_v27  ;;  %v1248_v58 = vld [vmem:[#allocation7 + $0x778] sm:$0xff]  ;;  %v1191_v27 = vld [vmem:[#allocation7 + $0x5b0] sm:$0xff] }
 0x184   :  { %1942 = vmatmul.f32.vlgmr.msra.gmra.mxu0 %v5733_v12  ;;  %1326 = vmatpush.msra.mxu2 %v1221_v4 }
 0x185   :  { %4307 = vmatmul.msk.f32.vlgmr.msra.gmra.mxu1 %vm713_vm3, %v5736_v48  ;;  %1292 = vmatpush.msra.mxu3 %v1199_v62  ;;  %v1256_v62 = vrot.slane %v5471_v17, 2  ;;  %v1189_v17 = vld [vmem:[#allocation7 + $0x5a0] sm:$0xff] }
 0x186   :  { %1144 = vmatmul.f32.gmra.mxu3 %v5621_v23  ;;  %4281 = vmatmul.msk.f32.gmra.mxu2 %vm713_vm3, %v5628_v24  ;;  %v2071_v24 = vld [vmem:[#allocation7 + $0xdc0] sm:$0xff] }
 0x187   :  { %2148 = vmatpush.msrb.mxu0 %v2071_v24  ;;  %1293 = vmatpush.msra.mxu3 %v1197_v63  ;;  %v2065_v63 = vld [vmem:[#allocation7 + $0xd90] sm:$0xff] }
 0x188   :  { %2179 = vmatpush.msrb.mxu1 %v2099_v2  ;;  %1371 = vmatpush.msrb.mxu2 %v1248_v58  ;;  %v1220_v2 = vld [vmem:[#allocation7 + $0x698] sm:$0xff]  ;;  %v2095_v58 = vld [vmem:[#allocation7 + $0xe80] sm:$0xff] }
 0x189   :  { %v5746_v60 = vpop.f32.mrf.mxu3  ;;  %v5748_v23 = vpop.f32.mrf.mxu2  ;;  %1294 = vmatpush.msra.mxu3 %v1195_v33  ;;  %2149 = vmatpush.msrb.mxu0 %v2069_v55  ;;  %v1246_v33 = vld [vmem:[#allocation7 + $0x768] sm:$0xff] }
 0x18a   :  { %6889 = vst [vmem:[#allocation24_spill] sm:$0xff] %v5746_v60  ;;  %v5750_v59 = vpop.f32.mrf.mxu0  ;;  %v5752_v11 = vpop.f32.mrf.mxu1  ;;  %2180 = vmatpush.msrb.mxu1 %v2097_v51  ;;  %1372 = vmatpush.msrb.mxu2 %v1246_v33  ;;  %v1244_v51 = vld [vmem:[#allocation7 + $0x758] sm:$0xff]  ;;  %v2085_v60 = vld [vmem:[#allocation7 + $0xe30] sm:$0xff] }
 0x18b   :  { %6890 = vst [vmem:[#allocation25_spill] sm:$0xff] %v5748_v23  ;;  %1295 = vmatpush.msra.mxu3 %v1193_v22  ;;  %2150 = vmatpush.msrb.mxu0 %v2067_v38  ;;  %v5792_v22 = vsel %vm290_vm0, %v1904_v7, %v6851_v35  ;;  %v1910_v7 = vrot.slane %v5728_v19, 4  ;;  %v1216_v33 = vld [vmem:[#allocation7 + $0x678] sm:$0xff] }
 0x18c   :  { %1945 = vmatmul.f32.gmra.mxu0 %v5757_v50  ;;  %2181 = vmatpush.msrb.mxu1 %v2095_v58  ;;  %v6894_v58 = vrot.slane %v5704_v1, 4 }
 0x18d   :  { %4308 = vmatmul.msk.f32.gmra.mxu1 %vm713_vm3, %v5760_v45  ;;  %1296 = vmatpush.msra.mxu3 %v1191_v27  ;;  %v1218_v27 = vld [vmem:[#allocation7 + $0x688] sm:$0xff] }
 0x18e   :  { %1147 = vmatmul.f32.gmra.mxu3 %v5663_v40  ;;  %4282 = vmatmul.msk.f32.gmra.mxu2 %vm713_vm3, %v5668_v26  ;;  %v1259_v40 = vrot.slane %v5473_v18, 2  ;;  %v6850_v26 = vrot.slane %v5480_v28, 2  ;;  %v5787_v18 = vsel %vm290_vm0, %v1902_v9, %v6852_v0  ;;  %v2063_v9 = vld [vmem:[#allocation7 + $0xd80] sm:$0xff] }
 0x18f   :  { %2151 = vmatpush.msrb.mxu0 %v2065_v63  ;;  %1297 = vmatpush.msra.mxu3 %v1189_v17  ;;  %v1912_v63 = vrot.slane %v5730_v52, 4  ;;  %v1242_v17 = vld [vmem:[#allocation7 + $0x748] sm:$0xff] }
 0x190   :  { %v5797_v38 = vsel %vm1255_vm4, %v1259_v40, %v6849_v25  ;;  %v5802_v47 = vsel %vm1255_vm4, %v1256_v62, %v6850_v26  ;;  %v2061_v40 = vld [vmem:[#allocation7 + $0xd70] sm:$0xff]  ;;  %1373 = vmatpush.msrb.mxu2 %v1244_v51  ;;  %v5825_v25 = vsel %vm290_vm0, %v6894_v58, %v1910_v7  ;;  %v1212_v26 = vld [vmem:[#allocation7 + $0x658] sm:$0xff]  ;;  %v6898_v7 = vrot.slane %v5491_v42, 2  ;;  %v1238_v58 = vld [vmem:[#allocation7 + $0x728] sm:$0xff] }
 0x191   :  { %v5774_v24 = vpop.f32.mrf.mxu3  ;;  %v5776_v43 = vpop.f32.mrf.mxu2  ;;  %1340 = vmatpush.msrb.mxu3 %v1220_v2  ;;  %v2093_v62 = vld [vmem:[#allocation7 + $0xe70] sm:$0xff]  ;;  %2152 = vmatpush.msrb.mxu0 %v2063_v9  ;;  %v1214_v9 = vld [vmem:[#allocation7 + $0x668] sm:$0xff] }
 0x192   :  { %6891 = vst [vmem:[#allocation26_spill] sm:$0xff] %v5774_v24  ;;  %v5778_v55 = vpop.f32.mrf.mxu0  ;;  %v5780_v4 = vpop.f32.mrf.mxu1  ;;  %v2091_v24 = vld [vmem:[#allocation7 + $0xe60] sm:$0xff]  ;;  %2182 = vmatpush.msrb.mxu1 %v2093_v62  ;;  %1374 = vmatpush.msrb.mxu2 %v1242_v17  ;;  %v6897_v62 = vrot.slane %v5480_v28, 2  ;;  %v1210_v28 = vld [vmem:[#allocation7 + $0x648] sm:$0xff] }
 0x193   :  { %6892 = vst [vmem:[#allocation27_spill] sm:$0xff] %v5776_v43  ;;  %1341 = vmatpush.msrb.mxu3 %v1218_v27  ;;  %v2059_v43 = vld [vmem:[#allocation7 + $0xd60] sm:$0xff]  ;;  %2153 = vmatpush.msrb.mxu0 %v2061_v40  ;;  %v6895_v27 = vrot.slane %v5706_v39, 4  ;;  %v6896_v40 = vrot.slane %v5489_v41, 2  ;;  %v2057_v39 = vld [vmem:[#allocation7 + $0xd50] sm:$0xff] }
 0x194   :  { %1948 = vmatmul.f32.gmra.mxu0 %v5787_v18  ;;  %2183 = vmatpush.msrb.mxu1 %v2091_v24  ;;  %v2055_v17 = vld [vmem:[#allocation7 + $0xd40] sm:$0xff] }
 0x195   :  { %4309 = vmatmul.msk.f32.gmra.mxu1 %vm713_vm3, %v5792_v22  ;;  %1342 = vmatpush.msrb.mxu3 %v1216_v33  ;;  %v5830_v51 = vsel %vm290_vm0, %v6895_v27, %v1912_v63  ;;  %v5837_v1 = vsel %vm1255_vm4, %v6897_v62, %v6896_v40  ;;  %v6899_v33 = vrot.slane %v5482_v29, 2  ;;  %v1240_v63 = vld [vmem:[#allocation7 + $0x738] sm:$0xff]  ;;  %v2087_v29 = vld [vmem:[#allocation7 + $0xe40] sm:$0xff]  ;;  %v2117_v27 = vrot.slane %v5728_v19, 2  ;;  %v1206_v62 = vld [vmem:[#allocation7 + $0x628] sm:$0xff] }
 0x196   :  { %1298 = vmatmul.f32.vlgmr.msra.gmra.mxu3 %v5802_v47  ;;  %4283 = vmatmul.msk.f32.vlgmr.msra.gmra.mxu2 %vm713_vm3, %v5797_v38  ;;  %v2120_v40 = vrot.slane %v5730_v52, 2 }
 0x197   :  { %2154 = vmatpush.msrb.mxu0 %v2059_v43  ;;  %1343 = vmatpush.msrb.mxu3 %v1214_v9  ;;  %v5844_v24 = vsel %vm1255_vm4, %v6899_v33, %v6898_v7  ;;  %v2089_v43 = vld [vmem:[#allocation7 + $0xe50] sm:$0xff]  ;;  %v1208_v9 = vld [vmem:[#allocation7 + $0x638] sm:$0xff] }
 0x198   :  { %2184 = vmatpush.msrb.mxu1 %v2089_v43  ;;  %1375 = vmatpush.msrb.mxu2 %v1240_v63  ;;  %v5864_v43 = vrot.slane %v5500_v54, 2  ;;  %v1236_v7 = vld [vmem:[#allocation7 + $0x718] sm:$0xff]  ;;  %v2083_v63 = vld [vmem:[#allocation7 + $0xe20] sm:$0xff]  ;;  %v6903_v54 = vrot.slane %v5750_v59, 2 }
 0x199   :  { %v5814_v35 = vpop.f32.mrf.mxu3  ;;  %v5816_v0 = vpop.f32.mrf.mxu2  ;;  %1344 = vmatpush.msrb.mxu3 %v1212_v26  ;;  %2155 = vmatpush.msrb.mxu0 %v2057_v39  ;;  %v2053_v26 = vld [vmem:[#allocation7 + $0xd30] sm:$0xff]  ;;  %v5861_v39 = vrot.slane %v5498_v53, 2  ;;  %v6902_v53 = vrot.slane %v5752_v11, 2 }
 0x19a   :  { %6893 = vst [vmem:[#allocation28_spill] sm:$0xff] %v5816_v0  ;;  %v5818_v2 = vpop.f32.mrf.mxu0  ;;  %v5820_v5 = vpop.f32.mrf.mxu1  ;;  %2185 = vmatpush.msrb.mxu1 %v2087_v29  ;;  %1376 = vmatpush.msrb.mxu2 %v1238_v58  ;;  %v6904_v29 = vrot.slane %v5489_v41, 2  ;;  %v1202_v41 = vld [vmem:[#allocation7 + $0x608] sm:$0xff]  ;;  %v2284_v0 = vld [vmem:[#allocation7 + $0xf80] sm:$0xff] }
 0x19b   :  { %1345 = vmatpush.msrb.mxu3 %v1210_v28  ;;  %2156 = vmatpush.msrb.mxu0 %v2055_v17  ;;  %v2051_v28 = vld [vmem:[#allocation7 + $0xd20] sm:$0xff]  ;;  %v5873_v57 = vsel %vm1255_vm4, %v2120_v40, %v6902_v53  ;;  %v5878_v17 = vsel %vm1255_vm4, %v2117_v27, %v6903_v54  ;;  %v1204_v40 = vld [vmem:[#allocation7 + $0x618] sm:$0xff]  ;;  %v1234_v27 = vld [vmem:[#allocation7 + $0x708] sm:$0xff]  ;;  %v2123_v54 = vrot.slane %v5778_v55, 2  ;;  %v6910_v55 = vrot.slane %v5750_v59, 2 }
 0x19c   :  { %1951 = vmatmul.f32.gmra.mxu0 %v5825_v25  ;;  %2186 = vmatpush.msrb.mxu1 %v2085_v60  ;;  %v6905_v60 = vrot.slane %v5491_v42, 2  ;;  %v2324_v53 = vld [vmem:[#allocation7 + $0x10c0] sm:$0xff] }
 0x19d   :  { %4310 = vmatmul.msk.f32.gmra.mxu1 %vm713_vm3, %v5830_v51  ;;  %1346 = vmatpush.msrb.mxu3 %v1208_v9  ;;  %v5884_v9 = vsel %vm1255_vm4, %v6904_v29, %v5861_v39  ;;  %v6853_v29 = vrot.slane %v5780_v4, 2 }
 0x19e   :  { %1301 = vmatmul.f32.gmra.mxu3 %v5837_v1  ;;  %4284 = vmatmul.msk.f32.gmra.mxu2 %vm713_vm3, %v5844_v24  ;;  %v5890_v58 = vsel %vm1255_vm4, %v6905_v60, %v5864_v43 }
 0x19f   :  { %2157 = vmatpush.msrb.mxu0 %v2053_v26  ;;  %1347 = vmatpush.msrb.mxu3 %v1206_v62  ;;  %v2298_v62 = vld [vmem:[#allocation7 + $0xff0] sm:$0xff]  ;;  %v2296_v26 = vld [vmem:[#allocation7 + $0xfe0] sm:$0xff] }
 0x1a0   :  { %1377 = vmatpush.msrb.mxu2 %v1236_v7  ;;  %2187 = vmatpush.msrb.mxu1 %v2083_v63  ;;  %v2326_v7 = vld [vmem:[#allocation7 + $0x10d0] sm:$0xff]  ;;  %v1232_v63 = vld [vmem:[#allocation7 + $0x6f8] sm:$0xff] }
 0x1a1   :  { %v5856_v33 = vpop.f32.mrf.mxu3  ;;  %v5858_v23 = vpop.f32.mrf.mxu2  ;;  %2158 = vmatpush.msrb.mxu0 %v2051_v28  ;;  %1348 = vmatpush.msrb.mxu3 %v1204_v40  ;;  %v1230_v40 = vld [vmem:[#allocation7 + $0x6e8] sm:$0xff] }
 0x1a2   :  { %v5866_v19 = vpop.f32.mrf.mxu0  ;;  %v5868_v52 = vpop.f32.mrf.mxu1  ;;  %1378 = vmatpush.msrb.mxu2 %v1234_v27  ;;  %2371 = vmatpush.msra.mxu1 %v2326_v7  ;;  %v5911_v27 = vsel %vm1255_vm4, %v6910_v55, %v2123_v54  ;;  %v6912_v7 = vrot.slane %v5752_v11, 2  ;;  %v2318_v55 = vld [vmem:[#allocation7 + $0x1090] sm:$0xff] }
 0x1a3   :  { %6900 = vst [vmem:[#allocation29_spill] sm:$0xff] %v5866_v19  ;;  %2340 = vmatpush.msra.mxu0 %v2298_v62  ;;  %1349 = vmatpush.msrb.mxu3 %v1202_v41  ;;  %v2322_v62 = vld [vmem:[#allocation7 + $0x10b0] sm:$0xff] }
 0x1a4   :  { %6901 = vst [vmem:[#allocation30_spill] sm:$0xff] %v5868_v52  ;;  %2159 = vmatmul.f32.vlgmr.msrb.gmra.mxu0 %v5878_v17  ;;  %1379 = vmatpush.msrb.mxu2 %v1232_v63  ;;  %v5918_v41 = vsel %vm1255_vm4, %v6912_v7, %v6853_v29  ;;  %v1228_v63 = vld [vmem:[#allocation7 + $0x6d8] sm:$0xff]  ;;  %v5935_v7 = vrot.slane %v5818_v2, 2 }
 0x1a5   :  { %4315 = vmatmul.msk.f32.vlgmr.msrb.gmra.mxu1 %vm713_vm3, %v5873_v57  ;;  %2341 = vmatpush.msra.mxu0 %v2296_v26  ;;  %6911 = vst [vmem:[#allocation35_spill] sm:$0xff] %v5911_v27  ;;  %v1196_v26 = vld [vmem:[#allocation7 + $0x5d8] sm:$0xff] }
 0x1a6   :  { %1304 = vmatmul.f32.gmra.mxu3 %v5884_v9  ;;  %4285 = vmatmul.msk.f32.gmra.mxu2 %vm713_vm3, %v5890_v58  ;;  %6913 = vst [vmem:[#allocation36_spill] sm:$0xff] %v5918_v41  ;;  %v1192_v29 = vld [vmem:[#allocation7 + $0x5b8] sm:$0xff]  ;;  %v5942_v2 = vsel %vm1255_vm4, %v2123_v54, %v5935_v7  ;;  %v1435_v54 = vld [vmem:[#allocation7 + $0x860] sm:$0xff] }
 0x1a7   :  { %2372 = vmatpush.msra.mxu1 %v2324_v53  ;;  %1350 = vmatpush.msrb.mxu3 %v1200_v46  ;;  %v2320_v46 = vld [vmem:[#allocation7 + $0x10a0] sm:$0xff]  ;;  %6918 = vst [vmem:[#allocation41_spill] sm:$0xff] %v5935_v7 }
 0x1a8   :  { %2342 = vmatpush.msra.mxu0 %v2294_v37  ;;  %1380 = vmatpush.msrb.mxu2 %v1230_v40  ;;  %v2290_v37 = vld [vmem:[#allocation7 + $0xfb0] sm:$0xff]  ;;  %v2288_v53 = vld [vmem:[#allocation7 + $0xfa0] sm:$0xff]  ;;  %6920 = vst [vmem:[#allocation43_spill] sm:$0xff] %v5942_v2 }
 0x1a9   :  { %v5898_v42 = vpop.f32.mrf.mxu3  ;;  %v5900_v28 = vpop.f32.mrf.mxu2  ;;  %2373 = vmatpush.msra.mxu1 %v2322_v62 }
 0x1aa   :  { %6906 = vst [vmem:[#allocation31_spill] sm:$0xff] %v5898_v42  ;;  %v5904_v60 = vpop.f32.mrf.mxu0  ;;  %v5906_v44 = vpop.f32.mrf.mxu1  ;;  %v2292_v42 = vld [vmem:[#allocation7 + $0xfc0] sm:$0xff]  ;;  %1381 = vmatpush.msrb.mxu2 %v1228_v63 }
 0x1ab   :  { %6907 = vst [vmem:[#allocation32_spill] sm:$0xff] %v5900_v28  ;;  %v1198_v28 = vld [vmem:[#allocation7 + $0x5e8] sm:$0xff]  ;;  %2343 = vmatpush.msra.mxu0 %v2292_v42  ;;  %2374 = vmatpush.msra.mxu1 %v2320_v46  ;;  %v2316_v63 = vld [vmem:[#allocation7 + $0x1080] sm:$0xff]  ;;  %v1437_v46 = vld [vmem:[#allocation7 + $0x870] sm:$0xff] }
 0x1ac   :  { %6908 = vst [vmem:[#allocation33_spill] sm:$0xff] %v5904_v60  ;;  %1351 = vmatpush.msrb.mxu3 %v1198_v28  ;;  %2162 = vmatmul.f32.gmra.mxu0 %v5911_v27  ;;  %v1194_v28 = vld [vmem:[#allocation7 + $0x5c8] sm:$0xff]  ;;  %v1224_v27 = vld [vmem:[#allocation7 + $0x6b8] sm:$0xff] }
 0x1ad   :  { %6909 = vst [vmem:[#allocation34_spill] sm:$0xff] %v5906_v44  ;;  %4316 = vmatmul.msk.f32.gmra.mxu1 %vm713_vm3, %v5918_v41  ;;  %v1226_v42 = vld [vmem:[#allocation7 + $0x6c8] sm:$0xff]  ;;  %2344 = vmatpush.msra.mxu0 %v2290_v37 }
 0x1ae   :  { %1307 = vmatmul.f32.gmra.mxu3 %v5861_v39  ;;  %4286 = vmatmul.msk.f32.gmra.mxu2 %vm713_vm3, %v5864_v43  ;;  %v1222_v41 = vld [vmem:[#allocation7 + $0x6a8] sm:$0xff] }
 0x1af   :  { %1352 = vmatpush.msrb.mxu3 %v1196_v26  ;;  %1382 = vmatpush.msrb.mxu2 %v1226_v42  ;;  %v2286_v26 = vld [vmem:[#allocation7 + $0xf90] sm:$0xff] }
 0x1b0   :  { %2345 = vmatpush.msra.mxu0 %v2288_v53  ;;  %2375 = vmatpush.msra.mxu1 %v2318_v55  ;;  %v1433_v53 = vld [vmem:[#allocation7 + $0x850] sm:$0xff]  ;;  %v1463_v55 = vld [vmem:[#allocation7 + $0x940] sm:$0xff] }
 0x1b1   :  { %v5926_v59 = vpop.f32.mrf.mxu3  ;;  %v5928_v11 = vpop.f32.mrf.mxu2  ;;  %1353 = vmatpush.msrb.mxu3 %v1194_v28  ;;  %1383 = vmatpush.msrb.mxu2 %v1224_v27  ;;  %v2314_v27 = vld [vmem:[#allocation7 + $0x1070] sm:$0xff] }
 0x1b2   :  { %6914 = vst [vmem:[#allocation37_spill] sm:$0xff] %v5926_v59  ;;  %v5930_v40 = vpop.f32.mrf.mxu0  ;;  %v5932_v62 = vpop.f32.mrf.mxu1  ;;  %v5938_v59 = vrot.slane %v5820_v5, 2  ;;  %2346 = vmatpush.msra.mxu0 %v2286_v26  ;;  %2376 = vmatpush.msra.mxu1 %v2316_v63  ;;  %v6921_v5 = vrot.slane %v5780_v4, 2  ;;  %v2310_v26 = vld [vmem:[#allocation7 + $0x1050] sm:$0xff]  ;;  %v1431_v63 = vld [vmem:[#allocation7 + $0x840] sm:$0xff] }
 0x1b3   :  { %6915 = vst [vmem:[#allocation38_spill] sm:$0xff] %v5928_v11  ;;  %v1190_v11 = vld [vmem:[#allocation7 + $0x5a8] sm:$0xff]  ;;  %1354 = vmatpush.msrb.mxu3 %v1192_v29  ;;  %1384 = vmatpush.msrb.mxu2 %v1222_v41  ;;  %v2282_v29 = vld [vmem:[#allocation7 + $0xf70] sm:$0xff] }
 0x1b4   :  { %6916 = vst [vmem:[#allocation39_spill] sm:$0xff] %v5930_v40  ;;  %v5948_v37 = vsel %vm1255_vm4, %v6921_v5, %v5938_v59  ;;  %2347 = vmatpush.msra.mxu0 %v2284_v0  ;;  %v2280_v0 = vld [vmem:[#allocation7 + $0xf60] sm:$0xff]  ;;  %2377 = vmatpush.msra.mxu1 %v2314_v27  ;;  %v1461_v5 = vld [vmem:[#allocation7 + $0x930] sm:$0xff] }
 0x1b5   :  { %6917 = vst [vmem:[#allocation40_spill] sm:$0xff] %v5932_v62  ;;  %1355 = vmatpush.msrb.mxu3 %v1190_v11  ;;  %2165 = vmatmul.f32.gmra.mxu0 %v5942_v2  ;;  %v1465_v11 = vld [vmem:[#allocation7 + $0x950] sm:$0xff] }
 0x1b6   :  { %6919 = vst [vmem:[#allocation42_spill] sm:$0xff] %v5938_v59  ;;  %1356 = vmatmul.f32.vlgmr.msrb.gmra.mxu3 %v5802_v47  ;;  %4287 = vmatmul.msk.f32.vlgmr.msrb.gmra.mxu2 %vm713_vm3, %v5797_v38  ;;  %v2312_v47 = vld [vmem:[#allocation7 + $0x1060] sm:$0xff]  ;;  %v2278_v38 = vld [vmem:[#allocation7 + $0xf50] sm:$0xff] }
 0x1b7   :  { %6922 = vst [vmem:[#allocation44_spill] sm:$0xff] %v5948_v37  ;;  %4317 = vmatmul.msk.f32.gmra.mxu1 %vm713_vm3, %v5948_v37  ;;  %1479 = vmatpush.msra.mxu3 %v1437_v46  ;;  %v1429_v27 = vld [vmem:[#allocation7 + $0x830] sm:$0xff] }
 0x1b8   :  { %2348 = vmatpush.msra.mxu0 %v2282_v29  ;;  %1510 = vmatpush.msra.mxu2 %v1465_v11  ;;  %v2467_v2 = vld [vmem:[#allocation7 + $0x10f0] sm:$0xff] }
 0x1b9   :  { %v5951_v28 = vpop.f32.mrf.mxu3  ;;  %v5953_v42 = vpop.f32.mrf.mxu2  ;;  %1480 = vmatpush.msra.mxu3 %v1435_v54  ;;  %2378 = vmatpush.msra.mxu1 %v2312_v47  ;;  %v2274_v54 = vld [vmem:[#allocation7 + $0xf30] sm:$0xff] }
 0x1ba   :  { %6923 = vst [vmem:[#allocation45_spill] sm:$0xff] %v5951_v28  ;;  %v5958_v4 = vpop.f32.mrf.mxu0  ;;  %v5960_v41 = vpop.f32.mrf.mxu1  ;;  %2349 = vmatpush.msra.mxu0 %v2280_v0  ;;  %1511 = vmatpush.msra.mxu2 %v1463_v55  ;;  %v2308_v28 = vld [vmem:[#allocation7 + $0x1040] sm:$0xff]  ;;  %v2306_v47 = vld [vmem:[#allocation7 + $0x1030] sm:$0xff] }
 0x1bb   :  { %6924 = vst [vmem:[#allocation46_spill] sm:$0xff] %v5953_v42  ;;  %1481 = vmatpush.msra.mxu3 %v1433_v53  ;;  %v2276_v42 = vld [vmem:[#allocation7 + $0xf40] sm:$0xff]  ;;  %2379 = vmatpush.msra.mxu1 %v2310_v26  ;;  %v1425_v26 = vld [vmem:[#allocation7 + $0x810] sm:$0xff]  ;;  %v2537_v37 = vrot.slane %v5960_v41, 6 }
 0x1bc   :  { %6925 = vst [vmem:[#allocation47_spill] sm:$0xff] %v5958_v4  ;;  %2350 = vmatpush.msra.mxu0 %v2278_v38  ;;  %1512 = vmatpush.msra.mxu2 %v1461_v5  ;;  %v1459_v53 = vld [vmem:[#allocation7 + $0x920] sm:$0xff]  ;;  %v1457_v38 = vld [vmem:[#allocation7 + $0x910] sm:$0xff] }
 0x1bd   :  { %6926 = vst [vmem:[#allocation48_spill] sm:$0xff] %v5960_v41  ;;  %1482 = vmatpush.msra.mxu3 %v1431_v63  ;;  %2380 = vmatpush.msra.mxu1 %v2308_v28  ;;  %v2272_v28 = vld [vmem:[#allocation7 + $0xf20] sm:$0xff] }
 0x1be   :  { %2351 = vmatpush.msra.mxu0 %v2276_v42  ;;  %1359 = vmatmul.f32.gmra.mxu3 %v5837_v1  ;;  %v1427_v42 = vld [vmem:[#allocation7 + $0x820] sm:$0xff]  ;;  %v2270_v1 = vld [vmem:[#allocation7 + $0xf10] sm:$0xff] }
 0x1bf   :  { %4288 = vmatmul.msk.f32.gmra.mxu2 %vm713_vm3, %v5844_v24  ;;  %2168 = vmatmul.f32.gmra.mxu0 %v5935_v7  ;;  %v2304_v55 = vld [vmem:[#allocation7 + $0x1020] sm:$0xff]  ;;  %v2302_v24 = vld [vmem:[#allocation7 + $0x1010] sm:$0xff] }
 0x1c0   :  { %4318 = vmatmul.msk.f32.gmra.mxu1 %vm713_vm3, %v5938_v59  ;;  %1483 = vmatpush.msra.mxu3 %v1429_v27  ;;  %v1455_v63 = vld [vmem:[#allocation7 + $0x900] sm:$0xff]  ;;  %v1426_v59 = vld [vmem:[#allocation7 + $0x818] sm:$0xff] }
 0x1c1   :  { %v5964_v46 = vpop.f32.mrf.mxu3  ;;  %v5966_v29 = vpop.f32.mrf.mxu2  ;;  %2352 = vmatpush.msra.mxu0 %v2274_v54  ;;  %2381 = vmatpush.msra.mxu1 %v2306_v47  ;;  %v1423_v5 = vld [vmem:[#allocation7 + $0x800] sm:$0xff] }
 0x1c2   :  { %6927 = vst [vmem:[#allocation49_spill] sm:$0xff] %v5964_v46  ;;  %v5968_v11 = vpop.f32.mrf.mxu0  ;;  %v5970_v0 = vpop.f32.mrf.mxu1  ;;  %1513 = vmatpush.msra.mxu2 %v1459_v53  ;;  %1484 = vmatpush.msra.mxu3 %v1427_v42  ;;  %v2300_v46 = vld [vmem:[#allocation7 + $0x1000] sm:$0xff]  ;;  %v1421_v53 = vld [vmem:[#allocation7 + $0x7f0] sm:$0xff] }
 0x1c3   :  { %6928 = vst [vmem:[#allocation50_spill] sm:$0xff] %v5966_v29  ;;  %2353 = vmatpush.msra.mxu0 %v2272_v28  ;;  %2382 = vmatpush.msra.mxu1 %v2304_v55  ;;  %v2268_v29 = vld [vmem:[#allocation7 + $0xf00] sm:$0xff]  ;;  %v1453_v42 = vld [vmem:[#allocation7 + $0x8f0] sm:$0xff] }
 0x1c4   :  { %1514 = vmatpush.msra.mxu2 %v1457_v38  ;;  %1485 = vmatpush.msra.mxu3 %v1425_v26  ;;  %v2495_v28 = vld [vmem:[#allocation7 + $0x11d0] sm:$0xff]  ;;  %v1419_v55 = vld [vmem:[#allocation7 + $0x7e0] sm:$0xff] }
 0x1c5   :  { %2354 = vmatpush.msra.mxu0 %v2270_v1  ;;  %2383 = vmatpush.msra.mxu1 %v2302_v24  ;;  %v2523_v38 = vld [vmem:[#allocation7 + $0x12b0] sm:$0xff]  ;;  %v1451_v26 = vld [vmem:[#allocation7 + $0x8e0] sm:$0xff] }
 0x1c6   :  { %1515 = vmatpush.msra.mxu2 %v1455_v63  ;;  %1486 = vmatpush.msra.mxu3 %v1423_v5  ;;  %v2493_v1 = vld [vmem:[#allocation7 + $0x11c0] sm:$0xff]  ;;  %v2491_v24 = vld [vmem:[#allocation7 + $0x11b0] sm:$0xff] }
 0x1c7   :  { %2355 = vmatpush.msra.mxu0 %v2268_v29  ;;  %2384 = vmatpush.msra.mxu1 %v2300_v46  ;;  %v1417_v46 = vld [vmem:[#allocation7 + $0x7d0] sm:$0xff]  ;;  %v2521_v29 = vld [vmem:[#allocation7 + $0x12a0] sm:$0xff] }
 0x1c8   :  { %1362 = vmatmul.f32.gmra.mxu3 %v5884_v9  ;;  %4289 = vmatmul.msk.f32.gmra.mxu2 %vm713_vm3, %v5890_v58  ;;  %v1449_v9 = vld [vmem:[#allocation7 + $0x8d0] sm:$0xff]  ;;  %v1415_v58 = vld [vmem:[#allocation7 + $0x7c0] sm:$0xff] }
 0x1c9   :  { %v5978_v7 = vpop.f32.mrf.mxu3  ;;  %v5980_v27 = vpop.f32.mrf.mxu2  ;;  %2356 = vmatmul.f32.vlgmr.msra.gmra.mxu0 %v5866_v19  ;;  %4323 = vmatmul.msk.f32.vlgmr.msra.gmra.mxu1 %vm713_vm3, %v5868_v52  ;;  %v2519_v63 = vld [vmem:[#allocation7 + $0x1290] sm:$0xff]  ;;  %v2473_v19 = vld [vmem:[#allocation7 + $0x1120] sm:$0xff] }
 0x1ca   :  { %6929 = vst [vmem:[#allocation51_spill] sm:$0xff] %v5978_v7  ;;  %v5982_v54 = vpop.f32.mrf.mxu0  ;;  %v5984_v47 = vpop.f32.mrf.mxu1  ;;  %1487 = vmatpush.msra.mxu3 %v1421_v53  ;;  %1516 = vmatpush.msra.mxu2 %v1453_v42  ;;  %v1447_v53 = vld [vmem:[#allocation7 + $0x8c0] sm:$0xff] }
 0x1cb   :  { %6930 = vst [vmem:[#allocation52_spill] sm:$0xff] %v5980_v27  ;;  %2564 = vmatpush.msrb.mxu0 %v2495_v28  ;;  %2595 = vmatpush.msrb.mxu1 %v2523_v38  ;;  %v2489_v7 = vld [vmem:[#allocation7 + $0x11a0] sm:$0xff]  ;;  %v1445_v38 = vld [vmem:[#allocation7 + $0x8b0] sm:$0xff] }
 0x1cc   :  { %1488 = vmatpush.msra.mxu3 %v1419_v55  ;;  %1517 = vmatpush.msra.mxu2 %v1451_v26  ;;  %v1413_v55 = vld [vmem:[#allocation7 + $0x7b0] sm:$0xff]  ;;  %v2505_v52 = vld [vmem:[#allocation7 + $0x1220] sm:$0xff] }
 0x1cd   :  { %2565 = vmatpush.msrb.mxu0 %v2493_v1  ;;  %2596 = vmatpush.msrb.mxu1 %v2521_v29  ;;  %v2487_v26 = vld [vmem:[#allocation7 + $0x1190] sm:$0xff]  ;;  %v2517_v1 = vld [vmem:[#allocation7 + $0x1280] sm:$0xff] }
 0x1ce   :  { %1489 = vmatpush.msra.mxu3 %v1417_v46  ;;  %1518 = vmatpush.msra.mxu2 %v1449_v9  ;;  %v1411_v46 = vld [vmem:[#allocation7 + $0x7a0] sm:$0xff] }
 0x1cf   :  { %2566 = vmatpush.msrb.mxu0 %v2491_v24  ;;  %2597 = vmatpush.msrb.mxu1 %v2519_v63  ;;  %v1443_v29 = vld [vmem:[#allocation7 + $0x8a0] sm:$0xff]  ;;  %v1409_v24 = vld [vmem:[#allocation7 + $0x790] sm:$0xff] }
 0x1d0   :  { %1490 = vmatpush.msra.mxu3 %v1415_v58  ;;  %1519 = vmatpush.msra.mxu2 %v1447_v53  ;;  %v2485_v9 = vld [vmem:[#allocation7 + $0x1180] sm:$0xff]  ;;  %v2483_v63 = vld [vmem:[#allocation7 + $0x1170] sm:$0xff] }
 0x1d1   :  { %v5992_v5 = vpop.f32.mrf.mxu3  ;;  %v5994_v27 = vpop.f32.mrf.mxu2  ;;  %2567 = vmatpush.msrb.mxu0 %v2489_v7  ;;  %1365 = vmatmul.f32.gmra.mxu3 %v5861_v39  ;;  %v2515_v7 = vld [vmem:[#allocation7 + $0x1270] sm:$0xff]  ;;  %v2513_v53 = vld [vmem:[#allocation7 + $0x1260] sm:$0xff] }
 0x1d2   :  { %6931 = vst [vmem:[#allocation53_spill] sm:$0xff] %v5992_v5  ;;  %v5996_v42 = vpop.f32.mrf.mxu0  ;;  %v5998_v28 = vpop.f32.mrf.mxu1  ;;  %4290 = vmatmul.msk.f32.gmra.mxu2 %vm713_vm3, %v5864_v43  ;;  %2359 = vmatmul.f32.gmra.mxu0 %v5904_v60  ;;  %v1441_v39 = vld [vmem:[#allocation7 + $0x890] sm:$0xff] }
 0x1d3   :  { %6932 = vst [vmem:[#allocation54_spill] sm:$0xff] %v5994_v27  ;;  %4324 = vmatmul.msk.f32.gmra.mxu1 %vm713_vm3, %v5906_v44  ;;  %1491 = vmatpush.msra.mxu3 %v1413_v55  ;;  %v1407_v55 = vld [vmem:[#allocation7 + $0x780] sm:$0xff]  ;;  %v2507_v44 = vld [vmem:[#allocation7 + $0x1230] sm:$0xff] }
 0x1d4   :  { %1520 = vmatpush.msra.mxu2 %v1445_v38  ;;  %2568 = vmatpush.msrb.mxu0 %v2487_v26  ;;  %v1439_v38 = vld [vmem:[#allocation7 + $0x880] sm:$0xff] }
 0x1d5   :  { %2598 = vmatpush.msrb.mxu1 %v2517_v1  ;;  %1492 = vmatpush.msra.mxu3 %v1411_v46  ;;  %v2481_v26 = vld [vmem:[#allocation7 + $0x1160] sm:$0xff]  ;;  %v1438_v1 = vld [vmem:[#allocation7 + $0x878] sm:$0xff]  ;;  %v2479_v46 = vld [vmem:[#allocation7 + $0x1150] sm:$0xff] }
 0x1d6   :  { %1521 = vmatpush.msra.mxu2 %v1443_v29  ;;  %2569 = vmatpush.msrb.mxu0 %v2485_v9  ;;  %v2511_v29 = vld [vmem:[#allocation7 + $0x1250] sm:$0xff]  ;;  %v1436_v9 = vld [vmem:[#allocation7 + $0x868] sm:$0xff] }
 0x1d7   :  { %2599 = vmatpush.msrb.mxu1 %v2515_v7  ;;  %1493 = vmatpush.msra.mxu3 %v1409_v24  ;;  %v1466_v7 = vld [vmem:[#allocation7 + $0x958] sm:$0xff]  ;;  %v2477_v24 = vld [vmem:[#allocation7 + $0x1140] sm:$0xff] }
 0x1d8   :  { %1522 = vmatpush.msra.mxu2 %v1441_v39  ;;  %2570 = vmatpush.msrb.mxu0 %v2483_v63  ;;  %v2509_v39 = vld [vmem:[#allocation7 + $0x1240] sm:$0xff] }
 0x1d9   :  { %v6006_v58 = vpop.f32.mrf.mxu3  ;;  %v6008_v43 = vpop.f32.mrf.mxu2  ;;  %2600 = vmatpush.msrb.mxu1 %v2513_v53  ;;  %1494 = vmatpush.msra.mxu3 %v1407_v55  ;;  %v1434_v55 = vld [vmem:[#allocation7 + $0x858] sm:$0xff] }
 0x1da   :  { %v6010_v27 = vpop.f32.mrf.mxu0  ;;  %v6012_v5 = vpop.f32.mrf.mxu1  ;;  %1523 = vmatpush.msra.mxu2 %v1439_v38  ;;  %2571 = vmatpush.msrb.mxu0 %v2481_v26  ;;  %v1464_v38 = vld [vmem:[#allocation7 + $0x948] sm:$0xff] }
 0x1db   :  { %1495 = vmatmul.f32.vlgmr.msra.gmra.mxu3 %v5507_v3  ;;  %4291 = vmatmul.msk.f32.vlgmr.msra.gmra.mxu2 %vm713_vm3, %v5509_v8 }
 0x1dc   :  { %2362 = vmatmul.f32.gmra.mxu0 %v5930_v40  ;;  %4325 = vmatmul.msk.f32.gmra.mxu1 %vm713_vm3, %v5932_v62  ;;  %v2475_v40 = vld [vmem:[#allocation7 + $0x1130] sm:$0xff]  ;;  %v1462_v62 = vld [vmem:[#allocation7 + $0x938] sm:$0xff] }
 0x1dd   :  { %1537 = vmatpush.msrb.mxu3 %v1438_v1  ;;  %2572 = vmatpush.msrb.mxu0 %v2479_v46  ;;  %v1432_v1 = vld [vmem:[#allocation7 + $0x848] sm:$0xff]  ;;  %v1430_v46 = vld [vmem:[#allocation7 + $0x838] sm:$0xff] }
 0x1de   :  { %2601 = vmatpush.msrb.mxu1 %v2511_v29  ;;  %1568 = vmatpush.msrb.mxu2 %v1466_v7  ;;  %v2471_v29 = vld [vmem:[#allocation7 + $0x1110] sm:$0xff]  ;;  %v1460_v7 = vld [vmem:[#allocation7 + $0x928] sm:$0xff] }
 0x1df   :  { %1538 = vmatpush.msrb.mxu3 %v1436_v9  ;;  %2573 = vmatpush.msrb.mxu0 %v2477_v24  ;;  %v2503_v9 = vld [vmem:[#allocation7 + $0x1210] sm:$0xff] }
 0x1e0   :  { %2602 = vmatpush.msrb.mxu1 %v2509_v39  ;;  %1569 = vmatpush.msrb.mxu2 %v1464_v38  ;;  %v2534_v38 = vrot.slane %v5958_v4, 6 }
 0x1e1   :  { %v6020_v63 = vpop.f32.mrf.mxu3  ;;  %v6022_v53 = vpop.f32.mrf.mxu2  ;;  %1539 = vmatpush.msrb.mxu3 %v1434_v55  ;;  %2574 = vmatpush.msrb.mxu0 %v2475_v40  ;;  %v1458_v55 = vld [vmem:[#allocation7 + $0x918] sm:$0xff] }
 0x1e2   :  { %v6024_v26 = vpop.f32.mrf.mxu0  ;;  %v6026_v60 = vpop.f32.mrf.mxu1  ;;  %2603 = vmatpush.msrb.mxu1 %v2507_v44  ;;  %1570 = vmatpush.msrb.mxu2 %v1462_v62  ;;  %v1428_v44 = vld [vmem:[#allocation7 + $0x828] sm:$0xff]  ;;  %v2501_v62 = vld [vmem:[#allocation7 + $0x1200] sm:$0xff] }
 0x1e3   :  { %6933 = vst [vmem:[#allocation55_spill] sm:$0xff] %v6024_v26  ;;  %1540 = vmatpush.msrb.mxu3 %v1432_v1  ;;  %2575 = vmatpush.msrb.mxu0 %v2473_v19  ;;  %v2469_v19 = vld [vmem:[#allocation7 + $0x1100] sm:$0xff]  ;;  %v2535_v1 = vrot.slane %v5968_v11, 6  ;;  %v2499_v26 = vld [vmem:[#allocation7 + $0x11f0] sm:$0xff] }
 0x1e4   :  { %6934 = vst [vmem:[#allocation56_spill] sm:$0xff] %v6026_v60  ;;  %2604 = vmatpush.msrb.mxu1 %v2505_v52  ;;  %1498 = vmatmul.f32.gmra.mxu3 %v5516_v31  ;;  %v2538_v60 = vrot.slane %v5970_v0, 6  ;;  %v1422_v0 = vld [vmem:[#allocation7 + $0x7f8] sm:$0xff] }
 0x1e5   :  { %4292 = vmatmul.msk.f32.gmra.mxu2 %vm713_vm3, %v5518_v32  ;;  %2365 = vmatmul.f32.gmra.mxu0 %v5958_v4  ;;  %v2497_v4 = vld [vmem:[#allocation7 + $0x11e0] sm:$0xff]  ;;  %v6047_v11 = vsel %vm690_vm2, %v2534_v38, %v2535_v1  ;;  %v1416_v38 = vld [vmem:[#allocation7 + $0x7c8] sm:$0xff] }
 0x1e6   :  { %4326 = vmatmul.msk.f32.gmra.mxu1 %vm713_vm3, %v5960_v41  ;;  %1541 = vmatpush.msrb.mxu3 %v1430_v46  ;;  %v1424_v46 = vld [vmem:[#allocation7 + $0x808] sm:$0xff]  ;;  %6936 = vst [vmem:[#allocation58_spill] sm:$0xff] %v6047_v11 }
 0x1e7   :  { %2576 = vmatpush.msrb.mxu0 %v2471_v29  ;;  %2605 = vmatpush.msrb.mxu1 %v2503_v9  ;;  %v2465_v29 = vld [vmem:[#allocation7 + $0x10e0] sm:$0xff]  ;;  %v6050_v9 = vsel %vm690_vm2, %v2537_v37, %v2538_v60  ;;  %v1420_v37 = vld [vmem:[#allocation7 + $0x7e8] sm:$0xff] }
 0x1e8   :  { %1571 = vmatpush.msrb.mxu2 %v1460_v7  ;;  %1542 = vmatpush.msrb.mxu3 %v1428_v44  ;;  %6937 = vst [vmem:[#allocation59_spill] sm:$0xff] %v6050_v9 }
 0x1e9   :  { %v6031_v24 = vpop.f32.mrf.mxu3  ;;  %v6033_v39 = vpop.f32.mrf.mxu2  ;;  %2577 = vmatpush.msrb.mxu0 %v2469_v19  ;;  %2606 = vmatpush.msrb.mxu1 %v2501_v62  ;;  %v1418_v19 = vld [vmem:[#allocation7 + $0x7d8] sm:$0xff]  ;;  %v2542_v62 = vrot.slane %v5984_v47, 6 }
 0x1ea   :  { %6935 = vst [vmem:[#allocation57_spill] sm:$0xff] %v6033_v39  ;;  %v6038_v52 = vpop.f32.mrf.mxu0  ;;  %v6040_v40 = vpop.f32.mrf.mxu1  ;;  %v1456_v39 = vld [vmem:[#allocation7 + $0x908] sm:$0xff]  ;;  %1572 = vmatpush.msrb.mxu2 %v1458_v55  ;;  %1543 = vmatpush.msrb.mxu3 %v1426_v59  ;;  %v1454_v59 = vld [vmem:[#allocation7 + $0x8f8] sm:$0xff] }
 0x1eb   :  { %2578 = vmatpush.msrb.mxu0 %v2467_v2  ;;  %2607 = vmatpush.msrb.mxu1 %v2499_v26  ;;  %v1452_v26 = vld [vmem:[#allocation7 + $0x8e8] sm:$0xff]  ;;  %v1450_v55 = vld [vmem:[#allocation7 + $0x8d8] sm:$0xff] }
 0x1ec   :  { %1573 = vmatpush.msrb.mxu2 %v1456_v39  ;;  %1544 = vmatpush.msrb.mxu3 %v1424_v46  ;;  %v1448_v46 = vld [vmem:[#allocation7 + $0x8c8] sm:$0xff] }
 0x1ed   :  { %2579 = vmatpush.msrb.mxu0 %v2465_v29  ;;  %2608 = vmatpush.msrb.mxu1 %v2497_v4  ;;  %v2540_v4 = vrot.slane %v5982_v54, 6  ;;  %v6076_v54 = vsel %vm690_vm2, %v2538_v60, %v2542_v62  ;;  %v1444_v60 = vld [vmem:[#allocation7 + $0x8a8] sm:$0xff] }
 0x1ee   :  { %1501 = vmatmul.f32.gmra.mxu3 %v5525_v56  ;;  %4293 = vmatmul.msk.f32.gmra.mxu2 %vm713_vm3, %v5527_v6  ;;  %6941 = vst [vmem:[#allocation63_spill] sm:$0xff] %v6076_v54 }
 0x1ef   :  { %2580 = vmatmul.f32.vlgmr.msrb.gmra.mxu0 %v6047_v11  ;;  %4331 = vmatmul.msk.f32.vlgmr.msrb.gmra.mxu1 %vm713_vm3, %v6050_v9  ;;  %v6069_v29 = vsel %vm690_vm2, %v2535_v1, %v2540_v4  ;;  %v1412_v1 = vld [vmem:[#allocation7 + $0x7a8] sm:$0xff] }
 0x1f0   :  { %1545 = vmatpush.msrb.mxu3 %v1422_v0  ;;  %1574 = vmatpush.msrb.mxu2 %v1454_v59  ;;  %6938 = vst [vmem:[#allocation60_spill] sm:$0xff] %v6069_v29  ;;  %v1414_v59 = vld [vmem:[#allocation7 + $0x7b8] sm:$0xff] }
 0x1f1   :  { %v6052_v7 = vpop.f32.mrf.mxu3  ;;  %v6054_v44 = vpop.f32.mrf.mxu2 }
 0x1f2   :  { %v6057_v2 = vpop.f32.mrf.mxu0  ;;  %v6064_v39 = vpop.f32.mrf.mxu1  ;;  %1546 = vmatpush.msrb.mxu3 %v1420_v37  ;;  %1575 = vmatpush.msrb.mxu2 %v1452_v26  ;;  %v1446_v37 = vld [vmem:[#allocation7 + $0x8b8] sm:$0xff] }
 0x1f4   :  { %1547 = vmatpush.msrb.mxu3 %v1418_v19  ;;  %1576 = vmatpush.msrb.mxu2 %v1450_v55  ;;  %v2544_v19 = vrot.slane %v5996_v42, 6  ;;  %v1410_v55 = vld [vmem:[#allocation7 + $0x798] sm:$0xff] }
 0x1f6   :  { %1548 = vmatpush.msrb.mxu3 %v1416_v38  ;;  %1577 = vmatpush.msrb.mxu2 %v1448_v46  ;;  %v2546_v38 = vrot.slane %v5998_v28, 6  ;;  %v1442_v46 = vld [vmem:[#allocation7 + $0x898] sm:$0xff] }
 0x1f7   :  { %1504 = vmatmul.f32.gmra.mxu3 %v5534_v13  ;;  %4294 = vmatmul.msk.f32.gmra.mxu2 %vm713_vm3, %v5536_v15  ;;  %v1635_v28 = vld [vmem:[#allocation7 + $0xa58] sm:$0xff] }
 0x1f8   :  { %2583 = vmatmul.f32.gmra.mxu0 %v6069_v29  ;;  %4332 = vmatmul.msk.f32.gmra.mxu1 %vm713_vm3, %v6076_v54  ;;  %v6100_v42 = vsel %vm690_vm2, %v2542_v62, %v2546_v38  ;;  %v2548_v62 = vrot.slane %v6010_v27, 6 }
 0x1f9   :  { %v6071_v0 = vpop.f32.mrf.mxu3  ;;  %v6073_v11 = vpop.f32.mrf.mxu2  ;;  %1549 = vmatpush.msrb.mxu3 %v1414_v59  ;;  %1578 = vmatpush.msrb.mxu2 %v1446_v37  ;;  %v6095_v59 = vsel %vm690_vm2, %v2540_v4, %v2544_v19  ;;  %6945 = vst [vmem:[#allocation67_spill] sm:$0xff] %v6100_v42  ;;  %v1663_v37 = vld [vmem:[#allocation7 + $0xb38] sm:$0xff]  ;;  %v1633_v4 = vld [vmem:[#allocation7 + $0xa48] sm:$0xff] }
 0x1fa   :  { %6939 = vst [vmem:[#allocation61_spill] sm:$0xff] %v6071_v0  ;;  %v6078_v47 = vpop.f32.mrf.mxu0  ;;  %v6084_v26 = vpop.f32.mrf.mxu1  ;;  %v1440_v0 = vld [vmem:[#allocation7 + $0x888] sm:$0xff] }
 0x1fb   :  { %6940 = vst [vmem:[#allocation62_spill] sm:$0xff] %v6073_v11  ;;  %1550 = vmatpush.msrb.mxu3 %v1412_v1  ;;  %1579 = vmatpush.msrb.mxu2 %v1444_v60  ;;  %v1408_v11 = vld [vmem:[#allocation7 + $0x788] sm:$0xff]  ;;  %v1631_v60 = vld [vmem:[#allocation7 + $0xa38] sm:$0xff] }
 0x1fc   :  { %6944 = vst [vmem:[#allocation66_spill] sm:$0xff] %v6095_v59 }
 0x1fd   :  { %1551 = vmatpush.msrb.mxu3 %v1410_v55  ;;  %1580 = vmatpush.msrb.mxu2 %v1442_v46  ;;  %v1629_v55 = vld [vmem:[#allocation7 + $0xa28] sm:$0xff] }
 0x1ff   :  { %1552 = vmatpush.msrb.mxu3 %v1408_v11  ;;  %1581 = vmatpush.msrb.mxu2 %v1440_v0  ;;  %v1661_v11 = vld [vmem:[#allocation7 + $0xb28] sm:$0xff]  ;;  %v2550_v0 = vrot.slane %v6012_v5, 6  ;;  %v1627_v5 = vld [vmem:[#allocation7 + $0xa18] sm:$0xff] }
 0x200   :  { %1553 = vmatmul.f32.vlgmr.msrb.gmra.mxu3 %v5507_v3  ;;  %4295 = vmatmul.msk.f32.vlgmr.msrb.gmra.mxu2 %vm713_vm3, %v5509_v8  ;;  %v1659_v3 = vld [vmem:[#allocation7 + $0xb18] sm:$0xff] }
 0x201   :  { %v6090_v29 = vpop.f32.mrf.mxu3  ;;  %v6092_v9 = vpop.f32.mrf.mxu2  ;;  %2586 = vmatmul.f32.gmra.mxu0 %v6095_v59  ;;  %4333 = vmatmul.msk.f32.gmra.mxu1 %vm713_vm3, %v6100_v42  ;;  %v6122_v27 = vsel %vm690_vm2, %v2546_v38, %v2550_v0  ;;  %v1623_v38 = vld [vmem:[#allocation7 + $0x9f8] sm:$0xff]  ;;  %v1865_v42 = vld [vmem:[#allocation7 + $0xc68] sm:$0xff] }
 0x202   :  { %6942 = vst [vmem:[#allocation64_spill] sm:$0xff] %v6090_v29  ;;  %v6097_v54 = vpop.f32.mrf.mxu0  ;;  %v6103_v1 = vpop.f32.mrf.mxu1  ;;  %1761 = vmatpush.msra.mxu3 %v1635_v28  ;;  %1792 = vmatpush.msra.mxu2 %v1663_v37  ;;  %v6119_v28 = vsel %vm690_vm2, %v2544_v19, %v2548_v62  ;;  %v1657_v37 = vld [vmem:[#allocation7 + $0xb08] sm:$0xff]  ;;  %v1887_v29 = vld [vmem:[#allocation7 + $0xd18] sm:$0xff] }
 0x203   :  { %6943 = vst [vmem:[#allocation65_spill] sm:$0xff] %v6092_v9  ;;  %v1625_v19 = vld [vmem:[#allocation7 + $0xa08] sm:$0xff] }
 0x204   :  { %1762 = vmatpush.msra.mxu3 %v1633_v4  ;;  %1793 = vmatpush.msra.mxu2 %v1661_v11  ;;  %6948 = vst [vmem:[#allocation70_spill] sm:$0xff] %v6119_v28  ;;  %v1655_v11 = vld [vmem:[#allocation7 + $0xaf8] sm:$0xff]  ;;  %v1653_v62 = vld [vmem:[#allocation7 + $0xae8] sm:$0xff] }
 0x205   :  { %6949 = vst [vmem:[#allocation71_spill] sm:$0xff] %v6122_v27 }
 0x206   :  { %1763 = vmatpush.msra.mxu3 %v1631_v60  ;;  %1794 = vmatpush.msra.mxu2 %v1659_v3 }
 0x208   :  { %1764 = vmatpush.msra.mxu3 %v1629_v55  ;;  %4296 = vmatmul.msk.f32.gmra.mxu2 %vm713_vm3, %v5518_v32  ;;  %v1651_v32 = vld [vmem:[#allocation7 + $0xad8] sm:$0xff] }
 0x209   :  { %v6112_v46 = vpop.f32.mrf.mxu3  ;;  %v6114_v8 = vpop.f32.mrf.mxu2  ;;  %1556 = vmatmul.f32.gmra.mxu3 %v5516_v31  ;;  %2589 = vmatmul.f32.gmra.mxu0 %v6119_v28  ;;  %v1621_v31 = vld [vmem:[#allocation7 + $0x9e8] sm:$0xff]  ;;  %v1619_v55 = vld [vmem:[#allocation7 + $0x9d8] sm:$0xff] }
 0x20a   :  { %6946 = vst [vmem:[#allocation68_spill] sm:$0xff] %v6112_v46  ;;  %v6116_v9 = vpop.f32.mrf.mxu0  ;;  %v6124_v4 = vpop.f32.mrf.mxu1  ;;  %4334 = vmatmul.msk.f32.gmra.mxu1 %vm713_vm3, %v6122_v27  ;;  %1765 = vmatpush.msra.mxu3 %v1627_v5  ;;  %v1649_v5 = vld [vmem:[#allocation7 + $0xac8] sm:$0xff]  ;;  %v1879_v28 = vld [vmem:[#allocation7 + $0xcd8] sm:$0xff] }
 0x20b   :  { %6947 = vst [vmem:[#allocation69_spill] sm:$0xff] %v6114_v8  ;;  %1795 = vmatpush.msra.mxu2 %v1657_v37  ;;  %v1617_v37 = vld [vmem:[#allocation7 + $0x9c8] sm:$0xff]  ;;  %v1851_v27 = vld [vmem:[#allocation7 + $0xbf8] sm:$0xff] }
 0x20c   :  { %1766 = vmatpush.msra.mxu3 %v1625_v19  ;;  %v1647_v19 = vld [vmem:[#allocation7 + $0xab8] sm:$0xff] }
 0x20d   :  { %1796 = vmatpush.msra.mxu2 %v1655_v11  ;;  %v1615_v11 = vld [vmem:[#allocation7 + $0x9b8] sm:$0xff] }
 0x20e   :  { %1767 = vmatpush.msra.mxu3 %v1623_v38  ;;  %v1645_v38 = vld [vmem:[#allocation7 + $0xaa8] sm:$0xff] }
 0x20f   :  { %1797 = vmatpush.msra.mxu2 %v1653_v62 }
 0x210   :  { %1768 = vmatpush.msra.mxu3 %v1621_v31  ;;  %4297 = vmatmul.msk.f32.gmra.mxu2 %vm713_vm3, %v5527_v6  ;;  %v1613_v31 = vld [vmem:[#allocation7 + $0x9a8] sm:$0xff] }
 0x211   :  { %v6132_v0 = vpop.f32.mrf.mxu3  ;;  %v6134_v60 = vpop.f32.mrf.mxu2  ;;  %1559 = vmatmul.f32.gmra.mxu3 %v5525_v56  ;;  %1798 = vmatpush.msra.mxu2 %v1651_v32  ;;  %v1611_v56 = vld [vmem:[#allocation7 + $0x998] sm:$0xff] }
 0x212   :  { %6950 = vst [vmem:[#allocation72_spill] sm:$0xff] %v6132_v0  ;;  %v6136_v3 = vpop.f32.mrf.mxu0  ;;  %v6138_v8 = vpop.f32.mrf.mxu1  ;;  %1769 = vmatpush.msra.mxu3 %v1619_v55  ;;  %v1643_v0 = vld [vmem:[#allocation7 + $0xa98] sm:$0xff]  ;;  %v1641_v55 = vld [vmem:[#allocation7 + $0xa88] sm:$0xff] }
 0x213   :  { %6951 = vst [vmem:[#allocation73_spill] sm:$0xff] %v6134_v60  ;;  %1799 = vmatpush.msra.mxu2 %v1649_v5  ;;  %v1609_v5 = vld [vmem:[#allocation7 + $0x988] sm:$0xff] }
 0x214   :  { %1770 = vmatpush.msra.mxu3 %v1617_v37  ;;  %v1639_v37 = vld [vmem:[#allocation7 + $0xa78] sm:$0xff] }
 0x215   :  { %1800 = vmatpush.msra.mxu2 %v1647_v19  ;;  %v1607_v19 = vld [vmem:[#allocation7 + $0x978] sm:$0xff] }
 0x216   :  { %1771 = vmatpush.msra.mxu3 %v1615_v11  ;;  %v1637_v11 = vld [vmem:[#allocation7 + $0xa68] sm:$0xff] }
 0x217   :  { %1801 = vmatpush.msra.mxu2 %v1645_v38 }
 0x218   :  { %1772 = vmatpush.msra.mxu3 %v1613_v31  ;;  %4298 = vmatmul.msk.f32.gmra.mxu2 %vm713_vm3, %v5536_v15  ;;  %v1605_v31 = vld [vmem:[#allocation7 + $0x968] sm:$0xff]  ;;  %v1859_v15 = vld [vmem:[#allocation7 + $0xc38] sm:$0xff] }
 0x219   :  { %v6143_v62 = vpop.f32.mrf.mxu3  ;;  %v6145_v60 = vpop.f32.mrf.mxu2  ;;  %1562 = vmatmul.f32.gmra.mxu3 %v5534_v13  ;;  %1802 = vmatpush.msra.mxu2 %v1643_v0  ;;  %v1885_v13 = vld [vmem:[#allocation7 + $0xd08] sm:$0xff] }
 0x21a   :  { %v6147_v6 = vpop.f32.mrf.mxu0  ;;  %v6149_v32 = vpop.f32.mrf.mxu1  ;;  %1773 = vmatpush.msra.mxu3 %v1611_v56 }
 0x21b   :  { %1803 = vmatpush.msra.mxu2 %v1641_v55  ;;  %v1857_v55 = vld [vmem:[#allocation7 + $0xc28] sm:$0xff] }
 0x21c   :  { %1774 = vmatpush.msra.mxu3 %v1609_v5  ;;  %v1883_v5 = vld [vmem:[#allocation7 + $0xcf8] sm:$0xff] }
 0x21d   :  { %1804 = vmatpush.msra.mxu2 %v1639_v37  ;;  %v1855_v37 = vld [vmem:[#allocation7 + $0xc18] sm:$0xff] }
 0x21e   :  { %1775 = vmatpush.msra.mxu3 %v1607_v19  ;;  %v1881_v19 = vld [vmem:[#allocation7 + $0xce8] sm:$0xff] }
 0x21f   :  { %1805 = vmatpush.msra.mxu2 %v1637_v11  ;;  %v1853_v11 = vld [vmem:[#allocation7 + $0xc08] sm:$0xff] }
 0x220   :  { %1776 = vmatpush.msra.mxu3 %v1605_v31  ;;  %4303 = vmatmul.msk.f32.vlgmr.msra.gmra.mxu2 %vm713_vm3, %v5614_v16 }
 0x221   :  { %v6154_v46 = vpop.f32.mrf.mxu3  ;;  %v6156_v38 = vpop.f32.mrf.mxu2  ;;  %1777 = vmatmul.f32.vlgmr.msra.gmra.mxu3 %v5609_v14  ;;  %2015 = vmatpush.msrb.mxu2 %v1887_v29  ;;  %v1877_v14 = vld [vmem:[#allocation7 + $0xcc8] sm:$0xff] }
 0x222   :  { %v6160_v0 = vpop.f32.mrf.mxu0  ;;  %v6162_v56 = vpop.f32.mrf.mxu1  ;;  %1984 = vmatpush.msrb.mxu3 %v1859_v15  ;;  %v1849_v29 = vld [vmem:[#allocation7 + $0xbe8] sm:$0xff] }
 0x223   :  { %2016 = vmatpush.msrb.mxu2 %v1885_v13 }
 0x224   :  { %1985 = vmatpush.msrb.mxu3 %v1857_v55  ;;  %v1875_v55 = vld [vmem:[#allocation7 + $0xcb8] sm:$0xff] }
 0x225   :  { %2017 = vmatpush.msrb.mxu2 %v1883_v5  ;;  %v1847_v5 = vld [vmem:[#allocation7 + $0xbd8] sm:$0xff] }
 0x226   :  { %1986 = vmatpush.msrb.mxu3 %v1855_v37  ;;  %v1873_v37 = vld [vmem:[#allocation7 + $0xca8] sm:$0xff] }
 0x227   :  { %2018 = vmatpush.msrb.mxu2 %v1881_v19  ;;  %v1845_v19 = vld [vmem:[#allocation7 + $0xbc8] sm:$0xff] }
 0x228   :  { %1987 = vmatpush.msrb.mxu3 %v1853_v11  ;;  %4304 = vmatmul.msk.f32.gmra.mxu2 %vm713_vm3, %v5658_v10  ;;  %v1871_v11 = vld [vmem:[#allocation7 + $0xc98] sm:$0xff] }
 0x229   :  { %v6165_v31 = vpop.f32.mrf.mxu3  ;;  %v6167_v16 = vpop.f32.mrf.mxu2  ;;  %1780 = vmatmul.f32.gmra.mxu3 %v5651_v49  ;;  %2019 = vmatpush.msrb.mxu2 %v1879_v28  ;;  %v1843_v49 = vld [vmem:[#allocation7 + $0xbb8] sm:$0xff]  ;;  %v1869_v28 = vld [vmem:[#allocation7 + $0xc88] sm:$0xff] }
 0x22a   :  { %v6172_v15 = vpop.f32.mrf.mxu0  ;;  %v6174_v13 = vpop.f32.mrf.mxu1  ;;  %1988 = vmatpush.msrb.mxu3 %v1851_v27  ;;  %v1841_v27 = vld [vmem:[#allocation7 + $0xba8] sm:$0xff] }
 0x22b   :  { %2020 = vmatpush.msrb.mxu2 %v1877_v14  ;;  %v1867_v14 = vld [vmem:[#allocation7 + $0xc78] sm:$0xff] }
 0x22c   :  { %1989 = vmatpush.msrb.mxu3 %v1849_v29 }
 0x22d   :  { %2021 = vmatpush.msrb.mxu2 %v1875_v55  ;;  %v1839_v55 = vld [vmem:[#allocation7 + $0xb98] sm:$0xff] }
 0x22e   :  { %1990 = vmatpush.msrb.mxu3 %v1847_v5 }
 0x22f   :  { %2022 = vmatpush.msrb.mxu2 %v1873_v37  ;;  %v1837_v37 = vld [vmem:[#allocation7 + $0xb88] sm:$0xff] }
 0x230   :  { %1991 = vmatpush.msrb.mxu3 %v1845_v19  ;;  %4305 = vmatmul.msk.f32.gmra.mxu2 %vm713_vm3, %v5692_v61  ;;  %v1863_v19 = vld [vmem:[#allocation7 + $0xc58] sm:$0xff] }
 0x231   :  { %v6176_v10 = vpop.f32.mrf.mxu3  ;;  %v6178_v59 = vpop.f32.mrf.mxu2  ;;  %1783 = vmatmul.f32.gmra.mxu3 %v5687_v36  ;;  %2023 = vmatpush.msrb.mxu2 %v1871_v11  ;;  %v1835_v61 = vld [vmem:[#allocation7 + $0xb78] sm:$0xff]  ;;  %v1861_v36 = vld [vmem:[#allocation7 + $0xc48] sm:$0xff] }
 0x232   :  { %1992 = vmatpush.msrb.mxu3 %v1843_v49  ;;  %v6183_v29 = vpop.f32.mrf.mxu0  ;;  %v1833_v49 = vld [vmem:[#allocation7 + $0xb68] sm:$0xff] }
 0x233   :  { %2024 = vmatpush.msrb.mxu2 %v1869_v28  ;;  %v2110_v28 = vld [vmem:[#allocation7 + $0xef8] sm:$0xff] }
 0x234   :  { %v6185_v5 = vpop.f32.mrf.mxu1  ;;  %1993 = vmatpush.msrb.mxu3 %v1841_v27  ;;  %v1831_v27 = vld [vmem:[#allocation7 + $0xb58] sm:$0xff] }
 0x235   :  { %2025 = vmatpush.msrb.mxu2 %v1867_v14  ;;  %v2108_v14 = vld [vmem:[#allocation7 + $0xee8] sm:$0xff] }
 0x236   :  { %1994 = vmatpush.msrb.mxu3 %v1839_v55 }
 0x237   :  { %2026 = vmatpush.msrb.mxu2 %v1865_v42 }
 0x238   :  { %1995 = vmatpush.msrb.mxu3 %v1837_v37  ;;  %4306 = vmatmul.msk.f32.gmra.mxu2 %vm713_vm3, %v5712_v21  ;;  %v1829_v37 = vld [vmem:[#allocation7 + $0xb48] sm:$0xff]  ;;  %v2106_v21 = vld [vmem:[#allocation7 + $0xed8] sm:$0xff] }
 0x239   :  { %v6187_v41 = vpop.f32.mrf.mxu3  ;;  %v6191_v11 = vpop.f32.mrf.mxu2  ;;  %1786 = vmatmul.f32.gmra.mxu3 %v5709_v20  ;;  %2027 = vmatpush.msrb.mxu2 %v1863_v19  ;;  %v2104_v20 = vld [vmem:[#allocation7 + $0xec8] sm:$0xff] }
 0x23a   :  { %6952 = vst [vmem:[#allocation74_spill] sm:$0xff] %v6187_v41  ;;  %1996 = vmatpush.msrb.mxu3 %v1835_v61  ;;  %v2080_v19 = vld [vmem:[#allocation7 + $0xe08] sm:$0xff]  ;;  %v2074_v41 = vld [vmem:[#allocation7 + $0xdd8] sm:$0xff] }
 0x23b   :  { %6953 = vst [vmem:[#allocation75_spill] sm:$0xff] %v6191_v11  ;;  %2028 = vmatpush.msrb.mxu2 %v1861_v36  ;;  %v2082_v11 = vld [vmem:[#allocation7 + $0xe18] sm:$0xff] }
 0x23c   :  { %1997 = vmatpush.msrb.mxu3 %v1833_v49  ;;  %v6194_v42 = vpop.f32.mrf.mxu0  ;;  %v2102_v49 = vld [vmem:[#allocation7 + $0xeb8] sm:$0xff] }
 0x23d   :  { %v6196_v55 = vpop.f32.mrf.mxu1  ;;  %2232 = vmatpush.msra.mxu2 %v2110_v28  ;;  %v2078_v28 = vld [vmem:[#allocation7 + $0xdf8] sm:$0xff] }
 0x23e   :  { %1998 = vmatpush.msrb.mxu3 %v1831_v27  ;;  %v2100_v27 = vld [vmem:[#allocation7 + $0xea8] sm:$0xff] }
 0x23f   :  { %2233 = vmatpush.msra.mxu2 %v2108_v14  ;;  %v2076_v14 = vld [vmem:[#allocation7 + $0xde8] sm:$0xff] }
 0x240   :  { %1999 = vmatpush.msrb.mxu3 %v1829_v37  ;;  %4311 = vmatmul.msk.f32.vlgmr.msrb.gmra.mxu2 %vm713_vm3, %v5736_v48 }
 0x241   :  { %2000 = vmatmul.f32.vlgmr.msrb.gmra.mxu3 %v5733_v12  ;;  %2234 = vmatpush.msra.mxu2 %v2106_v21  ;;  %v6201_v61 = vpop.f32.mrf.mxu3  ;;  %v2098_v12 = vld [vmem:[#allocation7 + $0xe98] sm:$0xff]  ;;  %v2072_v21 = vld [vmem:[#allocation7 + $0xdc8] sm:$0xff] }
 0x242   :  { %6954 = vst [vmem:[#allocation76_spill] sm:$0xff] %v6201_v61  ;;  %v6203_v36 = vpop.f32.mrf.mxu2  ;;  %2201 = vmatpush.msra.mxu3 %v2082_v11  ;;  %v2096_v11 = vld [vmem:[#allocation7 + $0xe88] sm:$0xff] }
 0x243   :  { %6955 = vst [vmem:[#allocation77_spill] sm:$0xff] %v6203_v36  ;;  %2235 = vmatpush.msra.mxu2 %v2104_v20  ;;  %v2092_v36 = vld [vmem:[#allocation7 + $0xe68] sm:$0xff] }
 0x244   :  { %2202 = vmatpush.msra.mxu3 %v2080_v19  ;;  %v2094_v19 = vld [vmem:[#allocation7 + $0xe78] sm:$0xff] }
 0x245   :  { %2236 = vmatpush.msra.mxu2 %v2102_v49  ;;  %v2070_v49 = vld [vmem:[#allocation7 + $0xdb8] sm:$0xff] }
 0x246   :  { %v6205_v37 = vpop.f32.mrf.mxu0  ;;  %2203 = vmatpush.msra.mxu3 %v2078_v28  ;;  %v6207_v48 = vpop.f32.mrf.mxu1 }
 0x247   :  { %2237 = vmatpush.msra.mxu2 %v2100_v27  ;;  %v2068_v27 = vld [vmem:[#allocation7 + $0xda8] sm:$0xff] }
 0x248   :  { %2204 = vmatpush.msra.mxu3 %v2076_v14  ;;  %4312 = vmatmul.msk.f32.gmra.mxu2 %vm713_vm3, %v5760_v45  ;;  %v2090_v14 = vld [vmem:[#allocation7 + $0xe58] sm:$0xff] }
 0x249   :  { %2003 = vmatmul.f32.gmra.mxu3 %v5757_v50  ;;  %2238 = vmatpush.msra.mxu2 %v2098_v12  ;;  %v2066_v45 = vld [vmem:[#allocation7 + $0xd98] sm:$0xff]  ;;  %v2064_v12 = vld [vmem:[#allocation7 + $0xd88] sm:$0xff] }
 0x24a   :  { %2205 = vmatpush.msra.mxu3 %v2074_v41  ;;  %v2088_v41 = vld [vmem:[#allocation7 + $0xe48] sm:$0xff] }
 0x24b   :  { %v6212_v20 = vpop.f32.mrf.mxu3  ;;  %v6214_v28 = vpop.f32.mrf.mxu2  ;;  %2239 = vmatpush.msra.mxu2 %v2096_v11  ;;  %v2086_v11 = vld [vmem:[#allocation7 + $0xe38] sm:$0xff] }
 0x24c   :  { %6956 = vst [vmem:[#allocation78_spill] sm:$0xff] %v6212_v20  ;;  %2206 = vmatpush.msra.mxu3 %v2072_v21  ;;  %v2062_v21 = vld [vmem:[#allocation7 + $0xd78] sm:$0xff] }
 0x24d   :  { %6957 = vst [vmem:[#allocation79_spill] sm:$0xff] %v6214_v28  ;;  %2240 = vmatpush.msra.mxu2 %v2094_v19  ;;  %v2084_v28 = vld [vmem:[#allocation7 + $0xe28] sm:$0xff] }
 0x24e   :  { %2207 = vmatpush.msra.mxu3 %v2070_v49 }
 0x24f   :  { %v6216_v61 = vpop.f32.mrf.mxu0  ;;  %2241 = vmatpush.msra.mxu2 %v2092_v36  ;;  %v2060_v36 = vld [vmem:[#allocation7 + $0xd68] sm:$0xff] }
 0x250   :  { %v6218_v50 = vpop.f32.mrf.mxu1  ;;  %2208 = vmatpush.msra.mxu3 %v2068_v27  ;;  %4313 = vmatmul.msk.f32.gmra.mxu2 %vm713_vm3, %v5792_v22  ;;  %v2327_v27 = vld [vmem:[#allocation7 + $0x10d8] sm:$0xff] }
 0x251   :  { %2006 = vmatmul.f32.gmra.mxu3 %v5787_v18  ;;  %2242 = vmatpush.msra.mxu2 %v2090_v14  ;;  %v2058_v22 = vld [vmem:[#allocation7 + $0xd58] sm:$0xff]  ;;  %v2325_v14 = vld [vmem:[#allocation7 + $0x10c8] sm:$0xff] }
 0x252   :  { %2209 = vmatpush.msra.mxu3 %v2066_v45  ;;  %v2056_v45 = vld [vmem:[#allocation7 + $0xd48] sm:$0xff] }
 0x253   :  { %2243 = vmatpush.msra.mxu2 %v2088_v41 }
 0x254   :  { %2210 = vmatpush.msra.mxu3 %v2064_v12  ;;  %v6223_v19 = vpop.f32.mrf.mxu3  ;;  %v2323_v12 = vld [vmem:[#allocation7 + $0x10b8] sm:$0xff] }
 0x255   :  { %6958 = vst [vmem:[#allocation80_spill] sm:$0xff] %v6223_v19  ;;  %v6225_v49 = vpop.f32.mrf.mxu2  ;;  %2244 = vmatpush.msra.mxu2 %v2086_v11  ;;  %v2054_v11 = vld [vmem:[#allocation7 + $0xd38] sm:$0xff] }
 0x256   :  { %6959 = vst [vmem:[#allocation81_spill] sm:$0xff] %v6225_v49  ;;  %2211 = vmatpush.msra.mxu3 %v2062_v21  ;;  %v2321_v21 = vld [vmem:[#allocation7 + $0x10a8] sm:$0xff]  ;;  %v2319_v49 = vld [vmem:[#allocation7 + $0x1098] sm:$0xff] }
 0x257   :  { %2245 = vmatpush.msra.mxu2 %v2084_v28  ;;  %v2052_v28 = vld [vmem:[#allocation7 + $0xd28] sm:$0xff]  ;;  %v2299_v19 = vld [vmem:[#allocation7 + $0xff8] sm:$0xff] }
 0x258   :  { %2212 = vmatpush.msra.mxu3 %v2060_v36  ;;  %4314 = vmatmul.msk.f32.gmra.mxu2 %vm713_vm3, %v5830_v51 }
 0x259   :  { %v6229_v18 = vpop.f32.mrf.mxu0  ;;  %2009 = vmatmul.f32.gmra.mxu3 %v5825_v25  ;;  %v6232_v41 = vpop.f32.mrf.mxu1  ;;  %2429 = vmatpush.msrb.mxu2 %v2327_v27  ;;  %v870_v25 = vadd.f32 %v5856_v33, %v5600_v34  ;;  %v2317_v27 = vld [vmem:[#allocation7 + $0x1088] sm:$0xff]  ;;  %v867_v34 = vadd.f32 %v5814_v35, %v5573_v30  ;;  %v2295_v33 = vld [vmem:[#allocation7 + $0xfd8] sm:$0xff]  ;;  %v1329_v30 = vadd.f32 %v6145_v60, %v6143_v62 }
 0x25a   :  { %2213 = vmatpush.msra.mxu3 %v2058_v22  ;;  %v2297_v22 = vld [vmem:[#allocation7 + $0xfe8] sm:$0xff]  ;;  %v2291_v35 = vld [vmem:[#allocation7 + $0xfb8] sm:$0xff]  ;;  %v1753_v62 = vadd.f32 %v6040_v40, %v6038_v52 }
 0x25b   :  { %2430 = vmatpush.msrb.mxu2 %v2325_v14  ;;  %v1114_v14 = vadd.f32 %v6022_v53, %v6020_v63  ;;  %v1111_v63 = vadd.f32 %v6008_v43, %v6006_v58  ;;  %v2293_v53 = vld [vmem:[#allocation7 + $0xfc8] sm:$0xff] }
 0x25c   :  { %2214 = vmatpush.msra.mxu3 %v2056_v45  ;;  %v2309_v43 = vld [vmem:[#allocation7 + $0x1048] sm:$0xff] }
 0x25d   :  { %2431 = vmatpush.msrb.mxu2 %v2323_v12  ;;  %v2285_v52 = vld [vmem:[#allocation7 + $0xf88] sm:$0xff] }
 0x25e   :  { %v1496_v36 = vpop.f32.mrf.mxu3  ;;  %2215 = vmatpush.msra.mxu3 %v2054_v11  ;;  %v1525_v51 = vpop.f32.mrf.mxu2  ;;  %v2315_v11 = vld [vmem:[#allocation7 + $0x1078] sm:$0xff]  ;;  %v6968_v40 = vld [vmem:[#allocation32_spill] sm:$0xff] }
 0x25f   :  { %2432 = vmatpush.msrb.mxu2 %v2321_v21  ;;  %v2311_v21 = vld [vmem:[#allocation7 + $0x1058] sm:$0xff] }
 0x260   :  { %2216 = vmatpush.msra.mxu3 %v2052_v28  ;;  %4319 = vmatmul.msk.f32.vlgmr.msra.gmra.mxu2 %vm713_vm3, %v5873_v57  ;;  %v899_v57 = vadd.f32 %v5858_v23, %v870_v25  ;;  %v6960_v28 = vld [vmem:[#allocation28_spill] sm:$0xff] }
 0x261   :  { %2217 = vmatmul.f32.vlgmr.msra.gmra.mxu3 %v5878_v17  ;;  %2433 = vmatpush.msrb.mxu2 %v2319_v49  ;;  %v1332_v17 = vadd.f32 %v6156_v38, %v6154_v46  ;;  %v2313_v49 = vld [vmem:[#allocation7 + $0x1068] sm:$0xff]  ;;  %v896_v20 = vadd.f32 %v6960_v28, %v867_v34 }
 0x262   :  { %2398 = vmatpush.msrb.mxu3 %v2299_v19  ;;  %v6241_v45 = vpop.f32.mrf.mxu0  ;;  %v1182_v19 = vadd.f32 %v1114_v14, %v899_v57  ;;  %v6961_v38 = vld [vmem:[#allocation36_spill] sm:$0xff]  ;;  %v6962_v14 = vld [vmem:[#allocation35_spill] sm:$0xff] }
 0x263   :  { %v6243_v12 = vpop.f32.mrf.mxu1  ;;  %2434 = vmatpush.msrb.mxu2 %v2317_v27  ;;  %v1180_v27 = vadd.f32 %v1111_v63, %v896_v20  ;;  %v6963_v34 = vld [vmem:[#allocation19_spill] sm:$0xff]  ;;  %v6965_v20 = vld [vmem:[#allocation57_spill] sm:$0xff]  ;;  %v6967_v28 = vld [vmem:[#allocation56_spill] sm:$0xff] }
 0x264   :  { %2399 = vmatpush.msrb.mxu3 %v2297_v22  ;;  %v1400_v46 = vadd.f32 %v1332_v17, %v1182_v19  ;;  %v1526_v22 = vadd.f32 %v1525_v51, %v1496_v36  ;;  %v2307_v17 = vld [vmem:[#allocation7 + $0x1038] sm:$0xff]  ;;  %v1117_v36 = vadd.f32 %v6965_v20, %v6031_v24  ;;  %v2305_v63 = vld [vmem:[#allocation7 + $0x1028] sm:$0xff] }
 0x265   :  { %2435 = vmatpush.msrb.mxu2 %v2315_v11  ;;  %v2289_v11 = vld [vmem:[#allocation7 + $0xfa8] sm:$0xff]  ;;  %v2303_v24 = vld [vmem:[#allocation7 + $0x1018] sm:$0xff] }
 0x266   :  { %2400 = vmatpush.msrb.mxu3 %v2295_v33  ;;  %v6964_v33 = vld [vmem:[#allocation31_spill] sm:$0xff] }
 0x267   :  { %v1499_v23 = vpop.f32.mrf.mxu3  ;;  %2436 = vmatpush.msrb.mxu2 %v2313_v49  ;;  %v873_v60 = vadd.f32 %v6964_v33, %v6963_v34  ;;  %v1398_v49 = vadd.f32 %v1329_v30, %v1180_v27  ;;  %v1976_v30 = vadd.f32 %v6124_v4, %v6116_v9  ;;  %v6970_v27 = vld [vmem:[#allocation37_spill] sm:$0xff]  ;;  %v2301_v33 = vld [vmem:[#allocation7 + $0x1008] sm:$0xff]  ;;  %v1756_v9 = vadd.f32 %v6064_v39, %v6057_v2 }
 0x268   :  { %v1528_v25 = vpop.f32.mrf.mxu2  ;;  %2401 = vmatpush.msrb.mxu3 %v2293_v53  ;;  %4320 = vmatmul.msk.f32.gmra.mxu2 %vm713_vm3, %v6961_v38  ;;  %v2287_v53 = vld [vmem:[#allocation7 + $0xf98] sm:$0xff]  ;;  %v1973_v4 = vadd.f32 %v6103_v1, %v6097_v54  ;;  %v2522_v2 = vld [vmem:[#allocation7 + $0x12a8] sm:$0xff]  ;;  %v1120_v39 = vadd.f32 %v6054_v44, %v6052_v7  ;;  %v1979_v54 = vadd.f32 %v6138_v8, %v6136_v3 }
 0x269   :  { %v1529_v58 = vadd.f32 %v1528_v25, %v1499_v23  ;;  %2220 = vmatmul.f32.gmra.mxu3 %v6962_v14  ;;  %2437 = vmatpush.msrb.mxu2 %v2311_v21  ;;  %v6966_v21 = vld [vmem:[#allocation55_spill] sm:$0xff]  ;;  %v1595_v25 = vadd.f32 %v1526_v22, %v1398_v49  ;;  %v6971_v22 = vld [vmem:[#allocation44_spill] sm:$0xff]  ;;  %v2193_v49 = vadd.f32 %v6174_v13, %v6172_v15  ;;  %v2520_v3 = vld [vmem:[#allocation7 + $0x1298] sm:$0xff] }
 0x26a   :  { %2402 = vmatpush.msrb.mxu3 %v2291_v35  ;;  %v1750_v23 = vadd.f32 %v6967_v28, %v6966_v21  ;;  %v902_v35 = vadd.f32 %v6968_v40, %v873_v60  ;;  %v6973_v21 = vld [vmem:[#allocation38_spill] sm:$0xff]  ;;  %v2190_v15 = vadd.f32 %v6162_v56, %v6160_v0  ;;  %v2196_v13 = vadd.f32 %v6185_v5, %v6183_v29  ;;  %v2518_v29 = vld [vmem:[#allocation7 + $0x1288] sm:$0xff] }
 0x26b   :  { %v1597_v57 = vadd.f32 %v1529_v58, %v1400_v46  ;;  %2438 = vmatpush.msrb.mxu2 %v2309_v43  ;;  %v1335_v46 = vadd.f32 %v6167_v16, %v6165_v31  ;;  %v2283_v58 = vld [vmem:[#allocation7 + $0xf78] sm:$0xff]  ;;  %v6969_v43 = vld [vmem:[#allocation20_spill] sm:$0xff]  ;;  %v6972_v16 = vld [vmem:[#allocation43_spill] sm:$0xff]  ;;  %v2390_v7 = vadd.f32 %v6218_v50, %v6216_v61  ;;  %v1338_v40 = vadd.f32 %v6178_v59, %v6176_v10 }
 0x26c   :  { %v6262_v19 = vpop.f32.mrf.mxu0  ;;  %2403 = vmatpush.msrb.mxu3 %v2289_v11  ;;  %v6266_v51 = vpop.f32.mrf.mxu1  ;;  %v876_v14 = vadd.f32 %v6970_v27, %v6969_v43  ;;  %v1184_v11 = vadd.f32 %v1117_v36, %v902_v35  ;;  %v1819_v31 = vadd.f32 %v1750_v23, %v1595_v25  ;;  %v2279_v36 = vld [vmem:[#allocation7 + $0xf58] sm:$0xff]  ;;  %v2387_v5 = vadd.f32 %v6207_v48, %v6205_v37 }
 0x26d   :  { %2439 = vmatpush.msrb.mxu2 %v2307_v17  ;;  %v1821_v38 = vadd.f32 %v1753_v62, %v1597_v57  ;;  %v2281_v62 = vld [vmem:[#allocation7 + $0xf68] sm:$0xff]  ;;  %v2524_v57 = vld [vmem:[#allocation7 + $0x12b8] sm:$0xff]  ;;  %v2393_v61 = vadd.f32 %v6232_v41, %v6229_v18  ;;  %v1982_v18 = vadd.f32 %v6149_v32, %v6147_v6  ;;  %v2199_v6 = vadd.f32 %v6196_v55, %v6194_v42 }
 0x26e   :  { %2404 = vmatpush.msrb.mxu3 %v2287_v53  ;;  %v1402_v17 = vadd.f32 %v1335_v46, %v1184_v11  ;;  %v905_v28 = vadd.f32 %v6973_v21, %v876_v14  ;;  %v2042_v23 = vadd.f32 %v1973_v4, %v1819_v31  ;;  %v2275_v35 = vld [vmem:[#allocation7 + $0xf38] sm:$0xff]  ;;  %v1759_v14 = vadd.f32 %v6084_v26, %v6078_v47  ;;  %v2514_v41 = vld [vmem:[#allocation7 + $0x1268] sm:$0xff] }
 0x26f   :  { %2440 = vmatpush.msrb.mxu2 %v2305_v63  ;;  %v2044_v53 = vadd.f32 %v1976_v30, %v1821_v38  ;;  %v6974_v56 = vld [vmem:[#allocation42_spill] sm:$0xff]  ;;  %v6975_v46 = vld [vmem:[#allocation41_spill] sm:$0xff] }
 0x270   :  { %2405 = vmatpush.msrb.mxu3 %v2285_v52  ;;  %4321 = vmatmul.msk.f32.gmra.mxu2 %vm713_vm3, %v6971_v22  ;;  %v2277_v52 = vld [vmem:[#allocation7 + $0xf48] sm:$0xff]  ;;  %v1186_v30 = vadd.f32 %v1120_v39, %v905_v28  ;;  %v2259_v50 = vadd.f32 %v2190_v15, %v2042_v23  ;;  %v2516_v27 = vld [vmem:[#allocation7 + $0x1278] sm:$0xff]  ;;  %v6310_v22 = vld [vmem:[#allocation8] sm:$0x3] }
 0x271   :  { %v1502_v34 = vpop.f32.mrf.mxu3  ;;  %2223 = vmatmul.f32.gmra.mxu3 %v6972_v16  ;;  %v1531_v60 = vpop.f32.mrf.mxu2  ;;  %2441 = vmatpush.msrb.mxu2 %v2303_v24  ;;  %v2261_v8 = vadd.f32 %v2193_v49, %v2044_v53  ;;  %v2273_v24 = vld [vmem:[#allocation7 + $0xf28] sm:$0xff]  ;;  %v2271_v48 = vld [vmem:[#allocation7 + $0xf18] sm:$0xff]  ;;  %v6323_v49 = vld [vmem:[#allocation10] sm:$0x3] }
 0x272   :  { %2406 = vmatpush.msrb.mxu3 %v2283_v58  ;;  %v1532_v20 = vadd.f32 %v1531_v60, %v1502_v34  ;;  %v1404_v11 = vadd.f32 %v1338_v40, %v1186_v30  ;;  %v2456_v34 = vadd.f32 %v2387_v5, %v2259_v50  ;;  %v2269_v16 = vld [vmem:[#allocation7 + $0xf08] sm:$0xff]  ;;  %v2512_v60 = vld [vmem:[#allocation7 + $0x1258] sm:$0xff]  ;;  %6978 = vst [vmem:[#allocation36_spill] sm:$0xff] %v6323_v49  ;;  %v6333_v21 = vperm.slane %v6323_v49, 0 }
 0x273   :  { %2442 = vmatpush.msrb.mxu2 %v2301_v33  ;;  %v2458_v59 = vadd.f32 %v2390_v7, %v2261_v8  ;;  %v2611_v33 = vadd.f32 %v6266_v51, %v6262_v19  ;;  %v6319_v19 = vperm.slane %v6310_v22, 0  ;;  %v6977_v51 = vld [vmem:[#allocation30_spill] sm:$0xff]  ;;  %v2510_v53 = vld [vmem:[#allocation7 + $0x1248] sm:$0xff]  ;;  %v6979_v55 = vld [vmem:[#allocation29_spill] sm:$0xff] }
 0x274   :  { %v1599_v1 = vadd.f32 %v1532_v20, %v1402_v17  ;;  %2407 = vmatpush.msrb.mxu3 %v2281_v62  ;;  %v2396_v17 = vadd.f32 %v6243_v12, %v6241_v45  ;;  %v2508_v12 = vld [vmem:[#allocation7 + $0x1238] sm:$0xff]  ;;  %6980 = vst [vmem:[#allocation35_spill] sm:$0xff] %v6333_v21  ;;  %v2506_v15 = vld [vmem:[#allocation7 + $0x1228] sm:$0xff] }
 0x275   :  { %v2584_v63 = vpop.f32.mrf.mxu0  ;;  %2653 = vmatpush.msra.mxu2 %v2524_v57  ;;  %v2613_v25 = vpop.f32.mrf.mxu1  ;;  %v2496_v57 = vld [vmem:[#allocation7 + $0x11d8] sm:$0xff]  ;;  %6976 = vst [vmem:[#allocation28_spill] sm:$0xff] %v6319_v19  ;;  %v2680_v20 = vadd.f32 %v2611_v33, %v2456_v34  ;;  %v2486_v5 = vld [vmem:[#allocation7 + $0x1188] sm:$0xff] }
 0x276   :  { %v1823_v44 = vadd.f32 %v1756_v9, %v1599_v1  ;;  %2408 = vmatpush.msrb.mxu3 %v2279_v36  ;;  %v2614_v10 = vadd.f32 %v2613_v25, %v2584_v63  ;;  %v2492_v28 = vld [vmem:[#allocation7 + $0x11b8] sm:$0xff]  ;;  %v2490_v25 = vld [vmem:[#allocation7 + $0x11a8] sm:$0xff] }
 0x277   :  { %2654 = vmatpush.msra.mxu2 %v2522_v2  ;;  %v2494_v2 = vld [vmem:[#allocation7 + $0x11c8] sm:$0xff]  ;;  %v2504_v8 = vld [vmem:[#allocation7 + $0x1218] sm:$0xff] }
 0x278   :  { %v2046_v0 = vadd.f32 %v1979_v54, %v1823_v44  ;;  %2409 = vmatpush.msrb.mxu3 %v2277_v52  ;;  %4322 = vmatmul.msk.f32.gmra.mxu2 %vm713_vm3, %v6974_v56  ;;  %v2682_v47 = vadd.f32 %v2614_v10, %v2458_v59  ;;  %v6981_v30 = vld [vmem:[#allocation34_spill] sm:$0xff]  ;;  %v6983_v34 = vld [vmem:[#allocation40_spill] sm:$0xff]  ;;  %v6984_v33 = vld [vmem:[#allocation39_spill] sm:$0xff] }
 0x279   :  { %2226 = vmatmul.f32.gmra.mxu3 %v6975_v46  ;;  %2655 = vmatpush.msra.mxu2 %v2520_v3  ;;  %v2500_v46 = vld [vmem:[#allocation7 + $0x11f8] sm:$0xff] }
 0x27a   :  { %v1505_v38 = vpop.f32.mrf.mxu3  ;;  %2410 = vmatpush.msrb.mxu3 %v2275_v35  ;;  %v1534_v58 = vpop.f32.mrf.mxu2  ;;  %v2263_v43 = vadd.f32 %v2196_v13, %v2046_v0  ;;  %v2695_v39 = vmul.f32 %v6319_v19, %v2682_v47  ;;  %v2693_v13 = vmul.f32 %v6319_v19, %v2680_v20  ;;  %v2488_v35 = vld [vmem:[#allocation7 + $0x1198] sm:$0xff]  ;;  %v2502_v0 = vld [vmem:[#allocation7 + $0x1208] sm:$0xff] }
 0x27b   :  { %v1535_v37 = vadd.f32 %v1534_v58, %v1505_v38  ;;  %2656 = vmatpush.msra.mxu2 %v2518_v29  ;;  %v6982_v29 = vld [vmem:[#allocation33_spill] sm:$0xff]  ;;  %v6985_v20 = vld [vmem:[#allocation48_spill] sm:$0xff] }
 0x27c   :  { %2411 = vmatpush.msrb.mxu3 %v2273_v24  ;;  %v2460_v31 = vadd.f32 %v2393_v61, %v2263_v43  ;;  %v6340_v3 = vadd.f32 %v6333_v21, %v2695_v39  ;;  %v6347_v50 = vadd.f32 %v6333_v21, %v2693_v13  ;;  %v2484_v58 = vld [vmem:[#allocation7 + $0x1178] sm:$0xff]  ;;  %v2498_v43 = vld [vmem:[#allocation7 + $0x11e8] sm:$0xff] }
 0x27d   :  { %v1601_v9 = vadd.f32 %v1535_v37, %v1404_v11  ;;  %2657 = vmatpush.msra.mxu2 %v2516_v27  ;;  %v7020_v49 = vld [vmem:[#allocation69_spill] sm:$0xff] }
 0x27e   :  { %v2587_v4 = vpop.f32.mrf.mxu0  ;;  %2412 = vmatpush.msrb.mxu3 %v2271_v48  ;;  %v2616_v26 = vpop.f32.mrf.mxu1  ;;  %v2724_v38 = vmin.f32 %v6340_v3, 0.0  ;;  %v2722_v37 = vmin.f32 %v6347_v50, 0.0  ;;  %vm2716_vm7 = vcmp.gt.f32.partialorder %v6340_v3, 0.0  ;;  %vm2714_vm8 = vcmp.gt.f32.partialorder %v6347_v50, 0.0 }
 0x27f   :  { %v1825_v32 = vadd.f32 %v1759_v14, %v1601_v9  ;;  %v2617_v62 = vadd.f32 %v2616_v26, %v2587_v4  ;;  %2658 = vmatpush.msra.mxu2 %v2514_v41  ;;  %v2482_v14 = vld [vmem:[#allocation7 + $0x1168] sm:$0xff]  ;;  %v2480_v41 = vld [vmem:[#allocation7 + $0x1158] sm:$0xff] }
 0x280   :  { %2413 = vmatpush.msrb.mxu3 %v2269_v16  ;;  %4327 = vmatmul.msk.f32.vlgmr.msrb.gmra.mxu2 %vm713_vm3, %v6977_v51  ;;  %v2734_v48 = vmul.f32 1.442695, %v2724_v38  ;;  %v2478_v9 = vld [vmem:[#allocation7 + $0x1148] sm:$0xff]  ;;  %v4474_v16 = vld [vmem:[#allocation7 + $0x3b0] sm:$0xff]  ;;  %v2476_v26 = vld [vmem:[#allocation7 + $0x1138] sm:$0xff] }
 0x281   :  { %v2048_v36 = vadd.f32 %v1982_v18, %v1825_v32  ;;  %v2684_v42 = vadd.f32 %v2617_v62, %v2460_v31  ;;  %2414 = vmatmul.f32.vlgmr.msrb.gmra.mxu3 %v6979_v55  ;;  %2659 = vmatpush.msra.mxu2 %v2512_v60  ;;  %v2730_v31 = vmul.f32 1.442695, %v2722_v37  ;;  %v4475_v60 = vld [vmem:[#allocation7 + $0x3a0] sm:$0xff]  ;;  %v2474_v32 = vld [vmem:[#allocation7 + $0x1128] sm:$0xff]  ;;  %v4476_v62 = vld [vmem:[#allocation7 + $0x390] sm:$0xff] }
 0x282   :  { %2622 = vmatpush.msra.mxu3 %v2496_v57  ;;  %v4477_v51 = vld [vmem:[#allocation7 + $0x380] sm:$0xff]  ;;  %v2470_v55 = vld [vmem:[#allocation7 + $0x1108] sm:$0xff] }
 0x283   :  { %v6327_v45 = vpop.f32.mrf.mxu3  ;;  %v2697_v54 = vmul.f32 %v6319_v19, %v2684_v42  ;;  %v6330_v1 = vpop.f32.mrf.mxu2  ;;  %v2265_v63 = vadd.f32 %v2199_v6, %v2048_v36  ;;  %2660 = vmatpush.msra.mxu2 %v2510_v53  ;;  %v6986_v42 = vld [vmem:[#allocation47_spill] sm:$0xff] }
 0x284   :  { %2623 = vmatpush.msra.mxu3 %v2494_v2  ;;  %v4478_v2 = vld [vmem:[#allocation7 + $0x370] sm:$0xff]  ;;  %v4485_v38 = vld [vmem:[#allocation7 + $0x2c0] sm:$0xff] }
 0x285   :  { %v2462_v23 = vadd.f32 %v2396_v17, %v2265_v63  ;;  %2661 = vmatpush.msra.mxu2 %v2508_v12  ;;  %v6337_v52 = vadd.f32 %v6333_v21, %v2697_v54  ;;  %v2472_v17 = vld [vmem:[#allocation7 + $0x1118] sm:$0xff]  ;;  %v4491_v37 = vld [vmem:[#allocation7 + $0x300] sm:$0xff] }
 0x286   :  { %v2590_v7 = vpop.f32.mrf.mxu0  ;;  %2624 = vmatpush.msra.mxu3 %v2492_v28  ;;  %v2468_v28 = vld [vmem:[#allocation7 + $0x10f8] sm:$0xff] }
 0x287   :  { %v2619_v44 = vpop.f32.mrf.mxu1  ;;  %2662 = vmatpush.msra.mxu2 %v2506_v15  ;;  %v2726_v61 = vmin.f32 %v6337_v52, 0.0  ;;  %v4479_v15 = vld [vmem:[#allocation7 + $0x360] sm:$0xff]  ;;  %vm2718_vm6 = vcmp.gt.f32.partialorder %v6337_v52, 0.0 }
 0x288   :  { %v2620_v40 = vadd.f32 %v2619_v44, %v2590_v7  ;;  %2625 = vmatpush.msra.mxu3 %v2490_v25  ;;  %4328 = vmatmul.msk.f32.gmra.mxu2 %vm713_vm3, %v6981_v30  ;;  %v2466_v7 = vld [vmem:[#allocation7 + $0x10e8] sm:$0xff]  ;;  %v4480_v44 = vld [vmem:[#allocation7 + $0x350] sm:$0xff] }
 0x289   :  { %2417 = vmatmul.f32.gmra.mxu3 %v6982_v29  ;;  %2663 = vmatpush.msra.mxu2 %v2504_v8  ;;  %v2738_v11 = vmul.f32 1.442695, %v2726_v61  ;;  %v6989_v30 = vld [vmem:[#allocation59_spill] sm:$0xff]  ;;  %v4482_v29 = vld [vmem:[#allocation7 + $0x2d0] sm:$0xff] }
 0x28a   :  { %v2686_v56 = vadd.f32 %v2620_v40, %v2462_v23  ;;  %2626 = vmatpush.msra.mxu3 %v2488_v35  ;;  %v4481_v35 = vld [vmem:[#allocation7 + $0x340] sm:$0xff] }
 0x28b   :  { %v6353_v10 = vpop.f32.mrf.mxu2  ;;  %2664 = vmatpush.msra.mxu2 %v2502_v0  ;;  %4454 = vpow2.f32 %v2738_v11  ;;  %v6994_v11 = vld [vmem:[#allocation60_spill] sm:$0xff] }
 0x28c   :  { %v2699_v24 = vmul.f32 %v6319_v19, %v2686_v56  ;;  %v6351_v59 = vpop.f32.mrf.mxu3  ;;  %2627 = vmatpush.msra.mxu3 %v2486_v5  ;;  %4456 = vpow2.f32 %v2734_v48  ;;  %v6991_v56 = vld [vmem:[#allocation58_spill] sm:$0xff]  ;;  %v4483_v5 = vld [vmem:[#allocation7 + $0x330] sm:$0xff] }
 0x28d   :  { %2665 = vmatpush.msra.mxu2 %v2500_v46  ;;  %v4492_v48 = vld [vmem:[#allocation7 + $0x2a0] sm:$0xff] }
 0x28e   :  { %v2712_v27 = vadd.f32 %v6333_v21, %v2699_v24  ;;  %2628 = vmatpush.msra.mxu3 %v2484_v58  ;;  %v4486_v24 = vld [vmem:[#allocation7 + $0x320] sm:$0xff]  ;;  %v4487_v58 = vld [vmem:[#allocation7 + $0x2c8] sm:$0xff]  ;;  %v7012_v21 = vld [vmem:[#allocation45_spill] sm:$0xff] }
 0x28f   :  { %2666 = vmatpush.msra.mxu2 %v2498_v43  ;;  %v4489_v43 = vld [vmem:[#allocation7 + $0x310] sm:$0xff] }
 0x290   :  { %v2728_v18 = vmin.f32 %v2712_v27, 0.0  ;;  %2629 = vmatpush.msra.mxu3 %v2482_v14  ;;  %4329 = vmatmul.msk.f32.gmra.mxu2 %vm713_vm3, %v6983_v34  ;;  %vm2720_vm5 = vcmp.gt.f32.partialorder %v2712_v27, 0.0  ;;  %v4490_v14 = vld [vmem:[#allocation7 + $0x2b8] sm:$0xff]  ;;  %v4494_v34 = vld [vmem:[#allocation7 + $0x2f0] sm:$0xff] }
 0x291   :  { %2420 = vmatmul.f32.gmra.mxu3 %v6984_v33  ;;  %2882 = vmatpush.msrb.mxu2 %v4474_v16  ;;  %v4455_v57 = vpop.eup %4454  ;;  %v4498_v16 = vld [vmem:[#allocation7 + $0x280] sm:$0xff] }
 0x292   :  { %v2742_v4 = vmul.f32 1.442695, %v2728_v18  ;;  %2630 = vmatpush.msra.mxu3 %v2480_v41  ;;  %v4457_v53 = vpop.eup %4456  ;;  %v4343_v12 = vadd.f32 -1.0, %v4455_v57  ;;  %v4493_v18 = vld [vmem:[#allocation7 + $0x2a8] sm:$0xff]  ;;  %v6996_v57 = vld [vmem:[#allocation66_spill] sm:$0xff] }
 0x293   :  { %v6360_v47 = vpop.f32.mrf.mxu2  ;;  %2883 = vmatpush.msrb.mxu2 %v4475_v60  ;;  %v4341_v25 = vadd.f32 -1.0, %v4457_v53  ;;  %v4500_v60 = vld [vmem:[#allocation7 + $0x1d0] sm:$0xff]  ;;  %v4504_v53 = vld [vmem:[#allocation7 + $0x1c0] sm:$0xff] }
 0x294   :  { %4458 = vpow2.f32 %v2742_v4  ;;  %v6362_v6 = vpop.f32.mrf.mxu3  ;;  %2631 = vmatpush.msra.mxu3 %v2478_v9  ;;  %v6377_v8 = vsel %vm2718_vm6, %v6337_v52, %v4343_v12  ;;  %v4495_v9 = vld [vmem:[#allocation7 + $0x290] sm:$0xff]  ;;  %v4496_v4 = vld [vmem:[#allocation7 + $0x298] sm:$0xff]  ;;  %v4509_v12 = vld [vmem:[#allocation7 + $0x240] sm:$0xff] }
 0x295   :  { %4460 = vpow2.f32 %v2730_v31  ;;  %2884 = vmatpush.msrb.mxu2 %v4476_v62  ;;  %6988 = vst [vmem:[#allocation31_spill] sm:$0xff] %v6377_v8  ;;  %v6384_v0 = vsel %vm2716_vm7, %v6340_v3, %v4341_v25  ;;  %v4484_v3 = vld [vmem:[#allocation7 + $0x2d8] sm:$0xff]  ;;  %v4497_v31 = vld [vmem:[#allocation7 + $0x2e0] sm:$0xff]  ;;  %v4501_v62 = vld [vmem:[#allocation7 + $0x270] sm:$0xff] }
 0x296   :  { %2632 = vmatpush.msra.mxu3 %v2476_v26  ;;  %6990 = vst [vmem:[#allocation57_spill] sm:$0xff] %v6384_v0  ;;  %v4499_v26 = vld [vmem:[#allocation7 + $0x288] sm:$0xff]  ;;  %v4512_v25 = vld [vmem:[#allocation7 + $0x230] sm:$0xff] }
 0x297   :  { %2885 = vmatpush.msrb.mxu2 %v4477_v51  ;;  %v4503_v51 = vld [vmem:[#allocation7 + $0x260] sm:$0xff] }
 0x298   :  { %2633 = vmatpush.msra.mxu3 %v2474_v32  ;;  %4330 = vmatmul.msk.f32.gmra.mxu2 %vm713_vm3, %v6985_v20  ;;  %v6995_v32 = vld [vmem:[#allocation67_spill] sm:$0xff] }
 0x299   :  { %2423 = vmatmul.f32.gmra.mxu3 %v6986_v42  ;;  %2886 = vmatpush.msrb.mxu2 %v4478_v2  ;;  %v4507_v2 = vld [vmem:[#allocation7 + $0x1b0] sm:$0xff] }
 0x29a   :  { %v4459_v36 = vpop.eup %4458  ;;  %2634 = vmatpush.msra.mxu3 %v2472_v17  ;;  %v4502_v17 = vld [vmem:[#allocation7 + $0x278] sm:$0xff] }
 0x29b   :  { %v4345_v39 = vadd.f32 -1.0, %v4459_v36  ;;  %v4461_v54 = vpop.eup %4460  ;;  %v6367_v63 = vpop.f32.mrf.mxu2  ;;  %2887 = vmatpush.msrb.mxu2 %v4479_v15  ;;  %v4505_v36 = vld [vmem:[#allocation7 + $0x268] sm:$0xff] }
 0x29c   :  { %v6369_v13 = vpop.f32.mrf.mxu3  ;;  %2635 = vmatpush.msra.mxu3 %v2470_v55  ;;  %v4339_v40 = vadd.f32 -1.0, %v4461_v54  ;;  %v4506_v55 = vld [vmem:[#allocation7 + $0x250] sm:$0xff]  ;;  %v4510_v54 = vld [vmem:[#allocation7 + $0x1a0] sm:$0xff] }
 0x29d   :  { %v6371_v23 = vsel %vm2720_vm5, %v2712_v27, %v4345_v39  ;;  %2888 = vmatpush.msrb.mxu2 %v4480_v44  ;;  %v6993_v27 = vld [vmem:[#allocation63_spill] sm:$0xff]  ;;  %v4508_v39 = vld [vmem:[#allocation7 + $0x258] sm:$0xff] }
 0x29e   :  { %6987 = vst [vmem:[#allocation19_spill] sm:$0xff] %v6371_v23  ;;  %4347 = vmatpush.msk.msra.mxu0 %vm1255_vm4, %v6371_v23  ;;  %2636 = vmatpush.msra.mxu3 %v2468_v28  ;;  %v6390_v52 = vsel %vm2714_vm8, %v6347_v50, %v4339_v40  ;;  %v4488_v50 = vld [vmem:[#allocation7 + $0x2b0] sm:$0xff]  ;;  %v4511_v28 = vld [vmem:[#allocation7 + $0x248] sm:$0xff]  ;;  %v4513_v44 = vld [vmem:[#allocation7 + $0x238] sm:$0xff] }
 0x29f   :  { %2889 = vmatpush.msrb.mxu2 %v4481_v35  ;;  %6992 = vst [vmem:[#allocation55_spill] sm:$0xff] %v6390_v52  ;;  %v6997_v15 = vld [vmem:[#allocation71_spill] sm:$0xff]  ;;  %v4515_v35 = vld [vmem:[#allocation7 + $0x190] sm:$0xff] }
 0x2a0   :  { %2802 = vmatpush.msra.mxu0 %v6377_v8  ;;  %2637 = vmatpush.msra.mxu3 %v2466_v7  ;;  %v6998_v7 = vld [vmem:[#allocation70_spill] sm:$0xff] }
 0x2a1   :  { %4335 = vmatmul.msk.f32.vlgmr.msra.gmra.mxu2 %vm713_vm3, %v6989_v30  ;;  %2638 = vmatmul.f32.vlgmr.msra.gmra.mxu3 %v6991_v56  ;;  %v4514_v40 = vld [vmem:[#allocation7 + $0x220] sm:$0xff]  ;;  %v4516_v56 = vld [vmem:[#allocation7 + $0x228] sm:$0xff]  ;;  %v4564_v8 = vld [vmem:[#allocation7 + $0x18] sm:$0xff] }
 0x2a2   :  { %2803 = vmatpush.msra.mxu0 %v6384_v0  ;;  %2860 = vmatpush.msrb.mxu3 %v4482_v29 }
 0x2a3   :  { %2890 = vmatpush.msrb.mxu2 %v4483_v5  ;;  %v6393_v61 = vpop.f32.mrf.mxu2  ;;  %v4517_v5 = vld [vmem:[#allocation7 + $0x210] sm:$0xff] }
 0x2a4   :  { %2804 = vmatpush.msra.mxu0 %v6390_v52  ;;  %v6395_v46 = vpop.f32.mrf.mxu3  ;;  %2861 = vmatpush.msrb.mxu3 %v4485_v38  ;;  %v4519_v38 = vld [vmem:[#allocation7 + $0x218] sm:$0xff]  ;;  %v7013_v52 = vld [vmem:[#allocation51_spill] sm:$0xff] }
 0x2a5   :  { %2891 = vmatpush.msrb.mxu2 %v4486_v24  ;;  %v4520_v24 = vld [vmem:[#allocation7 + $0x200] sm:$0xff] }
 0x2a6   :  { %2900 = vmatpush.msrb.mxu0 %v4484_v3  ;;  %2862 = vmatpush.msrb.mxu3 %v4488_v50  ;;  %v4518_v3 = vld [vmem:[#allocation7 + $0x180] sm:$0xff]  ;;  %v4522_v50 = vld [vmem:[#allocation7 + $0x208] sm:$0xff] }
 0x2a7   :  { %2892 = vmatpush.msrb.mxu2 %v4489_v43  ;;  %v4523_v43 = vld [vmem:[#allocation7 + $0x1f0] sm:$0xff] }
 0x2a8   :  { %2901 = vmatpush.msrb.mxu0 %v4487_v58  ;;  %2863 = vmatpush.msrb.mxu3 %v4492_v48  ;;  %v4521_v58 = vld [vmem:[#allocation7 + $0x170] sm:$0xff] }
 0x2a9   :  { %4336 = vmatmul.msk.f32.gmra.mxu2 %vm713_vm3, %v6993_v27  ;;  %2641 = vmatmul.f32.gmra.mxu3 %v6994_v11  ;;  %v4524_v27 = vld [vmem:[#allocation7 + $0x160] sm:$0xff] }
 0x2aa   :  { %2902 = vmatpush.msrb.mxu0 %v4490_v14  ;;  %2893 = vmatpush.msrb.mxu2 %v4491_v37  ;;  %v4525_v14 = vld [vmem:[#allocation7 + $0x1f8] sm:$0xff]  ;;  %v4526_v11 = vld [vmem:[#allocation7 + $0x1e0] sm:$0xff]  ;;  %v4527_v37 = vld [vmem:[#allocation7 + $0x150] sm:$0xff] }
 0x2ab   :  { %v6400_v41 = vpop.f32.mrf.mxu2  ;;  %2864 = vmatpush.msrb.mxu3 %v4495_v9 }
 0x2ac   :  { %2903 = vmatpush.msrb.mxu0 %v4493_v18  ;;  %2894 = vmatpush.msrb.mxu2 %v4494_v34  ;;  %v6402_v33 = vpop.f32.mrf.mxu3  ;;  %v4528_v18 = vld [vmem:[#allocation7 + $0x1e8] sm:$0xff]  ;;  %v4529_v34 = vld [vmem:[#allocation7 + $0xf0] sm:$0xff] }
 0x2ad   :  { %2865 = vmatpush.msrb.mxu3 %v4498_v16  ;;  %v4532_v16 = vld [vmem:[#allocation7 + $0x130] sm:$0xff] }
 0x2ae   :  { %2904 = vmatpush.msrb.mxu0 %v4496_v4  ;;  %2895 = vmatpush.msrb.mxu2 %v4497_v31  ;;  %v4530_v4 = vld [vmem:[#allocation7 + $0x140] sm:$0xff] }
 0x2af   :  { %2866 = vmatpush.msrb.mxu3 %v4501_v62  ;;  %v4531_v31 = vld [vmem:[#allocation7 + $0xe0] sm:$0xff]  ;;  %v4536_v62 = vld [vmem:[#allocation7 + $0x110] sm:$0xff] }
 0x2b0   :  { %2905 = vmatpush.msrb.mxu0 %v4499_v26  ;;  %2964 = vmatpush.msra.mxu2 %v4500_v60  ;;  %v4533_v26 = vld [vmem:[#allocation7 + $0xd0] sm:$0xff]  ;;  %v4534_v60 = vld [vmem:[#allocation7 + $0x120] sm:$0xff] }
 0x2b1   :  { %4337 = vmatmul.msk.f32.gmra.mxu2 %vm713_vm3, %v6995_v32  ;;  %2644 = vmatmul.f32.gmra.mxu3 %v6996_v57  ;;  %v4535_v32 = vld [vmem:[#allocation7 + $0xc0] sm:$0xff] }
 0x2b2   :  { %2906 = vmatpush.msrb.mxu0 %v4502_v17  ;;  %2867 = vmatpush.msrb.mxu3 %v4503_v51  ;;  %v4537_v17 = vld [vmem:[#allocation7 + $0xb0] sm:$0xff] }
 0x2b3   :  { %2965 = vmatpush.msra.mxu2 %v4504_v53  ;;  %v6407_v20 = vpop.f32.mrf.mxu2  ;;  %v4538_v53 = vld [vmem:[#allocation7 + $0x100] sm:$0xff] }
 0x2b4   :  { %2907 = vmatpush.msrb.mxu0 %v4505_v36  ;;  %v6409_v42 = vpop.f32.mrf.mxu3  ;;  %2868 = vmatpush.msrb.mxu3 %v4506_v55  ;;  %v4539_v36 = vld [vmem:[#allocation7 + $0xa0] sm:$0xff]  ;;  %v4540_v55 = vld [vmem:[#allocation7 + $0x90] sm:$0xff] }
 0x2b5   :  { %2966 = vmatpush.msra.mxu2 %v4507_v2  ;;  %v4541_v2 = vld [vmem:[#allocation7 + $0x80] sm:$0xff] }
 0x2b6   :  { %2908 = vmatpush.msrb.mxu0 %v4508_v39  ;;  %2869 = vmatpush.msrb.mxu3 %v4509_v12  ;;  %v4542_v12 = vld [vmem:[#allocation7 + $0x70] sm:$0xff] }
 0x2b7   :  { %2967 = vmatpush.msra.mxu2 %v4510_v54 }
 0x2b8   :  { %2909 = vmatpush.msrb.mxu0 %v4511_v28  ;;  %2870 = vmatpush.msrb.mxu3 %v4512_v25  ;;  %v4543_v28 = vld [vmem:[#allocation7 + $0x60] sm:$0xff] }
 0x2b9   :  { %4338 = vmatmul.msk.f32.gmra.mxu2 %vm713_vm3, %v6997_v15  ;;  %2647 = vmatmul.f32.gmra.mxu3 %v6998_v7  ;;  %v4544_v15 = vld [vmem:[#allocation7 + $0x50] sm:$0xff]  ;;  %v4545_v25 = vld [vmem:[#allocation7 + $0x40] sm:$0xff] }
 0x2ba   :  { %2910 = vmatpush.msrb.mxu0 %v4513_v44  ;;  %2871 = vmatpush.msrb.mxu3 %v4514_v40  ;;  %v4546_v44 = vld [vmem:[#allocation7 + $0x30] sm:$0xff] }
 0x2bb   :  { %2968 = vmatpush.msra.mxu2 %v4515_v35  ;;  %v6414_v30 = vpop.f32.mrf.mxu2  ;;  %v4547_v35 = vld [vmem:[#allocation7 + $0x20] sm:$0xff] }
 0x2bc   :  { %2911 = vmatpush.msrb.mxu0 %v4516_v56  ;;  %v6416_v29 = vpop.f32.mrf.mxu3  ;;  %2872 = vmatpush.msrb.mxu3 %v4517_v5  ;;  %v4548_v56 = vld [vmem:[#allocation7 + $0x10] sm:$0xff]  ;;  %v4549_v5 = vld [vmem:[#allocation7] sm:$0xff] }
 0x2bd   :  { %2969 = vmatpush.msra.mxu2 %v4518_v3 }
 0x2be   :  { %2912 = vmatpush.msrb.mxu0 %v4519_v38  ;;  %2873 = vmatpush.msrb.mxu3 %v4520_v24 }
 0x2bf   :  { %2970 = vmatpush.msra.mxu2 %v4521_v58 }
 0x2c0   :  { %2913 = vmatpush.msrb.mxu0 %v4522_v50  ;;  %2874 = vmatpush.msrb.mxu3 %v4523_v43 }
 0x2c1   :  { %2971 = vmatpush.msra.mxu2 %v4524_v27 }
 0x2c2   :  { %2914 = vmatpush.msrb.mxu0 %v4525_v14  ;;  %2875 = vmatpush.msrb.mxu3 %v4526_v11 }
 0x2c3   :  { %2972 = vmatpush.msra.mxu2 %v4527_v37  ;;  %v6418_v48 = vpop.f32.mrf.mxu2 }
 0x2c4   :  { %2915 = vmatpush.msrb.mxu0 %v4528_v18  ;;  %2942 = vmatpush.msra.mxu3 %v4529_v34  ;;  %v6420_v9 = vpop.f32.mrf.mxu3  ;;  %v6457_v18 = vld [vmem:[%s6841_s2] sm:$0xff]  ;;  %v4550_v34 = vld [vmem:[#allocation7 + $0xf8] sm:$0xff] }
 0x2c5   :  { %2973 = vmatpush.msra.mxu2 %v4530_v4  ;;  %7001 = vst [vmem:[#allocation20_spill] sm:$0xff] %v6457_v18  ;;  %4348 = vmatmul.msk.f32.vlgmr.msra.gmra.mxu0 %vm2767_vm9, %v6457_v18  ;;  %v4551_v4 = vld [vmem:[#allocation7 + $0xe8] sm:$0xff] }
 0x2c6   :  { %2943 = vmatpush.msra.mxu3 %v4531_v31  ;;  %2982 = vmatpush.msra.mxu0 %v4550_v34  ;;  %v4562_v34 = vld [vmem:[#allocation7 + $0x38] sm:$0xff]  ;;  %v7019_v18 = vld [vmem:[#allocation68_spill] sm:$0xff] }
 0x2c7   :  { %2974 = vmatpush.msra.mxu2 %v4532_v16  ;;  %v4552_v16 = vld [vmem:[#allocation7 + $0xd8] sm:$0xff] }
 0x2c8   :  { %2944 = vmatpush.msra.mxu3 %v4533_v26  ;;  %2983 = vmatpush.msra.mxu0 %v4551_v4  ;;  %v7006_v4 = vld [vmem:[#allocation49_spill] sm:$0xff] }
 0x2c9   :  { %2975 = vmatpush.msra.mxu2 %v4534_v60  ;;  %v4553_v60 = vld [vmem:[#allocation7 + $0xc8] sm:$0xff] }
 0x2ca   :  { %2945 = vmatpush.msra.mxu3 %v4535_v32  ;;  %2984 = vmatpush.msra.mxu0 %v4552_v16  ;;  %v4554_v32 = vld [vmem:[#allocation7 + $0xb8] sm:$0xff] }
 0x2cb   :  { %2976 = vmatpush.msra.mxu2 %v4536_v62  ;;  %v6422_v57 = vpop.f32.mrf.mxu2  ;;  %v4555_v62 = vld [vmem:[#allocation7 + $0xa8] sm:$0xff] }
 0x2cc   :  { %2946 = vmatpush.msra.mxu3 %v4537_v17  ;;  %v6424_v51 = vpop.f32.mrf.mxu3  ;;  %2985 = vmatpush.msra.mxu0 %v4553_v60  ;;  %v7007_v60 = vld [vmem:[#allocation24_spill] sm:$0xff] }
 0x2cd   :  { %2977 = vmatpush.msra.mxu2 %v4538_v53  ;;  %v4556_v53 = vld [vmem:[#allocation7 + $0x98] sm:$0xff] }
 0x2ce   :  { %2947 = vmatpush.msra.mxu3 %v4539_v36  ;;  %2986 = vmatpush.msra.mxu0 %v4554_v32  ;;  %v7008_v32 = vld [vmem:[#allocation25_spill] sm:$0xff] }
 0x2d0   :  { %2948 = vmatpush.msra.mxu3 %v4540_v55  ;;  %2987 = vmatpush.msra.mxu0 %v4555_v62  ;;  %v4557_v55 = vld [vmem:[#allocation7 + $0x88] sm:$0xff]  ;;  %v833_v62 = vadd.f32 %v7008_v32, %v7007_v60  ;;  %v7017_v60 = vld [vmem:[#allocation61_spill] sm:$0xff]  ;;  %v7018_v32 = vld [vmem:[#allocation62_spill] sm:$0xff] }
 0x2d2   :  { %2949 = vmatpush.msra.mxu3 %v4541_v2  ;;  %2988 = vmatpush.msra.mxu0 %v4556_v53  ;;  %v4558_v2 = vld [vmem:[#allocation7 + $0x78] sm:$0xff]  ;;  %v4563_v53 = vld [vmem:[#allocation7 + $0x28] sm:$0xff] }
 0x2d3   :  { %v6426_v39 = vpop.f32.mrf.mxu2 }
 0x2d4   :  { %2950 = vmatpush.msra.mxu3 %v4542_v12  ;;  %v6428_v54 = vpop.f32.mrf.mxu3  ;;  %2989 = vmatpush.msra.mxu0 %v4557_v55  ;;  %v4559_v12 = vld [vmem:[#allocation7 + $0x68] sm:$0xff] }
 0x2d5   :  { %v7009_v55 = vld [vmem:[#allocation64_spill] sm:$0xff] }
 0x2d6   :  { %2951 = vmatpush.msra.mxu3 %v4543_v28  ;;  %2990 = vmatpush.msra.mxu0 %v4558_v2  ;;  %v7010_v2 = vld [vmem:[#allocation65_spill] sm:$0xff] }
 0x2d8   :  { %2952 = vmatpush.msra.mxu3 %v4544_v15  ;;  %2991 = vmatpush.msra.mxu0 %v4559_v12  ;;  %v4560_v15 = vld [vmem:[#allocation7 + $0x58] sm:$0xff]  ;;  %v1172_v12 = vadd.f32 %v7010_v2, %v7009_v55  ;;  %v1175_v55 = vadd.f32 %v7020_v49, %v7019_v18  ;;  %v4565_v2 = vld [vmem:[#allocation7 + $0x8] sm:$0xff]  ;;  %v1811_v18 = vadd.f32 %v6400_v41, %v6402_v33 }
 0x2d9   :  { %v1814_v41 = vadd.f32 %v6407_v20, %v6409_v42  ;;  %v7033_v20 = vld [vmem:[#allocation80_spill] sm:$0xff]  ;;  %v7034_v42 = vld [vmem:[#allocation81_spill] sm:$0xff] }
 0x2da   :  { %2953 = vmatpush.msra.mxu3 %v4545_v25  ;;  %2992 = vmatpush.msra.mxu0 %v4560_v15  ;;  %v7011_v15 = vld [vmem:[#allocation21_spill] sm:$0xff] }
 0x2db   :  { %v6430_v7 = vpop.f32.mrf.mxu2  ;;  %v925_v19 = vadd.f32 %v7012_v21, %v7011_v15  ;;  %v7022_v15 = vld [vmem:[#allocation52_spill] sm:$0xff] }
 0x2dc   :  { %2954 = vmatpush.msra.mxu3 %v4546_v44  ;;  %v6432_v40 = vpop.f32.mrf.mxu3  ;;  %v4561_v44 = vld [vmem:[#allocation7 + $0x48] sm:$0xff] }
 0x2dd   :  { %2993 = vmatpush.msra.mxu0 %v4561_v44  ;;  %v931_v44 = vadd.f32 %v7013_v52, %v833_v62  ;;  %v1587_v52 = vadd.f32 %v6353_v10, %v6351_v59  ;;  %v7021_v62 = vld [vmem:[#allocation46_spill] sm:$0xff]  ;;  %v1590_v59 = vadd.f32 %v6360_v47, %v6362_v6  ;;  %v7029_v10 = vld [vmem:[#allocation53_spill] sm:$0xff] }
 0x2de   :  { %2955 = vmatpush.msra.mxu3 %v4547_v35  ;;  %v7004_v35 = vld [vmem:[#allocation22_spill] sm:$0xff] }
 0x2df   :  { %2994 = vmatpush.msra.mxu0 %v4562_v34  ;;  %v7015_v34 = vld [vmem:[#allocation76_spill] sm:$0xff] }
 0x2e0   :  { %2956 = vmatpush.msra.mxu3 %v4548_v56  ;;  %v7005_v56 = vld [vmem:[#allocation23_spill] sm:$0xff] }
 0x2e1   :  { %2995 = vmatpush.msra.mxu0 %v4563_v53  ;;  %v1169_v53 = vadd.f32 %v7018_v32, %v7017_v60  ;;  %v7027_v60 = vld [vmem:[#allocation26_spill] sm:$0xff]  ;;  %v7028_v32 = vld [vmem:[#allocation27_spill] sm:$0xff] }
 0x2e2   :  { %2957 = vmatpush.msra.mxu3 %v4549_v5  ;;  %v830_v5 = vadd.f32 %v7005_v56, %v7004_v35  ;;  %v7014_v35 = vld [vmem:[#allocation50_spill] sm:$0xff] }
 0x2e3   :  { %v6434_v3 = vpop.f32.mrf.mxu2  ;;  %2996 = vmatpush.msra.mxu0 %v4564_v8  ;;  %v954_v8 = vadd.f32 %v7021_v62, %v925_v19  ;;  %v1584_v19 = vadd.f32 %v6330_v1, %v6327_v45  ;;  %v7031_v45 = vld [vmem:[#allocation73_spill] sm:$0xff] }
 0x2e4   :  { %v6436_v38 = vpop.f32.mrf.mxu3  ;;  %v928_v16 = vadd.f32 %v7006_v4, %v830_v5  ;;  %v7016_v5 = vld [vmem:[#allocation77_spill] sm:$0xff] }
 0x2e5   :  { %v1390_v4 = vadd.f32 %v7016_v5, %v7015_v34  ;;  %2997 = vmatpush.msra.mxu0 %v4565_v2  ;;  %v7025_v5 = vld [vmem:[#allocation78_spill] sm:$0xff] }
 0x2e6   :  { %v957_v56 = vadd.f32 %v7014_v35, %v928_v16  ;;  %v960_v16 = vadd.f32 %v7022_v15, %v931_v44  ;;  %v7023_v35 = vld [vmem:[#allocation74_spill] sm:$0xff] }
 0x2e8   :  { %v1183_v21 = vadd.f32 %v1172_v12, %v957_v56  ;;  %v1181_v12 = vadd.f32 %v1169_v53, %v954_v8  ;;  %v1185_v56 = vadd.f32 %v1175_v55, %v960_v16  ;;  %v7030_v53 = vld [vmem:[#allocation72_spill] sm:$0xff] }
 0x2e9   :  { %v1178_v1 = vadd.f32 %v7031_v45, %v7030_v53 }
 0x2ea   :  { %v1401_v49 = vadd.f32 %v1390_v4, %v1183_v21  ;;  %v1808_v4 = vadd.f32 %v6393_v61, %v6395_v46  ;;  %v2037_v61 = vadd.f32 %v6426_v39, %v6428_v54  ;;  %v7032_v46 = vld [vmem:[#allocation54_spill] sm:$0xff]  ;;  %v1593_v39 = vadd.f32 %v6367_v63, %v6369_v13 }
 0x2eb   :  { %v6438_v24 = vpop.f32.mrf.mxu2 }
 0x2ec   :  { %v6440_v58 = vpop.f32.mrf.mxu3  ;;  %v1598_v44 = vadd.f32 %v1587_v52, %v1401_v49 }
 0x2ed   :  { %v2251_v47 = vadd.f32 %v6438_v24, %v6440_v58  ;;  %v2248_v58 = vadd.f32 %v6434_v3, %v6436_v38  ;;  %v1817_v3 = vadd.f32 %v6414_v30, %v6416_v29 }
 0x2ee   :  { %v1822_v55 = vadd.f32 %v1811_v18, %v1598_v44  ;;  %v2040_v18 = vadd.f32 %v6430_v7, %v6432_v40  ;;  %v7039_v40 = vld [vmem:[#allocation36_spill] sm:$0xff] }
 0x2f3   :  { %v6442_v50 = vpop.f32.mrf.mxu2 }
 0x2f4   :  { %v6444_v43 = vpop.f32.mrf.mxu3 }
 0x2fb   :  { %v6446_v27 = vpop.f32.mrf.mxu2 }
 0x2fc   :  { %6999 = vst [vmem:[#allocation56_spill] sm:$0xff] %v6446_v27  ;;  %v6448_v14 = vpop.f32.mrf.mxu3 }
 0x2fd   :  { %7000 = vst [vmem:[#allocation32_spill] sm:$0xff] %v6448_v14  ;;  %v836_v14 = vadd.f32 %v7028_v32, %v7027_v60 }
 0x303   :  { %v6450_v11 = vpop.f32.mrf.mxu2 }
 0x304   :  { %v6452_v37 = vpop.f32.mrf.mxu3 }
 0x30b   :  { %v6461_v31 = vpop.f32.mrf.mxu2 }
 0x30c   :  { %v6463_v26 = vpop.f32.mrf.mxu3 }
 0x30d   :  { %v2448_v8 = vadd.f32 %v6461_v31, %v6463_v26 }
 0x313   :  { %v6465_v17 = vpop.f32.mrf.mxu2 }
 0x314   :  { %v6467_v36 = vpop.f32.mrf.mxu3 }
 0x315   :  { %v2451_v31 = vadd.f32 %v6465_v17, %v6467_v36  ;;  %v6541_v17 = vperm.slane %v6310_v22, 1  ;;  %v2763_v22 = vld [vmem:[%s6841_s2 + $0x8] sm:$0xff] }
 0x316   :  { %4349 = vmatmul.msk.f32.gmra.mxu0 %vm2767_vm9, %v2763_v22 }
 0x31b   :  { %v6469_v28 = vpop.f32.mrf.mxu2 }
 0x31c   :  { %7002 = vst [vmem:[#allocation37_spill] sm:$0xff] %v6469_v28  ;;  %v6471_v25 = vpop.f32.mrf.mxu3  ;;  %v7024_v28 = vld [vmem:[#allocation75_spill] sm:$0xff] }
 0x31d   :  { %7003 = vst [vmem:[#allocation44_spill] sm:$0xff] %v6471_v25  ;;  %v1387_v34 = vadd.f32 %v7024_v28, %v7023_v35  ;;  %v7026_v25 = vld [vmem:[#allocation79_spill] sm:$0xff]  ;;  %v934_v28 = vadd.f32 %v7029_v10, %v836_v14 }
 0x31e   :  { %v1393_v27 = vadd.f32 %v7026_v25, %v7025_v5  ;;  %v2034_v25 = vadd.f32 %v6422_v57, %v6424_v51  ;;  %v2031_v57 = vadd.f32 %v6418_v48, %v6420_v9  ;;  %v2254_v48 = vadd.f32 %v6442_v50, %v6444_v43 }
 0x31f   :  { %v1399_v2 = vadd.f32 %v1387_v34, %v1181_v12  ;;  %v963_v51 = vadd.f32 %v7032_v46, %v934_v28  ;;  %v2445_v5 = vadd.f32 %v6450_v11, %v6452_v37 }
 0x320   :  { %v1403_v62 = vadd.f32 %v1393_v27, %v1185_v56  ;;  %v1396_v27 = vadd.f32 %v7034_v42, %v7033_v20  ;;  %v2045_v52 = vadd.f32 %v2034_v25, %v1822_v55  ;;  %v7035_v56 = vld [vmem:[#allocation32_spill] sm:$0xff]  ;;  %v6550_v25 = vperm.slane %v7039_v40, 1 }
 0x321   :  { %v1596_v14 = vadd.f32 %v1584_v19, %v1399_v2  ;;  %v1187_v9 = vadd.f32 %v1178_v1, %v963_v51  ;;  %v7036_v19 = vld [vmem:[#allocation56_spill] sm:$0xff] }
 0x322   :  { %v1600_v21 = vadd.f32 %v1590_v59, %v1403_v62  ;;  %v2262_v54 = vadd.f32 %v2251_v47, %v2045_v52  ;;  %v2257_v30 = vadd.f32 %v7036_v19, %v7035_v56  ;;  %v4579_v56 = vld [vmem:[#allocation7 + $0x2e8] sm:$0xff]  ;;  %v4580_v19 = vld [vmem:[#allocation7 + $0x1d8] sm:$0xff]  ;;  %v4588_v40 = vld [vmem:[#allocation7 + $0x590] sm:$0xff] }
 0x323   :  { %v1820_v15 = vadd.f32 %v1808_v4, %v1596_v14  ;;  %v1405_v26 = vadd.f32 %v1396_v27, %v1187_v9  ;;  %v7038_v28 = vld [vmem:[#allocation37_spill] sm:$0xff] }
 0x324   :  { %v2668_v0 = vpop.f32.mrf.mxu2  ;;  %v2639_v23 = vpop.f32.mrf.mxu3  ;;  %v1824_v24 = vadd.f32 %v1814_v41, %v1600_v21  ;;  %v2459_v60 = vadd.f32 %v2448_v8, %v2262_v54  ;;  %v7037_v10 = vld [vmem:[#allocation44_spill] sm:$0xff] }
 0x325   :  { %v2043_v35 = vadd.f32 %v2031_v57, %v1820_v15  ;;  %v2669_v43 = vadd.f32 %v2668_v0, %v2639_v23  ;;  %v1602_v63 = vadd.f32 %v1593_v39, %v1405_v26  ;;  %v2454_v44 = vadd.f32 %v7038_v28, %v7037_v10  ;;  %v2764_v57 = vld [vmem:[%s6841_s2 + $0x10] sm:$0xff]  ;;  %v2765_v8 = vld [vmem:[%s6841_s2 + $0x18] sm:$0xff]  ;;  %v2766_v39 = vld [vmem:[%s6841_s2 + $0x20] sm:$0xff] }
 0x326   :  { %v2047_v34 = vadd.f32 %v2037_v61, %v1824_v24  ;;  %4350 = vmatmul.msk.f32.gmra.mxu0 %vm2767_vm9, %v2764_v57  ;;  %v4586_v10 = vld [vmem:[#allocation7 + $0x178] sm:$0xff] }
 0x327   :  { %v2260_v38 = vadd.f32 %v2248_v58, %v2043_v35  ;;  %v1826_v36 = vadd.f32 %v1817_v3, %v1602_v63  ;;  %v4566_v3 = vld [vmem:[#allocation7 + $0x3b8] sm:$0xff]  ;;  %v4571_v63 = vld [vmem:[#allocation7 + $0x368] sm:$0xff] }
 0x328   :  { %v2264_v50 = vadd.f32 %v2254_v48, %v2047_v34 }
 0x329   :  { %v2457_v12 = vadd.f32 %v2445_v5, %v2260_v38  ;;  %v2049_v0 = vadd.f32 %v2040_v18, %v1826_v36  ;;  %v4567_v38 = vld [vmem:[#allocation7 + $0x3a8] sm:$0xff]  ;;  %v4574_v18 = vld [vmem:[#allocation7 + $0x338] sm:$0xff] }
 0x32a   :  { %v2461_v11 = vadd.f32 %v2451_v31, %v2264_v50  ;;  %v4568_v50 = vld [vmem:[#allocation7 + $0x398] sm:$0xff] }
 0x32b   :  { %v2681_v29 = vadd.f32 %v2669_v43, %v2457_v12  ;;  %v2266_v2 = vadd.f32 %v2257_v30, %v2049_v0  ;;  %v4569_v43 = vld [vmem:[#allocation7 + $0x388] sm:$0xff]  ;;  %v4578_v36 = vld [vmem:[#allocation7 + $0x2f8] sm:$0xff] }
 0x32c   :  { %v2671_v33 = vpop.f32.mrf.mxu2  ;;  %v2642_v6 = vpop.f32.mrf.mxu3  ;;  %v4575_v12 = vld [vmem:[#allocation7 + $0x328] sm:$0xff] }
 0x32d   :  { %v2672_v16 = vadd.f32 %v2671_v33, %v2642_v6  ;;  %v2694_v62 = vmul.f32 %v6541_v17, %v2681_v29  ;;  %v2463_v45 = vadd.f32 %v2454_v44, %v2266_v2  ;;  %v4581_v30 = vld [vmem:[#allocation7 + $0x1c8] sm:$0xff]  ;;  %v4582_v29 = vld [vmem:[#allocation7 + $0x1b8] sm:$0xff] }
 0x32e   :  { %4351 = vmatmul.msk.f32.gmra.mxu0 %vm2767_vm9, %v2765_v8  ;;  %v4585_v0 = vld [vmem:[#allocation7 + $0x188] sm:$0xff]  ;;  %v4590_v2 = vld [vmem:[#allocation7 + $0x158] sm:$0xff] }
 0x32f   :  { %v2683_v13 = vadd.f32 %v2672_v16, %v2459_v60  ;;  %v2707_v6 = vadd.f32 %v6550_v25, %v2694_v62  ;;  %v7040_v60 = vld [vmem:[#allocation20_spill] sm:$0xff]  ;;  %v4591_v62 = vld [vmem:[#allocation7 + $0x580] sm:$0xff] }
 0x331   :  { %v2696_v23 = vmul.f32 %v6541_v17, %v2683_v13  ;;  %v2723_v51 = vmin.f32 %v2707_v6, 0.0  ;;  %vm2715_vm13 = vcmp.gt.f32.partialorder %v2707_v6, 0.0  ;;  %v4572_v13 = vld [vmem:[#allocation7 + $0x358] sm:$0xff] }
 0x333   :  { %v2709_v53 = vadd.f32 %v6550_v25, %v2696_v23  ;;  %v2732_v52 = vmul.f32 1.442695, %v2723_v51  ;;  %v4584_v23 = vld [vmem:[#allocation7 + $0x198] sm:$0xff] }
 0x334   :  { %v2674_v32 = vpop.f32.mrf.mxu2  ;;  %v2645_v49 = vpop.f32.mrf.mxu3  ;;  %v4606_v51 = vld [vmem:[#allocation7 + $0x538] sm:$0xff] }
 0x335   :  { %v2675_v37 = vadd.f32 %v2674_v32, %v2645_v49  ;;  %v2725_v14 = vmin.f32 %v2709_v53, 0.0  ;;  %vm2717_vm12 = vcmp.gt.f32.partialorder %v2709_v53, 0.0  ;;  %v4570_v32 = vld [vmem:[#allocation7 + $0x378] sm:$0xff]  ;;  %v4573_v49 = vld [vmem:[#allocation7 + $0x348] sm:$0xff] }
 0x336   :  { %4352 = vmatmul.msk.f32.gmra.mxu0 %vm2767_vm9, %v2766_v39 }
 0x337   :  { %v2685_v59 = vadd.f32 %v2675_v37, %v2461_v11  ;;  %v2736_v20 = vmul.f32 1.442695, %v2725_v14  ;;  %v4576_v11 = vld [vmem:[#allocation7 + $0x318] sm:$0xff]  ;;  %v4577_v37 = vld [vmem:[#allocation7 + $0x308] sm:$0xff] }
 0x338   :  { %v4601_v14 = vld [vmem:[#allocation7 + $0x128] sm:$0xff] }
 0x339   :  { %v2698_v7 = vmul.f32 %v6541_v17, %v2685_v59  ;;  %v4583_v59 = vld [vmem:[#allocation7 + $0x1a8] sm:$0xff] }
 0x33b   :  { %v2711_v41 = vadd.f32 %v6550_v25, %v2698_v7  ;;  %v4587_v7 = vld [vmem:[#allocation7 + $0x168] sm:$0xff] }
 0x33c   :  { %v2677_v4 = vpop.f32.mrf.mxu2  ;;  %v2648_v33 = vpop.f32.mrf.mxu3 }
 0x33d   :  { %v2678_v1 = vadd.f32 %v2677_v4, %v2648_v33  ;;  %v2727_v47 = vmin.f32 %v2711_v41, 0.0  ;;  %vm2719_vm11 = vcmp.gt.f32.partialorder %v2711_v41, 0.0  ;;  %v4592_v4 = vld [vmem:[#allocation7 + $0x588] sm:$0xff]  ;;  %v4594_v33 = vld [vmem:[#allocation7 + $0x570] sm:$0xff] }
 0x33f   :  { %v2687_v55 = vadd.f32 %v2678_v1, %v2463_v45  ;;  %v2740_v46 = vmul.f32 1.442695, %v2727_v47  ;;  %v4596_v45 = vld [vmem:[#allocation7 + $0x138] sm:$0xff]  ;;  %v4597_v1 = vld [vmem:[#allocation7 + $0x560] sm:$0xff]  ;;  %v4599_v47 = vld [vmem:[#allocation7 + $0x550] sm:$0xff] }
 0x341   :  { %v2700_v21 = vmul.f32 %v6541_v17, %v2687_v55  ;;  %4462 = vpow2.f32 %v2740_v46  ;;  %v4598_v55 = vld [vmem:[#allocation7 + $0x568] sm:$0xff]  ;;  %v4605_v46 = vld [vmem:[#allocation7 + $0x530] sm:$0xff] }
 0x342   :  { %4464 = vpow2.f32 %v2736_v20  ;;  %v2806_v28 = vpop.f32.mrf.mxu0  ;;  %v4607_v20 = vld [vmem:[#allocation7 + $0x108] sm:$0xff] }
 0x343   :  { %v2713_v61 = vadd.f32 %v6550_v25, %v2700_v21  ;;  %v2855_v44 = vrot.slane %v2806_v28, 4  ;;  %v4602_v21 = vld [vmem:[#allocation7 + $0x540] sm:$0xff] }
 0x345   :  { %v2729_v42 = vmin.f32 %v2713_v61, 0.0  ;;  %vm2721_vm10 = vcmp.gt.f32.partialorder %v2713_v61, 0.0  ;;  %2876 = vmatmul.f32.vlgmr.msrb.gmra.mxu3 %v2855_v44  ;;  %2916 = vmatmul.f32.vlgmr.msrb.gmra.mxu0 %v2855_v44  ;;  %v4644_v44 = vld [vmem:[#allocation7 + $0x5e0] sm:$0xff] }
 0x346   :  { %3047 = vmatpush.msrb.mxu3 %v4588_v40  ;;  %v4646_v40 = vld [vmem:[#allocation7 + $0x5d0] sm:$0xff] }
 0x347   :  { %v2744_v27 = vmul.f32 1.442695, %v2729_v42  ;;  %v4463_v15 = vpop.eup %4462  ;;  %v4608_v42 = vld [vmem:[#allocation7 + $0x520] sm:$0xff] }
 0x348   :  { %v4465_v24 = vpop.eup %4464  ;;  %v4344_v9 = vadd.f32 -1.0, %v4463_v15  ;;  %3048 = vmatpush.msrb.mxu3 %v4591_v62  ;;  %v4612_v15 = vld [vmem:[#allocation7 + $0x500] sm:$0xff]  ;;  %v4649_v62 = vld [vmem:[#allocation7 + $0x5c8] sm:$0xff] }
 0x349   :  { %4466 = vpow2.f32 %v2744_v27  ;;  %v4342_v35 = vadd.f32 -1.0, %v4465_v24  ;;  %v4609_v27 = vld [vmem:[#allocation7 + $0x528] sm:$0xff] }
 0x34a   :  { %4468 = vpow2.f32 %v2732_v52  ;;  %v6578_v34 = vsel %vm2719_vm11, %v2711_v41, %v4344_v9  ;;  %v4593_v41 = vld [vmem:[#allocation7 + $0x148] sm:$0xff]  ;;  %3049 = vmatpush.msrb.mxu3 %v4594_v33  ;;  %v4610_v52 = vld [vmem:[#allocation7 + $0x510] sm:$0xff]  ;;  %v4616_v9 = vld [vmem:[#allocation7 + $0x4e0] sm:$0xff] }
 0x34b   :  { %v6581_v31 = vsel %vm2717_vm12, %v2709_v53, %v4342_v35  ;;  %v4595_v53 = vld [vmem:[#allocation7 + $0x578] sm:$0xff]  ;;  %v4613_v24 = vld [vmem:[#allocation7 + $0x508] sm:$0xff]  ;;  %v4652_v33 = vld [vmem:[#allocation7 + $0x5a0] sm:$0xff] }
 0x34c   :  { %3050 = vmatpush.msrb.mxu3 %v4597_v1  ;;  %v4619_v35 = vld [vmem:[#allocation7 + $0x4d8] sm:$0xff] }
 0x34d   :  { %2958 = vmatmul.f32.vlgmr.msra.gmra.mxu3 %v2806_v28  ;;  %2998 = vmatmul.f32.vlgmr.msra.gmra.mxu0 %v2806_v28  ;;  %v4643_v28 = vld [vmem:[#allocation7 + $0x5f8] sm:$0xff] }
 0x34e   :  { %3051 = vmatpush.msrb.mxu3 %v4599_v47  ;;  %v4655_v47 = vld [vmem:[#allocation7 + $0x4b8] sm:$0xff] }
 0x34f   :  { %v4467_v58 = vpop.eup %4466 }
 0x350   :  { %v4346_v48 = vadd.f32 -1.0, %v4467_v58  ;;  %v4469_v54 = vpop.eup %4468  ;;  %3052 = vmatpush.msrb.mxu3 %v4602_v21  ;;  %v4614_v58 = vld [vmem:[#allocation7 + $0x4f0] sm:$0xff] }
 0x351   :  { %v4340_v5 = vadd.f32 -1.0, %v4469_v54  ;;  %v4618_v54 = vld [vmem:[#allocation7 + $0x4d0] sm:$0xff] }
 0x352   :  { %v6573_v16 = vsel %vm2721_vm10, %v2713_v61, %v4346_v48  ;;  %v4604_v61 = vld [vmem:[#allocation7 + $0x118] sm:$0xff]  ;;  %3053 = vmatpush.msrb.mxu3 %v4605_v46  ;;  %v4658_v21 = vld [vmem:[#allocation7 + $0x490] sm:$0xff]  ;;  %v4660_v46 = vld [vmem:[#allocation7 + $0x480] sm:$0xff] }
 0x353   :  { %4353 = vmatpush.msk.msra.mxu1 %vm1255_vm4, %v6573_v16  ;;  %v6584_v26 = vsel %vm2715_vm13, %v2707_v6, %v4340_v5  ;;  %v4600_v6 = vld [vmem:[#allocation7 + $0x558] sm:$0xff]  ;;  %v4620_v5 = vld [vmem:[#allocation7 + $0x4c0] sm:$0xff] }
 0x354   :  { %3054 = vmatpush.msrb.mxu3 %v4608_v42  ;;  %v4615_v48 = vld [vmem:[#allocation7 + $0x4f8] sm:$0xff] }
 0x355   :  { %2834 = vmatpush.msra.mxu1 %v6578_v34  ;;  %v4663_v42 = vld [vmem:[#allocation7 + $0x958] sm:$0xff] }
 0x356   :  { %3055 = vmatpush.msrb.mxu3 %v4610_v52  ;;  %v4665_v52 = vld [vmem:[#allocation7 + $0x478] sm:$0xff] }
 0x357   :  { %2835 = vmatpush.msra.mxu1 %v6581_v31 }
 0x358   :  { %3056 = vmatpush.msrb.mxu3 %v4612_v15  ;;  %v4667_v15 = vld [vmem:[#allocation7 + $0x948] sm:$0xff] }
 0x359   :  { %2836 = vmatpush.msra.mxu1 %v6584_v26 }
 0x35a   :  { %4354 = vmatmul.msk.f32.vlgmr.msra.gmra.mxu1 %vm2767_vm9, %v7040_v60  ;;  %3057 = vmatpush.msrb.mxu3 %v4614_v58  ;;  %v4621_v60 = vld [vmem:[#allocation7 + $0x4c8] sm:$0xff] }
 0x35b   :  { %2922 = vmatpush.msrb.mxu1 %v4566_v3  ;;  %v4622_v3 = vld [vmem:[#allocation7 + $0x690] sm:$0xff]  ;;  %v4669_v58 = vld [vmem:[#allocation7 + $0x468] sm:$0xff] }
 0x35c   :  { %3058 = vmatpush.msrb.mxu3 %v4616_v9  ;;  %v4671_v9 = vld [vmem:[#allocation7 + $0x938] sm:$0xff] }
 0x35d   :  { %2923 = vmatpush.msrb.mxu1 %v4567_v38  ;;  %v4623_v38 = vld [vmem:[#allocation7 + $0x698] sm:$0xff] }
 0x35e   :  { %3059 = vmatpush.msrb.mxu3 %v4618_v54  ;;  %v4673_v54 = vld [vmem:[#allocation7 + $0x458] sm:$0xff] }
 0x35f   :  { %2924 = vmatpush.msrb.mxu1 %v4568_v50  ;;  %v4624_v50 = vld [vmem:[#allocation7 + $0x680] sm:$0xff] }
 0x360   :  { %3060 = vmatpush.msrb.mxu3 %v4620_v5  ;;  %v4675_v5 = vld [vmem:[#allocation7 + $0x928] sm:$0xff] }
 0x361   :  { %2925 = vmatpush.msrb.mxu1 %v4569_v43  ;;  %v4625_v43 = vld [vmem:[#allocation7 + $0x688] sm:$0xff] }
 0x362   :  { %4355 = vmatmul.msk.f32.gmra.mxu1 %vm2767_vm9, %v2763_v22  ;;  %v4589_v22 = vld [vmem:[#allocation7 + $0x598] sm:$0xff]  ;;  %3113 = vmatpush.msra.mxu3 %v4622_v3  ;;  %v4677_v3 = vld [vmem:[#allocation7 + $0x448] sm:$0xff] }
 0x363   :  { %2926 = vmatpush.msrb.mxu1 %v4570_v32  ;;  %3087 = vmatpush.msrb.mxu0 %v4589_v22  ;;  %v4626_v32 = vld [vmem:[#allocation7 + $0x670] sm:$0xff]  ;;  %v4647_v22 = vld [vmem:[#allocation7 + $0x5d8] sm:$0xff] }
 0x364   :  { %3114 = vmatpush.msra.mxu3 %v4624_v50  ;;  %v4679_v50 = vld [vmem:[#allocation7 + $0x918] sm:$0xff] }
 0x365   :  { %2927 = vmatpush.msrb.mxu1 %v4571_v63  ;;  %3088 = vmatpush.msrb.mxu0 %v4592_v4  ;;  %v4627_v63 = vld [vmem:[#allocation7 + $0x678] sm:$0xff]  ;;  %v4650_v4 = vld [vmem:[#allocation7 + $0x5b0] sm:$0xff] }
 0x366   :  { %3115 = vmatpush.msra.mxu3 %v4626_v32  ;;  %v4681_v32 = vld [vmem:[#allocation7 + $0x438] sm:$0xff] }
 0x367   :  { %2928 = vmatpush.msrb.mxu1 %v4572_v13  ;;  %3089 = vmatpush.msrb.mxu0 %v4595_v53  ;;  %v4628_v13 = vld [vmem:[#allocation7 + $0x660] sm:$0xff]  ;;  %v4653_v53 = vld [vmem:[#allocation7 + $0x5a8] sm:$0xff] }
 0x368   :  { %3116 = vmatpush.msra.mxu3 %v4628_v13  ;;  %v4683_v13 = vld [vmem:[#allocation7 + $0x908] sm:$0xff] }
 0x369   :  { %2929 = vmatpush.msrb.mxu1 %v4573_v49  ;;  %3090 = vmatpush.msrb.mxu0 %v4598_v55  ;;  %v4629_v49 = vld [vmem:[#allocation7 + $0x668] sm:$0xff]  ;;  %v4654_v55 = vld [vmem:[#allocation7 + $0x4b0] sm:$0xff] }
 0x36a   :  { %4356 = vmatmul.msk.f32.gmra.mxu1 %vm2767_vm9, %v2764_v57  ;;  %v4603_v57 = vld [vmem:[#allocation7 + $0x548] sm:$0xff] }
 0x36b   :  { %2930 = vmatpush.msrb.mxu1 %v4574_v18  ;;  %3091 = vmatpush.msrb.mxu0 %v4600_v6  ;;  %v4630_v18 = vld [vmem:[#allocation7 + $0x650] sm:$0xff]  ;;  %v4656_v6 = vld [vmem:[#allocation7 + $0x4a0] sm:$0xff] }
 0x36c   :  { %3117 = vmatpush.msra.mxu3 %v4630_v18  ;;  %v4685_v18 = vld [vmem:[#allocation7 + $0x428] sm:$0xff] }
 0x36d   :  { %2931 = vmatpush.msrb.mxu1 %v4575_v12  ;;  %3092 = vmatpush.msrb.mxu0 %v4603_v57  ;;  %v4631_v12 = vld [vmem:[#allocation7 + $0x658] sm:$0xff] }
 0x36e   :  { %v4659_v57 = vld [vmem:[#allocation7 + $0x498] sm:$0xff] }
 0x36f   :  { %2932 = vmatpush.msrb.mxu1 %v4576_v11  ;;  %3093 = vmatpush.msrb.mxu0 %v4606_v51  ;;  %v4632_v11 = vld [vmem:[#allocation7 + $0x640] sm:$0xff]  ;;  %v4661_v51 = vld [vmem:[#allocation7 + $0x488] sm:$0xff] }
 0x370   :  { %3118 = vmatpush.msra.mxu3 %v4632_v11  ;;  %v4687_v11 = vld [vmem:[#allocation7 + $0x8f8] sm:$0xff] }
 0x371   :  { %2933 = vmatpush.msrb.mxu1 %v4577_v37  ;;  %3094 = vmatpush.msrb.mxu0 %v4609_v27  ;;  %v4633_v37 = vld [vmem:[#allocation7 + $0x648] sm:$0xff]  ;;  %v4664_v27 = vld [vmem:[#allocation7 + $0x470] sm:$0xff] }
 0x372   :  { %4357 = vmatmul.msk.f32.gmra.mxu1 %vm2767_vm9, %v2765_v8  ;;  %v4611_v8 = vld [vmem:[#allocation7 + $0x518] sm:$0xff] }
 0x373   :  { %2934 = vmatpush.msrb.mxu1 %v4578_v36  ;;  %3095 = vmatpush.msrb.mxu0 %v4611_v8  ;;  %v4634_v36 = vld [vmem:[#allocation7 + $0x630] sm:$0xff]  ;;  %v4666_v8 = vld [vmem:[#allocation7 + $0x940] sm:$0xff] }
 0x374   :  { %3119 = vmatpush.msra.mxu3 %v4634_v36  ;;  %v4689_v36 = vld [vmem:[#allocation7 + $0x418] sm:$0xff] }
 0x375   :  { %2935 = vmatpush.msrb.mxu1 %v4579_v56  ;;  %3096 = vmatpush.msrb.mxu0 %v4613_v24  ;;  %v4635_v56 = vld [vmem:[#allocation7 + $0x638] sm:$0xff]  ;;  %v4668_v24 = vld [vmem:[#allocation7 + $0x460] sm:$0xff] }
 0x377   :  { %3004 = vmatpush.msra.mxu1 %v4580_v19  ;;  %3097 = vmatpush.msrb.mxu0 %v4615_v48  ;;  %v4636_v19 = vld [vmem:[#allocation7 + $0x620] sm:$0xff]  ;;  %v4670_v48 = vld [vmem:[#allocation7 + $0x930] sm:$0xff] }
 0x378   :  { %3120 = vmatpush.msra.mxu3 %v4636_v19  ;;  %v4691_v19 = vld [vmem:[#allocation7 + $0x8e8] sm:$0xff] }
 0x379   :  { %3005 = vmatpush.msra.mxu1 %v4581_v30  ;;  %v4637_v30 = vld [vmem:[#allocation7 + $0x628] sm:$0xff] }
 0x37a   :  { %4358 = vmatmul.msk.f32.gmra.mxu1 %vm2767_vm9, %v2766_v39  ;;  %v4617_v39 = vld [vmem:[#allocation7 + $0x4e8] sm:$0xff] }
 0x37b   :  { %3006 = vmatpush.msra.mxu1 %v4582_v29  ;;  %3098 = vmatpush.msrb.mxu0 %v4617_v39  ;;  %v4638_v29 = vld [vmem:[#allocation7 + $0x610] sm:$0xff] }
 0x37c   :  { %3121 = vmatpush.msra.mxu3 %v4638_v29  ;;  %v4672_v39 = vld [vmem:[#allocation7 + $0x450] sm:$0xff]  ;;  %v4693_v29 = vld [vmem:[#allocation7 + $0x408] sm:$0xff] }
 0x37d   :  { %3007 = vmatpush.msra.mxu1 %v4583_v59  ;;  %3099 = vmatpush.msrb.mxu0 %v4619_v35  ;;  %v4639_v59 = vld [vmem:[#allocation7 + $0x618] sm:$0xff]  ;;  %v4674_v35 = vld [vmem:[#allocation7 + $0x920] sm:$0xff] }
 0x37f   :  { %3008 = vmatpush.msra.mxu1 %v4584_v23  ;;  %3100 = vmatpush.msrb.mxu0 %v4621_v60  ;;  %v4640_v23 = vld [vmem:[#allocation7 + $0x600] sm:$0xff] }
 0x380   :  { %3122 = vmatpush.msra.mxu3 %v4640_v23  ;;  %v4676_v60 = vld [vmem:[#allocation7 + $0x440] sm:$0xff]  ;;  %v4695_v23 = vld [vmem:[#allocation7 + $0x8d8] sm:$0xff] }
 0x381   :  { %3009 = vmatpush.msra.mxu1 %v4585_v0  ;;  %3153 = vmatpush.msra.mxu0 %v4623_v38  ;;  %v4641_v0 = vld [vmem:[#allocation7 + $0x608] sm:$0xff]  ;;  %v4678_v38 = vld [vmem:[#allocation7 + $0x910] sm:$0xff] }
 0x383   :  { %3010 = vmatpush.msra.mxu1 %v4586_v10  ;;  %3154 = vmatpush.msra.mxu0 %v4625_v43  ;;  %v4642_v10 = vld [vmem:[#allocation7 + $0x5f0] sm:$0xff] }
 0x384   :  { %3123 = vmatpush.msra.mxu3 %v4642_v10  ;;  %v4680_v43 = vld [vmem:[#allocation7 + $0x430] sm:$0xff]  ;;  %v4697_v10 = vld [vmem:[#allocation7 + $0x3f8] sm:$0xff] }
 0x385   :  { %3011 = vmatpush.msra.mxu1 %v4587_v7  ;;  %3155 = vmatpush.msra.mxu0 %v4627_v63  ;;  %v4645_v7 = vld [vmem:[#allocation7 + $0x5e8] sm:$0xff]  ;;  %v4682_v63 = vld [vmem:[#allocation7 + $0x900] sm:$0xff] }
 0x386   :  { %3124 = vmatpush.msra.mxu3 %v4644_v44  ;;  %v4699_v44 = vld [vmem:[#allocation7 + $0x8c8] sm:$0xff] }
 0x387   :  { %3012 = vmatpush.msra.mxu1 %v4590_v2  ;;  %3156 = vmatpush.msra.mxu0 %v4629_v49  ;;  %v4648_v2 = vld [vmem:[#allocation7 + $0x5c0] sm:$0xff] }
 0x388   :  { %3125 = vmatpush.msra.mxu3 %v4646_v40  ;;  %v4684_v49 = vld [vmem:[#allocation7 + $0x420] sm:$0xff]  ;;  %v4701_v40 = vld [vmem:[#allocation7 + $0x3e8] sm:$0xff] }
 0x389   :  { %3013 = vmatpush.msra.mxu1 %v4593_v41  ;;  %3157 = vmatpush.msra.mxu0 %v4631_v12  ;;  %v4651_v41 = vld [vmem:[#allocation7 + $0x5b8] sm:$0xff]  ;;  %v4686_v12 = vld [vmem:[#allocation7 + $0x8f0] sm:$0xff] }
 0x38a   :  { %3126 = vmatpush.msra.mxu3 %v4648_v2  ;;  %v4703_v2 = vld [vmem:[#allocation7 + $0x8b8] sm:$0xff] }
 0x38b   :  { %3014 = vmatpush.msra.mxu1 %v4596_v45  ;;  %3158 = vmatpush.msra.mxu0 %v4633_v37  ;;  %v4688_v37 = vld [vmem:[#allocation7 + $0x410] sm:$0xff] }
 0x38c   :  { %3127 = vmatpush.msra.mxu3 %v4650_v4  ;;  %v4705_v4 = vld [vmem:[#allocation7 + $0x3d8] sm:$0xff] }
 0x38d   :  { %3015 = vmatpush.msra.mxu1 %v4601_v14  ;;  %3159 = vmatpush.msra.mxu0 %v4635_v56  ;;  %v4657_v14 = vld [vmem:[#allocation7 + $0x4a8] sm:$0xff]  ;;  %v4690_v56 = vld [vmem:[#allocation7 + $0x8e0] sm:$0xff] }
 0x38e   :  { %3128 = vmatpush.msra.mxu3 %v4652_v33  ;;  %v4706_v33 = vld [vmem:[#allocation7 + $0x8a0] sm:$0xff] }
 0x38f   :  { %3016 = vmatpush.msra.mxu1 %v4604_v61  ;;  %3160 = vmatpush.msra.mxu0 %v4637_v30  ;;  %v4692_v30 = vld [vmem:[#allocation7 + $0x400] sm:$0xff] }
 0x391   :  { %3017 = vmatpush.msra.mxu1 %v4607_v20  ;;  %3161 = vmatpush.msra.mxu0 %v4639_v59  ;;  %v4662_v20 = vld [vmem:[#allocation7 + $0x950] sm:$0xff] }
 0x392   :  { %v4694_v59 = vld [vmem:[#allocation7 + $0x8d0] sm:$0xff] }
 0x393   :  { %3162 = vmatpush.msra.mxu0 %v4641_v0  ;;  %v4696_v0 = vld [vmem:[#allocation7 + $0x3f0] sm:$0xff] }
 0x395   :  { %3163 = vmatpush.msra.mxu0 %v4643_v28  ;;  %v4698_v28 = vld [vmem:[#allocation7 + $0x8c0] sm:$0xff] }
 0x397   :  { %3164 = vmatpush.msra.mxu0 %v4645_v7  ;;  %v4700_v7 = vld [vmem:[#allocation7 + $0x3e0] sm:$0xff] }
 0x399   :  { %3165 = vmatpush.msra.mxu0 %v4647_v22  ;;  %v4702_v22 = vld [vmem:[#allocation7 + $0x8b0] sm:$0xff] }
 0x39b   :  { %3166 = vmatpush.msra.mxu0 %v4649_v62  ;;  %v4704_v62 = vld [vmem:[#allocation7 + $0x3d0] sm:$0xff] }
 0x39d   :  { %3167 = vmatpush.msra.mxu0 %v4651_v41  ;;  %v2809_v41 = vpop.f32.mrf.mxu0 }
 0x39f   :  { %3168 = vmatpush.msra.mxu0 %v4653_v53  ;;  %v4707_v53 = vld [vmem:[#allocation7 + $0x8a8] sm:$0xff] }
 0x3d7   :  { %v2838_v45 = vpop.f32.mrf.mxu1 }
 0x3d8   :  { %v2856_v1 = vrot.slane %v2838_v45, 4 }
 0x3da   :  { %4359 = vmatmul.msk.f32.vlgmr.msrb.gmra.mxu2 %vm713_vm3, %v2856_v1  ;;  %4360 = vmatmul.msk.f32.vlgmr.msrb.gmra.mxu1 %vm713_vm3, %v2856_v1  ;;  %v4709_v1 = vld [vmem:[#allocation7 + $0x3c8] sm:$0xff] }
 0x3db   :  { %3025 = vmatpush.msrb.mxu2 %v4654_v55  ;;  %3065 = vmatpush.msrb.mxu1 %v4655_v47  ;;  %v3108_v55 = vrot.slane %v2809_v41, 4  ;;  %v4710_v47 = vld [vmem:[#allocation7 + $0x890] sm:$0xff] }
 0x3dd   :  { %3026 = vmatpush.msrb.mxu2 %v4656_v6  ;;  %3066 = vmatpush.msrb.mxu1 %v4657_v14  ;;  %v4711_v6 = vld [vmem:[#allocation7 + $0x898] sm:$0xff]  ;;  %v4712_v14 = vld [vmem:[#allocation7 + $0x770] sm:$0xff] }
 0x3df   :  { %3027 = vmatpush.msrb.mxu2 %v4658_v21  ;;  %3067 = vmatpush.msrb.mxu1 %v4659_v57  ;;  %v6595_v61 = vpop.f32.mrf.mxu1  ;;  %v4713_v21 = vld [vmem:[#allocation7 + $0x778] sm:$0xff]  ;;  %v4714_v57 = vld [vmem:[#allocation7 + $0x880] sm:$0xff] }
 0x3e0   :  { %4363 = vmatmul.msk.f32.vlgmr.msrb.gmra.mxu3 %vm713_vm3, %v6595_v61  ;;  %4364 = vmatmul.msk.f32.vlgmr.msrb.gmra.mxu0 %vm713_vm3, %v6595_v61 }
 0x3e1   :  { %3028 = vmatpush.msrb.mxu2 %v4660_v46  ;;  %3068 = vmatpush.msrb.mxu1 %v4661_v51  ;;  %v4715_v46 = vld [vmem:[#allocation7 + $0x888] sm:$0xff]  ;;  %v4716_v51 = vld [vmem:[#allocation7 + $0x760] sm:$0xff] }
 0x3e2   :  { %3220 = vmatpush.msrb.mxu3 %v4662_v20  ;;  %3260 = vmatpush.msrb.mxu0 %v4663_v42  ;;  %v4717_v20 = vld [vmem:[#allocation7 + $0x768] sm:$0xff]  ;;  %v4718_v42 = vld [vmem:[#allocation7 + $0xa50] sm:$0xff] }
 0x3e3   :  { %4361 = vmatmul.msk.f32.vlgmr.msra.gmra.mxu2 %vm713_vm3, %v2838_v45  ;;  %4362 = vmatmul.msk.f32.vlgmr.msra.gmra.mxu1 %vm713_vm3, %v2838_v45  ;;  %v4708_v45 = vld [vmem:[#allocation7 + $0x3c0] sm:$0xff] }
 0x3e4   :  { %3029 = vmatpush.msrb.mxu2 %v4664_v27  ;;  %3069 = vmatpush.msrb.mxu1 %v4665_v52  ;;  %v4719_v27 = vld [vmem:[#allocation7 + $0xa58] sm:$0xff]  ;;  %v4720_v52 = vld [vmem:[#allocation7 + $0x750] sm:$0xff] }
 0x3e5   :  { %3221 = vmatpush.msrb.mxu3 %v4666_v8  ;;  %3261 = vmatpush.msrb.mxu0 %v4667_v15  ;;  %v4721_v8 = vld [vmem:[#allocation7 + $0x758] sm:$0xff]  ;;  %v4722_v15 = vld [vmem:[#allocation7 + $0xa40] sm:$0xff] }
 0x3e6   :  { %3030 = vmatpush.msrb.mxu2 %v4668_v24  ;;  %3070 = vmatpush.msrb.mxu1 %v4669_v58  ;;  %v4723_v24 = vld [vmem:[#allocation7 + $0xa48] sm:$0xff]  ;;  %v4724_v58 = vld [vmem:[#allocation7 + $0x740] sm:$0xff] }
 0x3e7   :  { %3222 = vmatpush.msrb.mxu3 %v4670_v48  ;;  %3262 = vmatpush.msrb.mxu0 %v4671_v9  ;;  %v4725_v48 = vld [vmem:[#allocation7 + $0x748] sm:$0xff]  ;;  %v4726_v9 = vld [vmem:[#allocation7 + $0xa30] sm:$0xff] }
 0x3e8   :  { %3031 = vmatpush.msrb.mxu2 %v4672_v39  ;;  %3071 = vmatpush.msrb.mxu1 %v4673_v54  ;;  %v4727_v39 = vld [vmem:[#allocation7 + $0xa38] sm:$0xff]  ;;  %v4728_v54 = vld [vmem:[#allocation7 + $0x730] sm:$0xff] }
 0x3e9   :  { %3223 = vmatpush.msrb.mxu3 %v4674_v35  ;;  %3263 = vmatpush.msrb.mxu0 %v4675_v5  ;;  %v4729_v35 = vld [vmem:[#allocation7 + $0x738] sm:$0xff]  ;;  %v4730_v5 = vld [vmem:[#allocation7 + $0xa20] sm:$0xff] }
 0x3ea   :  { %3032 = vmatpush.msrb.mxu2 %v4676_v60  ;;  %3072 = vmatpush.msrb.mxu1 %v4677_v3  ;;  %v4731_v60 = vld [vmem:[#allocation7 + $0xa28] sm:$0xff]  ;;  %v4732_v3 = vld [vmem:[#allocation7 + $0x720] sm:$0xff] }
 0x3eb   :  { %3224 = vmatpush.msrb.mxu3 %v4678_v38  ;;  %3264 = vmatpush.msrb.mxu0 %v4679_v50  ;;  %v4733_v38 = vld [vmem:[#allocation7 + $0x728] sm:$0xff]  ;;  %v4734_v50 = vld [vmem:[#allocation7 + $0xa10] sm:$0xff] }
 0x3ec   :  { %3033 = vmatpush.msrb.mxu2 %v4680_v43  ;;  %3073 = vmatpush.msrb.mxu1 %v4681_v32  ;;  %v4735_v43 = vld [vmem:[#allocation7 + $0xa18] sm:$0xff]  ;;  %v4736_v32 = vld [vmem:[#allocation7 + $0x710] sm:$0xff] }
 0x3ed   :  { %3225 = vmatpush.msrb.mxu3 %v4682_v63  ;;  %3265 = vmatpush.msrb.mxu0 %v4683_v13  ;;  %v4737_v63 = vld [vmem:[#allocation7 + $0x718] sm:$0xff]  ;;  %v4738_v13 = vld [vmem:[#allocation7 + $0xa00] sm:$0xff] }
 0x3ee   :  { %3034 = vmatpush.msrb.mxu2 %v4684_v49  ;;  %3074 = vmatpush.msrb.mxu1 %v4685_v18  ;;  %v4739_v49 = vld [vmem:[#allocation7 + $0xa08] sm:$0xff]  ;;  %v4740_v18 = vld [vmem:[#allocation7 + $0x700] sm:$0xff] }
 0x3ef   :  { %3226 = vmatpush.msrb.mxu3 %v4686_v12  ;;  %3266 = vmatpush.msrb.mxu0 %v4687_v11  ;;  %v4741_v12 = vld [vmem:[#allocation7 + $0x708] sm:$0xff]  ;;  %v4742_v11 = vld [vmem:[#allocation7 + $0x9f0] sm:$0xff] }
 0x3f0   :  { %3035 = vmatpush.msrb.mxu2 %v4688_v37  ;;  %3075 = vmatpush.msrb.mxu1 %v4689_v36  ;;  %v4743_v37 = vld [vmem:[#allocation7 + $0x9f8] sm:$0xff]  ;;  %v4744_v36 = vld [vmem:[#allocation7 + $0x6f0] sm:$0xff] }
 0x3f1   :  { %3227 = vmatpush.msrb.mxu3 %v4690_v56  ;;  %3267 = vmatpush.msrb.mxu0 %v4691_v19  ;;  %v4745_v56 = vld [vmem:[#allocation7 + $0x6f8] sm:$0xff]  ;;  %v4746_v19 = vld [vmem:[#allocation7 + $0x9e0] sm:$0xff] }
 0x3f2   :  { %3036 = vmatpush.msrb.mxu2 %v4692_v30  ;;  %3076 = vmatpush.msrb.mxu1 %v4693_v29  ;;  %v4747_v30 = vld [vmem:[#allocation7 + $0x9e8] sm:$0xff]  ;;  %v4748_v29 = vld [vmem:[#allocation7 + $0x6e0] sm:$0xff] }
 0x3f3   :  { %3228 = vmatpush.msrb.mxu3 %v4694_v59  ;;  %3268 = vmatpush.msrb.mxu0 %v4695_v23  ;;  %v4749_v59 = vld [vmem:[#allocation7 + $0x6e8] sm:$0xff]  ;;  %v4750_v23 = vld [vmem:[#allocation7 + $0x9d0] sm:$0xff] }
 0x3f4   :  { %3037 = vmatpush.msrb.mxu2 %v4696_v0  ;;  %3077 = vmatpush.msrb.mxu1 %v4697_v10  ;;  %v4751_v0 = vld [vmem:[#allocation7 + $0x9d8] sm:$0xff]  ;;  %v4752_v10 = vld [vmem:[#allocation7 + $0x6d0] sm:$0xff] }
 0x3f5   :  { %3229 = vmatpush.msrb.mxu3 %v4698_v28  ;;  %3269 = vmatpush.msrb.mxu0 %v4699_v44  ;;  %v4753_v28 = vld [vmem:[#allocation7 + $0x6d8] sm:$0xff]  ;;  %v4754_v44 = vld [vmem:[#allocation7 + $0x9c0] sm:$0xff] }
 0x3f6   :  { %3038 = vmatpush.msrb.mxu2 %v4700_v7  ;;  %3078 = vmatpush.msrb.mxu1 %v4701_v40  ;;  %v4755_v7 = vld [vmem:[#allocation7 + $0x9c8] sm:$0xff]  ;;  %v4756_v40 = vld [vmem:[#allocation7 + $0x6c0] sm:$0xff] }
 0x3f7   :  { %3230 = vmatpush.msrb.mxu3 %v4702_v22  ;;  %3270 = vmatpush.msrb.mxu0 %v4703_v2  ;;  %v4757_v22 = vld [vmem:[#allocation7 + $0x6c8] sm:$0xff]  ;;  %v4758_v2 = vld [vmem:[#allocation7 + $0x9b0] sm:$0xff] }
 0x3f8   :  { %3039 = vmatpush.msrb.mxu2 %v4704_v62  ;;  %3079 = vmatpush.msrb.mxu1 %v4705_v4  ;;  %v4759_v62 = vld [vmem:[#allocation7 + $0x9b8] sm:$0xff]  ;;  %v3109_v4 = vrot.slane %v6595_v61, 4  ;;  %v4768_v61 = vld [vmem:[#allocation7 + $0x870] sm:$0xff] }
 0x3f9   :  { %3231 = vmatpush.msrb.mxu3 %v4706_v33  ;;  %3271 = vmatpush.msrb.mxu0 %v4707_v53  ;;  %v4761_v33 = vld [vmem:[#allocation7 + $0x6b8] sm:$0xff]  ;;  %v4762_v53 = vld [vmem:[#allocation7 + $0x9a0] sm:$0xff] }
 0x3fa   :  { %3040 = vmatpush.msrb.mxu2 %v4708_v45  ;;  %3080 = vmatpush.msrb.mxu1 %v4709_v1  ;;  %v4763_v45 = vld [vmem:[#allocation7 + $0x9a8] sm:$0xff]  ;;  %v4764_v1 = vld [vmem:[#allocation7 + $0x6a0] sm:$0xff] }
 0x3fb   :  { %3232 = vmatpush.msrb.mxu3 %v4710_v47  ;;  %3272 = vmatpush.msrb.mxu0 %v4711_v6  ;;  %v4766_v47 = vld [vmem:[#allocation7 + $0x990] sm:$0xff]  ;;  %v4767_v6 = vld [vmem:[#allocation7 + $0x998] sm:$0xff] }
 0x3fc   :  { %3041 = vmatmul.f32.vlgmr.msrb.gmra.mxu2 %v2809_v41  ;;  %3081 = vmatmul.f32.vlgmr.msrb.gmra.mxu1 %v2809_v41  ;;  %v4760_v41 = vld [vmem:[#allocation7 + $0x6b0] sm:$0xff] }
 0x3fd   :  { %3135 = vmatpush.msra.mxu2 %v4712_v14  ;;  %3175 = vmatpush.msra.mxu1 %v4713_v21  ;;  %v4769_v14 = vld [vmem:[#allocation7 + $0x878] sm:$0xff]  ;;  %v4770_v21 = vld [vmem:[#allocation7 + $0x980] sm:$0xff] }
 0x3fe   :  { %3233 = vmatpush.msrb.mxu3 %v4714_v57  ;;  %3273 = vmatpush.msrb.mxu0 %v4715_v46  ;;  %v4771_v57 = vld [vmem:[#allocation7 + $0x988] sm:$0xff]  ;;  %v4772_v46 = vld [vmem:[#allocation7 + $0x860] sm:$0xff] }
 0x3ff   :  { %3129 = vmatmul.f32.vlgmr.msra.gmra.mxu3 %v3108_v55  ;;  %3136 = vmatpush.msra.mxu2 %v4716_v51  ;;  %v4773_v51 = vld [vmem:[#allocation7 + $0x868] sm:$0xff] }
 0x400   :  { %3169 = vmatmul.f32.vlgmr.msra.gmra.mxu0 %v3108_v55  ;;  %3176 = vmatpush.msra.mxu1 %v4717_v20  ;;  %v4765_v55 = vld [vmem:[#allocation7 + $0x6a8] sm:$0xff]  ;;  %v4774_v20 = vld [vmem:[#allocation7 + $0x970] sm:$0xff] }
 0x401   :  { %3286 = vmatpush.msra.mxu3 %v4718_v42  ;;  %3326 = vmatpush.msra.mxu0 %v4719_v27  ;;  %v4775_v42 = vld [vmem:[#allocation7 + $0x978] sm:$0xff]  ;;  %v6606_v27 = vpop.f32.mrf.mxu1 }
 0x402   :  { %3137 = vmatpush.msra.mxu2 %v4720_v52  ;;  %3177 = vmatpush.msra.mxu1 %v4721_v8  ;;  %v4776_v52 = vld [vmem:[#allocation7 + $0x850] sm:$0xff]  ;;  %v4777_v8 = vld [vmem:[#allocation7 + $0x858] sm:$0xff] }
 0x403   :  { %3287 = vmatpush.msra.mxu3 %v4722_v15  ;;  %3327 = vmatpush.msra.mxu0 %v4723_v24  ;;  %v4778_v15 = vld [vmem:[#allocation7 + $0x960] sm:$0xff]  ;;  %v4779_v24 = vld [vmem:[#allocation7 + $0x968] sm:$0xff] }
 0x404   :  { %3138 = vmatpush.msra.mxu2 %v4724_v58  ;;  %3178 = vmatpush.msra.mxu1 %v4725_v48  ;;  %v4780_v58 = vld [vmem:[#allocation7 + $0x840] sm:$0xff]  ;;  %v4781_v48 = vld [vmem:[#allocation7 + $0x848] sm:$0xff] }
 0x405   :  { %3288 = vmatpush.msra.mxu3 %v4726_v9  ;;  %3328 = vmatpush.msra.mxu0 %v4727_v39  ;;  %v4782_v9 = vld [vmem:[#allocation7 + $0xd10] sm:$0xff]  ;;  %v4783_v39 = vld [vmem:[#allocation7 + $0xd18] sm:$0xff] }
 0x406   :  { %3139 = vmatpush.msra.mxu2 %v4728_v54  ;;  %3179 = vmatpush.msra.mxu1 %v4729_v35  ;;  %v4784_v54 = vld [vmem:[#allocation7 + $0x830] sm:$0xff]  ;;  %v4785_v35 = vld [vmem:[#allocation7 + $0x838] sm:$0xff] }
 0x407   :  { %3289 = vmatpush.msra.mxu3 %v4730_v5  ;;  %3329 = vmatpush.msra.mxu0 %v4731_v60  ;;  %v4786_v5 = vld [vmem:[#allocation7 + $0xd00] sm:$0xff]  ;;  %v4787_v60 = vld [vmem:[#allocation7 + $0xd08] sm:$0xff] }
 0x408   :  { %3140 = vmatpush.msra.mxu2 %v4732_v3  ;;  %3180 = vmatpush.msra.mxu1 %v4733_v38  ;;  %v4788_v3 = vld [vmem:[#allocation7 + $0x820] sm:$0xff]  ;;  %v4789_v38 = vld [vmem:[#allocation7 + $0x828] sm:$0xff] }
 0x409   :  { %3290 = vmatpush.msra.mxu3 %v4734_v50  ;;  %3330 = vmatpush.msra.mxu0 %v4735_v43  ;;  %v4790_v50 = vld [vmem:[#allocation7 + $0xcf0] sm:$0xff]  ;;  %v4791_v43 = vld [vmem:[#allocation7 + $0xcf8] sm:$0xff] }
 0x40a   :  { %3141 = vmatpush.msra.mxu2 %v4736_v32  ;;  %3181 = vmatpush.msra.mxu1 %v4737_v63  ;;  %v4792_v32 = vld [vmem:[#allocation7 + $0x810] sm:$0xff]  ;;  %v4793_v63 = vld [vmem:[#allocation7 + $0x818] sm:$0xff] }
 0x40b   :  { %3291 = vmatpush.msra.mxu3 %v4738_v13  ;;  %3331 = vmatpush.msra.mxu0 %v4739_v49  ;;  %v4794_v13 = vld [vmem:[#allocation7 + $0xce0] sm:$0xff]  ;;  %v4795_v49 = vld [vmem:[#allocation7 + $0xce8] sm:$0xff] }
 0x40c   :  { %3142 = vmatpush.msra.mxu2 %v4740_v18  ;;  %3182 = vmatpush.msra.mxu1 %v4741_v12  ;;  %v4796_v18 = vld [vmem:[#allocation7 + $0x800] sm:$0xff]  ;;  %v4797_v12 = vld [vmem:[#allocation7 + $0x808] sm:$0xff] }
 0x40d   :  { %3292 = vmatpush.msra.mxu3 %v4742_v11  ;;  %3332 = vmatpush.msra.mxu0 %v4743_v37  ;;  %v4798_v11 = vld [vmem:[#allocation7 + $0xcd0] sm:$0xff]  ;;  %v4799_v37 = vld [vmem:[#allocation7 + $0xcd8] sm:$0xff] }
 0x40e   :  { %3143 = vmatpush.msra.mxu2 %v4744_v36  ;;  %3183 = vmatpush.msra.mxu1 %v4745_v56  ;;  %v4800_v36 = vld [vmem:[#allocation7 + $0x7f0] sm:$0xff]  ;;  %v4801_v56 = vld [vmem:[#allocation7 + $0x7f8] sm:$0xff] }
 0x40f   :  { %3293 = vmatpush.msra.mxu3 %v4746_v19  ;;  %3333 = vmatpush.msra.mxu0 %v4747_v30  ;;  %v4802_v19 = vld [vmem:[#allocation7 + $0xcc0] sm:$0xff]  ;;  %v4803_v30 = vld [vmem:[#allocation7 + $0xcc8] sm:$0xff] }
 0x410   :  { %3144 = vmatpush.msra.mxu2 %v4748_v29  ;;  %3184 = vmatpush.msra.mxu1 %v4749_v59  ;;  %v4804_v29 = vld [vmem:[#allocation7 + $0x7e0] sm:$0xff]  ;;  %v4805_v59 = vld [vmem:[#allocation7 + $0x7e8] sm:$0xff] }
 0x411   :  { %3294 = vmatpush.msra.mxu3 %v4750_v23  ;;  %3334 = vmatpush.msra.mxu0 %v4751_v0  ;;  %v4806_v23 = vld [vmem:[#allocation7 + $0xcb0] sm:$0xff]  ;;  %v4807_v0 = vld [vmem:[#allocation7 + $0xcb8] sm:$0xff] }
 0x412   :  { %3145 = vmatpush.msra.mxu2 %v4752_v10  ;;  %3185 = vmatpush.msra.mxu1 %v4753_v28  ;;  %v4808_v10 = vld [vmem:[#allocation7 + $0x7d0] sm:$0xff]  ;;  %v4809_v28 = vld [vmem:[#allocation7 + $0x7d8] sm:$0xff] }
 0x413   :  { %3295 = vmatpush.msra.mxu3 %v4754_v44  ;;  %3335 = vmatpush.msra.mxu0 %v4755_v7  ;;  %v4810_v44 = vld [vmem:[#allocation7 + $0xca0] sm:$0xff]  ;;  %v4811_v7 = vld [vmem:[#allocation7 + $0xca8] sm:$0xff] }
 0x414   :  { %3146 = vmatpush.msra.mxu2 %v4756_v40  ;;  %3186 = vmatpush.msra.mxu1 %v4757_v22  ;;  %v4812_v40 = vld [vmem:[#allocation7 + $0x7c0] sm:$0xff]  ;;  %v4813_v22 = vld [vmem:[#allocation7 + $0x7c8] sm:$0xff] }
 0x415   :  { %3296 = vmatpush.msra.mxu3 %v4758_v2  ;;  %3336 = vmatpush.msra.mxu0 %v4759_v62  ;;  %v4814_v2 = vld [vmem:[#allocation7 + $0xc90] sm:$0xff]  ;;  %v4815_v62 = vld [vmem:[#allocation7 + $0xc98] sm:$0xff] }
 0x416   :  { %3147 = vmatpush.msra.mxu2 %v4760_v41  ;;  %3187 = vmatpush.msra.mxu1 %v4761_v33  ;;  %v4817_v41 = vld [vmem:[#allocation7 + $0x7b8] sm:$0xff]  ;;  %v4818_v33 = vld [vmem:[#allocation7 + $0xc80] sm:$0xff] }
 0x417   :  { %3297 = vmatpush.msra.mxu3 %v4762_v53  ;;  %3337 = vmatpush.msra.mxu0 %v4763_v45  ;;  %v4819_v53 = vld [vmem:[#allocation7 + $0xc88] sm:$0xff]  ;;  %v4820_v45 = vld [vmem:[#allocation7 + $0x7a0] sm:$0xff] }
 0x418   :  { %3148 = vmatpush.msra.mxu2 %v4764_v1  ;;  %3188 = vmatpush.msra.mxu1 %v4765_v55  ;;  %v4821_v1 = vld [vmem:[#allocation7 + $0x7a8] sm:$0xff]  ;;  %v4822_v55 = vld [vmem:[#allocation7 + $0xc70] sm:$0xff] }
 0x419   :  { %3298 = vmatpush.msra.mxu3 %v4766_v47  ;;  %3338 = vmatpush.msra.mxu0 %v4767_v6  ;;  %v4823_v47 = vld [vmem:[#allocation7 + $0xc78] sm:$0xff]  ;;  %v4824_v6 = vld [vmem:[#allocation7 + $0x790] sm:$0xff] }
 0x41a   :  { %4365 = vmatmul.msk.f32.vlgmr.msra.gmra.mxu2 %vm713_vm3, %v3109_v4  ;;  %4366 = vmatmul.msk.f32.vlgmr.msra.gmra.mxu1 %vm713_vm3, %v3109_v4  ;;  %v4816_v4 = vld [vmem:[#allocation7 + $0x7b0] sm:$0xff] }
 0x41b   :  { %3198 = vmatpush.msrb.mxu2 %v4768_v61  ;;  %3238 = vmatpush.msrb.mxu1 %v4769_v14  ;;  %v4825_v61 = vld [vmem:[#allocation7 + $0x798] sm:$0xff]  ;;  %v2812_v14 = vpop.f32.mrf.mxu0 }
 0x41c   :  { %3299 = vmatpush.msra.mxu3 %v4770_v21  ;;  %3339 = vmatpush.msra.mxu0 %v4771_v57  ;;  %v4826_v21 = vld [vmem:[#allocation7 + $0xc60] sm:$0xff]  ;;  %v4827_v57 = vld [vmem:[#allocation7 + $0xc68] sm:$0xff] }
 0x41d   :  { %3199 = vmatpush.msrb.mxu2 %v4772_v46  ;;  %3239 = vmatpush.msrb.mxu1 %v4773_v51  ;;  %v4828_v46 = vld [vmem:[#allocation7 + $0x780] sm:$0xff]  ;;  %v4829_v51 = vld [vmem:[#allocation7 + $0x788] sm:$0xff] }
 0x41e   :  { %3300 = vmatpush.msra.mxu3 %v4774_v20  ;;  %3340 = vmatpush.msra.mxu0 %v4775_v42  ;;  %v3281_v20 = vrot.slane %v2812_v14, 4  ;;  %v4830_v42 = vld [vmem:[#allocation7 + $0xc50] sm:$0xff] }
 0x41f   :  { %3200 = vmatpush.msrb.mxu2 %v4776_v52  ;;  %3240 = vmatpush.msrb.mxu1 %v4777_v8  ;;  %v4831_v52 = vld [vmem:[#allocation7 + $0xc58] sm:$0xff]  ;;  %v4832_v8 = vld [vmem:[#allocation7 + $0xb30] sm:$0xff] }
 0x420   :  { %3301 = vmatpush.msra.mxu3 %v4778_v15  ;;  %3341 = vmatpush.msra.mxu0 %v4779_v24  ;;  %v4833_v15 = vld [vmem:[#allocation7 + $0xb38] sm:$0xff]  ;;  %v4834_v24 = vld [vmem:[#allocation7 + $0xc40] sm:$0xff] }
 0x421   :  { %3201 = vmatpush.msrb.mxu2 %v4780_v58  ;;  %4367 = vmatmul.msk.f32.vlgmr.msrb.gmra.mxu3 %vm713_vm3, %v6606_v27  ;;  %v4835_v58 = vld [vmem:[#allocation7 + $0xc48] sm:$0xff] }
 0x422   :  { %3241 = vmatpush.msrb.mxu1 %v4781_v48  ;;  %4368 = vmatmul.msk.f32.vlgmr.msrb.gmra.mxu0 %vm713_vm3, %v6606_v27  ;;  %v4836_v48 = vld [vmem:[#allocation7 + $0xb20] sm:$0xff] }
 0x423   :  { %3393 = vmatpush.msrb.mxu3 %v4782_v9  ;;  %3433 = vmatpush.msrb.mxu0 %v4783_v39  ;;  %v4837_v9 = vld [vmem:[#allocation7 + $0xb28] sm:$0xff]  ;;  %v4838_v39 = vld [vmem:[#allocation7 + $0xe10] sm:$0xff] }
 0x424   :  { %3202 = vmatpush.msrb.mxu2 %v4784_v54  ;;  %3242 = vmatpush.msrb.mxu1 %v4785_v35  ;;  %v4839_v54 = vld [vmem:[#allocation7 + $0xe18] sm:$0xff]  ;;  %v4840_v35 = vld [vmem:[#allocation7 + $0xb10] sm:$0xff] }
 0x425   :  { %3394 = vmatpush.msrb.mxu3 %v4786_v5  ;;  %3434 = vmatpush.msrb.mxu0 %v4787_v60  ;;  %v4841_v5 = vld [vmem:[#allocation7 + $0xb18] sm:$0xff]  ;;  %v4842_v60 = vld [vmem:[#allocation7 + $0xe00] sm:$0xff] }
 0x426   :  { %3203 = vmatpush.msrb.mxu2 %v4788_v3  ;;  %3243 = vmatpush.msrb.mxu1 %v4789_v38  ;;  %v4843_v3 = vld [vmem:[#allocation7 + $0xe08] sm:$0xff]  ;;  %v4844_v38 = vld [vmem:[#allocation7 + $0xb00] sm:$0xff] }
 0x427   :  { %3395 = vmatpush.msrb.mxu3 %v4790_v50  ;;  %3435 = vmatpush.msrb.mxu0 %v4791_v43  ;;  %v4845_v50 = vld [vmem:[#allocation7 + $0xb08] sm:$0xff]  ;;  %v4846_v43 = vld [vmem:[#allocation7 + $0xdf0] sm:$0xff] }
 0x428   :  { %3204 = vmatpush.msrb.mxu2 %v4792_v32  ;;  %3244 = vmatpush.msrb.mxu1 %v4793_v63  ;;  %v4847_v32 = vld [vmem:[#allocation7 + $0xdf8] sm:$0xff]  ;;  %v4848_v63 = vld [vmem:[#allocation7 + $0xaf0] sm:$0xff] }
 0x429   :  { %3396 = vmatpush.msrb.mxu3 %v4794_v13  ;;  %3436 = vmatpush.msrb.mxu0 %v4795_v49  ;;  %v4849_v13 = vld [vmem:[#allocation7 + $0xaf8] sm:$0xff]  ;;  %v4850_v49 = vld [vmem:[#allocation7 + $0xde0] sm:$0xff] }
 0x42a   :  { %3205 = vmatpush.msrb.mxu2 %v4796_v18  ;;  %3245 = vmatpush.msrb.mxu1 %v4797_v12  ;;  %v4851_v18 = vld [vmem:[#allocation7 + $0xde8] sm:$0xff]  ;;  %v4852_v12 = vld [vmem:[#allocation7 + $0xae0] sm:$0xff] }
 0x42b   :  { %3397 = vmatpush.msrb.mxu3 %v4798_v11  ;;  %3437 = vmatpush.msrb.mxu0 %v4799_v37  ;;  %v4853_v11 = vld [vmem:[#allocation7 + $0xae8] sm:$0xff]  ;;  %v4854_v37 = vld [vmem:[#allocation7 + $0xdd0] sm:$0xff] }
 0x42c   :  { %3206 = vmatpush.msrb.mxu2 %v4800_v36  ;;  %3246 = vmatpush.msrb.mxu1 %v4801_v56  ;;  %v4855_v36 = vld [vmem:[#allocation7 + $0xdd8] sm:$0xff]  ;;  %v4856_v56 = vld [vmem:[#allocation7 + $0xad0] sm:$0xff] }
 0x42d   :  { %3398 = vmatpush.msrb.mxu3 %v4802_v19  ;;  %3438 = vmatpush.msrb.mxu0 %v4803_v30  ;;  %v4857_v19 = vld [vmem:[#allocation7 + $0xad8] sm:$0xff]  ;;  %v4858_v30 = vld [vmem:[#allocation7 + $0xdc0] sm:$0xff] }
 0x42e   :  { %3207 = vmatpush.msrb.mxu2 %v4804_v29  ;;  %3247 = vmatpush.msrb.mxu1 %v4805_v59  ;;  %v4859_v29 = vld [vmem:[#allocation7 + $0xdc8] sm:$0xff]  ;;  %v4860_v59 = vld [vmem:[#allocation7 + $0xac0] sm:$0xff] }
 0x42f   :  { %3399 = vmatpush.msrb.mxu3 %v4806_v23  ;;  %3439 = vmatpush.msrb.mxu0 %v4807_v0  ;;  %v4861_v23 = vld [vmem:[#allocation7 + $0xac8] sm:$0xff]  ;;  %v4862_v0 = vld [vmem:[#allocation7 + $0xdb0] sm:$0xff] }
 0x430   :  { %3208 = vmatpush.msrb.mxu2 %v4808_v10  ;;  %3248 = vmatpush.msrb.mxu1 %v4809_v28  ;;  %v4863_v10 = vld [vmem:[#allocation7 + $0xdb8] sm:$0xff]  ;;  %v4864_v28 = vld [vmem:[#allocation7 + $0xab0] sm:$0xff] }
 0x431   :  { %3400 = vmatpush.msrb.mxu3 %v4810_v44  ;;  %3440 = vmatpush.msrb.mxu0 %v4811_v7  ;;  %v4865_v44 = vld [vmem:[#allocation7 + $0xab8] sm:$0xff]  ;;  %v4866_v7 = vld [vmem:[#allocation7 + $0xda0] sm:$0xff] }
 0x432   :  { %3209 = vmatpush.msrb.mxu2 %v4812_v40  ;;  %3249 = vmatpush.msrb.mxu1 %v4813_v22  ;;  %v4867_v40 = vld [vmem:[#allocation7 + $0xda8] sm:$0xff]  ;;  %v4868_v22 = vld [vmem:[#allocation7 + $0xaa0] sm:$0xff] }
 0x433   :  { %3401 = vmatpush.msrb.mxu3 %v4814_v2  ;;  %3441 = vmatpush.msrb.mxu0 %v4815_v62  ;;  %v4869_v2 = vld [vmem:[#allocation7 + $0xaa8] sm:$0xff]  ;;  %v4870_v62 = vld [vmem:[#allocation7 + $0xd90] sm:$0xff] }
 0x434   :  { %3210 = vmatpush.msrb.mxu2 %v4816_v4  ;;  %3250 = vmatpush.msrb.mxu1 %v4817_v41  ;;  %v4871_v4 = vld [vmem:[#allocation7 + $0xd98] sm:$0xff]  ;;  %v4872_v41 = vld [vmem:[#allocation7 + $0xa90] sm:$0xff] }
 0x435   :  { %3402 = vmatpush.msrb.mxu3 %v4818_v33  ;;  %3442 = vmatpush.msrb.mxu0 %v4819_v53  ;;  %v4873_v33 = vld [vmem:[#allocation7 + $0xa98] sm:$0xff]  ;;  %v4874_v53 = vld [vmem:[#allocation7 + $0xd80] sm:$0xff] }
 0x436   :  { %3211 = vmatpush.msrb.mxu2 %v4820_v45  ;;  %3251 = vmatpush.msrb.mxu1 %v4821_v1  ;;  %v4875_v45 = vld [vmem:[#allocation7 + $0xd88] sm:$0xff]  ;;  %v4876_v1 = vld [vmem:[#allocation7 + $0xa80] sm:$0xff] }
 0x437   :  { %3403 = vmatpush.msrb.mxu3 %v4822_v55  ;;  %3443 = vmatpush.msrb.mxu0 %v4823_v47  ;;  %v4877_v55 = vld [vmem:[#allocation7 + $0xa88] sm:$0xff]  ;;  %v4878_v47 = vld [vmem:[#allocation7 + $0xd70] sm:$0xff] }
 0x438   :  { %3212 = vmatpush.msrb.mxu2 %v4824_v6  ;;  %3252 = vmatpush.msrb.mxu1 %v4825_v61  ;;  %v4879_v6 = vld [vmem:[#allocation7 + $0xd78] sm:$0xff]  ;;  %v4880_v61 = vld [vmem:[#allocation7 + $0xa70] sm:$0xff] }
 0x439   :  { %3404 = vmatpush.msrb.mxu3 %v4826_v21  ;;  %3444 = vmatpush.msrb.mxu0 %v4827_v57  ;;  %v6612_v21 = vpop.f32.mrf.mxu1  ;;  %v4882_v57 = vld [vmem:[#allocation7 + $0xd60] sm:$0xff] }
 0x43a   :  { %3213 = vmatpush.msrb.mxu2 %v4828_v46  ;;  %3253 = vmatpush.msrb.mxu1 %v4829_v51  ;;  %v4883_v46 = vld [vmem:[#allocation7 + $0xd68] sm:$0xff]  ;;  %v3282_v51 = vrot.slane %v6606_v27, 4  ;;  %v4892_v27 = vld [vmem:[#allocation7 + $0xc20] sm:$0xff] }
 0x43b   :  { %3405 = vmatpush.msrb.mxu3 %v4830_v42  ;;  %3445 = vmatpush.msrb.mxu0 %v4831_v52  ;;  %v4885_v42 = vld [vmem:[#allocation7 + $0xa68] sm:$0xff]  ;;  %v4886_v52 = vld [vmem:[#allocation7 + $0xd50] sm:$0xff] }
 0x43c   :  { %3214 = vmatmul.f32.vlgmr.msrb.gmra.mxu2 %v2812_v14  ;;  %3254 = vmatmul.f32.vlgmr.msrb.gmra.mxu1 %v2812_v14  ;;  %v4881_v14 = vld [vmem:[#allocation7 + $0xa78] sm:$0xff] }
 0x43d   :  { %3308 = vmatpush.msra.mxu2 %v4832_v8  ;;  %3348 = vmatpush.msra.mxu1 %v4833_v15  ;;  %v4887_v8 = vld [vmem:[#allocation7 + $0xd58] sm:$0xff]  ;;  %v4888_v15 = vld [vmem:[#allocation7 + $0xc30] sm:$0xff] }
 0x43e   :  { %3406 = vmatpush.msrb.mxu3 %v4834_v24  ;;  %3446 = vmatpush.msrb.mxu0 %v4835_v58  ;;  %v4889_v24 = vld [vmem:[#allocation7 + $0xc38] sm:$0xff]  ;;  %v4890_v58 = vld [vmem:[#allocation7 + $0xd40] sm:$0xff] }
 0x43f   :  { %3302 = vmatmul.f32.vlgmr.msra.gmra.mxu3 %v3281_v20  ;;  %3309 = vmatpush.msra.mxu2 %v4836_v48  ;;  %v4891_v48 = vld [vmem:[#allocation7 + $0xd48] sm:$0xff] }
 0x440   :  { %3342 = vmatmul.f32.vlgmr.msra.gmra.mxu0 %v3281_v20  ;;  %3349 = vmatpush.msra.mxu1 %v4837_v9  ;;  %v4884_v20 = vld [vmem:[#allocation7 + $0xa60] sm:$0xff]  ;;  %v4893_v9 = vld [vmem:[#allocation7 + $0xc28] sm:$0xff] }
 0x441   :  { %3459 = vmatpush.msra.mxu3 %v4838_v39  ;;  %3499 = vmatpush.msra.mxu0 %v4839_v54  ;;  %v4894_v39 = vld [vmem:[#allocation7 + $0xd30] sm:$0xff]  ;;  %v4895_v54 = vld [vmem:[#allocation7 + $0xd38] sm:$0xff] }
 0x442   :  { %3310 = vmatpush.msra.mxu2 %v4840_v35  ;;  %3350 = vmatpush.msra.mxu1 %v4841_v5  ;;  %v6621_v35 = vpop.f32.mrf.mxu0  ;;  %v4896_v5 = vld [vmem:[#allocation7 + $0xc10] sm:$0xff] }
 0x443   :  { %3460 = vmatpush.msra.mxu3 %v4842_v60  ;;  %3500 = vmatpush.msra.mxu0 %v4843_v3  ;;  %v4897_v60 = vld [vmem:[#allocation7 + $0xc18] sm:$0xff]  ;;  %v3454_v3 = vrot.slane %v6621_v35, 4 }
 0x444   :  { %3311 = vmatpush.msra.mxu2 %v4844_v38  ;;  %3351 = vmatpush.msra.mxu1 %v4845_v50  ;;  %v4898_v38 = vld [vmem:[#allocation7 + $0xd20] sm:$0xff]  ;;  %v4899_v50 = vld [vmem:[#allocation7 + $0xd28] sm:$0xff] }
 0x445   :  { %3461 = vmatpush.msra.mxu3 %v4846_v43  ;;  %3501 = vmatpush.msra.mxu0 %v4847_v32  ;;  %v4900_v43 = vld [vmem:[#allocation7 + $0xc00] sm:$0xff]  ;;  %v4901_v32 = vld [vmem:[#allocation7 + $0xc08] sm:$0xff] }
 0x446   :  { %3312 = vmatpush.msra.mxu2 %v4848_v63  ;;  %3352 = vmatpush.msra.mxu1 %v4849_v13  ;;  %v4902_v63 = vld [vmem:[#allocation7 + $0x10d0] sm:$0xff]  ;;  %v4903_v13 = vld [vmem:[#allocation7 + $0x10d8] sm:$0xff] }
 0x447   :  { %3462 = vmatpush.msra.mxu3 %v4850_v49  ;;  %3502 = vmatpush.msra.mxu0 %v4851_v18  ;;  %v4904_v49 = vld [vmem:[#allocation7 + $0xbf0] sm:$0xff]  ;;  %v4905_v18 = vld [vmem:[#allocation7 + $0xbf8] sm:$0xff] }
 0x448   :  { %3313 = vmatpush.msra.mxu2 %v4852_v12  ;;  %3353 = vmatpush.msra.mxu1 %v4853_v11  ;;  %v4906_v12 = vld [vmem:[#allocation7 + $0x10c0] sm:$0xff]  ;;  %v4907_v11 = vld [vmem:[#allocation7 + $0x10c8] sm:$0xff] }
 0x449   :  { %3463 = vmatpush.msra.mxu3 %v4854_v37  ;;  %3503 = vmatpush.msra.mxu0 %v4855_v36  ;;  %v4908_v37 = vld [vmem:[#allocation7 + $0xbe0] sm:$0xff]  ;;  %v4909_v36 = vld [vmem:[#allocation7 + $0xbe8] sm:$0xff] }
 0x44a   :  { %3314 = vmatpush.msra.mxu2 %v4856_v56  ;;  %3354 = vmatpush.msra.mxu1 %v4857_v19  ;;  %v4910_v56 = vld [vmem:[#allocation7 + $0x10b0] sm:$0xff]  ;;  %v4911_v19 = vld [vmem:[#allocation7 + $0x10b8] sm:$0xff] }
 0x44b   :  { %3464 = vmatpush.msra.mxu3 %v4858_v30  ;;  %3504 = vmatpush.msra.mxu0 %v4859_v29  ;;  %v4912_v30 = vld [vmem:[#allocation7 + $0xbd0] sm:$0xff]  ;;  %v4913_v29 = vld [vmem:[#allocation7 + $0xbd8] sm:$0xff] }
 0x44c   :  { %3315 = vmatpush.msra.mxu2 %v4860_v59  ;;  %3355 = vmatpush.msra.mxu1 %v4861_v23  ;;  %v4914_v59 = vld [vmem:[#allocation7 + $0x10a0] sm:$0xff]  ;;  %v4915_v23 = vld [vmem:[#allocation7 + $0x10a8] sm:$0xff] }
 0x44d   :  { %3465 = vmatpush.msra.mxu3 %v4862_v0  ;;  %3505 = vmatpush.msra.mxu0 %v4863_v10  ;;  %v4916_v0 = vld [vmem:[#allocation7 + $0xbc0] sm:$0xff]  ;;  %v4917_v10 = vld [vmem:[#allocation7 + $0xbc8] sm:$0xff] }
 0x44e   :  { %3316 = vmatpush.msra.mxu2 %v4864_v28  ;;  %3356 = vmatpush.msra.mxu1 %v4865_v44  ;;  %v4918_v28 = vld [vmem:[#allocation7 + $0x1090] sm:$0xff]  ;;  %v4919_v44 = vld [vmem:[#allocation7 + $0x1098] sm:$0xff] }
 0x44f   :  { %3466 = vmatpush.msra.mxu3 %v4866_v7  ;;  %3506 = vmatpush.msra.mxu0 %v4867_v40  ;;  %v4920_v7 = vld [vmem:[#allocation7 + $0xbb0] sm:$0xff]  ;;  %v4921_v40 = vld [vmem:[#allocation7 + $0xbb8] sm:$0xff] }
 0x450   :  { %3317 = vmatpush.msra.mxu2 %v4868_v22  ;;  %3357 = vmatpush.msra.mxu1 %v4869_v2  ;;  %v4922_v22 = vld [vmem:[#allocation7 + $0x1080] sm:$0xff]  ;;  %v4923_v2 = vld [vmem:[#allocation7 + $0x1088] sm:$0xff] }
 0x451   :  { %3467 = vmatpush.msra.mxu3 %v4870_v62  ;;  %3507 = vmatpush.msra.mxu0 %v4871_v4  ;;  %v4924_v62 = vld [vmem:[#allocation7 + $0xba0] sm:$0xff]  ;;  %v4925_v4 = vld [vmem:[#allocation7 + $0xba8] sm:$0xff] }
 0x452   :  { %3318 = vmatpush.msra.mxu2 %v4872_v41  ;;  %3358 = vmatpush.msra.mxu1 %v4873_v33  ;;  %v4926_v41 = vld [vmem:[#allocation7 + $0x1070] sm:$0xff]  ;;  %v4927_v33 = vld [vmem:[#allocation7 + $0x1078] sm:$0xff] }
 0x453   :  { %3468 = vmatpush.msra.mxu3 %v4874_v53  ;;  %3508 = vmatpush.msra.mxu0 %v4875_v45  ;;  %v4928_v53 = vld [vmem:[#allocation7 + $0xb90] sm:$0xff]  ;;  %v4929_v45 = vld [vmem:[#allocation7 + $0xb98] sm:$0xff] }
 0x454   :  { %3319 = vmatpush.msra.mxu2 %v4876_v1  ;;  %3359 = vmatpush.msra.mxu1 %v4877_v55  ;;  %v4930_v1 = vld [vmem:[#allocation7 + $0x1060] sm:$0xff]  ;;  %v4931_v55 = vld [vmem:[#allocation7 + $0x1068] sm:$0xff] }
 0x455   :  { %3469 = vmatpush.msra.mxu3 %v4878_v47  ;;  %3509 = vmatpush.msra.mxu0 %v4879_v6  ;;  %v4932_v47 = vld [vmem:[#allocation7 + $0xb80] sm:$0xff]  ;;  %v4933_v6 = vld [vmem:[#allocation7 + $0xb88] sm:$0xff] }
 0x456   :  { %3320 = vmatpush.msra.mxu2 %v4880_v61  ;;  %3360 = vmatpush.msra.mxu1 %v4881_v14  ;;  %v4934_v61 = vld [vmem:[#allocation7 + $0x1050] sm:$0xff]  ;;  %v4935_v14 = vld [vmem:[#allocation7 + $0x1058] sm:$0xff] }
 0x457   :  { %3470 = vmatpush.msra.mxu3 %v4882_v57  ;;  %3510 = vmatpush.msra.mxu0 %v4883_v46  ;;  %v4936_v57 = vld [vmem:[#allocation7 + $0xb70] sm:$0xff]  ;;  %v4937_v46 = vld [vmem:[#allocation7 + $0xb78] sm:$0xff] }
 0x458   :  { %4371 = vmatmul.msk.f32.vlgmr.msrb.gmra.mxu3 %vm713_vm3, %v6612_v21  ;;  %4372 = vmatmul.msk.f32.vlgmr.msrb.gmra.mxu0 %vm713_vm3, %v6612_v21 }
 0x459   :  { %3321 = vmatpush.msra.mxu2 %v4884_v20  ;;  %3361 = vmatpush.msra.mxu1 %v4885_v42  ;;  %v4939_v20 = vld [vmem:[#allocation7 + $0x1048] sm:$0xff]  ;;  %v4940_v42 = vld [vmem:[#allocation7 + $0xb60] sm:$0xff] }
 0x45a   :  { %3471 = vmatpush.msra.mxu3 %v4886_v52  ;;  %3511 = vmatpush.msra.mxu0 %v4887_v8  ;;  %v4941_v52 = vld [vmem:[#allocation7 + $0xb68] sm:$0xff]  ;;  %v4942_v8 = vld [vmem:[#allocation7 + $0x1030] sm:$0xff] }
 0x45b   :  { %4369 = vmatmul.msk.f32.vlgmr.msra.gmra.mxu2 %vm713_vm3, %v3282_v51  ;;  %4370 = vmatmul.msk.f32.vlgmr.msra.gmra.mxu1 %vm713_vm3, %v3282_v51  ;;  %v4938_v51 = vld [vmem:[#allocation7 + $0x1040] sm:$0xff] }
 0x45c   :  { %3371 = vmatpush.msrb.mxu2 %v4888_v15  ;;  %3411 = vmatpush.msrb.mxu1 %v4889_v24  ;;  %v4943_v15 = vld [vmem:[#allocation7 + $0x1038] sm:$0xff]  ;;  %v4944_v24 = vld [vmem:[#allocation7 + $0xb50] sm:$0xff] }
 0x45d   :  { %3472 = vmatpush.msra.mxu3 %v4890_v58  ;;  %3512 = vmatpush.msra.mxu0 %v4891_v48  ;;  %v4945_v58 = vld [vmem:[#allocation7 + $0xb58] sm:$0xff]  ;;  %v4946_v48 = vld [vmem:[#allocation7 + $0x1020] sm:$0xff] }
 0x45e   :  { %3372 = vmatpush.msrb.mxu2 %v4892_v27  ;;  %3412 = vmatpush.msrb.mxu1 %v4893_v9  ;;  %v4947_v27 = vld [vmem:[#allocation7 + $0x1028] sm:$0xff]  ;;  %v4948_v9 = vld [vmem:[#allocation7 + $0xb40] sm:$0xff] }
 0x45f   :  { %3473 = vmatpush.msra.mxu3 %v4894_v39  ;;  %3513 = vmatpush.msra.mxu0 %v4895_v54  ;;  %v4949_v39 = vld [vmem:[#allocation7 + $0xb48] sm:$0xff]  ;;  %v4950_v54 = vld [vmem:[#allocation7 + $0x1010] sm:$0xff] }
 0x460   :  { %3373 = vmatpush.msrb.mxu2 %v4896_v5  ;;  %3413 = vmatpush.msrb.mxu1 %v4897_v60  ;;  %v4951_v5 = vld [vmem:[#allocation7 + $0x1018] sm:$0xff]  ;;  %v4952_v60 = vld [vmem:[#allocation7 + $0xef0] sm:$0xff] }
 0x461   :  { %3474 = vmatpush.msra.mxu3 %v4898_v38  ;;  %3514 = vmatpush.msra.mxu0 %v4899_v50  ;;  %v4954_v38 = vld [vmem:[#allocation7 + $0x1000] sm:$0xff]  ;;  %v4955_v50 = vld [vmem:[#allocation7 + $0x1008] sm:$0xff] }
 0x462   :  { %3374 = vmatpush.msrb.mxu2 %v4900_v43  ;;  %3414 = vmatpush.msrb.mxu1 %v4901_v32  ;;  %v6626_v43 = vpop.f32.mrf.mxu1  ;;  %v4956_v32 = vld [vmem:[#allocation7 + $0xee0] sm:$0xff] }
 0x463   :  { %3475 = vmatmul.f32.vlgmr.msra.gmra.mxu3 %v3454_v3  ;;  %3515 = vmatmul.f32.vlgmr.msra.gmra.mxu0 %v3454_v3  ;;  %v4953_v3 = vld [vmem:[#allocation7 + $0xef8] sm:$0xff] }
 0x464   :  { %3566 = vmatpush.msrb.mxu3 %v4902_v63  ;;  %3606 = vmatpush.msrb.mxu0 %v4903_v13  ;;  %v4957_v63 = vld [vmem:[#allocation7 + $0xee8] sm:$0xff]  ;;  %v4959_v13 = vld [vmem:[#allocation7 + $0x11d8] sm:$0xff] }
 0x465   :  { %3375 = vmatpush.msrb.mxu2 %v4904_v49  ;;  %3415 = vmatpush.msrb.mxu1 %v4905_v18  ;;  %v4960_v49 = vld [vmem:[#allocation7 + $0xed0] sm:$0xff]  ;;  %v4961_v18 = vld [vmem:[#allocation7 + $0xed8] sm:$0xff] }
 0x466   :  { %3567 = vmatpush.msrb.mxu3 %v4906_v12  ;;  %3607 = vmatpush.msrb.mxu0 %v4907_v11  ;;  %v4962_v12 = vld [vmem:[#allocation7 + $0x11c0] sm:$0xff]  ;;  %v4963_v11 = vld [vmem:[#allocation7 + $0x11c8] sm:$0xff] }
 0x467   :  { %3376 = vmatpush.msrb.mxu2 %v4908_v37  ;;  %3416 = vmatpush.msrb.mxu1 %v4909_v36  ;;  %v4964_v37 = vld [vmem:[#allocation7 + $0xec0] sm:$0xff]  ;;  %v4965_v36 = vld [vmem:[#allocation7 + $0xec8] sm:$0xff] }
 0x468   :  { %3568 = vmatpush.msrb.mxu3 %v4910_v56  ;;  %3608 = vmatpush.msrb.mxu0 %v4911_v19  ;;  %v4966_v56 = vld [vmem:[#allocation7 + $0x11b0] sm:$0xff]  ;;  %v4967_v19 = vld [vmem:[#allocation7 + $0x11b8] sm:$0xff] }
 0x469   :  { %3377 = vmatpush.msrb.mxu2 %v4912_v30  ;;  %3417 = vmatpush.msrb.mxu1 %v4913_v29  ;;  %v4968_v30 = vld [vmem:[#allocation7 + $0xeb0] sm:$0xff]  ;;  %v4969_v29 = vld [vmem:[#allocation7 + $0xeb8] sm:$0xff] }
 0x46a   :  { %3569 = vmatpush.msrb.mxu3 %v4914_v59  ;;  %3609 = vmatpush.msrb.mxu0 %v4915_v23  ;;  %v4970_v59 = vld [vmem:[#allocation7 + $0x11a0] sm:$0xff]  ;;  %v4971_v23 = vld [vmem:[#allocation7 + $0x11a8] sm:$0xff] }
 0x46b   :  { %3378 = vmatpush.msrb.mxu2 %v4916_v0  ;;  %3418 = vmatpush.msrb.mxu1 %v4917_v10  ;;  %v4972_v0 = vld [vmem:[#allocation7 + $0xea0] sm:$0xff]  ;;  %v4973_v10 = vld [vmem:[#allocation7 + $0xea8] sm:$0xff] }
 0x46c   :  { %3570 = vmatpush.msrb.mxu3 %v4918_v28  ;;  %3610 = vmatpush.msrb.mxu0 %v4919_v44  ;;  %v4974_v28 = vld [vmem:[#allocation7 + $0x1190] sm:$0xff]  ;;  %v4975_v44 = vld [vmem:[#allocation7 + $0x1198] sm:$0xff] }
 0x46d   :  { %3379 = vmatpush.msrb.mxu2 %v4920_v7  ;;  %3419 = vmatpush.msrb.mxu1 %v4921_v40  ;;  %v4976_v7 = vld [vmem:[#allocation7 + $0xe90] sm:$0xff]  ;;  %v4977_v40 = vld [vmem:[#allocation7 + $0xe98] sm:$0xff] }
 0x46e   :  { %3571 = vmatpush.msrb.mxu3 %v4922_v22  ;;  %3611 = vmatpush.msrb.mxu0 %v4923_v2  ;;  %v4978_v22 = vld [vmem:[#allocation7 + $0x1180] sm:$0xff]  ;;  %v4979_v2 = vld [vmem:[#allocation7 + $0x1188] sm:$0xff] }
 0x46f   :  { %3380 = vmatpush.msrb.mxu2 %v4924_v62  ;;  %3420 = vmatpush.msrb.mxu1 %v4925_v4  ;;  %v4980_v62 = vld [vmem:[#allocation7 + $0xe80] sm:$0xff]  ;;  %v4981_v4 = vld [vmem:[#allocation7 + $0xe88] sm:$0xff] }
 0x470   :  { %3572 = vmatpush.msrb.mxu3 %v4926_v41  ;;  %3612 = vmatpush.msrb.mxu0 %v4927_v33  ;;  %v4982_v41 = vld [vmem:[#allocation7 + $0x1170] sm:$0xff]  ;;  %v4983_v33 = vld [vmem:[#allocation7 + $0x1178] sm:$0xff] }
 0x471   :  { %3381 = vmatpush.msrb.mxu2 %v4928_v53  ;;  %3421 = vmatpush.msrb.mxu1 %v4929_v45  ;;  %v4984_v53 = vld [vmem:[#allocation7 + $0xe70] sm:$0xff]  ;;  %v4985_v45 = vld [vmem:[#allocation7 + $0xe78] sm:$0xff] }
 0x472   :  { %3573 = vmatpush.msrb.mxu3 %v4930_v1  ;;  %3613 = vmatpush.msrb.mxu0 %v4931_v55  ;;  %v4986_v1 = vld [vmem:[#allocation7 + $0x1160] sm:$0xff]  ;;  %v4987_v55 = vld [vmem:[#allocation7 + $0x1168] sm:$0xff] }
 0x473   :  { %3382 = vmatpush.msrb.mxu2 %v4932_v47  ;;  %3422 = vmatpush.msrb.mxu1 %v4933_v6  ;;  %v4988_v47 = vld [vmem:[#allocation7 + $0xe60] sm:$0xff]  ;;  %v4989_v6 = vld [vmem:[#allocation7 + $0xe68] sm:$0xff] }
 0x474   :  { %3574 = vmatpush.msrb.mxu3 %v4934_v61  ;;  %3614 = vmatpush.msrb.mxu0 %v4935_v14  ;;  %v4990_v61 = vld [vmem:[#allocation7 + $0x1150] sm:$0xff]  ;;  %v4991_v14 = vld [vmem:[#allocation7 + $0x1158] sm:$0xff] }
 0x475   :  { %3383 = vmatpush.msrb.mxu2 %v4936_v57  ;;  %3423 = vmatpush.msrb.mxu1 %v4937_v46  ;;  %v4992_v57 = vld [vmem:[#allocation7 + $0xe50] sm:$0xff]  ;;  %v4993_v46 = vld [vmem:[#allocation7 + $0xe58] sm:$0xff] }
 0x476   :  { %3575 = vmatpush.msrb.mxu3 %v4938_v51  ;;  %3615 = vmatpush.msrb.mxu0 %v4939_v20  ;;  %v4994_v51 = vld [vmem:[#allocation7 + $0x1140] sm:$0xff]  ;;  %v4995_v20 = vld [vmem:[#allocation7 + $0x1148] sm:$0xff] }
 0x477   :  { %3384 = vmatpush.msrb.mxu2 %v4940_v42  ;;  %3424 = vmatpush.msrb.mxu1 %v4941_v52  ;;  %v4996_v42 = vld [vmem:[#allocation7 + $0xe40] sm:$0xff]  ;;  %v4997_v52 = vld [vmem:[#allocation7 + $0xe48] sm:$0xff] }
 0x478   :  { %3576 = vmatpush.msrb.mxu3 %v4942_v8  ;;  %3616 = vmatpush.msrb.mxu0 %v4943_v15  ;;  %v4998_v8 = vld [vmem:[#allocation7 + $0x1130] sm:$0xff]  ;;  %v4999_v15 = vld [vmem:[#allocation7 + $0x1138] sm:$0xff] }
 0x479   :  { %3385 = vmatpush.msrb.mxu2 %v4944_v24  ;;  %3425 = vmatpush.msrb.mxu1 %v4945_v58  ;;  %v5000_v24 = vld [vmem:[#allocation7 + $0xe30] sm:$0xff]  ;;  %v5001_v58 = vld [vmem:[#allocation7 + $0xe38] sm:$0xff] }
 0x47a   :  { %3577 = vmatpush.msrb.mxu3 %v4946_v48  ;;  %3617 = vmatpush.msrb.mxu0 %v4947_v27  ;;  %v5002_v48 = vld [vmem:[#allocation7 + $0x1120] sm:$0xff]  ;;  %v5003_v27 = vld [vmem:[#allocation7 + $0x1128] sm:$0xff] }
 0x47b   :  { %3386 = vmatpush.msrb.mxu2 %v4948_v9  ;;  %3426 = vmatpush.msrb.mxu1 %v4949_v39  ;;  %v3455_v9 = vrot.slane %v6612_v21, 4  ;;  %v5004_v39 = vld [vmem:[#allocation7 + $0xe20] sm:$0xff] }
 0x47c   :  { %3578 = vmatpush.msrb.mxu3 %v4950_v54  ;;  %3618 = vmatpush.msrb.mxu0 %v4951_v5  ;;  %v5005_v54 = vld [vmem:[#allocation7 + $0xe28] sm:$0xff]  ;;  %v5006_v5 = vld [vmem:[#allocation7 + $0x1110] sm:$0xff]  ;;  %v5012_v21 = vld [vmem:[#allocation7 + $0xfe0] sm:$0xff] }
 0x47d   :  { %3387 = vmatmul.f32.vlgmr.msrb.gmra.mxu2 %v6621_v35  ;;  %3427 = vmatmul.f32.vlgmr.msrb.gmra.mxu1 %v6621_v35  ;;  %v4958_v35 = vld [vmem:[#allocation7 + $0x11d0] sm:$0xff] }
 0x47e   :  { %3481 = vmatpush.msra.mxu2 %v4952_v60  ;;  %3521 = vmatpush.msra.mxu1 %v4953_v3  ;;  %v5007_v60 = vld [vmem:[#allocation7 + $0x1118] sm:$0xff]  ;;  %v5008_v3 = vld [vmem:[#allocation7 + $0xff0] sm:$0xff] }
 0x47f   :  { %3579 = vmatpush.msrb.mxu3 %v4954_v38  ;;  %3619 = vmatpush.msrb.mxu0 %v4955_v50  ;;  %v5009_v38 = vld [vmem:[#allocation7 + $0xff8] sm:$0xff]  ;;  %v5010_v50 = vld [vmem:[#allocation7 + $0x1100] sm:$0xff] }
 0x480   :  { %3482 = vmatpush.msra.mxu2 %v4956_v32  ;;  %3522 = vmatpush.msra.mxu1 %v4957_v63  ;;  %v5011_v32 = vld [vmem:[#allocation7 + $0x1108] sm:$0xff] }
 0x481   :  { %4375 = vmatmul.msk.f32.vlgmr.msrb.gmra.mxu3 %vm713_vm3, %v6626_v43  ;;  %4376 = vmatmul.msk.f32.vlgmr.msrb.gmra.mxu0 %vm713_vm3, %v6626_v43  ;;  %v5013_v63 = vld [vmem:[#allocation7 + $0xfe8] sm:$0xff] }
 0x482   :  { %3632 = vmatpush.msra.mxu3 %v4958_v35  ;;  %3672 = vmatpush.msra.mxu0 %v4959_v13  ;;  %v5014_v35 = vld [vmem:[#allocation7 + $0x10f0] sm:$0xff]  ;;  %v5015_v13 = vld [vmem:[#allocation7 + $0x10f8] sm:$0xff] }
 0x483   :  { %3483 = vmatpush.msra.mxu2 %v4960_v49  ;;  %3523 = vmatpush.msra.mxu1 %v4961_v18  ;;  %v6635_v49 = vpop.f32.mrf.mxu0  ;;  %v5016_v18 = vld [vmem:[#allocation7 + $0xfd0] sm:$0xff] }
 0x484   :  { %3633 = vmatpush.msra.mxu3 %v4962_v12  ;;  %3673 = vmatpush.msra.mxu0 %v4963_v11  ;;  %v5017_v12 = vld [vmem:[#allocation7 + $0xfd8] sm:$0xff]  ;;  %v3627_v11 = vrot.slane %v6635_v49, 4 }
 0x485   :  { %3484 = vmatpush.msra.mxu2 %v4964_v37  ;;  %3524 = vmatpush.msra.mxu1 %v4965_v36  ;;  %v5018_v37 = vld [vmem:[#allocation7 + $0x10e0] sm:$0xff]  ;;  %v5019_v36 = vld [vmem:[#allocation7 + $0x10e8] sm:$0xff] }
 0x486   :  { %3634 = vmatpush.msra.mxu3 %v4966_v56  ;;  %3674 = vmatpush.msra.mxu0 %v4967_v19  ;;  %v5020_v56 = vld [vmem:[#allocation7 + $0xfc0] sm:$0xff]  ;;  %v5021_v19 = vld [vmem:[#allocation7 + $0xfc8] sm:$0xff] }
 0x487   :  { %3485 = vmatpush.msra.mxu2 %v4968_v30  ;;  %3525 = vmatpush.msra.mxu1 %v4969_v29  ;;  %v5022_v30 = vld [vmem:[#allocation7 + $0xfb0] sm:$0xff]  ;;  %v5023_v29 = vld [vmem:[#allocation7 + $0xfb8] sm:$0xff] }
 0x488   :  { %3635 = vmatpush.msra.mxu3 %v4970_v59  ;;  %3675 = vmatpush.msra.mxu0 %v4971_v23  ;;  %v5024_v59 = vld [vmem:[#allocation7 + $0xfa0] sm:$0xff]  ;;  %v5025_v23 = vld [vmem:[#allocation7 + $0xfa8] sm:$0xff] }
 0x489   :  { %3486 = vmatpush.msra.mxu2 %v4972_v0  ;;  %3526 = vmatpush.msra.mxu1 %v4973_v10  ;;  %v5026_v0 = vld [vmem:[#allocation7 + $0xf90] sm:$0xff]  ;;  %v5027_v10 = vld [vmem:[#allocation7 + $0xf98] sm:$0xff] }
 0x48a   :  { %3636 = vmatpush.msra.mxu3 %v4974_v28  ;;  %3676 = vmatpush.msra.mxu0 %v4975_v44  ;;  %v5028_v28 = vld [vmem:[#allocation7 + $0xf80] sm:$0xff]  ;;  %v5030_v44 = vld [vmem:[#allocation7 + $0xf70] sm:$0xff] }
 0x48b   :  { %3487 = vmatpush.msra.mxu2 %v4976_v7  ;;  %3527 = vmatpush.msra.mxu1 %v4977_v40  ;;  %v5031_v7 = vld [vmem:[#allocation7 + $0xf78] sm:$0xff]  ;;  %v5033_v40 = vld [vmem:[#allocation7 + $0xf68] sm:$0xff] }
 0x48c   :  { %3637 = vmatpush.msra.mxu3 %v4978_v22  ;;  %3677 = vmatpush.msra.mxu0 %v4979_v2  ;;  %v5034_v22 = vld [vmem:[#allocation7 + $0xf50] sm:$0xff]  ;;  %v5036_v2 = vld [vmem:[#allocation7 + $0xf40] sm:$0xff] }
 0x48d   :  { %3488 = vmatpush.msra.mxu2 %v4980_v62  ;;  %3528 = vmatpush.msra.mxu1 %v4981_v4  ;;  %v5037_v62 = vld [vmem:[#allocation7 + $0xf48] sm:$0xff]  ;;  %v5039_v4 = vld [vmem:[#allocation7 + $0xf38] sm:$0xff] }
 0x48e   :  { %3638 = vmatpush.msra.mxu3 %v4982_v41  ;;  %3678 = vmatpush.msra.mxu0 %v4983_v33  ;;  %v5040_v41 = vld [vmem:[#allocation7 + $0xf20] sm:$0xff]  ;;  %v5041_v33 = vld [vmem:[#allocation7 + $0xf28] sm:$0xff] }
 0x48f   :  { %3489 = vmatpush.msra.mxu2 %v4984_v53  ;;  %3529 = vmatpush.msra.mxu1 %v4985_v45  ;;  %v5042_v53 = vld [vmem:[#allocation7 + $0xf10] sm:$0xff]  ;;  %v5043_v45 = vld [vmem:[#allocation7 + $0xf18] sm:$0xff] }
 0x490   :  { %3639 = vmatpush.msra.mxu3 %v4986_v1  ;;  %3679 = vmatpush.msra.mxu0 %v4987_v55  ;;  %v5044_v1 = vld [vmem:[#allocation7 + $0xf00] sm:$0xff]  ;;  %v5045_v55 = vld [vmem:[#allocation7 + $0xf08] sm:$0xff] }
 0x491   :  { %3490 = vmatpush.msra.mxu2 %v4988_v47  ;;  %3530 = vmatpush.msra.mxu1 %v4989_v6  ;;  %v5046_v47 = vld [vmem:[#allocation7 + $0x12b0] sm:$0xff]  ;;  %v5047_v6 = vld [vmem:[#allocation7 + $0x12b8] sm:$0xff] }
 0x492   :  { %3640 = vmatpush.msra.mxu3 %v4990_v61  ;;  %3680 = vmatpush.msra.mxu0 %v4991_v14  ;;  %v5048_v61 = vld [vmem:[#allocation7 + $0x12a0] sm:$0xff]  ;;  %v5049_v14 = vld [vmem:[#allocation7 + $0x12a8] sm:$0xff] }
 0x493   :  { %3491 = vmatpush.msra.mxu2 %v4992_v57  ;;  %3531 = vmatpush.msra.mxu1 %v4993_v46  ;;  %v5050_v57 = vld [vmem:[#allocation7 + $0x1290] sm:$0xff]  ;;  %v5051_v46 = vld [vmem:[#allocation7 + $0x1298] sm:$0xff] }
 0x494   :  { %3641 = vmatpush.msra.mxu3 %v4994_v51  ;;  %3681 = vmatpush.msra.mxu0 %v4995_v20  ;;  %v5052_v51 = vld [vmem:[#allocation7 + $0x1280] sm:$0xff]  ;;  %v5053_v20 = vld [vmem:[#allocation7 + $0x1288] sm:$0xff] }
 0x495   :  { %3492 = vmatpush.msra.mxu2 %v4996_v42  ;;  %3532 = vmatpush.msra.mxu1 %v4997_v52  ;;  %v5054_v42 = vld [vmem:[#allocation7 + $0x1270] sm:$0xff]  ;;  %v5055_v52 = vld [vmem:[#allocation7 + $0x1278] sm:$0xff] }
 0x496   :  { %3642 = vmatpush.msra.mxu3 %v4998_v8  ;;  %3682 = vmatpush.msra.mxu0 %v4999_v15  ;;  %v5056_v8 = vld [vmem:[#allocation7 + $0x1260] sm:$0xff]  ;;  %v5057_v15 = vld [vmem:[#allocation7 + $0x1268] sm:$0xff] }
 0x497   :  { %3493 = vmatpush.msra.mxu2 %v5000_v24  ;;  %3533 = vmatpush.msra.mxu1 %v5001_v58  ;;  %v5058_v24 = vld [vmem:[#allocation7 + $0x1250] sm:$0xff]  ;;  %v5059_v58 = vld [vmem:[#allocation7 + $0x1258] sm:$0xff] }
 0x498   :  { %3643 = vmatpush.msra.mxu3 %v5002_v48  ;;  %3683 = vmatpush.msra.mxu0 %v5003_v27  ;;  %v5060_v48 = vld [vmem:[#allocation7 + $0x1240] sm:$0xff]  ;;  %v5061_v27 = vld [vmem:[#allocation7 + $0x1248] sm:$0xff] }
 0x499   :  { %3494 = vmatpush.msra.mxu2 %v5004_v39  ;;  %3534 = vmatpush.msra.mxu1 %v5005_v54  ;;  %v5063_v39 = vld [vmem:[#allocation7 + $0x1238] sm:$0xff]  ;;  %v5064_v54 = vld [vmem:[#allocation7 + $0x1220] sm:$0xff] }
 0x49a   :  { %3644 = vmatpush.msra.mxu3 %v5006_v5  ;;  %3684 = vmatpush.msra.mxu0 %v5007_v60  ;;  %v5065_v5 = vld [vmem:[#allocation7 + $0x1228] sm:$0xff]  ;;  %v5066_v60 = vld [vmem:[#allocation7 + $0x1210] sm:$0xff] }
 0x49b   :  { %4373 = vmatmul.msk.f32.vlgmr.msra.gmra.mxu2 %vm713_vm3, %v3455_v9  ;;  %4374 = vmatmul.msk.f32.vlgmr.msra.gmra.mxu1 %vm713_vm3, %v3455_v9  ;;  %v5062_v9 = vld [vmem:[#allocation7 + $0x1230] sm:$0xff] }
 0x49c   :  { %3544 = vmatpush.msrb.mxu2 %v5008_v3  ;;  %3584 = vmatpush.msrb.mxu1 %v5009_v38  ;;  %v5067_v3 = vld [vmem:[#allocation7 + $0x1218] sm:$0xff]  ;;  %v5068_v38 = vld [vmem:[#allocation7 + $0x1200] sm:$0xff] }
 0x49d   :  { %3645 = vmatpush.msra.mxu3 %v5010_v50  ;;  %3685 = vmatpush.msra.mxu0 %v5011_v32  ;;  %v5069_v50 = vld [vmem:[#allocation7 + $0x1208] sm:$0xff]  ;;  %v5070_v32 = vld [vmem:[#allocation7 + $0x11f0] sm:$0xff] }
 0x49e   :  { %3545 = vmatpush.msrb.mxu2 %v5012_v21  ;;  %3585 = vmatpush.msrb.mxu1 %v5013_v63  ;;  %v3628_v21 = vrot.slane %v6626_v43, 4  ;;  %v5071_v63 = vld [vmem:[#allocation7 + $0x11f8] sm:$0xff]  ;;  %v2917_v43 = vpop.f32.mrf.mxu0 }
 0x49f   :  { %3646 = vmatpush.msra.mxu3 %v5014_v35  ;;  %3686 = vmatpush.msra.mxu0 %v5015_v13  ;;  %v5072_v35 = vld [vmem:[#allocation7 + $0x11e0] sm:$0xff]  ;;  %v5073_v13 = vld [vmem:[#allocation7 + $0x11e8] sm:$0xff] }
 0x4a0   :  { %3546 = vmatpush.msrb.mxu2 %v5016_v18  ;;  %3586 = vmatpush.msrb.mxu1 %v5017_v12  ;;  %v7042_v18 = vld [vmem:[#allocation31_spill] sm:$0xff]  ;;  %v7043_v12 = vld [vmem:[#allocation57_spill] sm:$0xff] }
 0x4a1   :  { %3647 = vmatpush.msra.mxu3 %v5018_v37  ;;  %3687 = vmatpush.msra.mxu0 %v5019_v36  ;;  %v2937_v37 = vpop.f32.mrf.mxu1  ;;  %v2877_v36 = vpop.f32.mrf.mxu3 }
 0x4a2   :  { %3547 = vmatpush.msrb.mxu2 %v5020_v56  ;;  %3587 = vmatpush.msrb.mxu1 %v5021_v19  ;;  %v2897_v56 = vpop.f32.mrf.mxu2 }
 0x4a3   :  { %3648 = vmatmul.f32.vlgmr.msra.gmra.mxu3 %v3627_v11  ;;  %3688 = vmatmul.f32.vlgmr.msra.gmra.mxu0 %v3627_v11  ;;  %v7044_v11 = vld [vmem:[#allocation55_spill] sm:$0xff] }
 0x4a4   :  { %4396 = vmatpush.msk.msrb.mxu3 %vm1255_vm4, %v6573_v16  ;;  %3548 = vmatpush.msrb.mxu2 %v5022_v30  ;;  %v5029_v16 = vld [vmem:[#allocation7 + $0xf88] sm:$0xff] }
 0x4a5   :  { %3588 = vmatpush.msrb.mxu1 %v5023_v29 }
 0x4a6   :  { %3858 = vmatpush.msrb.mxu3 %v6578_v34  ;;  %3549 = vmatpush.msrb.mxu2 %v5024_v59  ;;  %v5032_v34 = vld [vmem:[#allocation7 + $0xf60] sm:$0xff]  ;;  %v2999_v19 = vpop.f32.mrf.mxu0 }
 0x4a7   :  { %3589 = vmatpush.msrb.mxu1 %v5025_v23 }
 0x4a8   :  { %3859 = vmatpush.msrb.mxu3 %v6581_v31  ;;  %3550 = vmatpush.msrb.mxu2 %v5026_v0  ;;  %v5035_v31 = vld [vmem:[#allocation7 + $0xf58] sm:$0xff] }
 0x4a9   :  { %3590 = vmatpush.msrb.mxu1 %v5027_v10  ;;  %v3019_v30 = vpop.f32.mrf.mxu1  ;;  %v2959_v29 = vpop.f32.mrf.mxu3 }
 0x4aa   :  { %3860 = vmatpush.msrb.mxu3 %v6584_v26  ;;  %3551 = vmatpush.msrb.mxu2 %v5028_v28  ;;  %v5038_v26 = vld [vmem:[#allocation7 + $0xf30] sm:$0xff]  ;;  %v2979_v23 = vpop.f32.mrf.mxu2 }
 0x4ab   :  { %3591 = vmatpush.msrb.mxu1 %v5029_v16 }
 0x4ac   :  { %3552 = vmatpush.msrb.mxu2 %v5030_v44 }
 0x4ad   :  { %3592 = vmatpush.msrb.mxu1 %v5031_v7 }
 0x4ae   :  { %3553 = vmatpush.msrb.mxu2 %v5032_v34  ;;  %v3102_v59 = vpop.f32.mrf.mxu0 }
 0x4af   :  { %3593 = vmatpush.msrb.mxu1 %v5033_v40 }
 0x4b0   :  { %3554 = vmatpush.msrb.mxu2 %v5034_v22 }
 0x4b1   :  { %3594 = vmatpush.msrb.mxu1 %v5035_v31  ;;  %v3082_v0 = vpop.f32.mrf.mxu1  ;;  %v3062_v10 = vpop.f32.mrf.mxu3 }
 0x4b2   :  { %3555 = vmatpush.msrb.mxu2 %v5036_v2  ;;  %v3042_v16 = vpop.f32.mrf.mxu2 }
 0x4b3   :  { %3595 = vmatpush.msrb.mxu1 %v5037_v62 }
 0x4b4   :  { %3556 = vmatpush.msrb.mxu2 %v5038_v26 }
 0x4b5   :  { %3596 = vmatpush.msrb.mxu1 %v5039_v4 }
 0x4b6   :  { %3557 = vmatpush.msrb.mxu2 %v5040_v41  ;;  %v3170_v28 = vpop.f32.mrf.mxu0 }
 0x4b7   :  { %3597 = vmatpush.msrb.mxu1 %v5041_v33 }
 0x4b8   :  { %3558 = vmatpush.msrb.mxu2 %v5042_v53  ;;  %v3730_v53 = vld [vmem:[%s6845_s6] sm:$0xff] }
 0x4b9   :  { %3598 = vmatpush.msrb.mxu1 %v5043_v45  ;;  %v3190_v44 = vpop.f32.mrf.mxu1  ;;  %v3130_v7 = vpop.f32.mrf.mxu3  ;;  %4397 = vmatmul.msk.f32.vlgmr.msrb.gmra.mxu3 %vm2767_vm9, %v3730_v53 }
 0x4ba   :  { %3559 = vmatpush.msrb.mxu2 %v5044_v1  ;;  %v3150_v40 = vpop.f32.mrf.mxu2 }
 0x4bb   :  { %3599 = vmatpush.msrb.mxu1 %v5045_v55  ;;  %3560 = vmatmul.f32.vlgmr.msrb.gmra.mxu2 %v6635_v49  ;;  %v2938_v55 = vadd.f32 %v2937_v37, %v2917_v43  ;;  %v3733_v37 = vld [vmem:[%s6845_s6 + $0x18] sm:$0xff] }
 0x4bc   :  { %3600 = vmatmul.f32.vlgmr.msrb.gmra.mxu1 %v6635_v49  ;;  %3654 = vmatpush.msra.mxu2 %v5046_v47  ;;  %v7041_v49 = vld [vmem:[#allocation19_spill] sm:$0xff] }
 0x4bd   :  { %3694 = vmatpush.msra.mxu1 %v5047_v6  ;;  %v3731_v6 = vld [vmem:[%s6845_s6 + $0x8] sm:$0xff] }
 0x4be   :  { %3655 = vmatpush.msra.mxu2 %v5048_v61  ;;  %v3275_v34 = vpop.f32.mrf.mxu0 }
 0x4bf   :  { %3695 = vmatpush.msra.mxu1 %v5049_v14 }
 0x4c0   :  { %3656 = vmatpush.msra.mxu2 %v5050_v57  ;;  %v3000_v57 = vadd.f32 %v2999_v19, %v2938_v55  ;;  %v3735_v55 = vld [vmem:[%s6845_s6 + $0x28] sm:$0xff] }
 0x4c1   :  { %3696 = vmatpush.msra.mxu1 %v5051_v46  ;;  %v3255_v22 = vpop.f32.mrf.mxu1  ;;  %v3235_v31 = vpop.f32.mrf.mxu3  ;;  %4398 = vmatmul.msk.f32.gmra.mxu3 %vm2767_vm9, %v3731_v6  ;;  %v3103_v46 = vadd.f32 %v3102_v59, %v3082_v0 }
 0x4c2   :  { %3657 = vmatpush.msra.mxu2 %v5052_v51  ;;  %v3215_v62 = vpop.f32.mrf.mxu2  ;;  %v2898_v51 = vadd.f32 %v2897_v56, %v2877_v36 }
 0x4c3   :  { %3697 = vmatpush.msra.mxu1 %v5053_v20  ;;  %v3020_v20 = vadd.f32 %v3019_v30, %v3000_v57  ;;  %v3736_v57 = vld [vmem:[%s6845_s6 + $0x30] sm:$0xff] }
 0x4c4   :  { %3658 = vmatpush.msra.mxu2 %v5054_v42  ;;  %v3191_v42 = vadd.f32 %v3190_v44, %v3170_v28 }
 0x4c5   :  { %3698 = vmatpush.msra.mxu1 %v5055_v52  ;;  %v3106_v52 = vadd.f32 %v3103_v46, %v3020_v20 }
 0x4c6   :  { %3659 = vmatpush.msra.mxu2 %v5056_v8  ;;  %v3343_v2 = vpop.f32.mrf.mxu0  ;;  %v3276_v8 = vadd.f32 %v3275_v34, %v3255_v22 }
 0x4c7   :  { %3699 = vmatpush.msra.mxu1 %v5057_v15 }
 0x4c8   :  { %3660 = vmatpush.msra.mxu2 %v5058_v24 }
 0x4c9   :  { %3700 = vmatpush.msra.mxu1 %v5059_v58  ;;  %v3303_v4 = vpop.f32.mrf.mxu3  ;;  %v2960_v58 = vadd.f32 %v2959_v29, %v2898_v51 }
 0x4ca   :  { %3661 = vmatpush.msra.mxu2 %v5060_v48  ;;  %v3063_v48 = vadd.f32 %v3062_v10, %v3042_v16 }
 0x4cb   :  { %3701 = vmatpush.msra.mxu1 %v5061_v27  ;;  %v3194_v27 = vadd.f32 %v3191_v42, %v3106_v52  ;;  %v3934_v52 = vld [vmem:[%s6846_s7 + $0x8] sm:$0xff] }
 0x4cc   :  { %3662 = vmatpush.msra.mxu2 %v5062_v9 }
 0x4cd   :  { %3702 = vmatpush.msra.mxu1 %v5063_v39  ;;  %v3732_v39 = vld [vmem:[%s6845_s6 + $0x10] sm:$0xff] }
 0x4ce   :  { %3663 = vmatpush.msra.mxu2 %v5064_v54  ;;  %v2980_v54 = vadd.f32 %v2979_v23, %v2960_v58  ;;  %4399 = vmatmul.msk.f32.gmra.mxu3 %vm2767_vm9, %v3732_v39  ;;  %v3936_v58 = vld [vmem:[%s6846_s7 + $0x18] sm:$0xff] }
 0x4cf   :  { %3703 = vmatpush.msra.mxu1 %v5065_v5  ;;  %v3151_v5 = vadd.f32 %v3150_v40, %v3130_v7 }
 0x4d0   :  { %3664 = vmatpush.msra.mxu2 %v5066_v60 }
 0x4d1   :  { %3704 = vmatpush.msra.mxu1 %v5067_v3 }
 0x4d2   :  { %3665 = vmatpush.msra.mxu2 %v5068_v38  ;;  %v3279_v38 = vadd.f32 %v3276_v8, %v3194_v27  ;;  %v3737_v8 = vld [vmem:[%s6845_s6 + $0x38] sm:$0xff]  ;;  %v3937_v27 = vld [vmem:[%s6846_s7 + $0x20] sm:$0xff] }
 0x4d3   :  { %3705 = vmatpush.msra.mxu1 %v5069_v50 }
 0x4d4   :  { %3666 = vmatpush.msra.mxu2 %v5070_v32  ;;  %v3105_v32 = vadd.f32 %v3063_v48, %v2980_v54  ;;  %v3739_v48 = vld [vmem:[%s6845_s6 + $0x48] sm:$0xff]  ;;  %v3741_v54 = vld [vmem:[%s6845_s6 + $0x58] sm:$0xff] }
 0x4d5   :  { %3706 = vmatpush.msra.mxu1 %v5071_v63  ;;  %v3448_v33 = vpop.f32.mrf.mxu0 }
 0x4d6   :  { %3667 = vmatpush.msra.mxu2 %v5072_v35  ;;  %4400 = vmatmul.msk.f32.gmra.mxu3 %vm2767_vm9, %v3733_v37 }
 0x4d7   :  { %3707 = vmatpush.msra.mxu1 %v5073_v13  ;;  %4377 = vmatmul.msk.f32.vlgmr.msra.gmra.mxu2 %vm713_vm3, %v3628_v21  ;;  %v3193_v13 = vadd.f32 %v3151_v5, %v3105_v32  ;;  %v3939_v5 = vld [vmem:[%s6846_s7 + $0x30] sm:$0xff]  ;;  %v3946_v32 = vld [vmem:[%s6846_s7 + $0x68] sm:$0xf] }
 0x4d8   :  { %4378 = vmatmul.msk.f32.vlgmr.msra.gmra.mxu1 %vm713_vm3, %v3628_v21  ;;  %4381 = vmatpush.msk.msrb.mxu2 %vm1255_vm4, %v7041_v49  ;;  %v3363_v26 = vpop.f32.mrf.mxu1  ;;  %v3236_v21 = vadd.f32 %v3235_v31, %v3215_v62  ;;  %v3734_v31 = vld [vmem:[%s6845_s6 + $0x20] sm:$0xff] }
 0x4d9   :  { %v3364_v9 = vadd.f32 %v3363_v26, %v3343_v2 }
 0x4da   :  { %3799 = vmatpush.msrb.mxu2 %v7042_v18  ;;  %v3278_v36 = vadd.f32 %v3236_v21, %v3193_v13  ;;  %v3942_v21 = vld [vmem:[%s6846_s7 + $0x48] sm:$0xff] }
 0x4db   :  { %v3408_v1 = vpop.f32.mrf.mxu3  ;;  %v3367_v63 = vadd.f32 %v3364_v9, %v3279_v38  ;;  %v3740_v9 = vld [vmem:[%s6845_s6 + $0x50] sm:$0xff]  ;;  %v3743_v38 = vld [vmem:[%s6845_s6 + $0x68] sm:$0xf] }
 0x4dc   :  { %3800 = vmatpush.msrb.mxu2 %v7043_v12 }
 0x4de   :  { %3801 = vmatpush.msrb.mxu2 %v7044_v11  ;;  %v3323_v41 = vpop.f32.mrf.mxu2  ;;  %4401 = vmatmul.msk.f32.gmra.mxu3 %vm2767_vm9, %v3734_v31 }
 0x4df   :  { %4382 = vmatmul.msk.f32.vlgmr.msrb.gmra.mxu2 %vm2767_vm9, %v3730_v53  ;;  %v3324_v49 = vadd.f32 %v3323_v41, %v3303_v4 }
 0x4e0   :  { %v3516_v61 = vpop.f32.mrf.mxu0 }
 0x4e1   :  { %v3366_v30 = vadd.f32 %v3324_v49, %v3278_v36  ;;  %v3944_v49 = vld [vmem:[%s6846_s7 + $0x58] sm:$0xff] }
 0x4e6   :  { %v3476_v15 = vpop.f32.mrf.mxu3  ;;  %4402 = vmatmul.msk.f32.gmra.mxu3 %vm2767_vm9, %v3735_v55 }
 0x4e7   :  { %4383 = vmatmul.msk.f32.gmra.mxu2 %vm2767_vm9, %v3731_v6 }
 0x4ee   :  { %4403 = vmatmul.msk.f32.gmra.mxu3 %vm2767_vm9, %v3736_v57 }
 0x4ef   :  { %4384 = vmatmul.msk.f32.gmra.mxu2 %vm2767_vm9, %v3732_v39  ;;  %v3938_v39 = vld [vmem:[%s6846_s7 + $0x28] sm:$0xff] }
 0x4f6   :  { %4404 = vmatmul.msk.f32.gmra.mxu3 %vm2767_vm9, %v3737_v8 }
 0x4f7   :  { %4385 = vmatmul.msk.f32.gmra.mxu2 %vm2767_vm9, %v3733_v37 }
 0x4fa   :  { %v3428_v45 = vpop.f32.mrf.mxu1 }
 0x4fb   :  { %v3449_v50 = vadd.f32 %v3448_v33, %v3428_v45  ;;  %v7045_v33 = vld [vmem:[#allocation28_spill] sm:$0xff] }
 0x4fd   :  { %v3452_v18 = vadd.f32 %v3449_v50, %v3367_v63  ;;  %v3941_v50 = vld [vmem:[%s6846_s7 + $0x40] sm:$0xff]  ;;  %v3943_v63 = vld [vmem:[%s6846_s7 + $0x50] sm:$0xff] }
 0x4fe   :  { %v3621_v60 = vpop.f32.mrf.mxu0 }
 0x4ff   :  { %4386 = vmatmul.msk.f32.gmra.mxu2 %vm2767_vm9, %v3734_v31 }
 0x500   :  { %v3388_v47 = vpop.f32.mrf.mxu2 }
 0x501   :  { %v3409_v56 = vadd.f32 %v3408_v1, %v3388_v47  ;;  %v7046_v1 = vld [vmem:[#allocation35_spill] sm:$0xff] }
 0x503   :  { %v3451_v28 = vadd.f32 %v3409_v56, %v3366_v30 }
 0x504   :  { %v3581_v12 = vpop.f32.mrf.mxu3 }
 0x507   :  { %4387 = vmatmul.msk.f32.gmra.mxu2 %vm2767_vm9, %v3735_v55 }
 0x50f   :  { %4388 = vmatmul.msk.f32.gmra.mxu2 %vm2767_vm9, %v3736_v57 }
 0x517   :  { %4389 = vmatmul.msk.f32.gmra.mxu2 %vm2767_vm9, %v3737_v8 }
 0x518   :  { %v3536_v14 = vpop.f32.mrf.mxu1 }
 0x519   :  { %v3537_v35 = vadd.f32 %v3536_v14, %v3516_v61  ;;  %v3933_v14 = vld [vmem:[%s6846_s7] sm:$0xff] }
 0x51b   :  { %v3540_v19 = vadd.f32 %v3537_v35, %v3452_v18 }
 0x51e   :  { %v3496_v24 = vpop.f32.mrf.mxu2 }
 0x51f   :  { %v3497_v29 = vadd.f32 %v3496_v24, %v3476_v15  ;;  %v3935_v15 = vld [vmem:[%s6846_s7 + $0x10] sm:$0xff]  ;;  %v3738_v24 = vld [vmem:[%s6845_s6 + $0x40] sm:$0xff] }
 0x520   :  { %v3689_v59 = vpop.f32.mrf.mxu0  ;;  %4390 = vmatmul.msk.f32.gmra.mxu2 %vm2767_vm9, %v3738_v24  ;;  %4405 = vmatmul.msk.f32.gmra.mxu3 %vm2767_vm9, %v3738_v24 }
 0x521   :  { %v3539_v7 = vadd.f32 %v3497_v29, %v3451_v28 }
 0x526   :  { %v3649_v34 = vpop.f32.mrf.mxu3 }
 0x528   :  { %4391 = vmatmul.msk.f32.gmra.mxu2 %vm2767_vm9, %v3739_v48  ;;  %4406 = vmatmul.msk.f32.gmra.mxu3 %vm2767_vm9, %v3739_v48 }
 0x530   :  { %4392 = vmatmul.msk.f32.gmra.mxu2 %vm2767_vm9, %v3740_v9  ;;  %4407 = vmatmul.msk.f32.gmra.mxu3 %vm2767_vm9, %v3740_v9 }
 0x538   :  { %4393 = vmatmul.msk.f32.gmra.mxu2 %vm2767_vm9, %v3741_v54  ;;  %4408 = vmatmul.msk.f32.gmra.mxu3 %vm2767_vm9, %v3741_v54 }
 0x539   :  { %v3601_v3 = vpop.f32.mrf.mxu1 }
 0x53a   :  { %v3622_v11 = vadd.f32 %v3621_v60, %v3601_v3  ;;  %v3742_v60 = vld [vmem:[%s6845_s6 + $0x60] sm:$0xff]  ;;  %v3940_v3 = vld [vmem:[%s6846_s7 + $0x38] sm:$0xff] }
 0x53c   :  { %v3625_v0 = vadd.f32 %v3622_v11, %v3540_v19  ;;  %v3862_v13 = vpop.f32.mrf.mxu3  ;;  %v3945_v11 = vld [vmem:[%s6846_s7 + $0x60] sm:$0xff]  ;;  %s5261_s7 = smov [#allocation11]  }
 0x53d   :  { %3905 = vst.msk [vmem:[#allocation11 + $0x8] sm:$0xff] %vm713_vm3, %v3862_v13  ;;  %s4146_s25 = sshll.u32 %s5261_s7, 4  ;;  %s4147_s25 = int_to_ptr.vmem [resolvable:$true] %s4146_s25 }
 0x53e   :  { %v3561_v43 = vpop.f32.mrf.mxu2 }
 0x53f   :  { %v3582_v16 = vadd.f32 %v3581_v12, %v3561_v43 }
 0x540   :  { %4394 = vmatmul.msk.f32.gmra.mxu2 %vm2767_vm9, %v3742_v60  ;;  %4409 = vmatmul.msk.f32.gmra.mxu3 %vm2767_vm9, %v3742_v60 }
 0x541   :  { %v3624_v2 = vadd.f32 %v3582_v16, %v3539_v7 }
 0x544   :  { %v3865_v12 = vpop.f32.mrf.mxu3 }
 0x545   :  { %3907 = vst.msk [vmem:[#allocation11 + $0x18] sm:$0xff] %vm713_vm3, %v3865_v12 }
 0x548   :  { %4395 = vmatmul.msk.f32.gmra.mxu2 %vm2767_vm9, %v3743_v38  ;;  %4410 = vmatmul.msk.f32.gmra.mxu3 %vm2767_vm9, %v3743_v38 }
 0x551   :  { %v3868_v37 = vpop.f32.mrf.mxu3 }
 0x552   :  { %3909 = vst.msk [vmem:[#allocation11 + $0x28] sm:$0xff] %vm713_vm3, %v3868_v37 }
 0x555   :  { %v3709_v23 = vpop.f32.mrf.mxu1 }
 0x556   :  { %v3710_v10 = vadd.f32 %v3709_v23, %v3689_v59 }
 0x558   :  { %v3713_v44 = vadd.f32 %v3710_v10, %v3625_v0 }
 0x559   :  { %v3871_v56 = vpop.f32.mrf.mxu3 }
 0x55a   :  { %v3715_v40 = vmul.f32 %v3713_v44, %v6541_v17  ;;  %v3669_v22 = vpop.f32.mrf.mxu2  ;;  %3911 = vst.msk [vmem:[#allocation11 + $0x38] sm:$0xff] %vm713_vm3, %v3871_v56 }
 0x55b   :  { %v3670_v62 = vadd.f32 %v3669_v22, %v3649_v34 }
 0x55c   :  { %v3717_v26 = vadd.f32 %v3715_v40, %v6550_v25 }
 0x55d   :  { %v3712_v4 = vadd.f32 %v3670_v62, %v3624_v2 }
 0x55e   :  { %v3721_v41 = vmin.f32 %v3717_v26, 0.0  ;;  %vm3719_vm14 = vcmp.gt.f32.partialorder %v3717_v26, 0.0 }
 0x55f   :  { %v3714_v53 = vmul.f32 %v3712_v4, %v7045_v33 }
 0x560   :  { %v3724_v45 = vmul.f32 1.442695, %v3721_v41 }
 0x561   :  { %v3716_v17 = vadd.f32 %v3714_v53, %v7046_v1  ;;  %v3874_v30 = vpop.f32.mrf.mxu3 }
 0x562   :  { %4470 = vpow2.f32 %v3724_v45  ;;  %v3803_v35 = vpop.f32.mrf.mxu2  ;;  %3913 = vst.msk [vmem:[#allocation11 + $0x48] sm:$0xff] %vm713_vm3, %v3874_v30 }
 0x563   :  { %v3720_v47 = vmin.f32 %v3716_v17, 0.0  ;;  %vm3718_vm1 = vcmp.gt.f32.partialorder %v3716_v17, 0.0  ;;  %3904 = vst [vmem:[#allocation11] sm:$0xff] %v3803_v35 }
 0x565   :  { %v3722_v6 = vmul.f32 1.442695, %v3720_v47 }
 0x567   :  { %4472 = vpow2.f32 %v3722_v6 }
 0x568   :  { %v4471_v25 = vpop.eup %4470 }
 0x569   :  { %v4380_v61 = vadd.f32 -1.0, %v4471_v25  ;;  %v3877_v59 = vpop.f32.mrf.mxu3 }
 0x56a   :  { %v3806_v18 = vpop.f32.mrf.mxu2  ;;  %3915 = vst.msk [vmem:[#allocation11 + $0x58] sm:$0xff] %vm713_vm3, %v3877_v59 }
 0x56b   :  { %v3729_v46 = vsel %vm3719_vm14, %v3717_v26, %v4380_v61  ;;  %3906 = vst [vmem:[#allocation11 + $0x10] sm:$0xff] %v3806_v18 }
 0x56c   :  { %4426 = vmatpush.msk.msrb.mxu0 %vm290_vm0, %v3729_v46  ;;  %4442 = vmatpush.msk.msra.mxu2 %vm290_vm0, %v3729_v46 }
 0x56d   :  { %v4473_v51 = vpop.eup %4472  ;;  %4427 = vmatmul.msk.f32.vlgmr.msrb.gmra.mxu0 %vm3947_vm15, %v3933_v14  ;;  %4440 = vmatmul.msk.f32.vlgmr.msra.gmra.mxu2 %vm3947_vm15, %v3946_v32 }
 0x56e   :  { %v4379_v20 = vadd.f32 -1.0, %v4473_v51 }
 0x570   :  { %v3728_v42 = vsel %vm3718_vm1, %v3716_v17, %v4379_v20 }
 0x571   :  { %4411 = vmatpush.msk.msrb.mxu1 %vm290_vm0, %v3728_v42  ;;  %4441 = vmatpush.msk.msra.mxu3 %vm290_vm0, %v3728_v42  ;;  %v3880_v28 = vpop.f32.mrf.mxu3  ;;  %vm3931_vm0 = vcmask 912384  }
 0x572   :  { %4412 = vmatmul.msk.f32.vlgmr.msrb.gmra.mxu1 %vm3947_vm15, %v3933_v14  ;;  %4425 = vmatmul.msk.f32.vlgmr.msra.gmra.mxu3 %vm3947_vm15, %v3946_v32  ;;  %v3809_v43 = vpop.f32.mrf.mxu2  ;;  %3917 = vst.msk [vmem:[#allocation11 + $0x68] sm:$0xff] %vm713_vm3, %v3880_v28 }
 0x573   :  { %3908 = vst [vmem:[#allocation11 + $0x20] sm:$0xff] %v3809_v43 }
 0x575   :  { %4428 = vmatmul.msk.f32.gmra.mxu0 %vm3947_vm15, %v3934_v52 }
 0x579   :  { %v3883_v34 = vpop.f32.mrf.mxu3 }
 0x57a   :  { %4413 = vmatmul.msk.f32.gmra.mxu1 %vm3947_vm15, %v3934_v52  ;;  %v3812_v36 = vpop.f32.mrf.mxu2  ;;  %3919 = vst.msk [vmem:[#allocation11 + $0x78] sm:$0xff] %vm713_vm3, %v3883_v34 }
 0x57b   :  { %3910 = vst [vmem:[#allocation11 + $0x30] sm:$0xff] %v3812_v36 }
 0x57d   :  { %4429 = vmatmul.msk.f32.gmra.mxu0 %vm3947_vm15, %v3935_v15 }
 0x582   :  { %4414 = vmatmul.msk.f32.gmra.mxu1 %vm3947_vm15, %v3935_v15  ;;  %v3815_v19 = vpop.f32.mrf.mxu2 }
 0x583   :  { %3912 = vst [vmem:[#allocation11 + $0x40] sm:$0xff] %v3815_v19 }
 0x585   :  { %4430 = vmatmul.msk.f32.gmra.mxu0 %vm3947_vm15, %v3936_v58 }
 0x58a   :  { %4415 = vmatmul.msk.f32.gmra.mxu1 %vm3947_vm15, %v3936_v58  ;;  %v3818_v29 = vpop.f32.mrf.mxu2 }
 0x58b   :  { %3914 = vst [vmem:[#allocation11 + $0x50] sm:$0xff] %v3818_v29 }
 0x58d   :  { %4431 = vmatmul.msk.f32.gmra.mxu0 %vm3947_vm15, %v3937_v27 }
 0x592   :  { %4416 = vmatmul.msk.f32.gmra.mxu1 %vm3947_vm15, %v3937_v27  ;;  %v3821_v10 = vpop.f32.mrf.mxu2 }
 0x593   :  { %3916 = vst [vmem:[#allocation11 + $0x60] sm:$0xff] %v3821_v10 }
 0x595   :  { %4432 = vmatmul.msk.f32.gmra.mxu0 %vm3947_vm15, %v3938_v39 }
 0x59a   :  { %4417 = vmatmul.msk.f32.gmra.mxu1 %vm3947_vm15, %v3938_v39  ;;  %v3824_v7 = vpop.f32.mrf.mxu2 }
 0x59b   :  { %3918 = vst [vmem:[#allocation11 + $0x70] sm:$0xff] %v3824_v7 }
 0x59d   :  { %4433 = vmatmul.msk.f32.gmra.mxu0 %vm3947_vm15, %v3939_v5 }
 0x5a2   :  { %4418 = vmatmul.msk.f32.gmra.mxu1 %vm3947_vm15, %v3939_v5 }
 0x5a3   :  { %v3827_v31 = vpop.f32.mrf.mxu2  ;;  %v3886_v2 = vpop.f32.mrf.mxu3 }
 0x5a4   :  { %3920 = vst [vmem:[#allocation11 + $0x80] sm:$0xff] %v3827_v31 }
 0x5a5   :  { %4434 = vmatmul.msk.f32.gmra.mxu0 %vm3947_vm15, %v3940_v3  ;;  %3921 = vst.msk [vmem:[#allocation11 + $0x88] sm:$0xff] %vm713_vm3, %v3886_v2 }
 0x5aa   :  { %4419 = vmatmul.msk.f32.gmra.mxu1 %vm3947_vm15, %v3940_v3 }
 0x5ab   :  { %v3830_v4 = vpop.f32.mrf.mxu2  ;;  %v3889_v41 = vpop.f32.mrf.mxu3 }
 0x5ac   :  { %3922 = vst [vmem:[#allocation11 + $0x90] sm:$0xff] %v3830_v4 }
 0x5ad   :  { %4435 = vmatmul.msk.f32.gmra.mxu0 %vm3947_vm15, %v3941_v50  ;;  %3923 = vst.msk [vmem:[#allocation11 + $0x98] sm:$0xff] %vm713_vm3, %v3889_v41 }
 0x5b2   :  { %4420 = vmatmul.msk.f32.gmra.mxu1 %vm3947_vm15, %v3941_v50 }
 0x5b3   :  { %v3833_v45 = vpop.f32.mrf.mxu2  ;;  %v3892_v1 = vpop.f32.mrf.mxu3 }
 0x5b4   :  { %3924 = vst [vmem:[#allocation11 + $0xa0] sm:$0xff] %v3833_v45 }
 0x5b5   :  { %4436 = vmatmul.msk.f32.gmra.mxu0 %vm3947_vm15, %v3942_v21  ;;  %3925 = vst.msk [vmem:[#allocation11 + $0xa8] sm:$0xff] %vm713_vm3, %v3892_v1 }
 0x5ba   :  { %4421 = vmatmul.msk.f32.gmra.mxu1 %vm3947_vm15, %v3942_v21 }
 0x5bb   :  { %v3836_v47 = vpop.f32.mrf.mxu2  ;;  %v3895_v6 = vpop.f32.mrf.mxu3 }
 0x5bc   :  { %3926 = vst [vmem:[#allocation11 + $0xb0] sm:$0xff] %v3836_v47 }
 0x5bd   :  { %4437 = vmatmul.msk.f32.gmra.mxu0 %vm3947_vm15, %v3943_v63  ;;  %3927 = vst.msk [vmem:[#allocation11 + $0xb8] sm:$0xff] %vm713_vm3, %v3895_v6 }
 0x5c2   :  { %4422 = vmatmul.msk.f32.gmra.mxu1 %vm3947_vm15, %v3943_v63 }
 0x5c3   :  { %v3839_v14 = vpop.f32.mrf.mxu2  ;;  %v3898_v57 = vpop.f32.mrf.mxu3 }
 0x5c4   :  { %3928 = vst [vmem:[#allocation11 + $0xc0] sm:$0xff] %v3839_v14 }
 0x5c5   :  { %4438 = vmatmul.msk.f32.gmra.mxu0 %vm3947_vm15, %v3944_v49  ;;  %3929 = vst.msk [vmem:[#allocation11 + $0xc8] sm:$0xff] %vm713_vm3, %v3898_v57 }
 0x5ca   :  { %4423 = vmatmul.msk.f32.gmra.mxu1 %vm3947_vm15, %v3944_v49 }
 0x5cb   :  { %v3842_v20 = vpop.f32.mrf.mxu2  ;;  %v3901_v42 = vpop.f32.mrf.mxu3 }
 0x5cc   :  { %3930 = vst [vmem:[#allocation11 + $0xd0] sm:$0xf] %v3842_v20 }
 0x5cd   :  { %4439 = vmatmul.msk.f32.gmra.mxu0 %vm3947_vm15, %v3945_v11  ;;  %3932 = vst.msk [vmem:[#allocation11 + $0xd8] sm:$0xf] %vm3931_vm0, %v3901_v42 }
 0x5ce   :  { %4154 = dma.vmem_to_hbm [thread:$0]  %s4147_s25, 3584, %s4149_s29, [#allocation4], %s5257_s27, %s5257_s27, %s5258_s28  }
 0x5d2   :  { %4424 = vmatmul.msk.f32.gmra.mxu1 %vm3947_vm15, %v3945_v11 }
 0x5ea   :  { %v4072_v23 = vpop.f32.mrf.mxu0 }
 0x5eb   :  { %4115 = vst.msk [vmem:[#allocation12 + $0x8] sm:$0xff] %vm713_vm3, %v4072_v23 }
 0x5ef   :  { %v4013_v0 = vpop.f32.mrf.mxu1 }
 0x5f0   :  { %4114 = vst [vmem:[#allocation12] sm:$0xff] %v4013_v0  ;;  %v4111_v15 = vpop.f32.mrf.mxu2 }
 0x5f1   :  { %4141 = vst.msk [vmem:[#allocation12 + $0xd8] sm:$0xf] %vm3931_vm0, %v4111_v15 }
 0x5f2   :  { %v4075_v16 = vpop.f32.mrf.mxu0 }
 0x5f3   :  { %4117 = vst.msk [vmem:[#allocation12 + $0x18] sm:$0xff] %vm713_vm3, %v4075_v16 }
 0x5f5   :  { %v4052_v24 = vpop.f32.mrf.mxu3 }
 0x5f6   :  { %4140 = vst [vmem:[#allocation12 + $0xd0] sm:$0xf] %v4052_v24 }
 0x5f7   :  { %v4016_v44 = vpop.f32.mrf.mxu1 }
 0x5f8   :  { %4116 = vst [vmem:[#allocation12 + $0x10] sm:$0xff] %v4016_v44 }
 0x5fa   :  { %v4078_v40 = vpop.f32.mrf.mxu0 }
 0x5fb   :  { %4119 = vst.msk [vmem:[#allocation12 + $0x28] sm:$0xff] %vm713_vm3, %v4078_v40 }
 0x5ff   :  { %v4019_v22 = vpop.f32.mrf.mxu1 }
 0x600   :  { %4118 = vst [vmem:[#allocation12 + $0x20] sm:$0xff] %v4019_v22 }
 0x602   :  { %v4081_v62 = vpop.f32.mrf.mxu0 }
 0x603   :  { %4121 = vst.msk [vmem:[#allocation12 + $0x38] sm:$0xff] %vm713_vm3, %v4081_v62 }
 0x607   :  { %v4022_v26 = vpop.f32.mrf.mxu1 }
 0x608   :  { %4120 = vst [vmem:[#allocation12 + $0x30] sm:$0xff] %v4022_v26 }
 0x60a   :  { %v4084_v33 = vpop.f32.mrf.mxu0 }
 0x60b   :  { %4123 = vst.msk [vmem:[#allocation12 + $0x48] sm:$0xff] %vm713_vm3, %v4084_v33 }
 0x60f   :  { %v4025_v53 = vpop.f32.mrf.mxu1 }
 0x610   :  { %4122 = vst [vmem:[#allocation12 + $0x40] sm:$0xff] %v4025_v53 }
 0x612   :  { %v4087_v17 = vpop.f32.mrf.mxu0 }
 0x613   :  { %4125 = vst.msk [vmem:[#allocation12 + $0x58] sm:$0xff] %vm713_vm3, %v4087_v17 }
 0x617   :  { %v4028_v55 = vpop.f32.mrf.mxu1 }
 0x618   :  { %4124 = vst [vmem:[#allocation12 + $0x50] sm:$0xff] %v4028_v55 }
 0x61a   :  { %v4090_v25 = vpop.f32.mrf.mxu0 }
 0x61b   :  { %4127 = vst.msk [vmem:[#allocation12 + $0x68] sm:$0xff] %vm713_vm3, %v4090_v25 }
 0x61f   :  { %v4031_v61 = vpop.f32.mrf.mxu1 }
 0x620   :  { %4126 = vst [vmem:[#allocation12 + $0x60] sm:$0xff] %v4031_v61 }
 0x622   :  { %v4093_v46 = vpop.f32.mrf.mxu0 }
 0x623   :  { %4129 = vst.msk [vmem:[#allocation12 + $0x78] sm:$0xff] %vm713_vm3, %v4093_v46 }
 0x627   :  { %v4034_v51 = vpop.f32.mrf.mxu1 }
 0x628   :  { %4128 = vst [vmem:[#allocation12 + $0x70] sm:$0xff] %v4034_v51 }
 0x62a   :  { %v4096_v52 = vpop.f32.mrf.mxu0 }
 0x62b   :  { %4131 = vst.msk [vmem:[#allocation12 + $0x88] sm:$0xff] %vm713_vm3, %v4096_v52 }
 0x62f   :  { %v4037_v8 = vpop.f32.mrf.mxu1 }
 0x630   :  { %4130 = vst [vmem:[#allocation12 + $0x80] sm:$0xff] %v4037_v8 }
 0x632   :  { %v4099_v58 = vpop.f32.mrf.mxu0 }
 0x633   :  { %4133 = vst.msk [vmem:[#allocation12 + $0x98] sm:$0xff] %vm713_vm3, %v4099_v58 }
 0x637   :  { %v4040_v48 = vpop.f32.mrf.mxu1 }
 0x638   :  { %4132 = vst [vmem:[#allocation12 + $0x90] sm:$0xff] %v4040_v48 }
 0x63a   :  { %v4102_v27 = vpop.f32.mrf.mxu0 }
 0x63b   :  { %4135 = vst.msk [vmem:[#allocation12 + $0xa8] sm:$0xff] %vm713_vm3, %v4102_v27 }
 0x63f   :  { %v4043_v9 = vpop.f32.mrf.mxu1 }
 0x640   :  { %4134 = vst [vmem:[#allocation12 + $0xa0] sm:$0xff] %v4043_v9 }
 0x642   :  { %v4105_v39 = vpop.f32.mrf.mxu0 }
 0x643   :  { %4137 = vst.msk [vmem:[#allocation12 + $0xb8] sm:$0xff] %vm713_vm3, %v4105_v39 }
 0x647   :  { %v4046_v54 = vpop.f32.mrf.mxu1 }
 0x648   :  { %4136 = vst [vmem:[#allocation12 + $0xb0] sm:$0xff] %v4046_v54 }
 0x64a   :  { %v4108_v5 = vpop.f32.mrf.mxu0 }
 0x64b   :  { %4139 = vst.msk [vmem:[#allocation12 + $0xc8] sm:$0xff] %vm713_vm3, %v4108_v5 }
 0x64f   :  { %v4049_v60 = vpop.f32.mrf.mxu1 }
 0x650   :  { %4138 = vst [vmem:[#allocation12 + $0xc0] sm:$0xff] %v4049_v60 }
 0x651   :  { %4167 = dma.vmem_to_hbm [thread:$0]  %s4160_s30, 3584, %s4162_s11, [#allocation13], %s5257_s27, %s5257_s27, %s5258_s28  }
 0x652   :  { %5248 = dma.done.wait [#allocation4], 3584  }
 0x653   :  { %5249 = vsyncadd [#allocation4], 4294963712 }
 0x654   :  { %5250 = dma.done.wait [#allocation13], 3584  }
 0x655   :  { %5251 = vsyncadd [#allocation13], 4294963712 }
 0x656   :  { %4176 = vsyncpa [#allocation3], 1 }
 0x657   :  { %4177 = vsyncpa [#allocation6], 1 }
 0x658   :  { %4178 = vsyncpa [#allocation9], 1 }
 0x659   :  { %4179 = vsyncpa [#allocation4], 1 }
 0x65a   :  { %4180 = vsyncpa [#allocation13], 1 }

</bundles_post_ra>
